<compile_context>
chip_gen: v7x
topology: tpu7x:2x2x1
jax: 0.10.0
libtpu: 0.0.40
codegen_flags: <defaults>
</compile_context>

<pallas_src>
import functools

import jax
import jax.numpy as jnp
from jax.experimental import pallas as pl
from jax.experimental.pallas import tpu as pltpu


def _round_up(x, m):
    return (x + m - 1) // m * m


# ----------------------------------------------------------------------------
# Pallas kernel 1: tiled matmul with fused bias (+ optional ReLU) epilogue.
#   out = relu?( A @ B + bias )   A: bf16 (M,K)   B: bf16 (K,N)   bias: f32 (1,N)
# ----------------------------------------------------------------------------
@functools.lru_cache(maxsize=None)
def _make_fused_matmul_kernel(relu):
    def kernel(a_ref, b_ref, bias_ref, o_ref, acc_ref):
        @pl.when(pl.program_id(2) == 0)
        def _():
            acc_ref[...] = jnp.zeros_like(acc_ref)

        acc_ref[...] += jnp.dot(a_ref[...], b_ref[...],
                                preferred_element_type=jnp.float32)

        @pl.when(pl.program_id(2) == pl.num_programs(2) - 1)
        def _():
            out = acc_ref[...] + bias_ref[...]
            if relu:
                out = jnp.maximum(out, 0.0)
            o_ref[...] = out.astype(o_ref.dtype)

    return kernel


def _tile_m(m):
    mp = _round_up(m, 8)
    if mp <= 256:
        return mp, mp            # single M tile, no pad-to-128 waste for tiny M
    return _round_up(m, 256), 256


def fused_matmul(a, wp, *, relu, out_dtype=jnp.bfloat16):
    """a: (M, K) activations; wp: prepared {'w': bf16 (Kp, N), 'b': f32 (1, N)}."""
    M, K = a.shape
    Kp, N = wp["w"].shape
    Mp, TM = _tile_m(M)
    TN = N if N % 128 != 0 else (256 if N % 256 == 0 else 128)
    TK = 512 if Kp % 512 == 0 else (256 if Kp % 256 == 0 else 128)
    a_p = jnp.pad(a.astype(jnp.bfloat16), ((0, Mp - M), (0, Kp - K)))
    out = pl.pallas_call(
        _make_fused_matmul_kernel(relu),
        out_shape=jax.ShapeDtypeStruct((Mp, N), out_dtype),
        grid_spec=pltpu.PrefetchScalarGridSpec(
            num_scalar_prefetch=0,
            grid=(Mp // TM, N // TN, Kp // TK),
            in_specs=[
                pl.BlockSpec((TM, TK), lambda i, j, k: (i, k)),
                pl.BlockSpec((TK, TN), lambda i, j, k: (k, j)),
                pl.BlockSpec((1, TN), lambda i, j, k: (0, j)),
            ],
            out_specs=pl.BlockSpec((TM, TN), lambda i, j, k: (i, j)),
            scratch_shapes=[pltpu.VMEM((TM, TN), jnp.float32)],
        ),
        compiler_params=pltpu.CompilerParams(
            dimension_semantics=("parallel", "parallel", "arbitrary")),
    )(a_p, wp["w"], wp["b"])
    return out[:M]


# ----------------------------------------------------------------------------
# Pallas kernel 2: fused  fc(512->D) + |e1-e2| + Linear(D,1) + sigmoid  head.
# ----------------------------------------------------------------------------
@functools.lru_cache(maxsize=None)
def _make_fc_head_kernel(batch):
    def kernel(a_ref, w_ref, b_ref, hw_ref, hb_ref, o_ref):
        emb = jnp.dot(a_ref[...], w_ref[...],
                      preferred_element_type=jnp.float32) + b_ref[...]
        d = jnp.abs(emb[0:batch, :] - emb[batch:2 * batch, :])      # L1 distance
        logits = jnp.sum(d * hw_ref[...], axis=-1, keepdims=True) + hb_ref[...]
        o_ref[...] = 1.0 / (1.0 + jnp.exp(-logits))                 # sigmoid

    return kernel


def fc_head(pooled, fcp, headp, batch):
    # pooled: (2*batch, 512) f32  ->  (batch,) probabilities
    M, K = pooled.shape
    Kw, N = fcp["w"].shape
    assert K == Kw
    Mp = _round_up(M, 8)
    a_p = jnp.pad(pooled.astype(jnp.bfloat16), ((0, Mp - M), (0, 0)))
    out = pl.pallas_call(
        _make_fc_head_kernel(batch),
        out_shape=jax.ShapeDtypeStruct((batch, 1), jnp.float32),
        grid=(1,),
        in_specs=[
            pl.BlockSpec((Mp, K), lambda i: (0, 0)),
            pl.BlockSpec((K, N), lambda i: (0, 0)),
            pl.BlockSpec((1, N), lambda i: (0, 0)),
            pl.BlockSpec((1, N), lambda i: (0, 0)),
            pl.BlockSpec((1, 1), lambda i: (0, 0)),
        ],
        out_specs=pl.BlockSpec((batch, 1), lambda i: (0, 0)),
    )(a_p, fcp["w"], fcp["b"], headp["w"], headp["b"])
    return out.reshape(-1)


# ----------------------------------------------------------------------------
# ResNet18 trunk (all convs routed through the fused Pallas matmul kernel)
# ----------------------------------------------------------------------------
def _im2col(x, kh, kw, stride, padding):
    # x: (N, H, W, C) bf16 -> patches (N*Ho*Wo, kh*kw*C) bf16
    if padding:
        x = jnp.pad(x, ((0, 0), (padding, padding), (padding, padding), (0, 0)))
    n, hp, wp_, c = x.shape
    ho = (hp - kh) // stride + 1
    wo = (wp_ - kw) // stride + 1
    cols = []
    for i in range(kh):
        for j in range(kw):
            cols.append(x[:, i:i + stride * (ho - 1) + 1:stride,
                           j:j + stride * (wo - 1) + 1:stride, :])
    patches = jnp.stack(cols, axis=3)          # (N, Ho, Wo, kh*kw, C)
    return patches.reshape(n * ho * wo, kh * kw * c), ho, wo


def conv_bn(x, wp, kh, kw, stride, padding, relu):
    # x: NHWC bf16; wp: BN-folded, K-padded bf16 weight matrix + f32 bias.
    # TODO(synk): the im2col gather is still materialized by XLA (in bf16);
    # folding the patch gather into the matmul index_map is not implemented.
    n = x.shape[0]
    a, ho, wo = _im2col(x, kh, kw, stride, padding)
    out = fused_matmul(a, wp, relu=relu, out_dtype=jnp.bfloat16)
    return out.reshape(n, ho, wo, out.shape[-1])


def maxpool_3x3_s2_p1(x):
    return jax.lax.reduce_window(
        x, jnp.array(-jnp.inf, x.dtype), jax.lax.max,
        window_dimensions=(1, 3, 3, 1), window_strides=(1, 2, 2, 1),
        padding=((0, 0), (1, 1), (1, 1), (0, 0)))


def basic_block(x, bp, stride):
    identity = x
    out = conv_bn(x, bp["conv1"], 3, 3, stride, 1, relu=True)    # conv+BN+ReLU fused
    out = conv_bn(out, bp["conv2"], 3, 3, 1, 1, relu=False)      # conv+BN fused
    if "down" in bp:
        identity = conv_bn(x, bp["down"], 1, 1, stride, 0, relu=False)
    return jax.nn.relu(out + identity)


def resnet18_trunk(x, ep):
    # x: NHWC bf16 (both Siamese branches stacked along batch)
    x = conv_bn(x, ep["stem"], 7, 7, 2, 3, relu=True)
    x = maxpool_3x3_s2_p1(x)
    for li, stride in zip((1, 2, 3, 4), (1, 2, 2, 2)):
        b0, b1 = ep[f"layer{li}"]
        x = basic_block(x, b0, stride)
        x = basic_block(x, b1, 1)
    return x.astype(jnp.float32).mean(axis=(1, 2))   # AdaptiveAvgPool2d((1, 1))


def siamese_forward(params, x1, x2):
    # Weights are shared: one embedding pass over the concatenated batch.
    b = x1.shape[0]
    x = jnp.concatenate([x1, x2], axis=0)
    x = jnp.transpose(x, (0, 2, 3, 1)).astype(jnp.bfloat16)      # NCHW -> NHWC bf16
    pooled = resnet18_trunk(x, params["embed"])
    return fc_head(pooled, params["embed"]["fc"], params["head"], b)


# ----------------------------------------------------------------------------
# Parameter preparation: fold BN, transpose / K-pad / bf16-cast weights ONCE.
# ----------------------------------------------------------------------------
def _prep_conv(conv_w, bn, eps=1e-5):
    cout, cin, kh, kw = conv_w.shape
    s = bn["gamma"] / jnp.sqrt(bn["var"] + eps)
    w = conv_w * s[:, None, None, None]                      # fold BN scale
    b = bn["beta"] - bn["mean"] * s                          # folded BN bias
    w_mat = jnp.transpose(w, (2, 3, 1, 0)).reshape(kh * kw * cin, cout)
    k = kh * kw * cin
    kp = _round_up(k, 128)
    return {"w": jnp.pad(w_mat, ((0, kp - k), (0, 0))).astype(jnp.bfloat16),
            "b": b.reshape(1, cout).astype(jnp.float32)}


def _prep_linear(w, b):
    return {"w": w.astype(jnp.bfloat16),
            "b": b.reshape(1, -1).astype(jnp.float32)}


def prepare_inference_params(raw, eps=1e-5):
    e = raw["embed"]

    def prep_block(bp):
        out = {"conv1": _prep_conv(bp["conv1"], bp["bn1"], eps),
               "conv2": _prep_conv(bp["conv2"], bp["bn2"], eps)}
        if "down_conv" in bp:
            out["down"] = _prep_conv(bp["down_conv"], bp["down_bn"], eps)
        return out

    embed = {"stem": _prep_conv(e["conv1"], e["bn1"], eps),
             "fc": _prep_linear(e["fc_w"], e["fc_b"])}
    for li in (1, 2, 3, 4):
        embed[f"layer{li}"] = [prep_block(bp) for bp in e[f"layer{li}"]]
    head = {"w": raw["head_w"].astype(jnp.float32),
            "b": raw["head_b"].astype(jnp.float32)}
    return {"embed": embed, "head": head}


# ----------------------------------------------------------------------------
# Deterministic parameter initialization (synthetic weights, no checkpoint)
# ----------------------------------------------------------------------------
def init_params(key, num_dims=256):
    keys = iter(jax.random.split(key, 256))
    nxt = lambda: next(keys)

    def conv_w(cout, cin, kh, kw):
        fan_in = cin * kh * kw
        return jax.random.normal(nxt(), (cout, cin, kh, kw), jnp.float32) / jnp.sqrt(fan_in)

    def bn(c):
        return {
            "gamma": 1.0 + 0.1 * jax.random.normal(nxt(), (c,), jnp.float32),
            "beta": 0.1 * jax.random.normal(nxt(), (c,), jnp.float32),
            "mean": 0.1 * jax.random.normal(nxt(), (c,), jnp.float32),
            "var": 1.0 + 0.1 * jax.random.uniform(nxt(), (c,), jnp.float32),
        }

    def block(cin, cout, downsample):
        p = {"conv1": conv_w(cout, cin, 3, 3), "bn1": bn(cout),
             "conv2": conv_w(cout, cout, 3, 3), "bn2": bn(cout)}
        if downsample:
            p["down_conv"] = conv_w(cout, cin, 1, 1)
            p["down_bn"] = bn(cout)
        return p

    embed = {
        "conv1": conv_w(64, 3, 7, 7),
        "bn1": bn(64),
        "layer1": [block(64, 64, False), block(64, 64, False)],
        "layer2": [block(64, 128, True), block(128, 128, False)],
        "layer3": [block(128, 256, True), block(256, 256, False)],
        "layer4": [block(256, 512, True), block(512, 512, False)],
        "fc_w": jax.random.normal(nxt(), (512, num_dims), jnp.float32) / jnp.sqrt(512.0),
        "fc_b": 0.01 * jax.random.normal(nxt(), (num_dims,), jnp.float32),
    }
    head_w = jax.random.normal(nxt(), (1, num_dims), jnp.float32) / jnp.sqrt(float(num_dims))
    head_b = 0.01 * jax.random.normal(nxt(), (1, 1), jnp.float32)
    return {"embed": embed, "head_w": head_w, "head_b": head_b}


if __name__ == "__main__":
    key = jax.random.PRNGKey(0)
    pkey, k1, k2 = jax.random.split(key, 3)
    raw_params = init_params(pkey, num_dims=256)
    params = prepare_inference_params(raw_params)   # one-time: BN fold, pad, bf16

    B, C, H, W = 2, 3, 32, 32
    x1 = jax.random.normal(k1, (B, C, H, W), jnp.float32)
    x2 = jax.random.normal(k2, (B, C, H, W), jnp.float32)

    fwd = jax.jit(siamese_forward)
    y = fwd(params, x1, x2)
    jax.block_until_ready(y)

    assert y.shape == (B,)
    assert bool(jnp.all((y > 0.0) & (y < 1.0)))
    print("KERNEL_OK")
</pallas_src>

<mosaic_0001>
module attributes {stable_mosaic.version = 11 : i64} {
  func.func @kernel(%arg0: i32, %arg1: i32, %arg2: i32, %arg3: memref<256x256xbf16, #tpu.memory_space<vmem>>, %arg4: memref<256x64xbf16, #tpu.memory_space<vmem>>, %arg5: memref<1x64xf32, #tpu.memory_space<vmem>>, %arg6: memref<256x64xbf16, #tpu.memory_space<vmem>>, %arg7: memref<256x64xf32, #tpu.memory_space<vmem>>) attributes {dimension_semantics = [#tpu.dimension_semantics<parallel>, #tpu.dimension_semantics<parallel>, #tpu.dimension_semantics<arbitrary>], iteration_bounds = array<i64: 4, 1, 1>, scalar_prefetch = 0 : i64, scratch_operands = 1 : i64, tpu.core_type = #tpu.core_type<tc>, window_params = [{transform_indices = @transform_0, window_bounds = array<i64: 256, 256>}, {transform_indices = @transform_1, window_bounds = array<i64: 256, 64>}, {transform_indices = @transform_2, window_bounds = array<i64: 1, 64>}, {transform_indices = @transform_3, window_bounds = array<i64: 256, 64>}]} {
    %c0_i32 = arith.constant 0 : i32
    %0 = arith.cmpi eq, %arg2, %c0_i32 : i32
    %1 = arith.extui %0 : i1 to i32
    %c0_i32_0 = arith.constant 0 : i32
    %2 = arith.cmpi ne, %1, %c0_i32_0 : i32
    scf.if %2 {
      %cst_10 = arith.constant 0.000000e+00 : f32
      %12 = vector.broadcast %cst_10 : f32 to vector<256x64xf32>
      %c0_11 = arith.constant 0 : index
      %c0_12 = arith.constant 0 : index
      %13 = vector.load %arg7[%c0_11, %c0_12] : memref<256x64xf32, #tpu.memory_space<vmem>>, vector<256x64xf32>
      tpu.vector_store %arg7[%c0_11, %c0_12], %12 {strides = array<i32>} : memref<256x64xf32, #tpu.memory_space<vmem>>, vector<256x64xf32>,
    } else {
    }
    %c0 = arith.constant 0 : index
    %c0_1 = arith.constant 0 : index
    %3 = vector.load %arg7[%c0, %c0_1] : memref<256x64xf32, #tpu.memory_space<vmem>>, vector<256x64xf32>
    %c0_2 = arith.constant 0 : index
    %c0_3 = arith.constant 0 : index
    %4 = vector.load %arg3[%c0_2, %c0_3] : memref<256x256xbf16, #tpu.memory_space<vmem>>, vector<256x256xbf16>
    %c0_4 = arith.constant 0 : index
    %c0_5 = arith.constant 0 : index
    %5 = vector.load %arg4[%c0_4, %c0_5] : memref<256x64xbf16, #tpu.memory_space<vmem>>, vector<256x64xbf16>
    %cst = arith.constant dense<0.000000e+00> : vector<256x64xf32>
    %6 = tpu.matmul %4, %5, %cst {dimension_numbers = #tpu.dot_dimension_numbers<[1], [0], [0], [1], [0, 0, 1, 1], [], []>} : vector<256x256xbf16>, vector<256x64xbf16>, vector<256x64xf32> -> vector<256x64xf32>
    %7 = arith.addf %3, %6 : vector<256x64xf32>
    %c0_6 = arith.constant 0 : index
    %c0_7 = arith.constant 0 : index
    %8 = vector.load %arg7[%c0_6, %c0_7] : memref<256x64xf32, #tpu.memory_space<vmem>>, vector<256x64xf32>
    tpu.vector_store %arg7[%c0_6, %c0_7], %7 {strides = array<i32>} : memref<256x64xf32, #tpu.memory_space<vmem>>, vector<256x64xf32>,
    %c0_i32_8 = arith.constant 0 : i32
    %9 = arith.cmpi eq, %arg2, %c0_i32_8 : i32
    %10 = arith.extui %9 : i1 to i32
    %c0_i32_9 = arith.constant 0 : i32
    %11 = arith.cmpi ne, %10, %c0_i32_9 : i32
    scf.if %11 {
      %c0_10 = arith.constant 0 : index
      %c0_11 = arith.constant 0 : index
      %12 = vector.load %arg7[%c0_10, %c0_11] : memref<256x64xf32, #tpu.memory_space<vmem>>, vector<256x64xf32>
      %c0_12 = arith.constant 0 : index
      %c0_13 = arith.constant 0 : index
      %13 = vector.load %arg5[%c0_12, %c0_13] : memref<1x64xf32, #tpu.memory_space<vmem>>, vector<1x64xf32>
      %14 = vector.broadcast %13 : vector<1x64xf32> to vector<256x64xf32>
      %15 = arith.addf %12, %14 : vector<256x64xf32>
      %cst_14 = arith.constant 0.000000e+00 : f32
      %16 = vector.broadcast %cst_14 : f32 to vector<256x64xf32>
      %17 = arith.maximumf %15, %16 : vector<256x64xf32>
      %18 = arith.truncf %17 : vector<256x64xf32> to vector<256x64xbf16>
      %c0_15 = arith.constant 0 : index
      %c0_16 = arith.constant 0 : index
      %19 = vector.load %arg6[%c0_15, %c0_16] : memref<256x64xbf16, #tpu.memory_space<vmem>>, vector<256x64xbf16>
      tpu.vector_store %arg6[%c0_15, %c0_16], %18 {strides = array<i32>} : memref<256x64xbf16, #tpu.memory_space<vmem>>, vector<256x64xbf16>,
    } else {
    }
    return
  }
  func.func @transform_0(%arg0: i32, %arg1: i32, %arg2: i32) -> (i32, i32) {
    %c0_i32 = arith.constant 0 : i32
    return %arg0, %arg2 : i32, i32
  }
  func.func @transform_1(%arg0: i32, %arg1: i32, %arg2: i32) -> (i32, i32) {
    %c0_i32 = arith.constant 0 : i32
    return %arg2, %arg1 : i32, i32
  }
  func.func @transform_2(%arg0: i32, %arg1: i32, %arg2: i32) -> (i32, i32) {
    %c0_i32 = arith.constant 0 : i32
    %c0_i32_0 = arith.constant 0 : i32
    return %c0_i32, %arg1 : i32, i32
  }
  func.func @transform_3(%arg0: i32, %arg1: i32, %arg2: i32) -> (i32, i32) {
    %c0_i32 = arith.constant 0 : i32
    return %arg0, %arg1 : i32, i32
  }
}

module attributes {stable_mosaic.version = 11 : i64} {
  func.func @kernel(%arg0: i32, %arg1: i32, %arg2: i32, %arg3: memref<256x128xbf16, #tpu.memory_space<vmem>>, %arg4: memref<128x64xbf16, #tpu.memory_space<vmem>>, %arg5: memref<1x64xf32, #tpu.memory_space<vmem>>, %arg6: memref<256x64xbf16, #tpu.memory_space<vmem>>, %arg7: memref<256x64xf32, #tpu.memory_space<vmem>>) attributes {dimension_semantics = [#tpu.dimension_semantics<parallel>, #tpu.dimension_semantics<parallel>, #tpu.dimension_semantics<arbitrary>], iteration_bounds = array<i64: 1, 1, 5>, scalar_prefetch = 0 : i64, scratch_operands = 1 : i64, tpu.core_type = #tpu.core_type<tc>, window_params = [{transform_indices = @transform_0, window_bounds = array<i64: 256, 128>}, {transform_indices = @transform_1, window_bounds = array<i64: 128, 64>}, {transform_indices = @transform_2, window_bounds = array<i64: 1, 64>}, {transform_indices = @transform_3, window_bounds = array<i64: 256, 64>}]} {
    %c0_i32 = arith.constant 0 : i32
    %0 = arith.cmpi eq, %arg2, %c0_i32 : i32
    %1 = arith.extui %0 : i1 to i32
    %c0_i32_0 = arith.constant 0 : i32
    %2 = arith.cmpi ne, %1, %c0_i32_0 : i32
    scf.if %2 {
      %cst_9 = arith.constant 0.000000e+00 : f32
      %12 = vector.broadcast %cst_9 : f32 to vector<256x64xf32>
      %c0_10 = arith.constant 0 : index
      %c0_11 = arith.constant 0 : index
      %13 = vector.load %arg7[%c0_10, %c0_11] : memref<256x64xf32, #tpu.memory_space<vmem>>, vector<256x64xf32>
      tpu.vector_store %arg7[%c0_10, %c0_11], %12 {strides = array<i32>} : memref<256x64xf32, #tpu.memory_space<vmem>>, vector<256x64xf32>,
    } else {
    }
    %c0 = arith.constant 0 : index
    %c0_1 = arith.constant 0 : index
    %3 = vector.load %arg7[%c0, %c0_1] : memref<256x64xf32, #tpu.memory_space<vmem>>, vector<256x64xf32>
    %c0_2 = arith.constant 0 : index
    %c0_3 = arith.constant 0 : index
    %4 = vector.load %arg3[%c0_2, %c0_3] : memref<256x128xbf16, #tpu.memory_space<vmem>>, vector<256x128xbf16>
    %c0_4 = arith.constant 0 : index
    %c0_5 = arith.constant 0 : index
    %5 = vector.load %arg4[%c0_4, %c0_5] : memref<128x64xbf16, #tpu.memory_space<vmem>>, vector<128x64xbf16>
    %cst = arith.constant dense<0.000000e+00> : vector<256x64xf32>
    %6 = tpu.matmul %4, %5, %cst {dimension_numbers = #tpu.dot_dimension_numbers<[1], [0], [0], [1], [0, 0, 1, 1], [], []>} : vector<256x128xbf16>, vector<128x64xbf16>, vector<256x64xf32> -> vector<256x64xf32>
    %7 = arith.addf %3, %6 : vector<256x64xf32>
    %c0_6 = arith.constant 0 : index
    %c0_7 = arith.constant 0 : index
    %8 = vector.load %arg7[%c0_6, %c0_7] : memref<256x64xf32, #tpu.memory_space<vmem>>, vector<256x64xf32>
    tpu.vector_store %arg7[%c0_6, %c0_7], %7 {strides = array<i32>} : memref<256x64xf32, #tpu.memory_space<vmem>>, vector<256x64xf32>,
    %c4_i32 = arith.constant 4 : i32
    %9 = arith.cmpi eq, %arg2, %c4_i32 : i32
    %10 = arith.extui %9 : i1 to i32
    %c0_i32_8 = arith.constant 0 : i32
    %11 = arith.cmpi ne, %10, %c0_i32_8 : i32
    scf.if %11 {
      %c0_9 = arith.constant 0 : index
      %c0_10 = arith.constant 0 : index
      %12 = vector.load %arg7[%c0_9, %c0_10] : memref<256x64xf32, #tpu.memory_space<vmem>>, vector<256x64xf32>
      %c0_11 = arith.constant 0 : index
      %c0_12 = arith.constant 0 : index
      %13 = vector.load %arg5[%c0_11, %c0_12] : memref<1x64xf32, #tpu.memory_space<vmem>>, vector<1x64xf32>
      %14 = vector.broadcast %13 : vector<1x64xf32> to vector<256x64xf32>
      %15 = arith.addf %12, %14 : vector<256x64xf32>
      %cst_13 = arith.constant 0.000000e+00 : f32
      %16 = vector.broadcast %cst_13 : f32 to vector<256x64xf32>
      %17 = arith.maximumf %15, %16 : vector<256x64xf32>
      %18 = arith.truncf %17 : vector<256x64xf32> to vector<256x64xbf16>
      %c0_14 = arith.constant 0 : index
      %c0_15 = arith.constant 0 : index
      %19 = vector.load %arg6[%c0_14, %c0_15] : memref<256x64xbf16, #tpu.memory_space<vmem>>, vector<256x64xbf16>
      tpu.vector_store %arg6[%c0_14, %c0_15], %18 {strides = array<i32>} : memref<256x64xbf16, #tpu.memory_space<vmem>>, vector<256x64xbf16>,
    } else {
    }
    return
  }
  func.func @transform_0(%arg0: i32, %arg1: i32, %arg2: i32) -> (i32, i32) {
    %c0_i32 = arith.constant 0 : i32
    return %arg0, %arg2 : i32, i32
  }
  func.func @transform_1(%arg0: i32, %arg1: i32, %arg2: i32) -> (i32, i32) {
    %c0_i32 = arith.constant 0 : i32
    return %arg2, %arg1 : i32, i32
  }
  func.func @transform_2(%arg0: i32, %arg1: i32, %arg2: i32) -> (i32, i32) {
    %c0_i32 = arith.constant 0 : i32
    %c0_i32_0 = arith.constant 0 : i32
    return %c0_i32, %arg1 : i32, i32
  }
  func.func @transform_3(%arg0: i32, %arg1: i32, %arg2: i32) -> (i32, i32) {
    %c0_i32 = arith.constant 0 : i32
    return %arg0, %arg1 : i32, i32
  }
}

module attributes {stable_mosaic.version = 11 : i64} {
  func.func @kernel(%arg0: i32, %arg1: i32, %arg2: i32, %arg3: memref<256x128xbf16, #tpu.memory_space<vmem>>, %arg4: memref<128x64xbf16, #tpu.memory_space<vmem>>, %arg5: memref<1x64xf32, #tpu.memory_space<vmem>>, %arg6: memref<256x64xbf16, #tpu.memory_space<vmem>>, %arg7: memref<256x64xf32, #tpu.memory_space<vmem>>) attributes {dimension_semantics = [#tpu.dimension_semantics<parallel>, #tpu.dimension_semantics<parallel>, #tpu.dimension_semantics<arbitrary>], iteration_bounds = array<i64: 1, 1, 5>, scalar_prefetch = 0 : i64, scratch_operands = 1 : i64, tpu.core_type = #tpu.core_type<tc>, window_params = [{transform_indices = @transform_0, window_bounds = array<i64: 256, 128>}, {transform_indices = @transform_1, window_bounds = array<i64: 128, 64>}, {transform_indices = @transform_2, window_bounds = array<i64: 1, 64>}, {transform_indices = @transform_3, window_bounds = array<i64: 256, 64>}]} {
    %c0_i32 = arith.constant 0 : i32
    %0 = arith.cmpi eq, %arg2, %c0_i32 : i32
    %1 = arith.extui %0 : i1 to i32
    %c0_i32_0 = arith.constant 0 : i32
    %2 = arith.cmpi ne, %1, %c0_i32_0 : i32
    scf.if %2 {
      %cst_9 = arith.constant 0.000000e+00 : f32
      %12 = vector.broadcast %cst_9 : f32 to vector<256x64xf32>
      %c0_10 = arith.constant 0 : index
      %c0_11 = arith.constant 0 : index
      %13 = vector.load %arg7[%c0_10, %c0_11] : memref<256x64xf32, #tpu.memory_space<vmem>>, vector<256x64xf32>
      tpu.vector_store %arg7[%c0_10, %c0_11], %12 {strides = array<i32>} : memref<256x64xf32, #tpu.memory_space<vmem>>, vector<256x64xf32>,
    } else {
    }
    %c0 = arith.constant 0 : index
    %c0_1 = arith.constant 0 : index
    %3 = vector.load %arg7[%c0, %c0_1] : memref<256x64xf32, #tpu.memory_space<vmem>>, vector<256x64xf32>
    %c0_2 = arith.constant 0 : index
    %c0_3 = arith.constant 0 : index
    %4 = vector.load %arg3[%c0_2, %c0_3] : memref<256x128xbf16, #tpu.memory_space<vmem>>, vector<256x128xbf16>
    %c0_4 = arith.constant 0 : index
    %c0_5 = arith.constant 0 : index
    %5 = vector.load %arg4[%c0_4, %c0_5] : memref<128x64xbf16, #tpu.memory_space<vmem>>, vector<128x64xbf16>
    %cst = arith.constant dense<0.000000e+00> : vector<256x64xf32>
    %6 = tpu.matmul %4, %5, %cst {dimension_numbers = #tpu.dot_dimension_numbers<[1], [0], [0], [1], [0, 0, 1, 1], [], []>} : vector<256x128xbf16>, vector<128x64xbf16>, vector<256x64xf32> -> vector<256x64xf32>
    %7 = arith.addf %3, %6 : vector<256x64xf32>
    %c0_6 = arith.constant 0 : index
    %c0_7 = arith.constant 0 : index
    %8 = vector.load %arg7[%c0_6, %c0_7] : memref<256x64xf32, #tpu.memory_space<vmem>>, vector<256x64xf32>
    tpu.vector_store %arg7[%c0_6, %c0_7], %7 {strides = array<i32>} : memref<256x64xf32, #tpu.memory_space<vmem>>, vector<256x64xf32>,
    %c4_i32 = arith.constant 4 : i32
    %9 = arith.cmpi eq, %arg2, %c4_i32 : i32
    %10 = arith.extui %9 : i1 to i32
    %c0_i32_8 = arith.constant 0 : i32
    %11 = arith.cmpi ne, %10, %c0_i32_8 : i32
    scf.if %11 {
      %c0_9 = arith.constant 0 : index
      %c0_10 = arith.constant 0 : index
      %12 = vector.load %arg7[%c0_9, %c0_10] : memref<256x64xf32, #tpu.memory_space<vmem>>, vector<256x64xf32>
      %c0_11 = arith.constant 0 : index
      %c0_12 = arith.constant 0 : index
      %13 = vector.load %arg5[%c0_11, %c0_12] : memref<1x64xf32, #tpu.memory_space<vmem>>, vector<1x64xf32>
      %14 = vector.broadcast %13 : vector<1x64xf32> to vector<256x64xf32>
      %15 = arith.addf %12, %14 : vector<256x64xf32>
      %16 = arith.truncf %15 : vector<256x64xf32> to vector<256x64xbf16>
      %c0_13 = arith.constant 0 : index
      %c0_14 = arith.constant 0 : index
      %17 = vector.load %arg6[%c0_13, %c0_14] : memref<256x64xbf16, #tpu.memory_space<vmem>>, vector<256x64xbf16>
      tpu.vector_store %arg6[%c0_13, %c0_14], %16 {strides = array<i32>} : memref<256x64xbf16, #tpu.memory_space<vmem>>, vector<256x64xbf16>,
    } else {
    }
    return
  }
  func.func @transform_0(%arg0: i32, %arg1: i32, %arg2: i32) -> (i32, i32) {
    %c0_i32 = arith.constant 0 : i32
    return %arg0, %arg2 : i32, i32
  }
  func.func @transform_1(%arg0: i32, %arg1: i32, %arg2: i32) -> (i32, i32) {
    %c0_i32 = arith.constant 0 : i32
    return %arg2, %arg1 : i32, i32
  }
  func.func @transform_2(%arg0: i32, %arg1: i32, %arg2: i32) -> (i32, i32) {
    %c0_i32 = arith.constant 0 : i32
    %c0_i32_0 = arith.constant 0 : i32
    return %c0_i32, %arg1 : i32, i32
  }
  func.func @transform_3(%arg0: i32, %arg1: i32, %arg2: i32) -> (i32, i32) {
    %c0_i32 = arith.constant 0 : i32
    return %arg0, %arg1 : i32, i32
  }
}

module attributes {stable_mosaic.version = 11 : i64} {
  func.func @kernel(%arg0: i32, %arg1: i32, %arg2: i32, %arg3: memref<64x128xbf16, #tpu.memory_space<vmem>>, %arg4: memref<128x128xbf16, #tpu.memory_space<vmem>>, %arg5: memref<1x128xf32, #tpu.memory_space<vmem>>, %arg6: memref<64x128xbf16, #tpu.memory_space<vmem>>, %arg7: memref<64x128xf32, #tpu.memory_space<vmem>>) attributes {dimension_semantics = [#tpu.dimension_semantics<parallel>, #tpu.dimension_semantics<parallel>, #tpu.dimension_semantics<arbitrary>], iteration_bounds = array<i64: 1, 1, 5>, scalar_prefetch = 0 : i64, scratch_operands = 1 : i64, tpu.core_type = #tpu.core_type<tc>, window_params = [{transform_indices = @transform_0, window_bounds = array<i64: 64, 128>}, {transform_indices = @transform_1, window_bounds = array<i64: 128, 128>}, {transform_indices = @transform_2, window_bounds = array<i64: 1, 128>}, {transform_indices = @transform_3, window_bounds = array<i64: 64, 128>}]} {
    %c0_i32 = arith.constant 0 : i32
    %0 = arith.cmpi eq, %arg2, %c0_i32 : i32
    %1 = arith.extui %0 : i1 to i32
    %c0_i32_0 = arith.constant 0 : i32
    %2 = arith.cmpi ne, %1, %c0_i32_0 : i32
    scf.if %2 {
      %cst_9 = arith.constant 0.000000e+00 : f32
      %12 = vector.broadcast %cst_9 : f32 to vector<64x128xf32>
      %c0_10 = arith.constant 0 : index
      %c0_11 = arith.constant 0 : index
      %13 = vector.load %arg7[%c0_10, %c0_11] : memref<64x128xf32, #tpu.memory_space<vmem>>, vector<64x128xf32>
      tpu.vector_store %arg7[%c0_10, %c0_11], %12 {strides = array<i32>} : memref<64x128xf32, #tpu.memory_space<vmem>>, vector<64x128xf32>,
    } else {
    }
    %c0 = arith.constant 0 : index
    %c0_1 = arith.constant 0 : index
    %3 = vector.load %arg7[%c0, %c0_1] : memref<64x128xf32, #tpu.memory_space<vmem>>, vector<64x128xf32>
    %c0_2 = arith.constant 0 : index
    %c0_3 = arith.constant 0 : index
    %4 = vector.load %arg3[%c0_2, %c0_3] : memref<64x128xbf16, #tpu.memory_space<vmem>>, vector<64x128xbf16>
    %c0_4 = arith.constant 0 : index
    %c0_5 = arith.constant 0 : index
    %5 = vector.load %arg4[%c0_4, %c0_5] : memref<128x128xbf16, #tpu.memory_space<vmem>>, vector<128x128xbf16>
    %cst = arith.constant dense<0.000000e+00> : vector<64x128xf32>
    %6 = tpu.matmul %4, %5, %cst {dimension_numbers = #tpu.dot_dimension_numbers<[1], [0], [0], [1], [0, 0, 1, 1], [], []>} : vector<64x128xbf16>, vector<128x128xbf16>, vector<64x128xf32> -> vector<64x128xf32>
    %7 = arith.addf %3, %6 : vector<64x128xf32>
    %c0_6 = arith.constant 0 : index
    %c0_7 = arith.constant 0 : index
    %8 = vector.load %arg7[%c0_6, %c0_7] : memref<64x128xf32, #tpu.memory_space<vmem>>, vector<64x128xf32>
    tpu.vector_store %arg7[%c0_6, %c0_7], %7 {strides = array<i32>} : memref<64x128xf32, #tpu.memory_space<vmem>>, vector<64x128xf32>,
    %c4_i32 = arith.constant 4 : i32
    %9 = arith.cmpi eq, %arg2, %c4_i32 : i32
    %10 = arith.extui %9 : i1 to i32
    %c0_i32_8 = arith.constant 0 : i32
    %11 = arith.cmpi ne, %10, %c0_i32_8 : i32
    scf.if %11 {
      %c0_9 = arith.constant 0 : index
      %c0_10 = arith.constant 0 : index
      %12 = vector.load %arg7[%c0_9, %c0_10] : memref<64x128xf32, #tpu.memory_space<vmem>>, vector<64x128xf32>
      %c0_11 = arith.constant 0 : index
      %c0_12 = arith.constant 0 : index
      %13 = vector.load %arg5[%c0_11, %c0_12] : memref<1x128xf32, #tpu.memory_space<vmem>>, vector<1x128xf32>
      %14 = vector.broadcast %13 : vector<1x128xf32> to vector<64x128xf32>
      %15 = arith.addf %12, %14 : vector<64x128xf32>
      %cst_13 = arith.constant 0.000000e+00 : f32
      %16 = vector.broadcast %cst_13 : f32 to vector<64x128xf32>
      %17 = arith.maximumf %15, %16 : vector<64x128xf32>
      %18 = arith.truncf %17 : vector<64x128xf32> to vector<64x128xbf16>
      %c0_14 = arith.constant 0 : index
      %c0_15 = arith.constant 0 : index
      %19 = vector.load %arg6[%c0_14, %c0_15] : memref<64x128xbf16, #tpu.memory_space<vmem>>, vector<64x128xbf16>
      tpu.vector_store %arg6[%c0_14, %c0_15], %18 {strides = array<i32>} : memref<64x128xbf16, #tpu.memory_space<vmem>>, vector<64x128xbf16>,
    } else {
    }
    return
  }
  func.func @transform_0(%arg0: i32, %arg1: i32, %arg2: i32) -> (i32, i32) {
    %c0_i32 = arith.constant 0 : i32
    return %arg0, %arg2 : i32, i32
  }
  func.func @transform_1(%arg0: i32, %arg1: i32, %arg2: i32) -> (i32, i32) {
    %c0_i32 = arith.constant 0 : i32
    return %arg2, %arg1 : i32, i32
  }
  func.func @transform_2(%arg0: i32, %arg1: i32, %arg2: i32) -> (i32, i32) {
    %c0_i32 = arith.constant 0 : i32
    %c0_i32_0 = arith.constant 0 : i32
    return %c0_i32, %arg1 : i32, i32
  }
  func.func @transform_3(%arg0: i32, %arg1: i32, %arg2: i32) -> (i32, i32) {
    %c0_i32 = arith.constant 0 : i32
    return %arg0, %arg1 : i32, i32
  }
}

module attributes {stable_mosaic.version = 11 : i64} {
  func.func @kernel(%arg0: i32, %arg1: i32, %arg2: i32, %arg3: memref<64x128xbf16, #tpu.memory_space<vmem>>, %arg4: memref<128x128xbf16, #tpu.memory_space<vmem>>, %arg5: memref<1x128xf32, #tpu.memory_space<vmem>>, %arg6: memref<64x128xbf16, #tpu.memory_space<vmem>>, %arg7: memref<64x128xf32, #tpu.memory_space<vmem>>) attributes {dimension_semantics = [#tpu.dimension_semantics<parallel>, #tpu.dimension_semantics<parallel>, #tpu.dimension_semantics<arbitrary>], iteration_bounds = array<i64: 1, 1, 9>, scalar_prefetch = 0 : i64, scratch_operands = 1 : i64, tpu.core_type = #tpu.core_type<tc>, window_params = [{transform_indices = @transform_0, window_bounds = array<i64: 64, 128>}, {transform_indices = @transform_1, window_bounds = array<i64: 128, 128>}, {transform_indices = @transform_2, window_bounds = array<i64: 1, 128>}, {transform_indices = @transform_3, window_bounds = array<i64: 64, 128>}]} {
    %c0_i32 = arith.constant 0 : i32
    %0 = arith.cmpi eq, %arg2, %c0_i32 : i32
    %1 = arith.extui %0 : i1 to i32
    %c0_i32_0 = arith.constant 0 : i32
    %2 = arith.cmpi ne, %1, %c0_i32_0 : i32
    scf.if %2 {
      %cst_9 = arith.constant 0.000000e+00 : f32
      %12 = vector.broadcast %cst_9 : f32 to vector<64x128xf32>
      %c0_10 = arith.constant 0 : index
      %c0_11 = arith.constant 0 : index
      %13 = vector.load %arg7[%c0_10, %c0_11] : memref<64x128xf32, #tpu.memory_space<vmem>>, vector<64x128xf32>
      tpu.vector_store %arg7[%c0_10, %c0_11], %12 {strides = array<i32>} : memref<64x128xf32, #tpu.memory_space<vmem>>, vector<64x128xf32>,
    } else {
    }
    %c0 = arith.constant 0 : index
    %c0_1 = arith.constant 0 : index
    %3 = vector.load %arg7[%c0, %c0_1] : memref<64x128xf32, #tpu.memory_space<vmem>>, vector<64x128xf32>
    %c0_2 = arith.constant 0 : index
    %c0_3 = arith.constant 0 : index
    %4 = vector.load %arg3[%c0_2, %c0_3] : memref<64x128xbf16, #tpu.memory_space<vmem>>, vector<64x128xbf16>
    %c0_4 = arith.constant 0 : index
    %c0_5 = arith.constant 0 : index
    %5 = vector.load %arg4[%c0_4, %c0_5] : memref<128x128xbf16, #tpu.memory_space<vmem>>, vector<128x128xbf16>
    %cst = arith.constant dense<0.000000e+00> : vector<64x128xf32>
    %6 = tpu.matmul %4, %5, %cst {dimension_numbers = #tpu.dot_dimension_numbers<[1], [0], [0], [1], [0, 0, 1, 1], [], []>} : vector<64x128xbf16>, vector<128x128xbf16>, vector<64x128xf32> -> vector<64x128xf32>
    %7 = arith.addf %3, %6 : vector<64x128xf32>
    %c0_6 = arith.constant 0 : index
    %c0_7 = arith.constant 0 : index
    %8 = vector.load %arg7[%c0_6, %c0_7] : memref<64x128xf32, #tpu.memory_space<vmem>>, vector<64x128xf32>
    tpu.vector_store %arg7[%c0_6, %c0_7], %7 {strides = array<i32>} : memref<64x128xf32, #tpu.memory_space<vmem>>, vector<64x128xf32>,
    %c8_i32 = arith.constant 8 : i32
    %9 = arith.cmpi eq, %arg2, %c8_i32 : i32
    %10 = arith.extui %9 : i1 to i32
    %c0_i32_8 = arith.constant 0 : i32
    %11 = arith.cmpi ne, %10, %c0_i32_8 : i32
    scf.if %11 {
      %c0_9 = arith.constant 0 : index
      %c0_10 = arith.constant 0 : index
      %12 = vector.load %arg7[%c0_9, %c0_10] : memref<64x128xf32, #tpu.memory_space<vmem>>, vector<64x128xf32>
      %c0_11 = arith.constant 0 : index
      %c0_12 = arith.constant 0 : index
      %13 = vector.load %arg5[%c0_11, %c0_12] : memref<1x128xf32, #tpu.memory_space<vmem>>, vector<1x128xf32>
      %14 = vector.broadcast %13 : vector<1x128xf32> to vector<64x128xf32>
      %15 = arith.addf %12, %14 : vector<64x128xf32>
      %16 = arith.truncf %15 : vector<64x128xf32> to vector<64x128xbf16>
      %c0_13 = arith.constant 0 : index
      %c0_14 = arith.constant 0 : index
      %17 = vector.load %arg6[%c0_13, %c0_14] : memref<64x128xbf16, #tpu.memory_space<vmem>>, vector<64x128xbf16>
      tpu.vector_store %arg6[%c0_13, %c0_14], %16 {strides = array<i32>} : memref<64x128xbf16, #tpu.memory_space<vmem>>, vector<64x128xbf16>,
    } else {
    }
    return
  }
  func.func @transform_0(%arg0: i32, %arg1: i32, %arg2: i32) -> (i32, i32) {
    %c0_i32 = arith.constant 0 : i32
    return %arg0, %arg2 : i32, i32
  }
  func.func @transform_1(%arg0: i32, %arg1: i32, %arg2: i32) -> (i32, i32) {
    %c0_i32 = arith.constant 0 : i32
    return %arg2, %arg1 : i32, i32
  }
  func.func @transform_2(%arg0: i32, %arg1: i32, %arg2: i32) -> (i32, i32) {
    %c0_i32 = arith.constant 0 : i32
    %c0_i32_0 = arith.constant 0 : i32
    return %c0_i32, %arg1 : i32, i32
  }
  func.func @transform_3(%arg0: i32, %arg1: i32, %arg2: i32) -> (i32, i32) {
    %c0_i32 = arith.constant 0 : i32
    return %arg0, %arg1 : i32, i32
  }
}

module attributes {stable_mosaic.version = 11 : i64} {
  func.func @kernel(%arg0: i32, %arg1: i32, %arg2: i32, %arg3: memref<64x128xbf16, #tpu.memory_space<vmem>>, %arg4: memref<128x128xbf16, #tpu.memory_space<vmem>>, %arg5: memref<1x128xf32, #tpu.memory_space<vmem>>, %arg6: memref<64x128xbf16, #tpu.memory_space<vmem>>, %arg7: memref<64x128xf32, #tpu.memory_space<vmem>>) attributes {dimension_semantics = [#tpu.dimension_semantics<parallel>, #tpu.dimension_semantics<parallel>, #tpu.dimension_semantics<arbitrary>], iteration_bounds = array<i64: 1, 1, 1>, scalar_prefetch = 0 : i64, scratch_operands = 1 : i64, tpu.core_type = #tpu.core_type<tc>, window_params = [{transform_indices = @transform_0, window_bounds = array<i64: 64, 128>}, {transform_indices = @transform_1, window_bounds = array<i64: 128, 128>}, {transform_indices = @transform_2, window_bounds = array<i64: 1, 128>}, {transform_indices = @transform_3, window_bounds = array<i64: 64, 128>}]} {
    %c0_i32 = arith.constant 0 : i32
    %0 = arith.cmpi eq, %arg2, %c0_i32 : i32
    %1 = arith.extui %0 : i1 to i32
    %c0_i32_0 = arith.constant 0 : i32
    %2 = arith.cmpi ne, %1, %c0_i32_0 : i32
    scf.if %2 {
      %cst_10 = arith.constant 0.000000e+00 : f32
      %12 = vector.broadcast %cst_10 : f32 to vector<64x128xf32>
      %c0_11 = arith.constant 0 : index
      %c0_12 = arith.constant 0 : index
      %13 = vector.load %arg7[%c0_11, %c0_12] : memref<64x128xf32, #tpu.memory_space<vmem>>, vector<64x128xf32>
      tpu.vector_store %arg7[%c0_11, %c0_12], %12 {strides = array<i32>} : memref<64x128xf32, #tpu.memory_space<vmem>>, vector<64x128xf32>,
    } else {
    }
    %c0 = arith.constant 0 : index
    %c0_1 = arith.constant 0 : index
    %3 = vector.load %arg7[%c0, %c0_1] : memref<64x128xf32, #tpu.memory_space<vmem>>, vector<64x128xf32>
    %c0_2 = arith.constant 0 : index
    %c0_3 = arith.constant 0 : index
    %4 = vector.load %arg3[%c0_2, %c0_3] : memref<64x128xbf16, #tpu.memory_space<vmem>>, vector<64x128xbf16>
    %c0_4 = arith.constant 0 : index
    %c0_5 = arith.constant 0 : index
    %5 = vector.load %arg4[%c0_4, %c0_5] : memref<128x128xbf16, #tpu.memory_space<vmem>>, vector<128x128xbf16>
    %cst = arith.constant dense<0.000000e+00> : vector<64x128xf32>
    %6 = tpu.matmul %4, %5, %cst {dimension_numbers = #tpu.dot_dimension_numbers<[1], [0], [0], [1], [0, 0, 1, 1], [], []>} : vector<64x128xbf16>, vector<128x128xbf16>, vector<64x128xf32> -> vector<64x128xf32>
    %7 = arith.addf %3, %6 : vector<64x128xf32>
    %c0_6 = arith.constant 0 : index
    %c0_7 = arith.constant 0 : index
    %8 = vector.load %arg7[%c0_6, %c0_7] : memref<64x128xf32, #tpu.memory_space<vmem>>, vector<64x128xf32>
    tpu.vector_store %arg7[%c0_6, %c0_7], %7 {strides = array<i32>} : memref<64x128xf32, #tpu.memory_space<vmem>>, vector<64x128xf32>,
    %c0_i32_8 = arith.constant 0 : i32
    %9 = arith.cmpi eq, %arg2, %c0_i32_8 : i32
    %10 = arith.extui %9 : i1 to i32
    %c0_i32_9 = arith.constant 0 : i32
    %11 = arith.cmpi ne, %10, %c0_i32_9 : i32
    scf.if %11 {
      %c0_10 = arith.constant 0 : index
      %c0_11 = arith.constant 0 : index
      %12 = vector.load %arg7[%c0_10, %c0_11] : memref<64x128xf32, #tpu.memory_space<vmem>>, vector<64x128xf32>
      %c0_12 = arith.constant 0 : index
      %c0_13 = arith.constant 0 : index
      %13 = vector.load %arg5[%c0_12, %c0_13] : memref<1x128xf32, #tpu.memory_space<vmem>>, vector<1x128xf32>
      %14 = vector.broadcast %13 : vector<1x128xf32> to vector<64x128xf32>
      %15 = arith.addf %12, %14 : vector<64x128xf32>
      %16 = arith.truncf %15 : vector<64x128xf32> to vector<64x128xbf16>
      %c0_14 = arith.constant 0 : index
      %c0_15 = arith.constant 0 : index
      %17 = vector.load %arg6[%c0_14, %c0_15] : memref<64x128xbf16, #tpu.memory_space<vmem>>, vector<64x128xbf16>
      tpu.vector_store %arg6[%c0_14, %c0_15], %16 {strides = array<i32>} : memref<64x128xbf16, #tpu.memory_space<vmem>>, vector<64x128xbf16>,
    } else {
    }
    return
  }
  func.func @transform_0(%arg0: i32, %arg1: i32, %arg2: i32) -> (i32, i32) {
    %c0_i32 = arith.constant 0 : i32
    return %arg0, %arg2 : i32, i32
  }
  func.func @transform_1(%arg0: i32, %arg1: i32, %arg2: i32) -> (i32, i32) {
    %c0_i32 = arith.constant 0 : i32
    return %arg2, %arg1 : i32, i32
  }
  func.func @transform_2(%arg0: i32, %arg1: i32, %arg2: i32) -> (i32, i32) {
    %c0_i32 = arith.constant 0 : i32
    %c0_i32_0 = arith.constant 0 : i32
    return %c0_i32, %arg1 : i32, i32
  }
  func.func @transform_3(%arg0: i32, %arg1: i32, %arg2: i32) -> (i32, i32) {
    %c0_i32 = arith.constant 0 : i32
    return %arg0, %arg1 : i32, i32
  }
}

module attributes {stable_mosaic.version = 11 : i64} {
  func.func @kernel(%arg0: i32, %arg1: i32, %arg2: i32, %arg3: memref<64x128xbf16, #tpu.memory_space<vmem>>, %arg4: memref<128x128xbf16, #tpu.memory_space<vmem>>, %arg5: memref<1x128xf32, #tpu.memory_space<vmem>>, %arg6: memref<64x128xbf16, #tpu.memory_space<vmem>>, %arg7: memref<64x128xf32, #tpu.memory_space<vmem>>) attributes {dimension_semantics = [#tpu.dimension_semantics<parallel>, #tpu.dimension_semantics<parallel>, #tpu.dimension_semantics<arbitrary>], iteration_bounds = array<i64: 1, 1, 9>, scalar_prefetch = 0 : i64, scratch_operands = 1 : i64, tpu.core_type = #tpu.core_type<tc>, window_params = [{transform_indices = @transform_0, window_bounds = array<i64: 64, 128>}, {transform_indices = @transform_1, window_bounds = array<i64: 128, 128>}, {transform_indices = @transform_2, window_bounds = array<i64: 1, 128>}, {transform_indices = @transform_3, window_bounds = array<i64: 64, 128>}]} {
    %c0_i32 = arith.constant 0 : i32
    %0 = arith.cmpi eq, %arg2, %c0_i32 : i32
    %1 = arith.extui %0 : i1 to i32
    %c0_i32_0 = arith.constant 0 : i32
    %2 = arith.cmpi ne, %1, %c0_i32_0 : i32
    scf.if %2 {
      %cst_9 = arith.constant 0.000000e+00 : f32
      %12 = vector.broadcast %cst_9 : f32 to vector<64x128xf32>
      %c0_10 = arith.constant 0 : index
      %c0_11 = arith.constant 0 : index
      %13 = vector.load %arg7[%c0_10, %c0_11] : memref<64x128xf32, #tpu.memory_space<vmem>>, vector<64x128xf32>
      tpu.vector_store %arg7[%c0_10, %c0_11], %12 {strides = array<i32>} : memref<64x128xf32, #tpu.memory_space<vmem>>, vector<64x128xf32>,
    } else {
    }
    %c0 = arith.constant 0 : index
    %c0_1 = arith.constant 0 : index
    %3 = vector.load %arg7[%c0, %c0_1] : memref<64x128xf32, #tpu.memory_space<vmem>>, vector<64x128xf32>
    %c0_2 = arith.constant 0 : index
    %c0_3 = arith.constant 0 : index
    %4 = vector.load %arg3[%c0_2, %c0_3] : memref<64x128xbf16, #tpu.memory_space<vmem>>, vector<64x128xbf16>
    %c0_4 = arith.constant 0 : index
    %c0_5 = arith.constant 0 : index
    %5 = vector.load %arg4[%c0_4, %c0_5] : memref<128x128xbf16, #tpu.memory_space<vmem>>, vector<128x128xbf16>
    %cst = arith.constant dense<0.000000e+00> : vector<64x128xf32>
    %6 = tpu.matmul %4, %5, %cst {dimension_numbers = #tpu.dot_dimension_numbers<[1], [0], [0], [1], [0, 0, 1, 1], [], []>} : vector<64x128xbf16>, vector<128x128xbf16>, vector<64x128xf32> -> vector<64x128xf32>
    %7 = arith.addf %3, %6 : vector<64x128xf32>
    %c0_6 = arith.constant 0 : index
    %c0_7 = arith.constant 0 : index
    %8 = vector.load %arg7[%c0_6, %c0_7] : memref<64x128xf32, #tpu.memory_space<vmem>>, vector<64x128xf32>
    tpu.vector_store %arg7[%c0_6, %c0_7], %7 {strides = array<i32>} : memref<64x128xf32, #tpu.memory_space<vmem>>, vector<64x128xf32>,
    %c8_i32 = arith.constant 8 : i32
    %9 = arith.cmpi eq, %arg2, %c8_i32 : i32
    %10 = arith.extui %9 : i1 to i32
    %c0_i32_8 = arith.constant 0 : i32
    %11 = arith.cmpi ne, %10, %c0_i32_8 : i32
    scf.if %11 {
      %c0_9 = arith.constant 0 : index
      %c0_10 = arith.constant 0 : index
      %12 = vector.load %arg7[%c0_9, %c0_10] : memref<64x128xf32, #tpu.memory_space<vmem>>, vector<64x128xf32>
      %c0_11 = arith.constant 0 : index
      %c0_12 = arith.constant 0 : index
      %13 = vector.load %arg5[%c0_11, %c0_12] : memref<1x128xf32, #tpu.memory_space<vmem>>, vector<1x128xf32>
      %14 = vector.broadcast %13 : vector<1x128xf32> to vector<64x128xf32>
      %15 = arith.addf %12, %14 : vector<64x128xf32>
      %cst_13 = arith.constant 0.000000e+00 : f32
      %16 = vector.broadcast %cst_13 : f32 to vector<64x128xf32>
      %17 = arith.maximumf %15, %16 : vector<64x128xf32>
      %18 = arith.truncf %17 : vector<64x128xf32> to vector<64x128xbf16>
      %c0_14 = arith.constant 0 : index
      %c0_15 = arith.constant 0 : index
      %19 = vector.load %arg6[%c0_14, %c0_15] : memref<64x128xbf16, #tpu.memory_space<vmem>>, vector<64x128xbf16>
      tpu.vector_store %arg6[%c0_14, %c0_15], %18 {strides = array<i32>} : memref<64x128xbf16, #tpu.memory_space<vmem>>, vector<64x128xbf16>,
    } else {
    }
    return
  }
  func.func @transform_0(%arg0: i32, %arg1: i32, %arg2: i32) -> (i32, i32) {
    %c0_i32 = arith.constant 0 : i32
    return %arg0, %arg2 : i32, i32
  }
  func.func @transform_1(%arg0: i32, %arg1: i32, %arg2: i32) -> (i32, i32) {
    %c0_i32 = arith.constant 0 : i32
    return %arg2, %arg1 : i32, i32
  }
  func.func @transform_2(%arg0: i32, %arg1: i32, %arg2: i32) -> (i32, i32) {
    %c0_i32 = arith.constant 0 : i32
    %c0_i32_0 = arith.constant 0 : i32
    return %c0_i32, %arg1 : i32, i32
  }
  func.func @transform_3(%arg0: i32, %arg1: i32, %arg2: i32) -> (i32, i32) {
    %c0_i32 = arith.constant 0 : i32
    return %arg0, %arg1 : i32, i32
  }
}

module attributes {stable_mosaic.version = 11 : i64} {
  func.func @kernel(%arg0: i32, %arg1: i32, %arg2: i32, %arg3: memref<16x128xbf16, #tpu.memory_space<vmem>>, %arg4: memref<128x256xbf16, #tpu.memory_space<vmem>>, %arg5: memref<1x256xf32, #tpu.memory_space<vmem>>, %arg6: memref<16x256xbf16, #tpu.memory_space<vmem>>, %arg7: memref<16x256xf32, #tpu.memory_space<vmem>>) attributes {dimension_semantics = [#tpu.dimension_semantics<parallel>, #tpu.dimension_semantics<parallel>, #tpu.dimension_semantics<arbitrary>], iteration_bounds = array<i64: 1, 1, 9>, scalar_prefetch = 0 : i64, scratch_operands = 1 : i64, tpu.core_type = #tpu.core_type<tc>, window_params = [{transform_indices = @transform_0, window_bounds = array<i64: 16, 128>}, {transform_indices = @transform_1, window_bounds = array<i64: 128, 256>}, {transform_indices = @transform_2, window_bounds = array<i64: 1, 256>}, {transform_indices = @transform_3, window_bounds = array<i64: 16, 256>}]} {
    %c0_i32 = arith.constant 0 : i32
    %0 = arith.cmpi eq, %arg2, %c0_i32 : i32
    %1 = arith.extui %0 : i1 to i32
    %c0_i32_0 = arith.constant 0 : i32
    %2 = arith.cmpi ne, %1, %c0_i32_0 : i32
    scf.if %2 {
      %cst_9 = arith.constant 0.000000e+00 : f32
      %12 = vector.broadcast %cst_9 : f32 to vector<16x256xf32>
      %c0_10 = arith.constant 0 : index
      %c0_11 = arith.constant 0 : index
      %13 = vector.load %arg7[%c0_10, %c0_11] : memref<16x256xf32, #tpu.memory_space<vmem>>, vector<16x256xf32>
      tpu.vector_store %arg7[%c0_10, %c0_11], %12 {strides = array<i32>} : memref<16x256xf32, #tpu.memory_space<vmem>>, vector<16x256xf32>,
    } else {
    }
    %c0 = arith.constant 0 : index
    %c0_1 = arith.constant 0 : index
    %3 = vector.load %arg7[%c0, %c0_1] : memref<16x256xf32, #tpu.memory_space<vmem>>, vector<16x256xf32>
    %c0_2 = arith.constant 0 : index
    %c0_3 = arith.constant 0 : index
    %4 = vector.load %arg3[%c0_2, %c0_3] : memref<16x128xbf16, #tpu.memory_space<vmem>>, vector<16x128xbf16>
    %c0_4 = arith.constant 0 : index
    %c0_5 = arith.constant 0 : index
    %5 = vector.load %arg4[%c0_4, %c0_5] : memref<128x256xbf16, #tpu.memory_space<vmem>>, vector<128x256xbf16>
    %cst = arith.constant dense<0.000000e+00> : vector<16x256xf32>
    %6 = tpu.matmul %4, %5, %cst {dimension_numbers = #tpu.dot_dimension_numbers<[1], [0], [0], [1], [0, 0, 1, 1], [], []>} : vector<16x128xbf16>, vector<128x256xbf16>, vector<16x256xf32> -> vector<16x256xf32>
    %7 = arith.addf %3, %6 : vector<16x256xf32>
    %c0_6 = arith.constant 0 : index
    %c0_7 = arith.constant 0 : index
    %8 = vector.load %arg7[%c0_6, %c0_7] : memref<16x256xf32, #tpu.memory_space<vmem>>, vector<16x256xf32>
    tpu.vector_store %arg7[%c0_6, %c0_7], %7 {strides = array<i32>} : memref<16x256xf32, #tpu.memory_space<vmem>>, vector<16x256xf32>,
    %c8_i32 = arith.constant 8 : i32
    %9 = arith.cmpi eq, %arg2, %c8_i32 : i32
    %10 = arith.extui %9 : i1 to i32
    %c0_i32_8 = arith.constant 0 : i32
    %11 = arith.cmpi ne, %10, %c0_i32_8 : i32
    scf.if %11 {
      %c0_9 = arith.constant 0 : index
      %c0_10 = arith.constant 0 : index
      %12 = vector.load %arg7[%c0_9, %c0_10] : memref<16x256xf32, #tpu.memory_space<vmem>>, vector<16x256xf32>
      %c0_11 = arith.constant 0 : index
      %c0_12 = arith.constant 0 : index
      %13 = vector.load %arg5[%c0_11, %c0_12] : memref<1x256xf32, #tpu.memory_space<vmem>>, vector<1x256xf32>
      %14 = vector.broadcast %13 : vector<1x256xf32> to vector<16x256xf32>
      %15 = arith.addf %12, %14 : vector<16x256xf32>
      %cst_13 = arith.constant 0.000000e+00 : f32
      %16 = vector.broadcast %cst_13 : f32 to vector<16x256xf32>
      %17 = arith.maximumf %15, %16 : vector<16x256xf32>
      %18 = arith.truncf %17 : vector<16x256xf32> to vector<16x256xbf16>
      %c0_14 = arith.constant 0 : index
      %c0_15 = arith.constant 0 : index
      %19 = vector.load %arg6[%c0_14, %c0_15] : memref<16x256xbf16, #tpu.memory_space<vmem>>, vector<16x256xbf16>
      tpu.vector_store %arg6[%c0_14, %c0_15], %18 {strides = array<i32>} : memref<16x256xbf16, #tpu.memory_space<vmem>>, vector<16x256xbf16>,
    } else {
    }
    return
  }
  func.func @transform_0(%arg0: i32, %arg1: i32, %arg2: i32) -> (i32, i32) {
    %c0_i32 = arith.constant 0 : i32
    return %arg0, %arg2 : i32, i32
  }
  func.func @transform_1(%arg0: i32, %arg1: i32, %arg2: i32) -> (i32, i32) {
    %c0_i32 = arith.constant 0 : i32
    return %arg2, %arg1 : i32, i32
  }
  func.func @transform_2(%arg0: i32, %arg1: i32, %arg2: i32) -> (i32, i32) {
    %c0_i32 = arith.constant 0 : i32
    %c0_i32_0 = arith.constant 0 : i32
    return %c0_i32, %arg1 : i32, i32
  }
  func.func @transform_3(%arg0: i32, %arg1: i32, %arg2: i32) -> (i32, i32) {
    %c0_i32 = arith.constant 0 : i32
    return %arg0, %arg1 : i32, i32
  }
}

module attributes {stable_mosaic.version = 11 : i64} {
  func.func @kernel(%arg0: i32, %arg1: i32, %arg2: i32, %arg3: memref<16x256xbf16, #tpu.memory_space<vmem>>, %arg4: memref<256x256xbf16, #tpu.memory_space<vmem>>, %arg5: memref<1x256xf32, #tpu.memory_space<vmem>>, %arg6: memref<16x256xbf16, #tpu.memory_space<vmem>>, %arg7: memref<16x256xf32, #tpu.memory_space<vmem>>) attributes {dimension_semantics = [#tpu.dimension_semantics<parallel>, #tpu.dimension_semantics<parallel>, #tpu.dimension_semantics<arbitrary>], iteration_bounds = array<i64: 1, 1, 9>, scalar_prefetch = 0 : i64, scratch_operands = 1 : i64, tpu.core_type = #tpu.core_type<tc>, window_params = [{transform_indices = @transform_0, window_bounds = array<i64: 16, 256>}, {transform_indices = @transform_1, window_bounds = array<i64: 256, 256>}, {transform_indices = @transform_2, window_bounds = array<i64: 1, 256>}, {transform_indices = @transform_3, window_bounds = array<i64: 16, 256>}]} {
    %c0_i32 = arith.constant 0 : i32
    %0 = arith.cmpi eq, %arg2, %c0_i32 : i32
    %1 = arith.extui %0 : i1 to i32
    %c0_i32_0 = arith.constant 0 : i32
    %2 = arith.cmpi ne, %1, %c0_i32_0 : i32
    scf.if %2 {
      %cst_9 = arith.constant 0.000000e+00 : f32
      %12 = vector.broadcast %cst_9 : f32 to vector<16x256xf32>
      %c0_10 = arith.constant 0 : index
      %c0_11 = arith.constant 0 : index
      %13 = vector.load %arg7[%c0_10, %c0_11] : memref<16x256xf32, #tpu.memory_space<vmem>>, vector<16x256xf32>
      tpu.vector_store %arg7[%c0_10, %c0_11], %12 {strides = array<i32>} : memref<16x256xf32, #tpu.memory_space<vmem>>, vector<16x256xf32>,
    } else {
    }
    %c0 = arith.constant 0 : index
    %c0_1 = arith.constant 0 : index
    %3 = vector.load %arg7[%c0, %c0_1] : memref<16x256xf32, #tpu.memory_space<vmem>>, vector<16x256xf32>
    %c0_2 = arith.constant 0 : index
    %c0_3 = arith.constant 0 : index
    %4 = vector.load %arg3[%c0_2, %c0_3] : memref<16x256xbf16, #tpu.memory_space<vmem>>, vector<16x256xbf16>
    %c0_4 = arith.constant 0 : index
    %c0_5 = arith.constant 0 : index
    %5 = vector.load %arg4[%c0_4, %c0_5] : memref<256x256xbf16, #tpu.memory_space<vmem>>, vector<256x256xbf16>
    %cst = arith.constant dense<0.000000e+00> : vector<16x256xf32>
    %6 = tpu.matmul %4, %5, %cst {dimension_numbers = #tpu.dot_dimension_numbers<[1], [0], [0], [1], [0, 0, 1, 1], [], []>} : vector<16x256xbf16>, vector<256x256xbf16>, vector<16x256xf32> -> vector<16x256xf32>
    %7 = arith.addf %3, %6 : vector<16x256xf32>
    %c0_6 = arith.constant 0 : index
    %c0_7 = arith.constant 0 : index
    %8 = vector.load %arg7[%c0_6, %c0_7] : memref<16x256xf32, #tpu.memory_space<vmem>>, vector<16x256xf32>
    tpu.vector_store %arg7[%c0_6, %c0_7], %7 {strides = array<i32>} : memref<16x256xf32, #tpu.memory_space<vmem>>, vector<16x256xf32>,
    %c8_i32 = arith.constant 8 : i32
    %9 = arith.cmpi eq, %arg2, %c8_i32 : i32
    %10 = arith.extui %9 : i1 to i32
    %c0_i32_8 = arith.constant 0 : i32
    %11 = arith.cmpi ne, %10, %c0_i32_8 : i32
    scf.if %11 {
      %c0_9 = arith.constant 0 : index
      %c0_10 = arith.constant 0 : index
      %12 = vector.load %arg7[%c0_9, %c0_10] : memref<16x256xf32, #tpu.memory_space<vmem>>, vector<16x256xf32>
      %c0_11 = arith.constant 0 : index
      %c0_12 = arith.constant 0 : index
      %13 = vector.load %arg5[%c0_11, %c0_12] : memref<1x256xf32, #tpu.memory_space<vmem>>, vector<1x256xf32>
      %14 = vector.broadcast %13 : vector<1x256xf32> to vector<16x256xf32>
      %15 = arith.addf %12, %14 : vector<16x256xf32>
      %16 = arith.truncf %15 : vector<16x256xf32> to vector<16x256xbf16>
      %c0_13 = arith.constant 0 : index
      %c0_14 = arith.constant 0 : index
      %17 = vector.load %arg6[%c0_13, %c0_14] : memref<16x256xbf16, #tpu.memory_space<vmem>>, vector<16x256xbf16>
      tpu.vector_store %arg6[%c0_13, %c0_14], %16 {strides = array<i32>} : memref<16x256xbf16, #tpu.memory_space<vmem>>, vector<16x256xbf16>,
    } else {
    }
    return
  }
  func.func @transform_0(%arg0: i32, %arg1: i32, %arg2: i32) -> (i32, i32) {
    %c0_i32 = arith.constant 0 : i32
    return %arg0, %arg2 : i32, i32
  }
  func.func @transform_1(%arg0: i32, %arg1: i32, %arg2: i32) -> (i32, i32) {
    %c0_i32 = arith.constant 0 : i32
    return %arg2, %arg1 : i32, i32
  }
  func.func @transform_2(%arg0: i32, %arg1: i32, %arg2: i32) -> (i32, i32) {
    %c0_i32 = arith.constant 0 : i32
    %c0_i32_0 = arith.constant 0 : i32
    return %c0_i32, %arg1 : i32, i32
  }
  func.func @transform_3(%arg0: i32, %arg1: i32, %arg2: i32) -> (i32, i32) {
    %c0_i32 = arith.constant 0 : i32
    return %arg0, %arg1 : i32, i32
  }
}

module attributes {stable_mosaic.version = 11 : i64} {
  func.func @kernel(%arg0: i32, %arg1: i32, %arg2: i32, %arg3: memref<16x256xbf16, #tpu.memory_space<vmem>>, %arg4: memref<256x256xbf16, #tpu.memory_space<vmem>>, %arg5: memref<1x256xf32, #tpu.memory_space<vmem>>, %arg6: memref<16x256xbf16, #tpu.memory_space<vmem>>, %arg7: memref<16x256xf32, #tpu.memory_space<vmem>>) attributes {dimension_semantics = [#tpu.dimension_semantics<parallel>, #tpu.dimension_semantics<parallel>, #tpu.dimension_semantics<arbitrary>], iteration_bounds = array<i64: 1, 1, 9>, scalar_prefetch = 0 : i64, scratch_operands = 1 : i64, tpu.core_type = #tpu.core_type<tc>, window_params = [{transform_indices = @transform_0, window_bounds = array<i64: 16, 256>}, {transform_indices = @transform_1, window_bounds = array<i64: 256, 256>}, {transform_indices = @transform_2, window_bounds = array<i64: 1, 256>}, {transform_indices = @transform_3, window_bounds = array<i64: 16, 256>}]} {
    %c0_i32 = arith.constant 0 : i32
    %0 = arith.cmpi eq, %arg2, %c0_i32 : i32
    %1 = arith.extui %0 : i1 to i32
    %c0_i32_0 = arith.constant 0 : i32
    %2 = arith.cmpi ne, %1, %c0_i32_0 : i32
    scf.if %2 {
      %cst_9 = arith.constant 0.000000e+00 : f32
      %12 = vector.broadcast %cst_9 : f32 to vector<16x256xf32>
      %c0_10 = arith.constant 0 : index
      %c0_11 = arith.constant 0 : index
      %13 = vector.load %arg7[%c0_10, %c0_11] : memref<16x256xf32, #tpu.memory_space<vmem>>, vector<16x256xf32>
      tpu.vector_store %arg7[%c0_10, %c0_11], %12 {strides = array<i32>} : memref<16x256xf32, #tpu.memory_space<vmem>>, vector<16x256xf32>,
    } else {
    }
    %c0 = arith.constant 0 : index
    %c0_1 = arith.constant 0 : index
    %3 = vector.load %arg7[%c0, %c0_1] : memref<16x256xf32, #tpu.memory_space<vmem>>, vector<16x256xf32>
    %c0_2 = arith.constant 0 : index
    %c0_3 = arith.constant 0 : index
    %4 = vector.load %arg3[%c0_2, %c0_3] : memref<16x256xbf16, #tpu.memory_space<vmem>>, vector<16x256xbf16>
    %c0_4 = arith.constant 0 : index
    %c0_5 = arith.constant 0 : index
    %5 = vector.load %arg4[%c0_4, %c0_5] : memref<256x256xbf16, #tpu.memory_space<vmem>>, vector<256x256xbf16>
    %cst = arith.constant dense<0.000000e+00> : vector<16x256xf32>
    %6 = tpu.matmul %4, %5, %cst {dimension_numbers = #tpu.dot_dimension_numbers<[1], [0], [0], [1], [0, 0, 1, 1], [], []>} : vector<16x256xbf16>, vector<256x256xbf16>, vector<16x256xf32> -> vector<16x256xf32>
    %7 = arith.addf %3, %6 : vector<16x256xf32>
    %c0_6 = arith.constant 0 : index
    %c0_7 = arith.constant 0 : index
    %8 = vector.load %arg7[%c0_6, %c0_7] : memref<16x256xf32, #tpu.memory_space<vmem>>, vector<16x256xf32>
    tpu.vector_store %arg7[%c0_6, %c0_7], %7 {strides = array<i32>} : memref<16x256xf32, #tpu.memory_space<vmem>>, vector<16x256xf32>,
    %c8_i32 = arith.constant 8 : i32
    %9 = arith.cmpi eq, %arg2, %c8_i32 : i32
    %10 = arith.extui %9 : i1 to i32
    %c0_i32_8 = arith.constant 0 : i32
    %11 = arith.cmpi ne, %10, %c0_i32_8 : i32
    scf.if %11 {
      %c0_9 = arith.constant 0 : index
      %c0_10 = arith.constant 0 : index
      %12 = vector.load %arg7[%c0_9, %c0_10] : memref<16x256xf32, #tpu.memory_space<vmem>>, vector<16x256xf32>
      %c0_11 = arith.constant 0 : index
      %c0_12 = arith.constant 0 : index
      %13 = vector.load %arg5[%c0_11, %c0_12] : memref<1x256xf32, #tpu.memory_space<vmem>>, vector<1x256xf32>
      %14 = vector.broadcast %13 : vector<1x256xf32> to vector<16x256xf32>
      %15 = arith.addf %12, %14 : vector<16x256xf32>
      %cst_13 = arith.constant 0.000000e+00 : f32
      %16 = vector.broadcast %cst_13 : f32 to vector<16x256xf32>
      %17 = arith.maximumf %15, %16 : vector<16x256xf32>
      %18 = arith.truncf %17 : vector<16x256xf32> to vector<16x256xbf16>
      %c0_14 = arith.constant 0 : index
      %c0_15 = arith.constant 0 : index
      %19 = vector.load %arg6[%c0_14, %c0_15] : memref<16x256xbf16, #tpu.memory_space<vmem>>, vector<16x256xbf16>
      tpu.vector_store %arg6[%c0_14, %c0_15], %18 {strides = array<i32>} : memref<16x256xbf16, #tpu.memory_space<vmem>>, vector<16x256xbf16>,
    } else {
    }
    return
  }
  func.func @transform_0(%arg0: i32, %arg1: i32, %arg2: i32) -> (i32, i32) {
    %c0_i32 = arith.constant 0 : i32
    return %arg0, %arg2 : i32, i32
  }
  func.func @transform_1(%arg0: i32, %arg1: i32, %arg2: i32) -> (i32, i32) {
    %c0_i32 = arith.constant 0 : i32
    return %arg2, %arg1 : i32, i32
  }
  func.func @transform_2(%arg0: i32, %arg1: i32, %arg2: i32) -> (i32, i32) {
    %c0_i32 = arith.constant 0 : i32
    %c0_i32_0 = arith.constant 0 : i32
    return %c0_i32, %arg1 : i32, i32
  }
  func.func @transform_3(%arg0: i32, %arg1: i32, %arg2: i32) -> (i32, i32) {
    %c0_i32 = arith.constant 0 : i32
    return %arg0, %arg1 : i32, i32
  }
}

module attributes {stable_mosaic.version = 11 : i64} {
  func.func @kernel(%arg0: i32, %arg1: i32, %arg2: i32, %arg3: memref<16x128xbf16, #tpu.memory_space<vmem>>, %arg4: memref<128x256xbf16, #tpu.memory_space<vmem>>, %arg5: memref<1x256xf32, #tpu.memory_space<vmem>>, %arg6: memref<16x256xbf16, #tpu.memory_space<vmem>>, %arg7: memref<16x256xf32, #tpu.memory_space<vmem>>) attributes {dimension_semantics = [#tpu.dimension_semantics<parallel>, #tpu.dimension_semantics<parallel>, #tpu.dimension_semantics<arbitrary>], iteration_bounds = array<i64: 1, 1, 1>, scalar_prefetch = 0 : i64, scratch_operands = 1 : i64, tpu.core_type = #tpu.core_type<tc>, window_params = [{transform_indices = @transform_0, window_bounds = array<i64: 16, 128>}, {transform_indices = @transform_1, window_bounds = array<i64: 128, 256>}, {transform_indices = @transform_2, window_bounds = array<i64: 1, 256>}, {transform_indices = @transform_3, window_bounds = array<i64: 16, 256>}]} {
    %c0_i32 = arith.constant 0 : i32
    %0 = arith.cmpi eq, %arg2, %c0_i32 : i32
    %1 = arith.extui %0 : i1 to i32
    %c0_i32_0 = arith.constant 0 : i32
    %2 = arith.cmpi ne, %1, %c0_i32_0 : i32
    scf.if %2 {
      %cst_10 = arith.constant 0.000000e+00 : f32
      %12 = vector.broadcast %cst_10 : f32 to vector<16x256xf32>
      %c0_11 = arith.constant 0 : index
      %c0_12 = arith.constant 0 : index
      %13 = vector.load %arg7[%c0_11, %c0_12] : memref<16x256xf32, #tpu.memory_space<vmem>>, vector<16x256xf32>
      tpu.vector_store %arg7[%c0_11, %c0_12], %12 {strides = array<i32>} : memref<16x256xf32, #tpu.memory_space<vmem>>, vector<16x256xf32>,
    } else {
    }
    %c0 = arith.constant 0 : index
    %c0_1 = arith.constant 0 : index
    %3 = vector.load %arg7[%c0, %c0_1] : memref<16x256xf32, #tpu.memory_space<vmem>>, vector<16x256xf32>
    %c0_2 = arith.constant 0 : index
    %c0_3 = arith.constant 0 : index
    %4 = vector.load %arg3[%c0_2, %c0_3] : memref<16x128xbf16, #tpu.memory_space<vmem>>, vector<16x128xbf16>
    %c0_4 = arith.constant 0 : index
    %c0_5 = arith.constant 0 : index
    %5 = vector.load %arg4[%c0_4, %c0_5] : memref<128x256xbf16, #tpu.memory_space<vmem>>, vector<128x256xbf16>
    %cst = arith.constant dense<0.000000e+00> : vector<16x256xf32>
    %6 = tpu.matmul %4, %5, %cst {dimension_numbers = #tpu.dot_dimension_numbers<[1], [0], [0], [1], [0, 0, 1, 1], [], []>} : vector<16x128xbf16>, vector<128x256xbf16>, vector<16x256xf32> -> vector<16x256xf32>
    %7 = arith.addf %3, %6 : vector<16x256xf32>
    %c0_6 = arith.constant 0 : index
    %c0_7 = arith.constant 0 : index
    %8 = vector.load %arg7[%c0_6, %c0_7] : memref<16x256xf32, #tpu.memory_space<vmem>>, vector<16x256xf32>
    tpu.vector_store %arg7[%c0_6, %c0_7], %7 {strides = array<i32>} : memref<16x256xf32, #tpu.memory_space<vmem>>, vector<16x256xf32>,
    %c0_i32_8 = arith.constant 0 : i32
    %9 = arith.cmpi eq, %arg2, %c0_i32_8 : i32
    %10 = arith.extui %9 : i1 to i32
    %c0_i32_9 = arith.constant 0 : i32
    %11 = arith.cmpi ne, %10, %c0_i32_9 : i32
    scf.if %11 {
      %c0_10 = arith.constant 0 : index
      %c0_11 = arith.constant 0 : index
      %12 = vector.load %arg7[%c0_10, %c0_11] : memref<16x256xf32, #tpu.memory_space<vmem>>, vector<16x256xf32>
      %c0_12 = arith.constant 0 : index
      %c0_13 = arith.constant 0 : index
      %13 = vector.load %arg5[%c0_12, %c0_13] : memref<1x256xf32, #tpu.memory_space<vmem>>, vector<1x256xf32>
      %14 = vector.broadcast %13 : vector<1x256xf32> to vector<16x256xf32>
      %15 = arith.addf %12, %14 : vector<16x256xf32>
      %16 = arith.truncf %15 : vector<16x256xf32> to vector<16x256xbf16>
      %c0_14 = arith.constant 0 : index
      %c0_15 = arith.constant 0 : index
      %17 = vector.load %arg6[%c0_14, %c0_15] : memref<16x256xbf16, #tpu.memory_space<vmem>>, vector<16x256xbf16>
      tpu.vector_store %arg6[%c0_14, %c0_15], %16 {strides = array<i32>} : memref<16x256xbf16, #tpu.memory_space<vmem>>, vector<16x256xbf16>,
    } else {
    }
    return
  }
  func.func @transform_0(%arg0: i32, %arg1: i32, %arg2: i32) -> (i32, i32) {
    %c0_i32 = arith.constant 0 : i32
    return %arg0, %arg2 : i32, i32
  }
  func.func @transform_1(%arg0: i32, %arg1: i32, %arg2: i32) -> (i32, i32) {
    %c0_i32 = arith.constant 0 : i32
    return %arg2, %arg1 : i32, i32
  }
  func.func @transform_2(%arg0: i32, %arg1: i32, %arg2: i32) -> (i32, i32) {
    %c0_i32 = arith.constant 0 : i32
    %c0_i32_0 = arith.constant 0 : i32
    return %c0_i32, %arg1 : i32, i32
  }
  func.func @transform_3(%arg0: i32, %arg1: i32, %arg2: i32) -> (i32, i32) {
    %c0_i32 = arith.constant 0 : i32
    return %arg0, %arg1 : i32, i32
  }
}

module attributes {stable_mosaic.version = 11 : i64} {
  func.func @kernel(%arg0: i32, %arg1: i32, %arg2: i32, %arg3: memref<8x256xbf16, #tpu.memory_space<vmem>>, %arg4: memref<256x256xbf16, #tpu.memory_space<vmem>>, %arg5: memref<1x256xf32, #tpu.memory_space<vmem>>, %arg6: memref<8x256xbf16, #tpu.memory_space<vmem>>, %arg7: memref<8x256xf32, #tpu.memory_space<vmem>>) attributes {dimension_semantics = [#tpu.dimension_semantics<parallel>, #tpu.dimension_semantics<parallel>, #tpu.dimension_semantics<arbitrary>], iteration_bounds = array<i64: 1, 2, 9>, scalar_prefetch = 0 : i64, scratch_operands = 1 : i64, tpu.core_type = #tpu.core_type<tc>, window_params = [{transform_indices = @transform_0, window_bounds = array<i64: 8, 256>}, {transform_indices = @transform_1, window_bounds = array<i64: 256, 256>}, {transform_indices = @transform_2, window_bounds = array<i64: 1, 256>}, {transform_indices = @transform_3, window_bounds = array<i64: 8, 256>}]} {
    %c0_i32 = arith.constant 0 : i32
    %0 = arith.cmpi eq, %arg2, %c0_i32 : i32
    %1 = arith.extui %0 : i1 to i32
    %c0_i32_0 = arith.constant 0 : i32
    %2 = arith.cmpi ne, %1, %c0_i32_0 : i32
    scf.if %2 {
      %cst_9 = arith.constant 0.000000e+00 : f32
      %12 = vector.broadcast %cst_9 : f32 to vector<8x256xf32>
      %c0_10 = arith.constant 0 : index
      %c0_11 = arith.constant 0 : index
      %13 = vector.load %arg7[%c0_10, %c0_11] : memref<8x256xf32, #tpu.memory_space<vmem>>, vector<8x256xf32>
      tpu.vector_store %arg7[%c0_10, %c0_11], %12 {strides = array<i32>} : memref<8x256xf32, #tpu.memory_space<vmem>>, vector<8x256xf32>,
    } else {
    }
    %c0 = arith.constant 0 : index
    %c0_1 = arith.constant 0 : index
    %3 = vector.load %arg7[%c0, %c0_1] : memref<8x256xf32, #tpu.memory_space<vmem>>, vector<8x256xf32>
    %c0_2 = arith.constant 0 : index
    %c0_3 = arith.constant 0 : index
    %4 = vector.load %arg3[%c0_2, %c0_3] : memref<8x256xbf16, #tpu.memory_space<vmem>>, vector<8x256xbf16>
    %c0_4 = arith.constant 0 : index
    %c0_5 = arith.constant 0 : index
    %5 = vector.load %arg4[%c0_4, %c0_5] : memref<256x256xbf16, #tpu.memory_space<vmem>>, vector<256x256xbf16>
    %cst = arith.constant dense<0.000000e+00> : vector<8x256xf32>
    %6 = tpu.matmul %4, %5, %cst {dimension_numbers = #tpu.dot_dimension_numbers<[1], [0], [0], [1], [0, 0, 1, 1], [], []>} : vector<8x256xbf16>, vector<256x256xbf16>, vector<8x256xf32> -> vector<8x256xf32>
    %7 = arith.addf %3, %6 : vector<8x256xf32>
    %c0_6 = arith.constant 0 : index
    %c0_7 = arith.constant 0 : index
    %8 = vector.load %arg7[%c0_6, %c0_7] : memref<8x256xf32, #tpu.memory_space<vmem>>, vector<8x256xf32>
    tpu.vector_store %arg7[%c0_6, %c0_7], %7 {strides = array<i32>} : memref<8x256xf32, #tpu.memory_space<vmem>>, vector<8x256xf32>,
    %c8_i32 = arith.constant 8 : i32
    %9 = arith.cmpi eq, %arg2, %c8_i32 : i32
    %10 = arith.extui %9 : i1 to i32
    %c0_i32_8 = arith.constant 0 : i32
    %11 = arith.cmpi ne, %10, %c0_i32_8 : i32
    scf.if %11 {
      %c0_9 = arith.constant 0 : index
      %c0_10 = arith.constant 0 : index
      %12 = vector.load %arg7[%c0_9, %c0_10] : memref<8x256xf32, #tpu.memory_space<vmem>>, vector<8x256xf32>
      %c0_11 = arith.constant 0 : index
      %c0_12 = arith.constant 0 : index
      %13 = vector.load %arg5[%c0_11, %c0_12] : memref<1x256xf32, #tpu.memory_space<vmem>>, vector<1x256xf32>
      %14 = vector.broadcast %13 : vector<1x256xf32> to vector<8x256xf32>
      %15 = arith.addf %12, %14 : vector<8x256xf32>
      %cst_13 = arith.constant 0.000000e+00 : f32
      %16 = vector.broadcast %cst_13 : f32 to vector<8x256xf32>
      %17 = arith.maximumf %15, %16 : vector<8x256xf32>
      %18 = arith.truncf %17 : vector<8x256xf32> to vector<8x256xbf16>
      %c0_14 = arith.constant 0 : index
      %c0_15 = arith.constant 0 : index
      %19 = vector.load %arg6[%c0_14, %c0_15] : memref<8x256xbf16, #tpu.memory_space<vmem>>, vector<8x256xbf16>
      tpu.vector_store %arg6[%c0_14, %c0_15], %18 {strides = array<i32>} : memref<8x256xbf16, #tpu.memory_space<vmem>>, vector<8x256xbf16>,
    } else {
    }
    return
  }
  func.func @transform_0(%arg0: i32, %arg1: i32, %arg2: i32) -> (i32, i32) {
    %c0_i32 = arith.constant 0 : i32
    return %arg0, %arg2 : i32, i32
  }
  func.func @transform_1(%arg0: i32, %arg1: i32, %arg2: i32) -> (i32, i32) {
    %c0_i32 = arith.constant 0 : i32
    return %arg2, %arg1 : i32, i32
  }
  func.func @transform_2(%arg0: i32, %arg1: i32, %arg2: i32) -> (i32, i32) {
    %c0_i32 = arith.constant 0 : i32
    %c0_i32_0 = arith.constant 0 : i32
    return %c0_i32, %arg1 : i32, i32
  }
  func.func @transform_3(%arg0: i32, %arg1: i32, %arg2: i32) -> (i32, i32) {
    %c0_i32 = arith.constant 0 : i32
    return %arg0, %arg1 : i32, i32
  }
}

module attributes {stable_mosaic.version = 11 : i64} {
  func.func @kernel(%arg0: i32, %arg1: i32, %arg2: i32, %arg3: memref<8x512xbf16, #tpu.memory_space<vmem>>, %arg4: memref<512x256xbf16, #tpu.memory_space<vmem>>, %arg5: memref<1x256xf32, #tpu.memory_space<vmem>>, %arg6: memref<8x256xbf16, #tpu.memory_space<vmem>>, %arg7: memref<8x256xf32, #tpu.memory_space<vmem>>) attributes {dimension_semantics = [#tpu.dimension_semantics<parallel>, #tpu.dimension_semantics<parallel>, #tpu.dimension_semantics<arbitrary>], iteration_bounds = array<i64: 1, 2, 9>, scalar_prefetch = 0 : i64, scratch_operands = 1 : i64, tpu.core_type = #tpu.core_type<tc>, window_params = [{transform_indices = @transform_0, window_bounds = array<i64: 8, 512>}, {transform_indices = @transform_1, window_bounds = array<i64: 512, 256>}, {transform_indices = @transform_2, window_bounds = array<i64: 1, 256>}, {transform_indices = @transform_3, window_bounds = array<i64: 8, 256>}]} {
    %c0_i32 = arith.constant 0 : i32
    %0 = arith.cmpi eq, %arg2, %c0_i32 : i32
    %1 = arith.extui %0 : i1 to i32
    %c0_i32_0 = arith.constant 0 : i32
    %2 = arith.cmpi ne, %1, %c0_i32_0 : i32
    scf.if %2 {
      %cst_9 = arith.constant 0.000000e+00 : f32
      %12 = vector.broadcast %cst_9 : f32 to vector<8x256xf32>
      %c0_10 = arith.constant 0 : index
      %c0_11 = arith.constant 0 : index
      %13 = vector.load %arg7[%c0_10, %c0_11] : memref<8x256xf32, #tpu.memory_space<vmem>>, vector<8x256xf32>
      tpu.vector_store %arg7[%c0_10, %c0_11], %12 {strides = array<i32>} : memref<8x256xf32, #tpu.memory_space<vmem>>, vector<8x256xf32>,
    } else {
    }
    %c0 = arith.constant 0 : index
    %c0_1 = arith.constant 0 : index
    %3 = vector.load %arg7[%c0, %c0_1] : memref<8x256xf32, #tpu.memory_space<vmem>>, vector<8x256xf32>
    %c0_2 = arith.constant 0 : index
    %c0_3 = arith.constant 0 : index
    %4 = vector.load %arg3[%c0_2, %c0_3] : memref<8x512xbf16, #tpu.memory_space<vmem>>, vector<8x512xbf16>
    %c0_4 = arith.constant 0 : index
    %c0_5 = arith.constant 0 : index
    %5 = vector.load %arg4[%c0_4, %c0_5] : memref<512x256xbf16, #tpu.memory_space<vmem>>, vector<512x256xbf16>
    %cst = arith.constant dense<0.000000e+00> : vector<8x256xf32>
    %6 = tpu.matmul %4, %5, %cst {dimension_numbers = #tpu.dot_dimension_numbers<[1], [0], [0], [1], [0, 0, 1, 1], [], []>} : vector<8x512xbf16>, vector<512x256xbf16>, vector<8x256xf32> -> vector<8x256xf32>
    %7 = arith.addf %3, %6 : vector<8x256xf32>
    %c0_6 = arith.constant 0 : index
    %c0_7 = arith.constant 0 : index
    %8 = vector.load %arg7[%c0_6, %c0_7] : memref<8x256xf32, #tpu.memory_space<vmem>>, vector<8x256xf32>
    tpu.vector_store %arg7[%c0_6, %c0_7], %7 {strides = array<i32>} : memref<8x256xf32, #tpu.memory_space<vmem>>, vector<8x256xf32>,
    %c8_i32 = arith.constant 8 : i32
    %9 = arith.cmpi eq, %arg2, %c8_i32 : i32
    %10 = arith.extui %9 : i1 to i32
    %c0_i32_8 = arith.constant 0 : i32
    %11 = arith.cmpi ne, %10, %c0_i32_8 : i32
    scf.if %11 {
      %c0_9 = arith.constant 0 : index
      %c0_10 = arith.constant 0 : index
      %12 = vector.load %arg7[%c0_9, %c0_10] : memref<8x256xf32, #tpu.memory_space<vmem>>, vector<8x256xf32>
      %c0_11 = arith.constant 0 : index
      %c0_12 = arith.constant 0 : index
      %13 = vector.load %arg5[%c0_11, %c0_12] : memref<1x256xf32, #tpu.memory_space<vmem>>, vector<1x256xf32>
      %14 = vector.broadcast %13 : vector<1x256xf32> to vector<8x256xf32>
      %15 = arith.addf %12, %14 : vector<8x256xf32>
      %16 = arith.truncf %15 : vector<8x256xf32> to vector<8x256xbf16>
      %c0_13 = arith.constant 0 : index
      %c0_14 = arith.constant 0 : index
      %17 = vector.load %arg6[%c0_13, %c0_14] : memref<8x256xbf16, #tpu.memory_space<vmem>>, vector<8x256xbf16>
      tpu.vector_store %arg6[%c0_13, %c0_14], %16 {strides = array<i32>} : memref<8x256xbf16, #tpu.memory_space<vmem>>, vector<8x256xbf16>,
    } else {
    }
    return
  }
  func.func @transform_0(%arg0: i32, %arg1: i32, %arg2: i32) -> (i32, i32) {
    %c0_i32 = arith.constant 0 : i32
    return %arg0, %arg2 : i32, i32
  }
  func.func @transform_1(%arg0: i32, %arg1: i32, %arg2: i32) -> (i32, i32) {
    %c0_i32 = arith.constant 0 : i32
    return %arg2, %arg1 : i32, i32
  }
  func.func @transform_2(%arg0: i32, %arg1: i32, %arg2: i32) -> (i32, i32) {
    %c0_i32 = arith.constant 0 : i32
    %c0_i32_0 = arith.constant 0 : i32
    return %c0_i32, %arg1 : i32, i32
  }
  func.func @transform_3(%arg0: i32, %arg1: i32, %arg2: i32) -> (i32, i32) {
    %c0_i32 = arith.constant 0 : i32
    return %arg0, %arg1 : i32, i32
  }
}

module attributes {stable_mosaic.version = 11 : i64} {
  func.func @kernel(%arg0: i32, %arg1: i32, %arg2: i32, %arg3: memref<8x256xbf16, #tpu.memory_space<vmem>>, %arg4: memref<256x256xbf16, #tpu.memory_space<vmem>>, %arg5: memref<1x256xf32, #tpu.memory_space<vmem>>, %arg6: memref<8x256xbf16, #tpu.memory_space<vmem>>, %arg7: memref<8x256xf32, #tpu.memory_space<vmem>>) attributes {dimension_semantics = [#tpu.dimension_semantics<parallel>, #tpu.dimension_semantics<parallel>, #tpu.dimension_semantics<arbitrary>], iteration_bounds = array<i64: 1, 2, 1>, scalar_prefetch = 0 : i64, scratch_operands = 1 : i64, tpu.core_type = #tpu.core_type<tc>, window_params = [{transform_indices = @transform_0, window_bounds = array<i64: 8, 256>}, {transform_indices = @transform_1, window_bounds = array<i64: 256, 256>}, {transform_indices = @transform_2, window_bounds = array<i64: 1, 256>}, {transform_indices = @transform_3, window_bounds = array<i64: 8, 256>}]} {
    %c0_i32 = arith.constant 0 : i32
    %0 = arith.cmpi eq, %arg2, %c0_i32 : i32
    %1 = arith.extui %0 : i1 to i32
    %c0_i32_0 = arith.constant 0 : i32
    %2 = arith.cmpi ne, %1, %c0_i32_0 : i32
    scf.if %2 {
      %cst_10 = arith.constant 0.000000e+00 : f32
      %12 = vector.broadcast %cst_10 : f32 to vector<8x256xf32>
      %c0_11 = arith.constant 0 : index
      %c0_12 = arith.constant 0 : index
      %13 = vector.load %arg7[%c0_11, %c0_12] : memref<8x256xf32, #tpu.memory_space<vmem>>, vector<8x256xf32>
      tpu.vector_store %arg7[%c0_11, %c0_12], %12 {strides = array<i32>} : memref<8x256xf32, #tpu.memory_space<vmem>>, vector<8x256xf32>,
    } else {
    }
    %c0 = arith.constant 0 : index
    %c0_1 = arith.constant 0 : index
    %3 = vector.load %arg7[%c0, %c0_1] : memref<8x256xf32, #tpu.memory_space<vmem>>, vector<8x256xf32>
    %c0_2 = arith.constant 0 : index
    %c0_3 = arith.constant 0 : index
    %4 = vector.load %arg3[%c0_2, %c0_3] : memref<8x256xbf16, #tpu.memory_space<vmem>>, vector<8x256xbf16>
    %c0_4 = arith.constant 0 : index
    %c0_5 = arith.constant 0 : index
    %5 = vector.load %arg4[%c0_4, %c0_5] : memref<256x256xbf16, #tpu.memory_space<vmem>>, vector<256x256xbf16>
    %cst = arith.constant dense<0.000000e+00> : vector<8x256xf32>
    %6 = tpu.matmul %4, %5, %cst {dimension_numbers = #tpu.dot_dimension_numbers<[1], [0], [0], [1], [0, 0, 1, 1], [], []>} : vector<8x256xbf16>, vector<256x256xbf16>, vector<8x256xf32> -> vector<8x256xf32>
    %7 = arith.addf %3, %6 : vector<8x256xf32>
    %c0_6 = arith.constant 0 : index
    %c0_7 = arith.constant 0 : index
    %8 = vector.load %arg7[%c0_6, %c0_7] : memref<8x256xf32, #tpu.memory_space<vmem>>, vector<8x256xf32>
    tpu.vector_store %arg7[%c0_6, %c0_7], %7 {strides = array<i32>} : memref<8x256xf32, #tpu.memory_space<vmem>>, vector<8x256xf32>,
    %c0_i32_8 = arith.constant 0 : i32
    %9 = arith.cmpi eq, %arg2, %c0_i32_8 : i32
    %10 = arith.extui %9 : i1 to i32
    %c0_i32_9 = arith.constant 0 : i32
    %11 = arith.cmpi ne, %10, %c0_i32_9 : i32
    scf.if %11 {
      %c0_10 = arith.constant 0 : index
      %c0_11 = arith.constant 0 : index
      %12 = vector.load %arg7[%c0_10, %c0_11] : memref<8x256xf32, #tpu.memory_space<vmem>>, vector<8x256xf32>
      %c0_12 = arith.constant 0 : index
      %c0_13 = arith.constant 0 : index
      %13 = vector.load %arg5[%c0_12, %c0_13] : memref<1x256xf32, #tpu.memory_space<vmem>>, vector<1x256xf32>
      %14 = vector.broadcast %13 : vector<1x256xf32> to vector<8x256xf32>
      %15 = arith.addf %12, %14 : vector<8x256xf32>
      %16 = arith.truncf %15 : vector<8x256xf32> to vector<8x256xbf16>
      %c0_14 = arith.constant 0 : index
      %c0_15 = arith.constant 0 : index
      %17 = vector.load %arg6[%c0_14, %c0_15] : memref<8x256xbf16, #tpu.memory_space<vmem>>, vector<8x256xbf16>
      tpu.vector_store %arg6[%c0_14, %c0_15], %16 {strides = array<i32>} : memref<8x256xbf16, #tpu.memory_space<vmem>>, vector<8x256xbf16>,
    } else {
    }
    return
  }
  func.func @transform_0(%arg0: i32, %arg1: i32, %arg2: i32) -> (i32, i32) {
    %c0_i32 = arith.constant 0 : i32
    return %arg0, %arg2 : i32, i32
  }
  func.func @transform_1(%arg0: i32, %arg1: i32, %arg2: i32) -> (i32, i32) {
    %c0_i32 = arith.constant 0 : i32
    return %arg2, %arg1 : i32, i32
  }
  func.func @transform_2(%arg0: i32, %arg1: i32, %arg2: i32) -> (i32, i32) {
    %c0_i32 = arith.constant 0 : i32
    %c0_i32_0 = arith.constant 0 : i32
    return %c0_i32, %arg1 : i32, i32
  }
  func.func @transform_3(%arg0: i32, %arg1: i32, %arg2: i32) -> (i32, i32) {
    %c0_i32 = arith.constant 0 : i32
    return %arg0, %arg1 : i32, i32
  }
}

module attributes {stable_mosaic.version = 11 : i64} {
  func.func @kernel(%arg0: i32, %arg1: i32, %arg2: i32, %arg3: memref<8x512xbf16, #tpu.memory_space<vmem>>, %arg4: memref<512x256xbf16, #tpu.memory_space<vmem>>, %arg5: memref<1x256xf32, #tpu.memory_space<vmem>>, %arg6: memref<8x256xbf16, #tpu.memory_space<vmem>>, %arg7: memref<8x256xf32, #tpu.memory_space<vmem>>) attributes {dimension_semantics = [#tpu.dimension_semantics<parallel>, #tpu.dimension_semantics<parallel>, #tpu.dimension_semantics<arbitrary>], iteration_bounds = array<i64: 1, 2, 9>, scalar_prefetch = 0 : i64, scratch_operands = 1 : i64, tpu.core_type = #tpu.core_type<tc>, window_params = [{transform_indices = @transform_0, window_bounds = array<i64: 8, 512>}, {transform_indices = @transform_1, window_bounds = array<i64: 512, 256>}, {transform_indices = @transform_2, window_bounds = array<i64: 1, 256>}, {transform_indices = @transform_3, window_bounds = array<i64: 8, 256>}]} {
    %c0_i32 = arith.constant 0 : i32
    %0 = arith.cmpi eq, %arg2, %c0_i32 : i32
    %1 = arith.extui %0 : i1 to i32
    %c0_i32_0 = arith.constant 0 : i32
    %2 = arith.cmpi ne, %1, %c0_i32_0 : i32
    scf.if %2 {
      %cst_9 = arith.constant 0.000000e+00 : f32
      %12 = vector.broadcast %cst_9 : f32 to vector<8x256xf32>
      %c0_10 = arith.constant 0 : index
      %c0_11 = arith.constant 0 : index
      %13 = vector.load %arg7[%c0_10, %c0_11] : memref<8x256xf32, #tpu.memory_space<vmem>>, vector<8x256xf32>
      tpu.vector_store %arg7[%c0_10, %c0_11], %12 {strides = array<i32>} : memref<8x256xf32, #tpu.memory_space<vmem>>, vector<8x256xf32>,
    } else {
    }
    %c0 = arith.constant 0 : index
    %c0_1 = arith.constant 0 : index
    %3 = vector.load %arg7[%c0, %c0_1] : memref<8x256xf32, #tpu.memory_space<vmem>>, vector<8x256xf32>
    %c0_2 = arith.constant 0 : index
    %c0_3 = arith.constant 0 : index
    %4 = vector.load %arg3[%c0_2, %c0_3] : memref<8x512xbf16, #tpu.memory_space<vmem>>, vector<8x512xbf16>
    %c0_4 = arith.constant 0 : index
    %c0_5 = arith.constant 0 : index
    %5 = vector.load %arg4[%c0_4, %c0_5] : memref<512x256xbf16, #tpu.memory_space<vmem>>, vector<512x256xbf16>
    %cst = arith.constant dense<0.000000e+00> : vector<8x256xf32>
    %6 = tpu.matmul %4, %5, %cst {dimension_numbers = #tpu.dot_dimension_numbers<[1], [0], [0], [1], [0, 0, 1, 1], [], []>} : vector<8x512xbf16>, vector<512x256xbf16>, vector<8x256xf32> -> vector<8x256xf32>
    %7 = arith.addf %3, %6 : vector<8x256xf32>
    %c0_6 = arith.constant 0 : index
    %c0_7 = arith.constant 0 : index
    %8 = vector.load %arg7[%c0_6, %c0_7] : memref<8x256xf32, #tpu.memory_space<vmem>>, vector<8x256xf32>
    tpu.vector_store %arg7[%c0_6, %c0_7], %7 {strides = array<i32>} : memref<8x256xf32, #tpu.memory_space<vmem>>, vector<8x256xf32>,
    %c8_i32 = arith.constant 8 : i32
    %9 = arith.cmpi eq, %arg2, %c8_i32 : i32
    %10 = arith.extui %9 : i1 to i32
    %c0_i32_8 = arith.constant 0 : i32
    %11 = arith.cmpi ne, %10, %c0_i32_8 : i32
    scf.if %11 {
      %c0_9 = arith.constant 0 : index
      %c0_10 = arith.constant 0 : index
      %12 = vector.load %arg7[%c0_9, %c0_10] : memref<8x256xf32, #tpu.memory_space<vmem>>, vector<8x256xf32>
      %c0_11 = arith.constant 0 : index
      %c0_12 = arith.constant 0 : index
      %13 = vector.load %arg5[%c0_11, %c0_12] : memref<1x256xf32, #tpu.memory_space<vmem>>, vector<1x256xf32>
      %14 = vector.broadcast %13 : vector<1x256xf32> to vector<8x256xf32>
      %15 = arith.addf %12, %14 : vector<8x256xf32>
      %cst_13 = arith.constant 0.000000e+00 : f32
      %16 = vector.broadcast %cst_13 : f32 to vector<8x256xf32>
      %17 = arith.maximumf %15, %16 : vector<8x256xf32>
      %18 = arith.truncf %17 : vector<8x256xf32> to vector<8x256xbf16>
      %c0_14 = arith.constant 0 : index
      %c0_15 = arith.constant 0 : index
      %19 = vector.load %arg6[%c0_14, %c0_15] : memref<8x256xbf16, #tpu.memory_space<vmem>>, vector<8x256xbf16>
      tpu.vector_store %arg6[%c0_14, %c0_15], %18 {strides = array<i32>} : memref<8x256xbf16, #tpu.memory_space<vmem>>, vector<8x256xbf16>,
    } else {
    }
    return
  }
  func.func @transform_0(%arg0: i32, %arg1: i32, %arg2: i32) -> (i32, i32) {
    %c0_i32 = arith.constant 0 : i32
    return %arg0, %arg2 : i32, i32
  }
  func.func @transform_1(%arg0: i32, %arg1: i32, %arg2: i32) -> (i32, i32) {
    %c0_i32 = arith.constant 0 : i32
    return %arg2, %arg1 : i32, i32
  }
  func.func @transform_2(%arg0: i32, %arg1: i32, %arg2: i32) -> (i32, i32) {
    %c0_i32 = arith.constant 0 : i32
    %c0_i32_0 = arith.constant 0 : i32
    return %c0_i32, %arg1 : i32, i32
  }
  func.func @transform_3(%arg0: i32, %arg1: i32, %arg2: i32) -> (i32, i32) {
    %c0_i32 = arith.constant 0 : i32
    return %arg0, %arg1 : i32, i32
  }
}

module attributes {stable_mosaic.version = 11 : i64} {
  func.func @kernel(%arg0: i32, %arg1: memref<8x512xbf16, #tpu.memory_space<vmem>>, %arg2: memref<512x256xbf16, #tpu.memory_space<vmem>>, %arg3: memref<1x256xf32, #tpu.memory_space<vmem>>, %arg4: memref<1x256xf32, #tpu.memory_space<vmem>>, %arg5: memref<1x1xf32, #tpu.memory_space<vmem>>, %arg6: memref<2x1xf32, #tpu.memory_space<vmem>>) attributes {dimension_semantics = [#tpu.dimension_semantics<arbitrary>], iteration_bounds = array<i64: 1>, scalar_prefetch = 0 : i64, scratch_operands = 0 : i64, tpu.core_type = #tpu.core_type<tc>, window_params = [{pipeline_mode = #tpu.pipeline_mode<synchronous>, transform_indices = @transform_0, window_bounds = array<i64: 8, 512>}, {pipeline_mode = #tpu.pipeline_mode<synchronous>, transform_indices = @transform_1, window_bounds = array<i64: 512, 256>}, {pipeline_mode = #tpu.pipeline_mode<synchronous>, transform_indices = @transform_2, window_bounds = array<i64: 1, 256>}, {pipeline_mode = #tpu.pipeline_mode<synchronous>, transform_indices = @transform_3, window_bounds = array<i64: 1, 256>}, {pipeline_mode = #tpu.pipeline_mode<synchronous>, transform_indices = @transform_4, window_bounds = array<i64: 1, 1>}, {pipeline_mode = #tpu.pipeline_mode<synchronous>, transform_indices = @transform_5, window_bounds = array<i64: 2, 1>}]} {
    %c0 = arith.constant 0 : index
    %c0_0 = arith.constant 0 : index
    %0 = vector.load %arg1[%c0, %c0_0] : memref<8x512xbf16, #tpu.memory_space<vmem>>, vector<8x512xbf16>
    %c0_1 = arith.constant 0 : index
    %c0_2 = arith.constant 0 : index
    %1 = vector.load %arg2[%c0_1, %c0_2] : memref<512x256xbf16, #tpu.memory_space<vmem>>, vector<512x256xbf16>
    %cst = arith.constant dense<0.000000e+00> : vector<8x256xf32>
    %2 = tpu.matmul %0, %1, %cst {dimension_numbers = #tpu.dot_dimension_numbers<[1], [0], [0], [1], [0, 0, 1, 1], [], []>} : vector<8x512xbf16>, vector<512x256xbf16>, vector<8x256xf32> -> vector<8x256xf32>
    %c0_3 = arith.constant 0 : index
    %c0_4 = arith.constant 0 : index
    %3 = vector.load %arg3[%c0_3, %c0_4] : memref<1x256xf32, #tpu.memory_space<vmem>>, vector<1x256xf32>
    %4 = vector.broadcast %3 : vector<1x256xf32> to vector<8x256xf32>
    %5 = arith.addf %2, %4 : vector<8x256xf32>
    %6 = vector.extract_strided_slice %5 {offsets = [0, 0], sizes = [2, 256], strides = [1, 1]} : vector<8x256xf32> to vector<2x256xf32>
    %7 = vector.extract_strided_slice %5 {offsets = [2, 0], sizes = [2, 256], strides = [1, 1]} : vector<8x256xf32> to vector<2x256xf32>
    %8 = arith.subf %6, %7 : vector<2x256xf32>
    %9 = math.absf %8 : vector<2x256xf32>
    %c0_5 = arith.constant 0 : index
    %c0_6 = arith.constant 0 : index
    %10 = vector.load %arg4[%c0_5, %c0_6] : memref<1x256xf32, #tpu.memory_space<vmem>>, vector<1x256xf32>
    %11 = vector.broadcast %10 : vector<1x256xf32> to vector<2x256xf32>
    %12 = arith.mulf %9, %11 : vector<2x256xf32>
    %cst_7 = arith.constant dense<0.000000e+00> : vector<2xf32>
    %13 = vector.multi_reduction <add>, %12, %cst_7 [1] : vector<2x256xf32> to vector<2xf32>
    %14 = vector.shape_cast %13 : vector<2xf32> to vector<2x1xf32>
    %c0_8 = arith.constant 0 : index
    %c0_9 = arith.constant 0 : index
    %15 = vector.load %arg5[%c0_8, %c0_9] : memref<1x1xf32, #tpu.memory_space<vmem>>, vector<1x1xf32>
    %16 = vector.broadcast %15 : vector<1x1xf32> to vector<2x1xf32>
    %17 = arith.addf %14, %16 : vector<2x1xf32>
    %cst_10 = arith.constant 0.000000e+00 : f32
    %18 = vector.broadcast %cst_10 : f32 to vector<2x1xf32>
    %19 = arith.subf %18, %17 : vector<2x1xf32>
    %20 = math.exp %19 : vector<2x1xf32>
    %cst_11 = arith.constant 1.000000e+00 : f32
    %21 = vector.broadcast %cst_11 : f32 to vector<2x1xf32>
    %22 = arith.addf %21, %20 : vector<2x1xf32>
    %cst_12 = arith.constant 1.000000e+00 : f32
    %23 = vector.broadcast %cst_12 : f32 to vector<2x1xf32>
    %24 = arith.divf %23, %22 : vector<2x1xf32>
    %c0_13 = arith.constant 0 : index
    %c0_14 = arith.constant 0 : index
    %25 = vector.load %arg6[%c0_13, %c0_14] : memref<2x1xf32, #tpu.memory_space<vmem>>, vector<2x1xf32>
    tpu.vector_store %arg6[%c0_13, %c0_14], %24 {strides = array<i32>} : memref<2x1xf32, #tpu.memory_space<vmem>>, vector<2x1xf32>,
    return
  }
  func.func @transform_0(%arg0: i32) -> (i32, i32) {
    %c0_i32 = arith.constant 0 : i32
    %c0_i32_0 = arith.constant 0 : i32
    %c0_i32_1 = arith.constant 0 : i32
    return %c0_i32, %c0_i32_0 : i32, i32
  }
  func.func @transform_1(%arg0: i32) -> (i32, i32) {
    %c0_i32 = arith.constant 0 : i32
    %c0_i32_0 = arith.constant 0 : i32
    %c0_i32_1 = arith.constant 0 : i32
    return %c0_i32, %c0_i32_0 : i32, i32
  }
  func.func @transform_2(%arg0: i32) -> (i32, i32) {
    %c0_i32 = arith.constant 0 : i32
    %c0_i32_0 = arith.constant 0 : i32
    %c0_i32_1 = arith.constant 0 : i32
    return %c0_i32, %c0_i32_0 : i32, i32
  }
  func.func @transform_3(%arg0: i32) -> (i32, i32) {
    %c0_i32 = arith.constant 0 : i32
    %c0_i32_0 = arith.constant 0 : i32
    %c0_i32_1 = arith.constant 0 : i32
    return %c0_i32, %c0_i32_0 : i32, i32
  }
  func.func @transform_4(%arg0: i32) -> (i32, i32) {
    %c0_i32 = arith.constant 0 : i32
    %c0_i32_0 = arith.constant 0 : i32
    %c0_i32_1 = arith.constant 0 : i32
    return %c0_i32, %c0_i32_0 : i32, i32
  }
  func.func @transform_5(%arg0: i32) -> (i32, i32) {
    %c0_i32 = arith.constant 0 : i32
    %c0_i32_0 = arith.constant 0 : i32
    %c0_i32_1 = arith.constant 0 : i32
    return %c0_i32, %c0_i32_0 : i32, i32
  }
}

</mosaic_0001>

<bundles_post_ra>
// kernel: siamese_forward.21
= control target key start
LH: loop header
LB: loop body
LE: loop exit
PB: predicated region body
PF: predicated region fallthrough
CT: control target
= control target key end

     0   :  { %s1654_s12 = smov 0   ;;  %s1656_s13 = smov 0   ;;  %s1940_s0 = inlined_call_operand.vmem [shape: bf16[1024,256], index: 0, kind: input, shape index: {}]   ;;  %s1941_s1 = inlined_call_operand.vmem [shape: bf16[256,64], index: 1, kind: input, shape index: {}]   ;;  %s1942_s2 = inlined_call_operand.vmem [shape: f32[1,64], index: 2, kind: input, shape index: {}]   ;;  %s1943_s3 = inlined_call_operand.vmem [shape: bf16[1024,64], index: 3, kind: output, shape index: {}]  }
   0x1   :  { %s1658_s14 = smov 0  }
   0x2 LB: > { %s32_s15 = sadd.s32 1, %s1627_s13  ;;  %p1270_p0 = scmp.ge.s32.totalorder %s1631_s14, 1  ;;  %s1631_s14 = sphi %s1658_s14, %s13_s14   ;;  %s1627_s13 = sphi %s1656_s13, %s1945_s13   ;;  %s1623_s12 = sphi %s1654_s12, %s1944_s12  }
   0x3   : > { %p34_p1 = scmp.ge.s32.totalorder %s32_s15, 4  ;;  %p191_p2 = scmp.lt.s32.totalorder %s1631_s14, 5 }
   0x5   : > { %s1947_s15 = smov (%p34_p1, %s32_s15), 0  ;;  %p192_p3 = pnand %p1270_p0, %p191_p2 }
   0x6   : > { %v1545_v0 = vld [vmem:[%s1941_s1 + $0x40] sm:$0xff] (!%p192_p3)   ;;  %s1271_s18 = sshll.u32 (!%p192_p3), %s1623_s12, 5  ;;  %v1547_v2 = vld [vmem:[%s1941_s1 + $0x48] sm:$0xff] (!%p192_p3)   ;;  %v1549_v4 = vld [vmem:[%s1941_s1 + $0x50] sm:$0xff] (!%p192_p3)   ;;  %vm272_vm0 = vcmask (!%p192_p3), 523264   ;;  %v1633_v48 = vmov (!%p192_p3), 0.0  }
   0x7   : > { %195 = sbr.rel (%p192_p3) target bundleno = 332 (0x14c), region = 32  ;;  %v1546_v1 = vld [vmem:[%s1941_s1] sm:$0xff] (!%p192_p3)   ;;  %1392 = vmatprep.subr.bf16.mxu0 (!%p192_p3), %v1545_v0  ;;  %1504 = vmatprep.subr.bf16.mxu1 (!%p192_p3), %v1545_v0  ;;  %v1548_v3 = vld [vmem:[%s1941_s1 + $0x8] sm:$0xff] (!%p192_p3)   ;;  %p236_p4 = scmp.lt.s32.totalorder (!%p192_p3), %s1271_s18, 127  ;;  %v1550_v5 = vld [vmem:[%s1941_s1 + $0x10] sm:$0xff] (!%p192_p3)   ;;  %273 = vst.msk [vmem:[#allocation2] sm:$0xff] (!%p192_p3), %vm272_vm0, %v1633_v48 }
   0x8   : > { %1393 = vmatpush3.bf16.msra.mxu0 (!%p192_p3), %v1546_v1  ;;  %1512 = vmatpush3.bf16.msra.mxu1 (!%p192_p3), %v1546_v1  ;;  %v1551_v6 = vld [vmem:[%s1941_s1 + $0x58] sm:$0xff] (!%p192_p3)   ;;  %v1553_v8 = vld [vmem:[%s1941_s1 + $0x60] sm:$0xff] (!%p192_p3)   ;;  %v1555_v10 = vld [vmem:[%s1941_s1 + $0x68] sm:$0xff] (!%p192_p3)   ;;  %274 = vst.msk [vmem:[#allocation2 + $0x8] sm:$0xff] (!%p192_p3), %vm272_vm0, %v1633_v48  ;;  %vm1117_vm1 = vcmask (!%p192_p3), 519168  }
   0x9   : > { %1394 = vmatprep.subr.bf16.mxu0 (!%p192_p3), %v1547_v2  ;;  %1505 = vmatprep.subr.bf16.mxu1 (!%p192_p3), %v1547_v2  ;;  %v1552_v7 = vld [vmem:[%s1941_s1 + $0x18] sm:$0xff] (!%p192_p3)   ;;  %v1554_v9 = vld [vmem:[%s1941_s1 + $0x20] sm:$0xff] (!%p192_p3)   ;;  %v1556_v13 = vld [vmem:[%s1941_s1 + $0x28] sm:$0xff] (!%p192_p3)   ;;  %275 = vst.msk [vmem:[#allocation2 + $0x10] sm:$0xff] (!%p192_p3), %vm272_vm0, %v1633_v48 }
   0xa   : > { %v1557_v14 = vld [vmem:[%s1941_s1 + $0x70] sm:$0xff] (!%p192_p3)   ;;  %v1559_v16 = vld [vmem:[%s1941_s1 + $0x78] sm:$0xff] (!%p192_p3)   ;;  %276 = vst.msk [vmem:[#allocation2 + $0x18] sm:$0xff] (!%p192_p3), %vm272_vm0, %v1633_v48  ;;  %277 = vst.msk [vmem:[#allocation2 + $0x20] sm:$0xff] (!%p192_p3), %vm272_vm0, %v1633_v48 }
   0xb   : > { %v1558_v15 = vld [vmem:[%s1941_s1 + $0x30] sm:$0xff] (!%p192_p3)   ;;  %v1560_v17 = vld [vmem:[%s1941_s1 + $0x38] sm:$0xff] (!%p192_p3)   ;;  %278 = vst.msk [vmem:[#allocation2 + $0x28] sm:$0xff] (!%p192_p3), %vm272_vm0, %v1633_v48  ;;  %279 = vst.msk [vmem:[#allocation2 + $0x30] sm:$0xff] (!%p192_p3), %vm272_vm0, %v1633_v48 }
   0xc   : > { %1395 = vmatpush3.bf16.msra.mxu0 (!%p192_p3), %v1548_v3  ;;  %1513 = vmatpush3.bf16.msra.mxu1 (!%p192_p3), %v1548_v3  ;;  %280 = vst.msk [vmem:[#allocation2 + $0x38] sm:$0xff] (!%p192_p3), %vm272_vm0, %v1633_v48  ;;  %281 = vst.msk [vmem:[#allocation2 + $0x40] sm:$0xff] (!%p192_p3), %vm272_vm0, %v1633_v48 }
   0xd   : > { %1396 = vmatprep.subr.bf16.mxu0 (!%p192_p3), %v1549_v4  ;;  %1506 = vmatprep.subr.bf16.mxu1 (!%p192_p3), %v1549_v4  ;;  %282 = vst.msk [vmem:[#allocation2 + $0x48] sm:$0xff] (!%p192_p3), %vm272_vm0, %v1633_v48  ;;  %283 = vst.msk [vmem:[#allocation2 + $0x50] sm:$0xff] (!%p192_p3), %vm272_vm0, %v1633_v48 }
   0xe   : > { %s1949_s18 = smov (!%p236_p4, %s1271_s18), 127  ;;  %284 = vst.msk [vmem:[#allocation2 + $0x58] sm:$0xff] %vm272_vm0, %v1633_v48  ;;  %285 = vst.msk [vmem:[#allocation2 + $0x60] sm:$0xff] %vm272_vm0, %v1633_v48  ;;  %v305_v51 = vld [vmem:[#allocation2] sm:$0xff] }
   0xf   : > { %s1359_s6 = sshll.u32 %s1949_s18, 3  ;;  %286 = vst.msk [vmem:[#allocation2 + $0x68] sm:$0xff] %vm272_vm0, %v1633_v48  ;;  %287 = vst.msk [vmem:[#allocation2 + $0x70] sm:$0xff] %vm272_vm0, %v1633_v48  ;;  %v306_v59 = vld [vmem:[#allocation2 + $0x8] sm:$0xff]  ;;  %s1275_s5 = sshll.u32 %s1949_s18, 2 }
  0x10   : > { %1397 = vmatpush3.bf16.msra.mxu0 %v1550_v5  ;;  %1514 = vmatpush3.bf16.msra.mxu1 %v1550_v5  ;;  %s1705_s11 = scalar_lea.vmem %s1940_s0, %s1359_s6  ;;  %288 = vst.msk [vmem:[#allocation2 + $0x78] sm:$0xff] %vm272_vm0, %v1633_v48  ;;  %289 = vst.msk [vmem:[#allocation2 + $0x80] sm:$0xff] %vm272_vm0, %v1633_v48  ;;  %s1813_s7 = scalar_lea.vmem %s1943_s3, %s1275_s5 }
  0x11   : > { %1398 = vmatprep.subr.bf16.mxu0 %v1551_v6  ;;  %1507 = vmatprep.subr.bf16.mxu1 %v1551_v6  ;;  %v1563_v11 = vld [vmem:[%s1705_s11 + $0x4] ss:$8 sps:$4 sm:$0xff]   ;;  %v1561_v18 = vld [vmem:[%s1705_s11] ss:$8 sps:$4 sm:$0xff]   ;;  %v1567_v20 = vld [vmem:[%s1705_s11 + $0x14] ss:$8 sps:$4 sm:$0xff]  }
  0x12   : > { %v1566_v12 = vld [vmem:[%s1705_s11 + $0x84] ss:$8 sps:$4 sm:$0xff]   ;;  %689 = vmatprep.mubr.bf16.mxu0 %v1563_v11  ;;  %v1564_v19 = vld [vmem:[%s1705_s11 + $0x80] ss:$8 sps:$4 sm:$0xff]   ;;  %v1569_v21 = vld [vmem:[%s1705_s11 + $0x94] ss:$8 sps:$4 sm:$0xff]  }
  0x13   : > { %753 = vmatprep.mubr.bf16.mxu1 %v1566_v12  ;;  %v1571_v22 = vld [vmem:[%s1705_s11 + $0x10] ss:$8 sps:$4 sm:$0xff]   ;;  %v1573_v24 = vld [vmem:[%s1705_s11 + $0x24] ss:$8 sps:$4 sm:$0xff]   ;;  %v1577_v26 = vld [vmem:[%s1705_s11 + $0x20] ss:$8 sps:$4 sm:$0xff]  }
  0x14   : > { %1399 = vmatpush3.bf16.msra.mxu0 %v1552_v7  ;;  %1515 = vmatpush3.bf16.msra.mxu1 %v1552_v7  ;;  %v1572_v23 = vld [vmem:[%s1705_s11 + $0x90] ss:$8 sps:$4 sm:$0xff]   ;;  %v1575_v25 = vld [vmem:[%s1705_s11 + $0xa4] ss:$8 sps:$4 sm:$0xff]   ;;  %v1578_v27 = vld [vmem:[%s1705_s11 + $0xa0] ss:$8 sps:$4 sm:$0xff]  }
  0x15   : > { %1400 = vmatprep.subr.bf16.mxu0 %v1553_v8  ;;  %1508 = vmatprep.subr.bf16.mxu1 %v1553_v8  ;;  %v1579_v28 = vld [vmem:[%s1705_s11 + $0x34] ss:$8 sps:$4 sm:$0xff]   ;;  %v1583_v30 = vld [vmem:[%s1705_s11 + $0x30] ss:$8 sps:$4 sm:$0xff]   ;;  %v1585_v32 = vld [vmem:[%s1705_s11 + $0x44] ss:$8 sps:$4 sm:$0xff]  }
  0x16   : > { %v1581_v29 = vld [vmem:[%s1705_s11 + $0xb4] ss:$8 sps:$4 sm:$0xff]   ;;  %v1584_v31 = vld [vmem:[%s1705_s11 + $0xb0] ss:$8 sps:$4 sm:$0xff]   ;;  %v1587_v33 = vld [vmem:[%s1705_s11 + $0xc4] ss:$8 sps:$4 sm:$0xff]  }
  0x17   : > { %v1589_v34 = vld [vmem:[%s1705_s11 + $0x40] ss:$8 sps:$4 sm:$0xff]   ;;  %v1591_v36 = vld [vmem:[%s1705_s11 + $0x54] ss:$8 sps:$4 sm:$0xff]   ;;  %v1595_v38 = vld [vmem:[%s1705_s11 + $0x50] ss:$8 sps:$4 sm:$0xff]  }
  0x18   : > { %1401 = vmatpush3.bf16.msra.mxu0 %v1554_v9  ;;  %1516 = vmatpush3.bf16.msra.mxu1 %v1554_v9  ;;  %v1590_v35 = vld [vmem:[%s1705_s11 + $0xc0] ss:$8 sps:$4 sm:$0xff]   ;;  %v1593_v37 = vld [vmem:[%s1705_s11 + $0xd4] ss:$8 sps:$4 sm:$0xff]   ;;  %v1596_v39 = vld [vmem:[%s1705_s11 + $0xd0] ss:$8 sps:$4 sm:$0xff]  }
  0x19   : > { %1402 = vmatprep.subr.bf16.mxu0 %v1555_v10  ;;  %1509 = vmatprep.subr.bf16.mxu1 %v1555_v10  ;;  %v1597_v40 = vld [vmem:[%s1705_s11 + $0x64] ss:$8 sps:$4 sm:$0xff]   ;;  %v1601_v42 = vld [vmem:[%s1705_s11 + $0x60] ss:$8 sps:$4 sm:$0xff]   ;;  %v1603_v44 = vld [vmem:[%s1705_s11 + $0x74] ss:$8 sps:$4 sm:$0xff]  }
  0x1a   : > { %v1599_v41 = vld [vmem:[%s1705_s11 + $0xe4] ss:$8 sps:$4 sm:$0xff]   ;;  %v1602_v43 = vld [vmem:[%s1705_s11 + $0xe0] ss:$8 sps:$4 sm:$0xff]   ;;  %v1605_v45 = vld [vmem:[%s1705_s11 + $0xf4] ss:$8 sps:$4 sm:$0xff]  }
  0x1b   : > { %v1607_v46 = vld [vmem:[%s1705_s11 + $0x70] ss:$8 sps:$4 sm:$0xff]   ;;  %290 = vst.msk [vmem:[#allocation2 + $0x88] sm:$0xff] %vm272_vm0, %v1633_v48  ;;  %291 = vst.msk [vmem:[#allocation2 + $0x90] sm:$0xff] %vm272_vm0, %v1633_v48  ;;  %v321_v53 = vld [vmem:[#allocation2 + $0x80] sm:$0xff] }
  0x1c   : > { %1403 = vmatpush3.bf16.msra.mxu0 %v1556_v13  ;;  %1517 = vmatpush3.bf16.msra.mxu1 %v1556_v13  ;;  %v1608_v47 = vld [vmem:[%s1705_s11 + $0xf0] ss:$8 sps:$4 sm:$0xff]   ;;  %292 = vst.msk [vmem:[#allocation2 + $0x98] sm:$0xff] %vm272_vm0, %v1633_v48  ;;  %293 = vst.msk [vmem:[#allocation2 + $0xa0] sm:$0xff] %vm272_vm0, %v1633_v48 }
  0x1d   : > { %1404 = vmatprep.subr.bf16.mxu0 %v1557_v14  ;;  %1510 = vmatprep.subr.bf16.mxu1 %v1557_v14  ;;  %294 = vst.msk [vmem:[#allocation2 + $0xa8] sm:$0xff] %vm272_vm0, %v1633_v48  ;;  %295 = vst.msk [vmem:[#allocation2 + $0xb0] sm:$0xff] %vm272_vm0, %v1633_v48  ;;  %v307_v7 = vld [vmem:[#allocation2 + $0x10] sm:$0xff] }
  0x1e   : > { %296 = vst.msk [vmem:[#allocation2 + $0xb8] sm:$0xff] %vm272_vm0, %v1633_v48  ;;  %297 = vst.msk [vmem:[#allocation2 + $0xc0] sm:$0xff] %vm272_vm0, %v1633_v48 }
  0x1f   : > { %298 = vst.msk [vmem:[#allocation2 + $0xc8] sm:$0xff] %vm272_vm0, %v1633_v48  ;;  %299 = vst.msk [vmem:[#allocation2 + $0xd0] sm:$0xff] %vm272_vm0, %v1633_v48 }
  0x20   : > { %1405 = vmatpush3.bf16.msra.mxu0 %v1558_v15  ;;  %1518 = vmatpush3.bf16.msra.mxu1 %v1558_v15  ;;  %300 = vst.msk [vmem:[#allocation2 + $0xd8] sm:$0xff] %vm272_vm0, %v1633_v48  ;;  %301 = vst.msk [vmem:[#allocation2 + $0xe0] sm:$0xff] %vm272_vm0, %v1633_v48  ;;  %v1799_v15 = vld [vmem:[%s1942_s2] ss:$0 sm:$0xff] }
  0x21   : > { %1406 = vmatprep.subr.bf16.mxu0 %v1559_v16  ;;  %1511 = vmatprep.subr.bf16.mxu1 %v1559_v16  ;;  %302 = vst.msk [vmem:[#allocation2 + $0xe8] sm:$0xff] %vm272_vm0, %v1633_v48  ;;  %303 = vst.msk [vmem:[#allocation2 + $0xf0] sm:$0xff] %vm272_vm0, %v1633_v48  ;;  %v308_v16 = vld [vmem:[#allocation2 + $0x18] sm:$0xff] }
  0x22   : > { %304 = vst.msk [vmem:[#allocation2 + $0xf8] sm:$0xff] %vm272_vm0, %v1633_v48  ;;  %v322_v61 = vld [vmem:[#allocation2 + $0x88] sm:$0xff]  ;;  %v323_v9 = vld [vmem:[#allocation2 + $0x90] sm:$0xff] }
  0x24   : > { %1407 = vmatpush3.bf16.msra.mxu0 %v1560_v17  ;;  %1519 = vmatpush3.bf16.msra.mxu1 %v1560_v17 }
  0x27   : > { %690 = vmatmul.mubr.bf16.vlgmr.msra.gmra.mrb[0].mxu0 %v1561_v18  ;;  %754 = vmatmul.mubr.bf16.vlgmr.msra.gmra.mrb[0].mxu1 %v1564_v19  ;;  %v324_v18 = vld [vmem:[#allocation2 + $0x98] sm:$0xff] }
  0x28   : > { %697 = vmatprep.mubr.bf16.mxu0 %v1567_v20  ;;  %761 = vmatprep.mubr.bf16.mxu1 %v1569_v21 }
  0x2f   : > { %698 = vmatmul.mubr.bf16.gmra.mrb[4].mxu0 %v1571_v22  ;;  %762 = vmatmul.mubr.bf16.gmra.mrb[4].mxu1 %v1572_v23 }
  0x30   : > { %705 = vmatprep.mubr.bf16.mxu0 %v1573_v24  ;;  %769 = vmatprep.mubr.bf16.mxu1 %v1575_v25 }
  0x37   : > { %706 = vmatmul.mubr.bf16.gmra.mrb[8].mxu0 %v1577_v26  ;;  %770 = vmatmul.mubr.bf16.gmra.mrb[8].mxu1 %v1578_v27 }
  0x38   : > { %713 = vmatprep.mubr.bf16.mxu0 %v1579_v28  ;;  %777 = vmatprep.mubr.bf16.mxu1 %v1581_v29 }
  0x3f   : > { %714 = vmatmul.mubr.bf16.gmra.mrb[12].mxu0 %v1583_v30  ;;  %778 = vmatmul.mubr.bf16.gmra.mrb[12].mxu1 %v1584_v31 }
  0x40   : > { %721 = vmatprep.mubr.bf16.mxu0 %v1585_v32  ;;  %785 = vmatprep.mubr.bf16.mxu1 %v1587_v33 }
  0x47   : > { %722 = vmatmul.mubr.bf16.gmra.mrb[16].mxu0 %v1589_v34  ;;  %786 = vmatmul.mubr.bf16.gmra.mrb[16].mxu1 %v1590_v35 }
  0x48   : > { %729 = vmatprep.mubr.bf16.mxu0 %v1591_v36  ;;  %793 = vmatprep.mubr.bf16.mxu1 %v1593_v37 }
  0x4f   : > { %730 = vmatmul.mubr.bf16.gmra.mrb[20].mxu0 %v1595_v38  ;;  %794 = vmatmul.mubr.bf16.gmra.mrb[20].mxu1 %v1596_v39 }
  0x50   : > { %737 = vmatprep.mubr.bf16.mxu0 %v1597_v40  ;;  %801 = vmatprep.mubr.bf16.mxu1 %v1599_v41 }
  0x57   : > { %738 = vmatmul.mubr.bf16.gmra.mrb[24].mxu0 %v1601_v42  ;;  %802 = vmatmul.mubr.bf16.gmra.mrb[24].mxu1 %v1602_v43 }
  0x58   : > { %745 = vmatprep.mubr.bf16.mxu0 %v1603_v44  ;;  %809 = vmatprep.mubr.bf16.mxu1 %v1605_v45  ;;  %v309_v44 = vld [vmem:[#allocation2 + $0x20] sm:$0xff] }
  0x59   : > { %v325_v45 = vld [vmem:[#allocation2 + $0xa0] sm:$0xff] }
  0x5f   : > { %746 = vmatmul.mubr.bf16.gmra.mrb[28].mxu0 %v1607_v46  ;;  %810 = vmatmul.mubr.bf16.gmra.mrb[28].mxu1 %v1608_v47 }
  0xfa   : > { %v1408_v49 = vpop.f32.mrb[0].mxu0  ;;  %v1456_v50 = vpop.f32.mrb[0].mxu1 }
  0xfb   : > { %v1409_v52 = vpop.f32.mrb[1].mxu0  ;;  %v1457_v54 = vpop.f32.mrb[1].mxu1 }
  0xfc   : > { %v1410_v55 = vadd.f32 %v1409_v52, %v1408_v49  ;;  %v1458_v56 = vadd.f32 %v1457_v54, %v1456_v50  ;;  %v1411_v57 = vpop.f32.mrb[2].mxu0  ;;  %v1459_v58 = vpop.f32.mrb[2].mxu1  ;;  %v310_v50 = vld [vmem:[#allocation2 + $0x28] sm:$0xff] }
  0xfd   : > { %v1412_v60 = vpop.f32.mrb[3].mxu0  ;;  %v1460_v62 = vpop.f32.mrb[3].mxu1  ;;  %v326_v52 = vld [vmem:[#allocation2 + $0xa8] sm:$0xff] }
  0xfe   : > { %v818_v63 = vadd.f32 %v1410_v55, %v305_v51  ;;  %v834_v0 = vadd.f32 %v1458_v56, %v321_v53  ;;  %v1413_v1 = vadd.f32 %v1412_v60, %v1411_v57  ;;  %v1461_v2 = vadd.f32 %v1460_v62, %v1459_v58 }
 0x100   : > { %851 = vst.msk [vmem:[#allocation2] sm:$0xff] %vm272_vm0, %v818_v63  ;;  %867 = vst.msk [vmem:[#allocation2 + $0x80] sm:$0xff] %vm272_vm0, %v834_v0  ;;  %v819_v3 = vadd.f32 %v1413_v1, %v306_v59  ;;  %v835_v4 = vadd.f32 %v1461_v2, %v322_v61 }
 0x102   : > { %852 = vst.msk [vmem:[#allocation2 + $0x8] sm:$0xff] %vm272_vm0, %v819_v3  ;;  %868 = vst.msk [vmem:[#allocation2 + $0x88] sm:$0xff] %vm272_vm0, %v835_v4  ;;  %v1414_v5 = vpop.f32.mrb[4].mxu0  ;;  %v1462_v6 = vpop.f32.mrb[4].mxu1 }
 0x103   : > { %v1415_v8 = vpop.f32.mrb[5].mxu0  ;;  %v1463_v10 = vpop.f32.mrb[5].mxu1 }
 0x104   : > { %v1416_v11 = vadd.f32 %v1415_v8, %v1414_v5  ;;  %v1464_v12 = vadd.f32 %v1463_v10, %v1462_v6  ;;  %v1417_v13 = vpop.f32.mrb[6].mxu0  ;;  %v1465_v14 = vpop.f32.mrb[6].mxu1 }
 0x105   : > { %v1418_v17 = vpop.f32.mrb[7].mxu0  ;;  %v1466_v19 = vpop.f32.mrb[7].mxu1 }
 0x106   : > { %v820_v20 = vadd.f32 %v1416_v11, %v307_v7  ;;  %v836_v21 = vadd.f32 %v1464_v12, %v323_v9  ;;  %v1419_v22 = vadd.f32 %v1418_v17, %v1417_v13  ;;  %v1467_v23 = vadd.f32 %v1466_v19, %v1465_v14  ;;  %v311_v17 = vld [vmem:[#allocation2 + $0x30] sm:$0xff] }
 0x107   : > { %v886_v24 = vld [vmem:[#allocation2] sm:$0xff] }
 0x108   : > { %v902_v25 = vld [vmem:[#allocation2 + $0x80] sm:$0xff]  ;;  %v925_v26 = vadd.f32 %v1799_v15, %v886_v24  ;;  %853 = vst.msk [vmem:[#allocation2 + $0x10] sm:$0xff] %vm272_vm0, %v820_v20  ;;  %869 = vst.msk [vmem:[#allocation2 + $0x90] sm:$0xff] %vm272_vm0, %v836_v21  ;;  %v821_v28 = vadd.f32 %v1419_v22, %v308_v16  ;;  %v837_v29 = vadd.f32 %v1467_v23, %v324_v18  ;;  %v327_v18 = vld [vmem:[#allocation2 + $0xb0] sm:$0xff] }
 0x109   : > { %v941_v27 = vadd.f32 %v1799_v15, %v902_v25  ;;  %v887_v30 = vld [vmem:[#allocation2 + $0x8] sm:$0xff]  ;;  %v312_v23 = vld [vmem:[#allocation2 + $0x38] sm:$0xff] }
 0x10a   : > { %v903_v31 = vld [vmem:[#allocation2 + $0x88] sm:$0xff]  ;;  %v957_v32 = vmax.f32 %v925_v26, 0.0  ;;  %v926_v34 = vadd.f32 %v1799_v15, %v887_v30  ;;  %854 = vst.msk [vmem:[#allocation2 + $0x18] sm:$0xff] %vm272_vm0, %v821_v28  ;;  %870 = vst.msk [vmem:[#allocation2 + $0x98] sm:$0xff] %vm272_vm0, %v837_v29  ;;  %v1420_v36 = vpop.f32.mrb[8].mxu0  ;;  %v1468_v37 = vpop.f32.mrb[8].mxu1 }
 0x10b   : > { %v973_v33 = vmax.f32 %v941_v27, 0.0  ;;  %v942_v35 = vadd.f32 %v1799_v15, %v903_v31  ;;  %v1421_v38 = vpop.f32.mrb[9].mxu0  ;;  %v1469_v39 = vpop.f32.mrb[9].mxu1  ;;  %v328_v25 = vld [vmem:[#allocation2 + $0xb8] sm:$0xff] }
 0x10c   : > { %v1360_v40 = vpack.c.bf16 %v957_v32, %v957_v32  ;;  %v958_v42 = vmax.f32 %v926_v34, 0.0  ;;  %v1423_v46 = vpop.f32.mrb[10].mxu0  ;;  %v1471_v47 = vpop.f32.mrb[10].mxu1  ;;  %v1422_v48 = vadd.f32 %v1421_v38, %v1420_v36  ;;  %v1470_v49 = vadd.f32 %v1469_v39, %v1468_v37 }
 0x10d   : > { %v1376_v41 = vpack.c.bf16 %v973_v33, %v973_v33  ;;  %v974_v43 = vmax.f32 %v942_v35, 0.0  ;;  %v1424_v51 = vpop.f32.mrb[11].mxu0  ;;  %v1472_v53 = vpop.f32.mrb[11].mxu1 }
 0x10e   : > { %1118 = vst.msk [vmem:[%s1813_s7] sm:$0xf] %vm1117_vm1, %v1360_v40  ;;  %v1361_v54 = vpack.c.bf16 %v958_v42, %v958_v42  ;;  %v1425_v56 = vadd.f32 %v1424_v51, %v1423_v46  ;;  %v1473_v57 = vadd.f32 %v1472_v53, %v1471_v47  ;;  %v822_v60 = vadd.f32 %v1422_v48, %v309_v44  ;;  %v313_v47 = vld [vmem:[#allocation2 + $0x40] sm:$0xff] }
 0x10f   : > { %1134 = vst.msk [vmem:[%s1813_s7 + $0x40] sm:$0xf] %vm1117_vm1, %v1376_v41  ;;  %v1377_v55 = vpack.c.bf16 %v974_v43, %v974_v43  ;;  %v888_v58 = vld [vmem:[#allocation2 + $0x10] sm:$0xff]  ;;  %v838_v61 = vadd.f32 %v1470_v49, %v325_v45  ;;  %v329_v49 = vld [vmem:[#allocation2 + $0xc0] sm:$0xff] }
 0x110   : > { %v904_v59 = vld [vmem:[#allocation2 + $0x90] sm:$0xff]  ;;  %1119 = vst.msk [vmem:[%s1813_s7 + $0x4] sm:$0xf] %vm1117_vm1, %v1361_v54  ;;  %v927_v62 = vadd.f32 %v1799_v15, %v888_v58  ;;  %v823_v0 = vadd.f32 %v1425_v56, %v310_v50  ;;  %v839_v1 = vadd.f32 %v1473_v57, %v326_v52 }
 0x111   : > { %1135 = vst.msk [vmem:[%s1813_s7 + $0x44] sm:$0xf] %vm1117_vm1, %v1377_v55  ;;  %v943_v63 = vadd.f32 %v1799_v15, %v904_v59  ;;  %v889_v2 = vld [vmem:[#allocation2 + $0x18] sm:$0xff] }
 0x112   : > { %v905_v3 = vld [vmem:[#allocation2 + $0x98] sm:$0xff]  ;;  %855 = vst.msk [vmem:[#allocation2 + $0x20] sm:$0xff] %vm272_vm0, %v822_v60  ;;  %871 = vst.msk [vmem:[#allocation2 + $0xa0] sm:$0xff] %vm272_vm0, %v838_v61  ;;  %v959_v4 = vmax.f32 %v927_v62, 0.0  ;;  %v928_v6 = vadd.f32 %v1799_v15, %v889_v2  ;;  %v1426_v8 = vpop.f32.mrb[12].mxu0  ;;  %v1474_v9 = vpop.f32.mrb[12].mxu1 }
 0x113   : > { %v975_v5 = vmax.f32 %v943_v63, 0.0  ;;  %v944_v7 = vadd.f32 %v1799_v15, %v905_v3  ;;  %856 = vst.msk [vmem:[#allocation2 + $0x28] sm:$0xff] %vm272_vm0, %v823_v0  ;;  %872 = vst.msk [vmem:[#allocation2 + $0xa8] sm:$0xff] %vm272_vm0, %v839_v1  ;;  %v1427_v10 = vpop.f32.mrb[13].mxu0  ;;  %v1475_v11 = vpop.f32.mrb[13].mxu1  ;;  %v314_v1 = vld [vmem:[#allocation2 + $0x48] sm:$0xff] }
 0x114   : > { %v1362_v12 = vpack.c.bf16 %v959_v4, %v959_v4  ;;  %v960_v14 = vmax.f32 %v928_v6, 0.0  ;;  %v1429_v19 = vpop.f32.mrb[14].mxu0  ;;  %v1477_v20 = vpop.f32.mrb[14].mxu1  ;;  %v1428_v21 = vadd.f32 %v1427_v10, %v1426_v8  ;;  %v1476_v22 = vadd.f32 %v1475_v11, %v1474_v9  ;;  %v330_v2 = vld [vmem:[#allocation2 + $0xc8] sm:$0xff] }
 0x115   : > { %v1378_v13 = vpack.c.bf16 %v975_v5, %v975_v5  ;;  %v976_v16 = vmax.f32 %v944_v7, 0.0  ;;  %v1430_v24 = vpop.f32.mrb[15].mxu0  ;;  %v1478_v26 = vpop.f32.mrb[15].mxu1 }
 0x116   : > { %1120 = vst.msk [vmem:[%s1813_s7 + $0x8] sm:$0xf] %vm1117_vm1, %v1362_v12  ;;  %v1363_v27 = vpack.c.bf16 %v960_v14, %v960_v14  ;;  %v1431_v29 = vadd.f32 %v1430_v24, %v1429_v19  ;;  %v1479_v30 = vadd.f32 %v1478_v26, %v1477_v20  ;;  %v824_v31 = vadd.f32 %v1428_v21, %v311_v17  ;;  %v315_v20 = vld [vmem:[#allocation2 + $0x50] sm:$0xff] }
 0x117   : > { %1136 = vst.msk [vmem:[%s1813_s7 + $0x48] sm:$0xf] %vm1117_vm1, %v1378_v13  ;;  %v1379_v28 = vpack.c.bf16 %v976_v16, %v976_v16  ;;  %v840_v32 = vadd.f32 %v1476_v22, %v327_v18  ;;  %v331_v22 = vld [vmem:[#allocation2 + $0xd0] sm:$0xff] }
 0x118   : > { %1121 = vst.msk [vmem:[%s1813_s7 + $0xc] sm:$0xf] %vm1117_vm1, %v1363_v27  ;;  %v825_v35 = vadd.f32 %v1431_v29, %v312_v23  ;;  %v841_v36 = vadd.f32 %v1479_v30, %v328_v25 }
 0x119   : > { %1137 = vst.msk [vmem:[%s1813_s7 + $0x4c] sm:$0xf] %vm1117_vm1, %v1379_v28  ;;  %v890_v33 = vld [vmem:[#allocation2 + $0x20] sm:$0xff] }
 0x11a   : > { %v906_v34 = vld [vmem:[#allocation2 + $0xa0] sm:$0xff]  ;;  %v929_v37 = vadd.f32 %v1799_v15, %v890_v33  ;;  %v891_v39 = vld [vmem:[#allocation2 + $0x28] sm:$0xff]  ;;  %857 = vst.msk [vmem:[#allocation2 + $0x30] sm:$0xff] %vm272_vm0, %v824_v31  ;;  %873 = vst.msk [vmem:[#allocation2 + $0xb0] sm:$0xff] %vm272_vm0, %v840_v32  ;;  %v1432_v43 = vpop.f32.mrb[16].mxu0  ;;  %v1480_v44 = vpop.f32.mrb[16].mxu1 }
 0x11b   : > { %v945_v38 = vadd.f32 %v1799_v15, %v906_v34  ;;  %v907_v40 = vld [vmem:[#allocation2 + $0xa8] sm:$0xff]  ;;  %v930_v41 = vadd.f32 %v1799_v15, %v891_v39  ;;  %858 = vst.msk [vmem:[#allocation2 + $0x38] sm:$0xff] %vm272_vm0, %v825_v35  ;;  %874 = vst.msk [vmem:[#allocation2 + $0xb8] sm:$0xff] %vm272_vm0, %v841_v36  ;;  %v1433_v48 = vpop.f32.mrb[17].mxu0  ;;  %v1481_v50 = vpop.f32.mrb[17].mxu1  ;;  %v332_v39 = vld [vmem:[#allocation2 + $0xd8] sm:$0xff] }
 0x11c   : > { %v946_v42 = vadd.f32 %v1799_v15, %v907_v40  ;;  %v961_v45 = vmax.f32 %v929_v37, 0.0  ;;  %v1434_v53 = vadd.f32 %v1433_v48, %v1432_v43  ;;  %v1482_v54 = vadd.f32 %v1481_v50, %v1480_v44  ;;  %v1435_v55 = vpop.f32.mrb[18].mxu0  ;;  %v1483_v56 = vpop.f32.mrb[18].mxu1 }
 0x11d   : > { %v977_v46 = vmax.f32 %v945_v38, 0.0  ;;  %v962_v51 = vmax.f32 %v930_v41, 0.0  ;;  %v1436_v59 = vpop.f32.mrb[19].mxu0  ;;  %v1484_v60 = vpop.f32.mrb[19].mxu1  ;;  %v316_v38 = vld [vmem:[#allocation2 + $0x58] sm:$0xff] }
 0x11e   : > { %v978_v52 = vmax.f32 %v946_v42, 0.0  ;;  %v1364_v57 = vpack.c.bf16 %v961_v45, %v961_v45  ;;  %v826_v63 = vadd.f32 %v1434_v53, %v313_v47  ;;  %v842_v0 = vadd.f32 %v1482_v54, %v329_v49 }
 0x11f   : > { %v1380_v58 = vpack.c.bf16 %v977_v46, %v977_v46  ;;  %v1365_v61 = vpack.c.bf16 %v962_v51, %v962_v51  ;;  %v1437_v3 = vadd.f32 %v1436_v59, %v1435_v55  ;;  %v1485_v4 = vadd.f32 %v1484_v60, %v1483_v56  ;;  %v317_v56 = vld [vmem:[#allocation2 + $0x60] sm:$0xff] }
 0x120   : > { %v1381_v62 = vpack.c.bf16 %v978_v52, %v978_v52  ;;  %1122 = vst.msk [vmem:[%s1813_s7 + $0x10] sm:$0xf] %vm1117_vm1, %v1364_v57 }
 0x121   : > { %1138 = vst.msk [vmem:[%s1813_s7 + $0x50] sm:$0xf] %vm1117_vm1, %v1380_v58  ;;  %1123 = vst.msk [vmem:[%s1813_s7 + $0x14] sm:$0xf] %vm1117_vm1, %v1365_v61  ;;  %v892_v5 = vld [vmem:[#allocation2 + $0x30] sm:$0xff]  ;;  %v827_v11 = vadd.f32 %v1437_v3, %v314_v1  ;;  %v843_v12 = vadd.f32 %v1485_v4, %v330_v2  ;;  %v333_v58 = vld [vmem:[#allocation2 + $0xe0] sm:$0xff] }
 0x122   : > { %1139 = vst.msk [vmem:[%s1813_s7 + $0x54] sm:$0xf] %vm1117_vm1, %v1381_v62  ;;  %v908_v6 = vld [vmem:[#allocation2 + $0xb0] sm:$0xff]  ;;  %v931_v7 = vadd.f32 %v1799_v15, %v892_v5  ;;  %v893_v9 = vld [vmem:[#allocation2 + $0x38] sm:$0xff]  ;;  %v1438_v16 = vpop.f32.mrb[20].mxu0  ;;  %v1486_v17 = vpop.f32.mrb[20].mxu1 }
 0x123   : > { %859 = vst.msk [vmem:[#allocation2 + $0x40] sm:$0xff] %vm272_vm0, %v826_v63  ;;  %875 = vst.msk [vmem:[#allocation2 + $0xc0] sm:$0xff] %vm272_vm0, %v842_v0  ;;  %v947_v8 = vadd.f32 %v1799_v15, %v908_v6  ;;  %v909_v10 = vld [vmem:[#allocation2 + $0xb8] sm:$0xff]  ;;  %v932_v13 = vadd.f32 %v1799_v15, %v893_v9  ;;  %v1439_v21 = vpop.f32.mrb[21].mxu0  ;;  %v1487_v23 = vpop.f32.mrb[21].mxu1  ;;  %v318_v4 = vld [vmem:[#allocation2 + $0x68] sm:$0xff] }
 0x124   : > { %v948_v14 = vadd.f32 %v1799_v15, %v909_v10  ;;  %v963_v18 = vmax.f32 %v931_v7, 0.0  ;;  %860 = vst.msk [vmem:[#allocation2 + $0x48] sm:$0xff] %vm272_vm0, %v827_v11  ;;  %876 = vst.msk [vmem:[#allocation2 + $0xc8] sm:$0xff] %vm272_vm0, %v843_v12  ;;  %v1440_v26 = vadd.f32 %v1439_v21, %v1438_v16  ;;  %v1488_v27 = vadd.f32 %v1487_v23, %v1486_v17  ;;  %v1441_v28 = vpop.f32.mrb[22].mxu0  ;;  %v1489_v29 = vpop.f32.mrb[22].mxu1  ;;  %v334_v6 = vld [vmem:[#allocation2 + $0xe8] sm:$0xff] }
 0x125   : > { %v979_v19 = vmax.f32 %v947_v8, 0.0  ;;  %v964_v24 = vmax.f32 %v932_v13, 0.0  ;;  %v1442_v32 = vpop.f32.mrb[23].mxu0  ;;  %v1490_v33 = vpop.f32.mrb[23].mxu1 }
 0x126   : > { %v980_v25 = vmax.f32 %v948_v14, 0.0  ;;  %v1366_v30 = vpack.c.bf16 %v963_v18, %v963_v18  ;;  %v828_v36 = vadd.f32 %v1440_v26, %v315_v20  ;;  %v844_v37 = vadd.f32 %v1488_v27, %v331_v22 }
 0x127   : > { %v1382_v31 = vpack.c.bf16 %v979_v19, %v979_v19  ;;  %v1367_v34 = vpack.c.bf16 %v964_v24, %v964_v24  ;;  %v1443_v42 = vadd.f32 %v1442_v32, %v1441_v28  ;;  %v1491_v43 = vadd.f32 %v1490_v33, %v1489_v29  ;;  %v319_v29 = vld [vmem:[#allocation2 + $0x70] sm:$0xff] }
 0x128   : > { %v1383_v35 = vpack.c.bf16 %v980_v25, %v980_v25  ;;  %1124 = vst.msk [vmem:[%s1813_s7 + $0x18] sm:$0xf] %vm1117_vm1, %v1366_v30 }
 0x129   : > { %1140 = vst.msk [vmem:[%s1813_s7 + $0x58] sm:$0xf] %vm1117_vm1, %v1382_v31  ;;  %1125 = vst.msk [vmem:[%s1813_s7 + $0x1c] sm:$0xf] %vm1117_vm1, %v1367_v34  ;;  %v829_v46 = vadd.f32 %v1443_v42, %v316_v38  ;;  %v845_v47 = vadd.f32 %v1491_v43, %v332_v39  ;;  %v335_v31 = vld [vmem:[#allocation2 + $0xf0] sm:$0xff]  ;;  %v336_v43 = vld [vmem:[#allocation2 + $0xf8] sm:$0xff] }
 0x12a   : > { %v894_v40 = vld [vmem:[#allocation2 + $0x40] sm:$0xff]  ;;  %1141 = vst.msk [vmem:[%s1813_s7 + $0x5c] sm:$0xf] %vm1117_vm1, %v1383_v35  ;;  %v1444_v52 = vpop.f32.mrb[24].mxu0  ;;  %v1492_v53 = vpop.f32.mrb[24].mxu1 }
 0x12b   : > { %v910_v41 = vld [vmem:[#allocation2 + $0xc0] sm:$0xff]  ;;  %v933_v44 = vadd.f32 %v1799_v15, %v894_v40  ;;  %861 = vst.msk [vmem:[#allocation2 + $0x50] sm:$0xff] %vm272_vm0, %v828_v36  ;;  %877 = vst.msk [vmem:[#allocation2 + $0xd0] sm:$0xff] %vm272_vm0, %v844_v37  ;;  %v895_v50 = vld [vmem:[#allocation2 + $0x48] sm:$0xff]  ;;  %v1445_v57 = vpop.f32.mrb[25].mxu0  ;;  %v1493_v59 = vpop.f32.mrb[25].mxu1 }
 0x12c   : > { %v949_v45 = vadd.f32 %v1799_v15, %v910_v41  ;;  %v911_v51 = vld [vmem:[#allocation2 + $0xc8] sm:$0xff]  ;;  %v934_v54 = vadd.f32 %v1799_v15, %v895_v50  ;;  %862 = vst.msk [vmem:[#allocation2 + $0x58] sm:$0xff] %vm272_vm0, %v829_v46  ;;  %878 = vst.msk [vmem:[#allocation2 + $0xd8] sm:$0xff] %vm272_vm0, %v845_v47  ;;  %v1446_v62 = vadd.f32 %v1445_v57, %v1444_v52  ;;  %v1447_v0 = vpop.f32.mrb[26].mxu0  ;;  %v1495_v1 = vpop.f32.mrb[26].mxu1  ;;  %v320_v41 = vld [vmem:[#allocation2 + $0x78] sm:$0xff] }
 0x12d   : > { %v965_v48 = vmax.f32 %v933_v44, 0.0  ;;  %v950_v55 = vadd.f32 %v1799_v15, %v911_v51  ;;  %v1494_v63 = vadd.f32 %v1493_v59, %v1492_v53  ;;  %v1448_v5 = vpop.f32.mrb[27].mxu0  ;;  %v1496_v7 = vpop.f32.mrb[27].mxu1 }
 0x12e   : > { %v981_v49 = vmax.f32 %v949_v45, 0.0  ;;  %v966_v2 = vmax.f32 %v934_v54, 0.0  ;;  %v830_v8 = vadd.f32 %v1446_v62, %v317_v56  ;;  %v1449_v10 = vadd.f32 %v1448_v5, %v1447_v0 }
 0x12f   : > { %v1368_v60 = vpack.c.bf16 %v965_v48, %v965_v48  ;;  %v982_v3 = vmax.f32 %v950_v55, 0.0  ;;  %v846_v9 = vadd.f32 %v1494_v63, %v333_v58  ;;  %v1497_v11 = vadd.f32 %v1496_v7, %v1495_v1 }
 0x130   : > { %v1384_v61 = vpack.c.bf16 %v981_v49, %v981_v49  ;;  %v1369_v12 = vpack.c.bf16 %v966_v2, %v966_v2  ;;  %863 = vst.msk [vmem:[#allocation2 + $0x60] sm:$0xff] %vm272_vm0, %v830_v8  ;;  %v831_v19 = vadd.f32 %v1449_v10, %v318_v4 }
 0x131   : > { %1126 = vst.msk [vmem:[%s1813_s7 + $0x20] sm:$0xf] %vm1117_vm1, %v1368_v60  ;;  %v1385_v13 = vpack.c.bf16 %v982_v3, %v982_v3  ;;  %v847_v20 = vadd.f32 %v1497_v11, %v334_v6 }
 0x132   : > { %1142 = vst.msk [vmem:[%s1813_s7 + $0x60] sm:$0xf] %vm1117_vm1, %v1384_v61  ;;  %v896_v14 = vld [vmem:[#allocation2 + $0x50] sm:$0xff]  ;;  %1127 = vst.msk [vmem:[%s1813_s7 + $0x24] sm:$0xf] %vm1117_vm1, %v1369_v12  ;;  %v1450_v25 = vpop.f32.mrb[28].mxu0 }
 0x133   : > { %v912_v16 = vld [vmem:[#allocation2 + $0xd0] sm:$0xff]  ;;  %v935_v17 = vadd.f32 %v1799_v15, %v896_v14  ;;  %879 = vst.msk [vmem:[#allocation2 + $0xe0] sm:$0xff] %vm272_vm0, %v846_v9  ;;  %v897_v23 = vld [vmem:[#allocation2 + $0x58] sm:$0xff]  ;;  %864 = vst.msk [vmem:[#allocation2 + $0x68] sm:$0xff] %vm272_vm0, %v831_v19  ;;  %v1498_v26 = vpop.f32.mrb[28].mxu1  ;;  %v1451_v30 = vpop.f32.mrb[29].mxu0 }
 0x134   : > { %v951_v18 = vadd.f32 %v1799_v15, %v912_v16  ;;  %1143 = vst.msk [vmem:[%s1813_s7 + $0x64] sm:$0xf] %vm1117_vm1, %v1385_v13  ;;  %v913_v24 = vld [vmem:[#allocation2 + $0xd8] sm:$0xff]  ;;  %v936_v27 = vadd.f32 %v1799_v15, %v897_v23  ;;  %v1499_v32 = vpop.f32.mrb[29].mxu1  ;;  %v1452_v35 = vadd.f32 %v1451_v30, %v1450_v25  ;;  %v1453_v37 = vpop.f32.mrb[30].mxu0 }
 0x135   : > { %v967_v21 = vmax.f32 %v935_v17, 0.0  ;;  %880 = vst.msk [vmem:[#allocation2 + $0xe8] sm:$0xff] %vm272_vm0, %v847_v20  ;;  %v952_v28 = vadd.f32 %v1799_v15, %v913_v24  ;;  %v1500_v36 = vadd.f32 %v1499_v32, %v1498_v26  ;;  %v1501_v38 = vpop.f32.mrb[30].mxu1  ;;  %v1454_v42 = vpop.f32.mrb[31].mxu0 }
 0x136   : > { %v983_v22 = vmax.f32 %v951_v18, 0.0  ;;  %v968_v39 = vmax.f32 %v936_v27, 0.0  ;;  %v1502_v44 = vpop.f32.mrb[31].mxu1  ;;  %v832_v45 = vadd.f32 %v1452_v35, %v319_v29  ;;  %v1455_v47 = vadd.f32 %v1454_v42, %v1453_v37 }
 0x137   : > { %v1370_v33 = vpack.c.bf16 %v967_v21, %v967_v21  ;;  %v984_v40 = vmax.f32 %v952_v28, 0.0  ;;  %v848_v46 = vadd.f32 %v1500_v36, %v335_v31  ;;  %v1503_v48 = vadd.f32 %v1502_v44, %v1501_v38  ;;  %v898_v51 = vld [vmem:[#allocation2 + $0x60] sm:$0xff] }
 0x138   : > { %v1386_v34 = vpack.c.bf16 %v983_v22, %v983_v22  ;;  %v1371_v49 = vpack.c.bf16 %v968_v39, %v968_v39  ;;  %v937_v53 = vadd.f32 %v1799_v15, %v898_v51  ;;  %865 = vst.msk [vmem:[#allocation2 + $0x70] sm:$0xff] %vm272_vm0, %v832_v45  ;;  %v833_v55 = vadd.f32 %v1455_v47, %v320_v41 }
 0x139   : > { %1128 = vst.msk [vmem:[%s1813_s7 + $0x28] sm:$0xf] %vm1117_vm1, %v1370_v33  ;;  %v1387_v50 = vpack.c.bf16 %v984_v40, %v984_v40  ;;  %v849_v56 = vadd.f32 %v1503_v48, %v336_v43 }
 0x13a   : > { %1144 = vst.msk [vmem:[%s1813_s7 + $0x68] sm:$0xf] %vm1117_vm1, %v1386_v34  ;;  %v914_v52 = vld [vmem:[#allocation2 + $0xe0] sm:$0xff]  ;;  %1129 = vst.msk [vmem:[%s1813_s7 + $0x2c] sm:$0xf] %vm1117_vm1, %v1371_v49  ;;  %v899_v57 = vld [vmem:[#allocation2 + $0x68] sm:$0xff] }
 0x13b   : > { %v953_v54 = vadd.f32 %v1799_v15, %v914_v52  ;;  %881 = vst.msk [vmem:[#allocation2 + $0xf0] sm:$0xff] %vm272_vm0, %v848_v46  ;;  %v969_v59 = vmax.f32 %v937_v53, 0.0  ;;  %v938_v61 = vadd.f32 %v1799_v15, %v899_v57  ;;  %866 = vst.msk [vmem:[#allocation2 + $0x78] sm:$0xff] %vm272_vm0, %v833_v55 }
 0x13c   : > { %1145 = vst.msk [vmem:[%s1813_s7 + $0x6c] sm:$0xf] %vm1117_vm1, %v1387_v50  ;;  %v915_v58 = vld [vmem:[#allocation2 + $0xe8] sm:$0xff] }
 0x13d   : > { %v985_v60 = vmax.f32 %v953_v54, 0.0  ;;  %v954_v62 = vadd.f32 %v1799_v15, %v915_v58  ;;  %882 = vst.msk [vmem:[#allocation2 + $0xf8] sm:$0xff] %vm272_vm0, %v849_v56  ;;  %v1372_v63 = vpack.c.bf16 %v969_v59, %v969_v59  ;;  %v970_v1 = vmax.f32 %v938_v61, 0.0 }
 0x13f   : > { %v1388_v0 = vpack.c.bf16 %v985_v60, %v985_v60  ;;  %v986_v2 = vmax.f32 %v954_v62, 0.0  ;;  %1130 = vst.msk [vmem:[%s1813_s7 + $0x30] sm:$0xf] %vm1117_vm1, %v1372_v63  ;;  %v1373_v3 = vpack.c.bf16 %v970_v1, %v970_v1  ;;  %v900_v5 = vld [vmem:[#allocation2 + $0x70] sm:$0xff] }
 0x140   : > { %v939_v7 = vadd.f32 %v1799_v15, %v900_v5 }
 0x141   : > { %1146 = vst.msk [vmem:[%s1813_s7 + $0x70] sm:$0xf] %vm1117_vm1, %v1388_v0  ;;  %v1389_v4 = vpack.c.bf16 %v986_v2, %v986_v2  ;;  %1131 = vst.msk [vmem:[%s1813_s7 + $0x34] sm:$0xf] %vm1117_vm1, %v1373_v3 }
 0x142   : > { %v916_v6 = vld [vmem:[#allocation2 + $0xf0] sm:$0xff]  ;;  %v901_v9 = vld [vmem:[#allocation2 + $0x78] sm:$0xff]  ;;  %v971_v11 = vmax.f32 %v939_v7, 0.0 }
 0x143   : > { %1147 = vst.msk [vmem:[%s1813_s7 + $0x74] sm:$0xf] %vm1117_vm1, %v1389_v4  ;;  %v955_v8 = vadd.f32 %v1799_v15, %v916_v6  ;;  %v940_v13 = vadd.f32 %v1799_v15, %v901_v9 }
 0x144   : > { %v917_v10 = vld [vmem:[#allocation2 + $0xf8] sm:$0xff]  ;;  %v1374_v16 = vpack.c.bf16 %v971_v11, %v971_v11 }
 0x145   : > { %v987_v12 = vmax.f32 %v955_v8, 0.0  ;;  %v956_v14 = vadd.f32 %v1799_v15, %v917_v10  ;;  %v972_v18 = vmax.f32 %v940_v13, 0.0 }
 0x146   : > { %1132 = vst.msk [vmem:[%s1813_s7 + $0x38] sm:$0xf] %vm1117_vm1, %v1374_v16 }
 0x147   : > { %v1390_v17 = vpack.c.bf16 %v987_v12, %v987_v12  ;;  %v988_v19 = vmax.f32 %v956_v14, 0.0  ;;  %v1375_v20 = vpack.c.bf16 %v972_v18, %v972_v18 }
 0x149   : > { %1148 = vst.msk [vmem:[%s1813_s7 + $0x78] sm:$0xf] %vm1117_vm1, %v1390_v17  ;;  %v1391_v21 = vpack.c.bf16 %v988_v19, %v988_v19  ;;  %1133 = vst.msk [vmem:[%s1813_s7 + $0x3c] sm:$0xf] %vm1117_vm1, %v1375_v20 }
 0x14b   : > { %1149 = vst.msk [vmem:[%s1813_s7 + $0x7c] sm:$0xf] %vm1117_vm1, %v1391_v21 }
 0x14c PF: > { %s13_s14 = sadd.s32 1, %s1631_s14   ;;  %s1944_s12 = smov %s1627_s13 }
 0x14d   : > { %p10_p5 = scmp.ge.s32.totalorder %s13_s14, 6   ;;  %s1945_s13 = smov %s1947_s15 }
 0x14f   :  { %12 = sbr.rel (!%p10_p5) target bundleno = 2 (0x2), region = 76 }

// kernel: siamese_forward.22
= control target key start
LH: loop header
LB: loop body
LE: loop exit
PB: predicated region body
PF: predicated region fallthrough
CT: control target
= control target key end

     0   :  { %s1602_s12 = smov 0   ;;  %s1604_s13 = smov 0   ;;  %s1994_s0 = inlined_call_operand.vmem [shape: bf16[256,640], index: 0, kind: input, shape index: {}]   ;;  %s1995_s1 = inlined_call_operand.vmem [shape: bf16[640,64], index: 1, kind: input, shape index: {}]   ;;  %s1996_s2 = inlined_call_operand.vmem [shape: f32[1,64], index: 2, kind: input, shape index: {}]   ;;  %s1997_s3 = inlined_call_operand.vmem [shape: bf16[256,64], index: 3, kind: output, shape index: {}]  }
   0x1   :  { %s1606_s14 = smov 0   ;;  %s1608_s15 = smov 0  }
   0x2   :  { %s1610_s16 = smov 0  }
   0x3 LB: > { %s25_s17 = sadd.s32 1, %s1575_s15  ;;  %p48_p1 = scmp.ne.s32.totalorder %s1567_s13, %s1563_s12  ;;  %s1579_s16 = sphi %s1610_s16, %s13_s16   ;;  %s1575_s15 = sphi %s1608_s15, %s2001_s15   ;;  %s1571_s14 = sphi %s1606_s14, %s2000_s14   ;;  %s1567_s13 = sphi %s1604_s13, %s1999_s13   ;;  %s1563_s12 = sphi %s1602_s12, %s1998_s12  }
   0x4   : > { %p26_p0 = scmp.ge.s32.totalorder %s25_s17, 5  ;;  %p49_p2 = scmp.eq.s32.totalorder %s1579_s16, 0 }
   0x5   : > { %s41_s19 = sadd.s32 1, %s1567_s13  ;;  %p1286_p5 = scmp.ge.s32.totalorder %s1579_s16, 5 }
   0x6   : > { %s2003_s17 = smov (%p26_p0, %s25_s17), 0  ;;  %p50_p3 = por %p49_p2, %p48_p1 }
   0x7   : > { %s37_s18 = ssub.s32 %s1575_s15, %s2003_s17  ;;  %162 = sbr.rel (%p1286_p5) target bundleno = 39 (0x27), region = 20 }
   0x8   : > { %p39_p4 = scmp.eq.s32.totalorder %s37_s18, 0 }
   0xa   : > { %s1637_s20 = scalar_select %p39_p4, %s1567_s13, %s41_s19  }
   0xe   : > { %165 = sbr.rel (!%p50_p3) target bundleno = 39 (0x27), region = 24  ;;  %s167_s21 = sand.u32 (%p50_p3), 1, %s1567_s13  }
   0xf   : > { %s1288_s22 = sshll.u32 (%p50_p3), %s1575_s15, 2  ;;  %s1287_s23 = sshll.u32 (%p50_p3), %s167_s21, 7 }
  0x10   : > { %s1645_s26 = scalar_lea.vmem (%p50_p3), %s1994_s0, %s1288_s22  ;;  %s1649_s27 = scalar_lea.vmem (%p50_p3), [#allocation3], %s1287_s23 }
  0x11   : > { %v190_v0 = vld [vmem:[%s1645_s26] sm:$0xf] (%p50_p3)  ;;  %v192_v1 = vld [vmem:[%s1645_s26 + $0x14] sm:$0xf] (%p50_p3)  ;;  %v194_v2 = vld [vmem:[%s1645_s26 + $0x28] sm:$0xf] (%p50_p3) }
  0x12   : > { %191 = vst [vmem:[%s1649_s27] sm:$0xf] (%p50_p3), %v190_v0  ;;  %193 = vst [vmem:[%s1649_s27 + $0x4] sm:$0xf] (%p50_p3), %v192_v1  ;;  %v196_v3 = vld [vmem:[%s1645_s26 + $0x3c] sm:$0xf] (%p50_p3) }
  0x13   : > { %v198_v4 = vld [vmem:[%s1645_s26 + $0x50] sm:$0xf] (%p50_p3)  ;;  %195 = vst [vmem:[%s1649_s27 + $0x8] sm:$0xf] (%p50_p3), %v194_v2  ;;  %197 = vst [vmem:[%s1649_s27 + $0xc] sm:$0xf] (%p50_p3), %v196_v3 }
  0x14   : > { %199 = vst [vmem:[%s1649_s27 + $0x10] sm:$0xf] (%p50_p3), %v198_v4  ;;  %v200_v5 = vld [vmem:[%s1645_s26 + $0x64] sm:$0xf] (%p50_p3)  ;;  %v202_v6 = vld [vmem:[%s1645_s26 + $0x78] sm:$0xf] (%p50_p3) }
  0x15   : > { %v204_v7 = vld [vmem:[%s1645_s26 + $0x8c] sm:$0xf]  ;;  %201 = vst [vmem:[%s1649_s27 + $0x14] sm:$0xf] %v200_v5  ;;  %203 = vst [vmem:[%s1649_s27 + $0x18] sm:$0xf] %v202_v6 }
  0x16   : > { %205 = vst [vmem:[%s1649_s27 + $0x1c] sm:$0xf] %v204_v7  ;;  %v206_v8 = vld [vmem:[%s1645_s26 + $0xa0] sm:$0xf]  ;;  %v208_v9 = vld [vmem:[%s1645_s26 + $0xb4] sm:$0xf] }
  0x17   : > { %v210_v10 = vld [vmem:[%s1645_s26 + $0xc8] sm:$0xf]  ;;  %207 = vst [vmem:[%s1649_s27 + $0x20] sm:$0xf] %v206_v8  ;;  %209 = vst [vmem:[%s1649_s27 + $0x24] sm:$0xf] %v208_v9 }
  0x18   : > { %211 = vst [vmem:[%s1649_s27 + $0x28] sm:$0xf] %v210_v10  ;;  %v212_v11 = vld [vmem:[%s1645_s26 + $0xdc] sm:$0xf]  ;;  %v214_v12 = vld [vmem:[%s1645_s26 + $0xf0] sm:$0xf] }
  0x19   : > { %v216_v13 = vld [vmem:[%s1645_s26 + $0x104] sm:$0xf]  ;;  %213 = vst [vmem:[%s1649_s27 + $0x2c] sm:$0xf] %v212_v11  ;;  %215 = vst [vmem:[%s1649_s27 + $0x30] sm:$0xf] %v214_v12 }
  0x1a   : > { %217 = vst [vmem:[%s1649_s27 + $0x34] sm:$0xf] %v216_v13  ;;  %v218_v14 = vld [vmem:[%s1645_s26 + $0x118] sm:$0xf]  ;;  %v220_v15 = vld [vmem:[%s1645_s26 + $0x12c] sm:$0xf] }
  0x1b   : > { %v222_v16 = vld [vmem:[%s1645_s26 + $0x140] sm:$0xf]  ;;  %219 = vst [vmem:[%s1649_s27 + $0x38] sm:$0xf] %v218_v14  ;;  %221 = vst [vmem:[%s1649_s27 + $0x3c] sm:$0xf] %v220_v15 }
  0x1c   : > { %223 = vst [vmem:[%s1649_s27 + $0x40] sm:$0xf] %v222_v16  ;;  %v224_v17 = vld [vmem:[%s1645_s26 + $0x154] sm:$0xf]  ;;  %v226_v18 = vld [vmem:[%s1645_s26 + $0x168] sm:$0xf] }
  0x1d   : > { %v228_v19 = vld [vmem:[%s1645_s26 + $0x17c] sm:$0xf]  ;;  %225 = vst [vmem:[%s1649_s27 + $0x44] sm:$0xf] %v224_v17  ;;  %227 = vst [vmem:[%s1649_s27 + $0x48] sm:$0xf] %v226_v18 }
  0x1e   : > { %229 = vst [vmem:[%s1649_s27 + $0x4c] sm:$0xf] %v228_v19  ;;  %v230_v20 = vld [vmem:[%s1645_s26 + $0x190] sm:$0xf]  ;;  %v232_v21 = vld [vmem:[%s1645_s26 + $0x1a4] sm:$0xf] }
  0x1f   : > { %v234_v22 = vld [vmem:[%s1645_s26 + $0x1b8] sm:$0xf]  ;;  %231 = vst [vmem:[%s1649_s27 + $0x50] sm:$0xf] %v230_v20  ;;  %233 = vst [vmem:[%s1649_s27 + $0x54] sm:$0xf] %v232_v21 }
  0x20   : > { %235 = vst [vmem:[%s1649_s27 + $0x58] sm:$0xf] %v234_v22  ;;  %v236_v23 = vld [vmem:[%s1645_s26 + $0x1cc] sm:$0xf]  ;;  %v238_v24 = vld [vmem:[%s1645_s26 + $0x1e0] sm:$0xf] }
  0x21   : > { %v240_v25 = vld [vmem:[%s1645_s26 + $0x1f4] sm:$0xf]  ;;  %237 = vst [vmem:[%s1649_s27 + $0x5c] sm:$0xf] %v236_v23  ;;  %239 = vst [vmem:[%s1649_s27 + $0x60] sm:$0xf] %v238_v24 }
  0x22   : > { %241 = vst [vmem:[%s1649_s27 + $0x64] sm:$0xf] %v240_v25  ;;  %v242_v26 = vld [vmem:[%s1645_s26 + $0x208] sm:$0xf]  ;;  %v244_v27 = vld [vmem:[%s1645_s26 + $0x21c] sm:$0xf] }
  0x23   : > { %v246_v28 = vld [vmem:[%s1645_s26 + $0x230] sm:$0xf]  ;;  %243 = vst [vmem:[%s1649_s27 + $0x68] sm:$0xf] %v242_v26  ;;  %245 = vst [vmem:[%s1649_s27 + $0x6c] sm:$0xf] %v244_v27 }
  0x24   : > { %247 = vst [vmem:[%s1649_s27 + $0x70] sm:$0xf] %v246_v28  ;;  %v248_v29 = vld [vmem:[%s1645_s26 + $0x244] sm:$0xf]  ;;  %v250_v30 = vld [vmem:[%s1645_s26 + $0x258] sm:$0xf] }
  0x25   : > { %v252_v31 = vld [vmem:[%s1645_s26 + $0x26c] sm:$0xf]  ;;  %249 = vst [vmem:[%s1649_s27 + $0x74] sm:$0xf] %v248_v29  ;;  %251 = vst [vmem:[%s1649_s27 + $0x78] sm:$0xf] %v250_v30 }
  0x26   : > { %253 = vst [vmem:[%s1649_s27 + $0x7c] sm:$0xf] %v252_v31 }
  0x27 PF: > { %p1289_p6 = scmp.ge.s32.totalorder %s1579_s16, 1  ;;  %p351_p7 = scmp.lt.s32.totalorder %s1579_s16, 6 }
  0x29   : > { %p352_p8 = pnand %p1289_p6, %p351_p7 }
  0x2a   : > { %s358_s28 = sand.u32 (!%p352_p8), 1, %s1563_s12   ;;  %s1291_s29 = sshll.u32 (!%p352_p8), %s1571_s14, 4 }
  0x2b   : > { %355 = sbr.rel (%p352_p8) target bundleno = 361 (0x169), region = 69  ;;  %s1290_s30 = sshll.u32 (!%p352_p8), %s358_s28, 7 }
  0x2c   : > { %p397_p9 = scmp.lt.s32.totalorder (!%p352_p8), %s1291_s29, 79  ;;  %s1722_s8 = scalar_lea.vmem (!%p352_p8), [#allocation3], %s1290_s30 }
  0x2d   : > { %p1293_p10 = scmp.ne.s32.totalorder (!%p352_p8), %s1571_s14, 0 }
  0x32   : > { %s2005_s29 = smov (!%p397_p9, %s1291_s29), 79  ;;  %421 = sbr.rel (%p1293_p10) target bundleno = 68 (0x44), region = 77 }
  0x33   : > { %s1292_s4 = sshll.u32 %s2005_s29, 2  ;;  %vm422_vm0 = vcmask (!%p1293_p10), 523264   ;;  %v1581_v32 = vmov (!%p1293_p10), 0.0  }
  0x34   : > { %s1720_s7 = scalar_lea.vmem %s1995_s1, %s1292_s4  ;;  %423 = vst.msk [vmem:[#allocation2] sm:$0xff] (!%p1293_p10), %vm422_vm0, %v1581_v32  ;;  %424 = vst.msk [vmem:[#allocation2 + $0x8] sm:$0xff] (!%p1293_p10), %vm422_vm0, %v1581_v32 }
  0x35   : > { %425 = vst.msk [vmem:[#allocation2 + $0x10] sm:$0xff] (!%p1293_p10), %vm422_vm0, %v1581_v32  ;;  %426 = vst.msk [vmem:[#allocation2 + $0x18] sm:$0xff] (!%p1293_p10), %vm422_vm0, %v1581_v32 }
  0x36   : > { %427 = vst.msk [vmem:[#allocation2 + $0x20] sm:$0xff] (!%p1293_p10), %vm422_vm0, %v1581_v32  ;;  %428 = vst.msk [vmem:[#allocation2 + $0x28] sm:$0xff] (!%p1293_p10), %vm422_vm0, %v1581_v32 }
  0x37   : > { %429 = vst.msk [vmem:[#allocation2 + $0x30] sm:$0xff] (!%p1293_p10), %vm422_vm0, %v1581_v32  ;;  %430 = vst.msk [vmem:[#allocation2 + $0x38] sm:$0xff] (!%p1293_p10), %vm422_vm0, %v1581_v32 }
  0x38   : > { %431 = vst.msk [vmem:[#allocation2 + $0x40] sm:$0xff] (!%p1293_p10), %vm422_vm0, %v1581_v32  ;;  %432 = vst.msk [vmem:[#allocation2 + $0x48] sm:$0xff] (!%p1293_p10), %vm422_vm0, %v1581_v32 }
  0x39   : > { %433 = vst.msk [vmem:[#allocation2 + $0x50] sm:$0xff] %vm422_vm0, %v1581_v32  ;;  %434 = vst.msk [vmem:[#allocation2 + $0x58] sm:$0xff] %vm422_vm0, %v1581_v32 }
  0x3a   : > { %435 = vst.msk [vmem:[#allocation2 + $0x60] sm:$0xff] %vm422_vm0, %v1581_v32  ;;  %436 = vst.msk [vmem:[#allocation2 + $0x68] sm:$0xff] %vm422_vm0, %v1581_v32 }
  0x3b   : > { %437 = vst.msk [vmem:[#allocation2 + $0x70] sm:$0xff] %vm422_vm0, %v1581_v32  ;;  %438 = vst.msk [vmem:[#allocation2 + $0x78] sm:$0xff] %vm422_vm0, %v1581_v32 }
  0x3c   : > { %439 = vst.msk [vmem:[#allocation2 + $0x80] sm:$0xff] %vm422_vm0, %v1581_v32  ;;  %440 = vst.msk [vmem:[#allocation2 + $0x88] sm:$0xff] %vm422_vm0, %v1581_v32 }
  0x3d   : > { %441 = vst.msk [vmem:[#allocation2 + $0x90] sm:$0xff] %vm422_vm0, %v1581_v32  ;;  %442 = vst.msk [vmem:[#allocation2 + $0x98] sm:$0xff] %vm422_vm0, %v1581_v32 }
  0x3e   : > { %443 = vst.msk [vmem:[#allocation2 + $0xa0] sm:$0xff] %vm422_vm0, %v1581_v32  ;;  %444 = vst.msk [vmem:[#allocation2 + $0xa8] sm:$0xff] %vm422_vm0, %v1581_v32 }
  0x3f   : > { %445 = vst.msk [vmem:[#allocation2 + $0xb0] sm:$0xff] %vm422_vm0, %v1581_v32  ;;  %446 = vst.msk [vmem:[#allocation2 + $0xb8] sm:$0xff] %vm422_vm0, %v1581_v32 }
  0x40   : > { %447 = vst.msk [vmem:[#allocation2 + $0xc0] sm:$0xff] %vm422_vm0, %v1581_v32  ;;  %448 = vst.msk [vmem:[#allocation2 + $0xc8] sm:$0xff] %vm422_vm0, %v1581_v32 }
  0x41   : > { %449 = vst.msk [vmem:[#allocation2 + $0xd0] sm:$0xff] %vm422_vm0, %v1581_v32  ;;  %450 = vst.msk [vmem:[#allocation2 + $0xd8] sm:$0xff] %vm422_vm0, %v1581_v32 }
  0x42   : > { %451 = vst.msk [vmem:[#allocation2 + $0xe0] sm:$0xff] %vm422_vm0, %v1581_v32  ;;  %452 = vst.msk [vmem:[#allocation2 + $0xe8] sm:$0xff] %vm422_vm0, %v1581_v32 }
  0x43   : > { %453 = vst.msk [vmem:[#allocation2 + $0xf0] sm:$0xff] %vm422_vm0, %v1581_v32  ;;  %454 = vst.msk [vmem:[#allocation2 + $0xf8] sm:$0xff] %vm422_vm0, %v1581_v32 }
  0x44 PF: > { %v1517_v33 = vld [vmem:[%s1720_s7] sm:$0xff]   ;;  %v1518_v34 = vld [vmem:[%s1720_s7 + $0x8] sm:$0xff]   ;;  %v1519_v35 = vld [vmem:[%s1720_s7 + $0x10] sm:$0xff]   ;;  %vm872_vm1 = vcmask 523264   ;;  %p1318_p11 = scmp.ne.s32.totalorder %s1571_s14, 4 }
  0x45   : > { %1412 = vmatprep.subr.bf16.mxu0 %v1517_v33  ;;  %1460 = vmatprep.subr.bf16.mxu1 %v1517_v33  ;;  %v1520_v36 = vld [vmem:[%s1720_s7 + $0x18] sm:$0xff]   ;;  %v1525_v37 = vld [vmem:[%s1722_s8] sm:$0xff]   ;;  %v1522_v40 = vld [vmem:[%s1720_s7 + $0x28] sm:$0xff]   ;;  %vm1140_vm2 = vcmask (!%p1318_p11), 519168  }
  0x46   : > { %1413 = vmatpush3.bf16.msra.mxu0 %v1517_v33  ;;  %1468 = vmatpush3.bf16.msra.mxu1 %v1517_v33  ;;  %v1526_v38 = vld [vmem:[%s1722_s8 + $0x40] sm:$0xff]   ;;  %v1523_v41 = vld [vmem:[%s1720_s7 + $0x30] sm:$0xff]   ;;  %v1524_v42 = vld [vmem:[%s1720_s7 + $0x38] sm:$0xff]  }
  0x47   : > { %1414 = vmatprep.subr.bf16.mxu0 %v1518_v34  ;;  %1461 = vmatprep.subr.bf16.mxu1 %v1518_v34  ;;  %v1521_v39 = vld [vmem:[%s1720_s7 + $0x20] sm:$0xff]   ;;  %v1527_v43 = vld [vmem:[%s1722_s8 + $0x8] sm:$0xff]   ;;  %v1529_v45 = vld [vmem:[%s1722_s8 + $0x10] sm:$0xff]  }
  0x48   : > { %1428 = vmatprep.mubr.bf16.mxu0 %v1525_v37  ;;  %1444 = vmatprep.mubr.bf16.mxu1 %v1526_v38  ;;  %v1528_v44 = vld [vmem:[%s1722_s8 + $0x48] sm:$0xff]   ;;  %v1530_v46 = vld [vmem:[%s1722_s8 + $0x50] sm:$0xff]   ;;  %v1531_v47 = vld [vmem:[%s1722_s8 + $0x18] sm:$0xff]  }
  0x49   : > { %v1532_v48 = vld [vmem:[%s1722_s8 + $0x58] sm:$0xff]   ;;  %v1533_v49 = vld [vmem:[%s1722_s8 + $0x20] sm:$0xff]   ;;  %v1535_v51 = vld [vmem:[%s1722_s8 + $0x28] sm:$0xff]  }
  0x4a   : > { %1415 = vmatpush3.bf16.msra.mxu0 %v1518_v34  ;;  %1469 = vmatpush3.bf16.msra.mxu1 %v1518_v34  ;;  %v1534_v50 = vld [vmem:[%s1722_s8 + $0x60] sm:$0xff]   ;;  %v1536_v52 = vld [vmem:[%s1722_s8 + $0x68] sm:$0xff]   ;;  %v1537_v53 = vld [vmem:[%s1722_s8 + $0x30] sm:$0xff]  }
  0x4b   : > { %1416 = vmatprep.subr.bf16.mxu0 %v1519_v35  ;;  %1462 = vmatprep.subr.bf16.mxu1 %v1519_v35  ;;  %v1538_v54 = vld [vmem:[%s1722_s8 + $0x70] sm:$0xff]   ;;  %v1539_v55 = vld [vmem:[%s1722_s8 + $0x38] sm:$0xff]   ;;  %v455_v59 = vld [vmem:[#allocation2] sm:$0xff] }
  0x4c   : > { %v1540_v56 = vld [vmem:[%s1722_s8 + $0x78] sm:$0xff]   ;;  %v457_v57 = vld [vmem:[#allocation2 + $0x10] sm:$0xff]  ;;  %v471_v60 = vld [vmem:[#allocation2 + $0x80] sm:$0xff] }
  0x4d   : > { %v473_v58 = vld [vmem:[#allocation2 + $0x90] sm:$0xff]  ;;  %v458_v63 = vld [vmem:[#allocation2 + $0x18] sm:$0xff]  ;;  %v456_v5 = vld [vmem:[#allocation2 + $0x8] sm:$0xff] }
  0x4e   : > { %1417 = vmatpush3.bf16.msra.mxu0 %v1519_v35  ;;  %1470 = vmatpush3.bf16.msra.mxu1 %v1519_v35  ;;  %v474_v0 = vld [vmem:[#allocation2 + $0x98] sm:$0xff]  ;;  %v472_v6 = vld [vmem:[#allocation2 + $0x88] sm:$0xff]  ;;  %v461_v17 = vld [vmem:[#allocation2 + $0x30] sm:$0xff] }
  0x4f   : > { %1418 = vmatprep.subr.bf16.mxu0 %v1520_v36  ;;  %1463 = vmatprep.subr.bf16.mxu1 %v1520_v36  ;;  %v477_v18 = vld [vmem:[#allocation2 + $0xb0] sm:$0xff]  ;;  %v459_v19 = vld [vmem:[#allocation2 + $0x20] sm:$0xff]  ;;  %v462_v23 = vld [vmem:[#allocation2 + $0x38] sm:$0xff] }
  0x50   : > { %v475_v20 = vld [vmem:[#allocation2 + $0xa0] sm:$0xff]  ;;  %v478_v24 = vld [vmem:[#allocation2 + $0xb8] sm:$0xff]  ;;  %v460_v29 = vld [vmem:[#allocation2 + $0x28] sm:$0xff] }
  0x51   : > { %v476_v30 = vld [vmem:[#allocation2 + $0xa8] sm:$0xff] }
  0x52   : > { %1419 = vmatpush3.bf16.msra.mxu0 %v1520_v36  ;;  %1471 = vmatpush3.bf16.msra.mxu1 %v1520_v36 }
  0x53   : > { %1420 = vmatprep.subr.bf16.mxu0 %v1521_v39  ;;  %1464 = vmatprep.subr.bf16.mxu1 %v1521_v39 }
  0x56   : > { %1421 = vmatpush3.bf16.msra.mxu0 %v1521_v39  ;;  %1472 = vmatpush3.bf16.msra.mxu1 %v1521_v39 }
  0x57   : > { %1422 = vmatprep.subr.bf16.mxu0 %v1522_v40  ;;  %1465 = vmatprep.subr.bf16.mxu1 %v1522_v40 }
  0x5a   : > { %1423 = vmatpush3.bf16.msra.mxu0 %v1522_v40  ;;  %1473 = vmatpush3.bf16.msra.mxu1 %v1522_v40 }
  0x5b   : > { %1424 = vmatprep.subr.bf16.mxu0 %v1523_v41  ;;  %1466 = vmatprep.subr.bf16.mxu1 %v1523_v41 }
  0x5e   : > { %1425 = vmatpush3.bf16.msra.mxu0 %v1523_v41  ;;  %1474 = vmatpush3.bf16.msra.mxu1 %v1523_v41  ;;  %v465_v41 = vld [vmem:[#allocation2 + $0x50] sm:$0xff] }
  0x5f   : > { %1426 = vmatprep.subr.bf16.mxu0 %v1524_v42  ;;  %1467 = vmatprep.subr.bf16.mxu1 %v1524_v42 }
  0x62   : > { %1427 = vmatpush3.bf16.msra.mxu0 %v1524_v42  ;;  %1475 = vmatpush3.bf16.msra.mxu1 %v1524_v42  ;;  %v481_v42 = vld [vmem:[#allocation2 + $0xd0] sm:$0xff] }
  0x65   : > { %1429 = vmatmul.mubr.bf16.vlgmr.msra.gmra.mrb[0].mxu0 %v1527_v43  ;;  %1445 = vmatmul.mubr.bf16.vlgmr.msra.gmra.mrb[0].mxu1 %v1528_v44  ;;  %v463_v43 = vld [vmem:[#allocation2 + $0x40] sm:$0xff] }
  0x66   : > { %1432 = vmatprep.mubr.bf16.mxu0 %v1529_v45  ;;  %1448 = vmatprep.mubr.bf16.mxu1 %v1530_v46  ;;  %v479_v44 = vld [vmem:[#allocation2 + $0xc0] sm:$0xff] }
  0x6d   : > { %1433 = vmatmul.mubr.bf16.gmra.mrb[4].mxu0 %v1531_v47  ;;  %1449 = vmatmul.mubr.bf16.gmra.mrb[4].mxu1 %v1532_v48  ;;  %v466_v47 = vld [vmem:[#allocation2 + $0x58] sm:$0xff] }
  0x6e   : > { %1436 = vmatprep.mubr.bf16.mxu0 %v1533_v49  ;;  %1452 = vmatprep.mubr.bf16.mxu1 %v1534_v50  ;;  %v482_v48 = vld [vmem:[#allocation2 + $0xd8] sm:$0xff] }
  0x75   : > { %1437 = vmatmul.mubr.bf16.gmra.mrb[8].mxu0 %v1535_v51  ;;  %1453 = vmatmul.mubr.bf16.gmra.mrb[8].mxu1 %v1536_v52 }
  0x76   : > { %1440 = vmatprep.mubr.bf16.mxu0 %v1537_v53  ;;  %1456 = vmatprep.mubr.bf16.mxu1 %v1538_v54  ;;  %v464_v53 = vld [vmem:[#allocation2 + $0x48] sm:$0xff] }
  0x77   : > { %v480_v54 = vld [vmem:[#allocation2 + $0xc8] sm:$0xff] }
  0x7d   : > { %1441 = vmatmul.mubr.bf16.gmra.mrb[12].mxu0 %v1539_v55  ;;  %1457 = vmatmul.mubr.bf16.gmra.mrb[12].mxu1 %v1540_v56 }
 0x138   : > { %v1430_v61 = vpop.f32.mrb[0].mxu0  ;;  %v1446_v62 = vpop.f32.mrb[0].mxu1 }
 0x139   : > { %v842_v1 = vadd.f32 %v1430_v61, %v457_v57  ;;  %v858_v2 = vadd.f32 %v1446_v62, %v473_v58  ;;  %v713_v3 = vpop.f32.mrb[1].mxu0  ;;  %v777_v4 = vpop.f32.mrb[1].mxu1 }
 0x13a   : > { %v840_v7 = vadd.f32 %v713_v3, %v455_v59  ;;  %v856_v8 = vadd.f32 %v777_v4, %v471_v60  ;;  %v1431_v9 = vpop.f32.mrb[2].mxu0  ;;  %v1447_v10 = vpop.f32.mrb[2].mxu1  ;;  %v467_v3 = vld [vmem:[#allocation2 + $0x60] sm:$0xff] }
 0x13b   : > { %875 = vst.msk [vmem:[#allocation2 + $0x10] sm:$0xff] %vm872_vm1, %v842_v1  ;;  %891 = vst.msk [vmem:[#allocation2 + $0x90] sm:$0xff] %vm872_vm1, %v858_v2  ;;  %v843_v11 = vadd.f32 %v1431_v9, %v458_v63  ;;  %v859_v12 = vadd.f32 %v1447_v10, %v474_v0  ;;  %v716_v13 = vpop.f32.mrb[3].mxu0  ;;  %v780_v14 = vpop.f32.mrb[3].mxu1  ;;  %v469_v1 = vld [vmem:[#allocation2 + $0x70] sm:$0xff]  ;;  %v483_v4 = vld [vmem:[#allocation2 + $0xe0] sm:$0xff] }
 0x13c   : > { %873 = vst.msk [vmem:[#allocation2] sm:$0xff] %vm872_vm1, %v840_v7  ;;  %889 = vst.msk [vmem:[#allocation2 + $0x80] sm:$0xff] %vm872_vm1, %v856_v8  ;;  %v841_v15 = vadd.f32 %v716_v13, %v456_v5  ;;  %v857_v16 = vadd.f32 %v780_v14, %v472_v6  ;;  %v485_v2 = vld [vmem:[#allocation2 + $0xf0] sm:$0xff]  ;;  %v470_v7 = vld [vmem:[#allocation2 + $0x78] sm:$0xff] }
 0x13d   : > { %876 = vst.msk [vmem:[#allocation2 + $0x18] sm:$0xff] %vm872_vm1, %v843_v11  ;;  %892 = vst.msk [vmem:[#allocation2 + $0x98] sm:$0xff] %vm872_vm1, %v859_v12  ;;  %v486_v8 = vld [vmem:[#allocation2 + $0xf8] sm:$0xff]  ;;  %v468_v13 = vld [vmem:[#allocation2 + $0x68] sm:$0xff] }
 0x13e   : > { %874 = vst.msk [vmem:[#allocation2 + $0x8] sm:$0xff] %vm872_vm1, %v841_v15  ;;  %890 = vst.msk [vmem:[#allocation2 + $0x88] sm:$0xff] %vm872_vm1, %v857_v16  ;;  %v484_v14 = vld [vmem:[#allocation2 + $0xe8] sm:$0xff] }
 0x140   : > { %v1434_v21 = vpop.f32.mrb[4].mxu0  ;;  %v1450_v22 = vpop.f32.mrb[4].mxu1 }
 0x141   : > { %v846_v25 = vadd.f32 %v1434_v21, %v461_v17  ;;  %v862_v26 = vadd.f32 %v1450_v22, %v477_v18  ;;  %v729_v27 = vpop.f32.mrb[5].mxu0  ;;  %v793_v28 = vpop.f32.mrb[5].mxu1 }
 0x142   : > { %v844_v31 = vadd.f32 %v729_v27, %v459_v19  ;;  %v860_v32 = vadd.f32 %v793_v28, %v475_v20  ;;  %v1435_v33 = vpop.f32.mrb[6].mxu0  ;;  %v1451_v34 = vpop.f32.mrb[6].mxu1 }
 0x143   : > { %879 = vst.msk [vmem:[#allocation2 + $0x30] sm:$0xff] %vm872_vm1, %v846_v25  ;;  %895 = vst.msk [vmem:[#allocation2 + $0xb0] sm:$0xff] %vm872_vm1, %v862_v26  ;;  %v847_v35 = vadd.f32 %v1435_v33, %v462_v23  ;;  %v863_v36 = vadd.f32 %v1451_v34, %v478_v24  ;;  %v732_v37 = vpop.f32.mrb[7].mxu0  ;;  %v796_v38 = vpop.f32.mrb[7].mxu1  ;;  %v909_v25 = vld [vmem:[#allocation2] sm:$0xff] (!%p1318_p11) }
 0x144   : > { %877 = vst.msk [vmem:[#allocation2 + $0x20] sm:$0xff] %vm872_vm1, %v844_v31  ;;  %893 = vst.msk [vmem:[#allocation2 + $0xa0] sm:$0xff] %vm872_vm1, %v860_v32  ;;  %v845_v39 = vadd.f32 %v732_v37, %v460_v29  ;;  %v861_v40 = vadd.f32 %v796_v38, %v476_v30  ;;  %v1817_v26 = vld [vmem:[%s1996_s2] ss:$0 sm:$0xff] (!%p1318_p11)  ;;  %v911_v30 = vld [vmem:[#allocation2 + $0x10] sm:$0xff] (!%p1318_p11) }
 0x145   : > { %880 = vst.msk [vmem:[#allocation2 + $0x38] sm:$0xff] %vm872_vm1, %v847_v35  ;;  %896 = vst.msk [vmem:[#allocation2 + $0xb8] sm:$0xff] %vm872_vm1, %v863_v36  ;;  %v910_v27 = vld [vmem:[#allocation2 + $0x8] sm:$0xff] (!%p1318_p11)  ;;  %v948_v28 = vadd.f32 (!%p1318_p11), %v1817_v26, %v909_v25  ;;  %v912_v31 = vld [vmem:[#allocation2 + $0x18] sm:$0xff] (!%p1318_p11)  ;;  %v950_v33 = vadd.f32 (!%p1318_p11), %v1817_v26, %v911_v30 }
 0x146   : > { %878 = vst.msk [vmem:[#allocation2 + $0x28] sm:$0xff] %vm872_vm1, %v845_v39  ;;  %894 = vst.msk [vmem:[#allocation2 + $0xa8] sm:$0xff] %vm872_vm1, %v861_v40  ;;  %v949_v29 = vadd.f32 (!%p1318_p11), %v1817_v26, %v910_v27  ;;  %v951_v34 = vadd.f32 (!%p1318_p11), %v1817_v26, %v912_v31 }
 0x147   : > { %v980_v39 = vmax.f32 (!%p1318_p11), %v948_v28, 0.0 }
 0x148   : > { %v1438_v45 = vpop.f32.mrb[8].mxu0  ;;  %v1454_v46 = vpop.f32.mrb[8].mxu1  ;;  %v981_v40 = vmax.f32 (!%p1318_p11), %v949_v29, 0.0 }
 0x149   : > { %v850_v49 = vadd.f32 %v1438_v45, %v465_v41  ;;  %v866_v50 = vadd.f32 %v1454_v46, %v481_v42  ;;  %v745_v51 = vpop.f32.mrb[9].mxu0  ;;  %v809_v52 = vpop.f32.mrb[9].mxu1 }
 0x14a   : > { %v848_v55 = vadd.f32 %v745_v51, %v463_v43  ;;  %v864_v56 = vadd.f32 %v809_v52, %v479_v44  ;;  %v1439_v57 = vpop.f32.mrb[10].mxu0  ;;  %v1455_v58 = vpop.f32.mrb[10].mxu1  ;;  %v915_v37 = vld [vmem:[#allocation2 + $0x30] sm:$0xff] (!%p1318_p11)  ;;  %v982_v43 = vmax.f32 (!%p1318_p11), %v950_v33, 0.0  ;;  %v983_v44 = vmax.f32 (!%p1318_p11), %v951_v34, 0.0 }
 0x14b   : > { %883 = vst.msk [vmem:[#allocation2 + $0x50] sm:$0xff] %vm872_vm1, %v850_v49  ;;  %899 = vst.msk [vmem:[#allocation2 + $0xd0] sm:$0xff] %vm872_vm1, %v866_v50  ;;  %v851_v59 = vadd.f32 %v1439_v57, %v466_v47  ;;  %v867_v60 = vadd.f32 %v1455_v58, %v482_v48  ;;  %v748_v61 = vpop.f32.mrb[11].mxu0  ;;  %v812_v62 = vpop.f32.mrb[11].mxu1  ;;  %v913_v32 = vld [vmem:[#allocation2 + $0x20] sm:$0xff] (!%p1318_p11)  ;;  %v954_v42 = vadd.f32 (!%p1318_p11), %v1817_v26, %v915_v37  ;;  %v931_v30 = vld [vmem:[#allocation2 + $0xb0] sm:$0xff] (!%p1318_p11) }
 0x14c   : > { %881 = vst.msk [vmem:[#allocation2 + $0x40] sm:$0xff] %vm872_vm1, %v848_v55  ;;  %897 = vst.msk [vmem:[#allocation2 + $0xc0] sm:$0xff] %vm872_vm1, %v864_v56  ;;  %v849_v63 = vadd.f32 %v748_v61, %v464_v53  ;;  %v865_v0 = vadd.f32 %v812_v62, %v480_v54  ;;  %v952_v35 = vadd.f32 (!%p1318_p11), %v1817_v26, %v913_v32  ;;  %v916_v38 = vld [vmem:[#allocation2 + $0x38] sm:$0xff] (!%p1318_p11) }
 0x14d   : > { %884 = vst.msk [vmem:[#allocation2 + $0x58] sm:$0xff] %vm872_vm1, %v851_v59  ;;  %900 = vst.msk [vmem:[#allocation2 + $0xd8] sm:$0xff] %vm872_vm1, %v867_v60  ;;  %v914_v36 = vld [vmem:[#allocation2 + $0x28] sm:$0xff] (!%p1318_p11)  ;;  %v955_v46 = vadd.f32 (!%p1318_p11), %v1817_v26, %v916_v38  ;;  %v1356_v49 = vpack.c.bf16 (!%p1318_p11), %v980_v39, %v980_v39  ;;  %v1357_v50 = vpack.c.bf16 (!%p1318_p11), %v981_v40, %v981_v40  ;;  %v986_v52 = vmax.f32 (!%p1318_p11), %v954_v42, 0.0 }
 0x14e   : > { %882 = vst.msk [vmem:[#allocation2 + $0x48] sm:$0xff] %vm872_vm1, %v849_v63  ;;  %898 = vst.msk [vmem:[#allocation2 + $0xc8] sm:$0xff] %vm872_vm1, %v865_v0  ;;  %v953_v41 = vadd.f32 (!%p1318_p11), %v1817_v26, %v914_v36  ;;  %v984_v45 = vmax.f32 (!%p1318_p11), %v952_v35, 0.0  ;;  %v1358_v56 = vpack.c.bf16 (!%p1318_p11), %v982_v43, %v982_v43  ;;  %v1359_v57 = vpack.c.bf16 (!%p1318_p11), %v983_v44, %v983_v44  ;;  %v930_v29 = vld [vmem:[#allocation2 + $0xa8] sm:$0xff] (!%p1318_p11)  ;;  %v932_v35 = vld [vmem:[#allocation2 + $0xb8] sm:$0xff] (!%p1318_p11) }
 0x14f   : > { %v987_v59 = vmax.f32 (!%p1318_p11), %v955_v46, 0.0  ;;  %1141 = vst.msk [vmem:[%s1997_s3] sm:$0xf] (!%p1318_p11), %vm1140_vm2, %v1356_v49  ;;  %1142 = vst.msk [vmem:[%s1997_s3 + $0x4] sm:$0xf] (!%p1318_p11), %vm1140_vm2, %v1357_v50  ;;  %v1362_v63 = vpack.c.bf16 (!%p1318_p11), %v986_v52, %v986_v52  ;;  %v969_v42 = vadd.f32 (!%p1318_p11), %v1817_v26, %v930_v29  ;;  %v970_v43 = vadd.f32 (!%p1318_p11), %v1817_v26, %v931_v30 }
 0x150   : > { %v1442_v5 = vpop.f32.mrb[12].mxu0  ;;  %v1458_v6 = vpop.f32.mrb[12].mxu1  ;;  %908 = sbr.rel (%p1318_p11) target bundleno = 361 (0x169), region = 81  ;;  %v985_v51 = vmax.f32 (!%p1318_p11), %v953_v41, 0.0  ;;  %v1360_v58 = vpack.c.bf16 (!%p1318_p11), %v984_v45, %v984_v45  ;;  %1143 = vst.msk [vmem:[%s1997_s3 + $0x8] sm:$0xf] (!%p1318_p11), %vm1140_vm2, %v1358_v56 }
 0x151   : > { %v854_v9 = vadd.f32 %v1442_v5, %v469_v1  ;;  %v870_v10 = vadd.f32 %v1458_v6, %v485_v2  ;;  %v761_v11 = vpop.f32.mrb[13].mxu0  ;;  %v825_v12 = vpop.f32.mrb[13].mxu1  ;;  %1144 = vst.msk [vmem:[%s1997_s3 + $0xc] sm:$0xf] (!%p1318_p11), %vm1140_vm2, %v1359_v57  ;;  %1147 = vst.msk [vmem:[%s1997_s3 + $0x18] sm:$0xf] (!%p1318_p11), %vm1140_vm2, %v1362_v63 }
 0x152   : > { %v852_v15 = vadd.f32 %v761_v11, %v467_v3  ;;  %v868_v16 = vadd.f32 %v825_v12, %v483_v4  ;;  %v1443_v17 = vpop.f32.mrb[14].mxu0  ;;  %v1459_v18 = vpop.f32.mrb[14].mxu1  ;;  %v919_v53 = vld [vmem:[#allocation2 + $0x50] sm:$0xff] (!%p1318_p11)  ;;  %v1361_v62 = vpack.c.bf16 (!%p1318_p11), %v985_v51, %v985_v51  ;;  %1145 = vst.msk [vmem:[%s1997_s3 + $0x10] sm:$0xf] (!%p1318_p11), %vm1140_vm2, %v1360_v58  ;;  %v1363_v3 = vpack.c.bf16 (!%p1318_p11), %v987_v59, %v987_v59 }
 0x153   : > { %887 = vst.msk [vmem:[#allocation2 + $0x70] sm:$0xff] %vm872_vm1, %v854_v9  ;;  %903 = vst.msk [vmem:[#allocation2 + $0xf0] sm:$0xff] %vm872_vm1, %v870_v10  ;;  %v855_v19 = vadd.f32 %v1443_v17, %v470_v7  ;;  %v871_v20 = vadd.f32 %v1459_v18, %v486_v8  ;;  %v764_v21 = vpop.f32.mrb[15].mxu0  ;;  %v828_v22 = vpop.f32.mrb[15].mxu1  ;;  %v917_v47 = vld [vmem:[#allocation2 + $0x40] sm:$0xff] (!%p1318_p11)  ;;  %v958_v4 = vadd.f32 (!%p1318_p11), %v1817_v26, %v919_v53  ;;  %v1001_v52 = vmax.f32 (!%p1318_p11), %v969_v42, 0.0 }
 0x154   : > { %885 = vst.msk [vmem:[#allocation2 + $0x60] sm:$0xff] %vm872_vm1, %v852_v15  ;;  %901 = vst.msk [vmem:[#allocation2 + $0xe0] sm:$0xff] %vm872_vm1, %v868_v16  ;;  %v853_v23 = vadd.f32 %v764_v21, %v468_v13  ;;  %v869_v24 = vadd.f32 %v828_v22, %v484_v14  ;;  %v920_v54 = vld [vmem:[#allocation2 + $0x58] sm:$0xff] (!%p1318_p11)  ;;  %v956_v0 = vadd.f32 (!%p1318_p11), %v1817_v26, %v917_v47  ;;  %v925_v15 = vld [vmem:[#allocation2 + $0x80] sm:$0xff] (!%p1318_p11)  ;;  %v1002_v53 = vmax.f32 (!%p1318_p11), %v970_v43, 0.0 }
 0x155   : > { %888 = vst.msk [vmem:[#allocation2 + $0x78] sm:$0xff] %vm872_vm1, %v855_v19  ;;  %904 = vst.msk [vmem:[#allocation2 + $0xf8] sm:$0xff] %vm872_vm1, %v871_v20  ;;  %v918_v48 = vld [vmem:[#allocation2 + $0x48] sm:$0xff] (!%p1318_p11)  ;;  %v959_v5 = vadd.f32 (!%p1318_p11), %v1817_v26, %v920_v54  ;;  %v990_v11 = vmax.f32 (!%p1318_p11), %v958_v4, 0.0  ;;  %v927_v21 = vld [vmem:[#allocation2 + $0x90] sm:$0xff] (!%p1318_p11)  ;;  %v964_v33 = vadd.f32 (!%p1318_p11), %v1817_v26, %v925_v15  ;;  %v971_v47 = vadd.f32 (!%p1318_p11), %v1817_v26, %v932_v35 }
 0x156   : > { %886 = vst.msk [vmem:[#allocation2 + $0x68] sm:$0xff] %vm872_vm1, %v853_v23  ;;  %902 = vst.msk [vmem:[#allocation2 + $0xe8] sm:$0xff] %vm872_vm1, %v869_v24  ;;  %v957_v1 = vadd.f32 (!%p1318_p11), %v1817_v26, %v918_v48  ;;  %v988_v7 = vmax.f32 (!%p1318_p11), %v956_v0, 0.0  ;;  %v926_v16 = vld [vmem:[#allocation2 + $0x88] sm:$0xff] (!%p1318_p11)  ;;  %v928_v22 = vld [vmem:[#allocation2 + $0x98] sm:$0xff] (!%p1318_p11)  ;;  %v966_v37 = vadd.f32 (!%p1318_p11), %v1817_v26, %v927_v21  ;;  %v1377_v63 = vpack.c.bf16 (!%p1318_p11), %v1001_v52, %v1001_v52 }
 0x157   : > { %1146 = vst.msk [vmem:[%s1997_s3 + $0x14] sm:$0xf] %vm1140_vm2, %v1361_v62  ;;  %1148 = vst.msk [vmem:[%s1997_s3 + $0x1c] sm:$0xf] %vm1140_vm2, %v1363_v3  ;;  %v991_v12 = vmax.f32 %v959_v5, 0.0  ;;  %v929_v23 = vld [vmem:[#allocation2 + $0xa0] sm:$0xff]  ;;  %v1366_v24 = vpack.c.bf16 %v990_v11, %v990_v11  ;;  %v965_v34 = vadd.f32 %v1817_v26, %v926_v16  ;;  %v967_v38 = vadd.f32 %v1817_v26, %v928_v22 }
 0x158   : > { %v989_v8 = vmax.f32 %v957_v1, 0.0  ;;  %v1364_v17 = vpack.c.bf16 %v988_v7, %v988_v7  ;;  %v968_v39 = vadd.f32 %v1817_v26, %v929_v23  ;;  %v996_v40 = vmax.f32 %v964_v33, 0.0  ;;  %v933_v48 = vld [vmem:[#allocation2 + $0xc0] sm:$0xff]  ;;  %v934_v49 = vld [vmem:[#allocation2 + $0xc8] sm:$0xff]  ;;  %v935_v54 = vld [vmem:[#allocation2 + $0xd0] sm:$0xff] }
 0x159   : > { %v1367_v25 = vpack.c.bf16 %v991_v12, %v991_v12  ;;  %1151 = vst.msk [vmem:[%s1997_s3 + $0x28] sm:$0xf] %vm1140_vm2, %v1366_v24  ;;  %v997_v41 = vmax.f32 %v965_v34, 0.0  ;;  %v998_v44 = vmax.f32 %v966_v37, 0.0  ;;  %v999_v45 = vmax.f32 %v967_v38, 0.0 }
 0x15a   : > { %v923_v61 = vld [vmem:[#allocation2 + $0x70] sm:$0xff]  ;;  %v1365_v18 = vpack.c.bf16 %v989_v8, %v989_v8  ;;  %1149 = vst.msk [vmem:[%s1997_s3 + $0x20] sm:$0xf] %vm1140_vm2, %v1364_v17  ;;  %v1000_v46 = vmax.f32 %v968_v39, 0.0  ;;  %v1372_v50 = vpack.c.bf16 %v996_v40, %v996_v40  ;;  %v1378_v0 = vpack.c.bf16 %v1002_v53, %v1002_v53  ;;  %1162 = vst.msk [vmem:[%s1997_s3 + $0x54] sm:$0xf] %vm1140_vm2, %v1377_v63 }
 0x15b   : > { %v921_v55 = vld [vmem:[#allocation2 + $0x60] sm:$0xff]  ;;  %v962_v10 = vadd.f32 %v1817_v26, %v923_v61  ;;  %1152 = vst.msk [vmem:[%s1997_s3 + $0x2c] sm:$0xf] %vm1140_vm2, %v1367_v25  ;;  %v1373_v51 = vpack.c.bf16 %v997_v41, %v997_v41  ;;  %v1374_v57 = vpack.c.bf16 %v998_v44, %v998_v44  ;;  %v1375_v58 = vpack.c.bf16 %v999_v45, %v999_v45  ;;  %v939_v62 = vld [vmem:[#allocation2 + $0xf0] sm:$0xff] }
 0x15c   : > { %v924_v2 = vld [vmem:[#allocation2 + $0x78] sm:$0xff]  ;;  %v960_v6 = vadd.f32 %v1817_v26, %v921_v55  ;;  %1150 = vst.msk [vmem:[%s1997_s3 + $0x24] sm:$0xf] %vm1140_vm2, %v1365_v18  ;;  %v937_v56 = vld [vmem:[#allocation2 + $0xe0] sm:$0xff]  ;;  %v1376_v59 = vpack.c.bf16 %v1000_v46, %v1000_v46  ;;  %1157 = vst.msk [vmem:[%s1997_s3 + $0x40] sm:$0xf] %vm1140_vm2, %v1372_v50  ;;  %v972_v1 = vadd.f32 %v1817_v26, %v933_v48 }
 0x15d   : > { %v922_v60 = vld [vmem:[#allocation2 + $0x68] sm:$0xff]  ;;  %v963_v14 = vadd.f32 %v1817_v26, %v924_v2  ;;  %v994_v20 = vmax.f32 %v962_v10, 0.0  ;;  %v936_v55 = vld [vmem:[#allocation2 + $0xd8] sm:$0xff]  ;;  %1158 = vst.msk [vmem:[%s1997_s3 + $0x44] sm:$0xf] %vm1140_vm2, %v1373_v51  ;;  %v973_v2 = vadd.f32 %v1817_v26, %v934_v49  ;;  %v974_v5 = vadd.f32 %v1817_v26, %v935_v54 }
 0x15e   : > { %v961_v9 = vadd.f32 %v1817_v26, %v922_v60  ;;  %v992_v13 = vmax.f32 %v960_v6, 0.0  ;;  %v1003_v60 = vmax.f32 %v971_v47, 0.0  ;;  %v938_v61 = vld [vmem:[#allocation2 + $0xe8] sm:$0xff]  ;;  %v940_v3 = vld [vmem:[#allocation2 + $0xf8] sm:$0xff]  ;;  %1159 = vst.msk [vmem:[%s1997_s3 + $0x48] sm:$0xf] %vm1140_vm2, %v1374_v57  ;;  %v975_v6 = vadd.f32 %v1817_v26, %v936_v55 }
 0x15f   : > { %v995_v28 = vmax.f32 %v963_v14, 0.0  ;;  %v1370_v32 = vpack.c.bf16 %v994_v20, %v994_v20  ;;  %1160 = vst.msk [vmem:[%s1997_s3 + $0x4c] sm:$0xf] %vm1140_vm2, %v1375_v58  ;;  %1161 = vst.msk [vmem:[%s1997_s3 + $0x50] sm:$0xf] %vm1140_vm2, %v1376_v59  ;;  %v976_v7 = vadd.f32 %v1817_v26, %v937_v56  ;;  %v1004_v8 = vmax.f32 %v972_v1, 0.0 }
 0x160   : > { %v993_v19 = vmax.f32 %v961_v9, 0.0  ;;  %v1368_v27 = vpack.c.bf16 %v992_v13, %v992_v13  ;;  %v1379_v4 = vpack.c.bf16 %v1003_v60, %v1003_v60  ;;  %1163 = vst.msk [vmem:[%s1997_s3 + $0x58] sm:$0xf] %vm1140_vm2, %v1378_v0  ;;  %v1005_v9 = vmax.f32 %v973_v2, 0.0 }
 0x161   : > { %v1371_v36 = vpack.c.bf16 %v995_v28, %v995_v28  ;;  %1155 = vst.msk [vmem:[%s1997_s3 + $0x38] sm:$0xf] %vm1140_vm2, %v1370_v32  ;;  %v977_v10 = vadd.f32 %v1817_v26, %v938_v61  ;;  %v978_v11 = vadd.f32 %v1817_v26, %v939_v62  ;;  %v1006_v12 = vmax.f32 %v974_v5, 0.0 }
 0x162   : > { %v1369_v31 = vpack.c.bf16 %v993_v19, %v993_v19  ;;  %1153 = vst.msk [vmem:[%s1997_s3 + $0x30] sm:$0xf] %vm1140_vm2, %v1368_v27  ;;  %1164 = vst.msk [vmem:[%s1997_s3 + $0x5c] sm:$0xf] %vm1140_vm2, %v1379_v4  ;;  %v1007_v13 = vmax.f32 %v975_v6, 0.0  ;;  %v1008_v14 = vmax.f32 %v976_v7, 0.0  ;;  %v979_v15 = vadd.f32 %v1817_v26, %v940_v3 }
 0x163   : > { %1156 = vst.msk [vmem:[%s1997_s3 + $0x3c] sm:$0xf] %vm1140_vm2, %v1371_v36  ;;  %v1380_v16 = vpack.c.bf16 %v1004_v8, %v1004_v8  ;;  %v1381_v17 = vpack.c.bf16 %v1005_v9, %v1005_v9  ;;  %v1009_v18 = vmax.f32 %v977_v10, 0.0  ;;  %v1010_v19 = vmax.f32 %v978_v11, 0.0 }
 0x164   : > { %1154 = vst.msk [vmem:[%s1997_s3 + $0x34] sm:$0xf] %vm1140_vm2, %v1369_v31  ;;  %v1382_v20 = vpack.c.bf16 %v1006_v12, %v1006_v12  ;;  %v1383_v21 = vpack.c.bf16 %v1007_v13, %v1007_v13  ;;  %v1384_v22 = vpack.c.bf16 %v1008_v14, %v1008_v14  ;;  %v1011_v23 = vmax.f32 %v979_v15, 0.0 }
 0x165   : > { %1165 = vst.msk [vmem:[%s1997_s3 + $0x60] sm:$0xf] %vm1140_vm2, %v1380_v16  ;;  %1166 = vst.msk [vmem:[%s1997_s3 + $0x64] sm:$0xf] %vm1140_vm2, %v1381_v17  ;;  %v1385_v24 = vpack.c.bf16 %v1009_v18, %v1009_v18  ;;  %v1386_v26 = vpack.c.bf16 %v1010_v19, %v1010_v19 }
 0x166   : > { %1167 = vst.msk [vmem:[%s1997_s3 + $0x68] sm:$0xf] %vm1140_vm2, %v1382_v20  ;;  %1168 = vst.msk [vmem:[%s1997_s3 + $0x6c] sm:$0xf] %vm1140_vm2, %v1383_v21  ;;  %v1387_v25 = vpack.c.bf16 %v1011_v23, %v1011_v23 }
 0x167   : > { %1169 = vst.msk [vmem:[%s1997_s3 + $0x70] sm:$0xf] %vm1140_vm2, %v1384_v22  ;;  %1170 = vst.msk [vmem:[%s1997_s3 + $0x74] sm:$0xf] %vm1140_vm2, %v1385_v24 }
 0x168   : > { %1171 = vst.msk [vmem:[%s1997_s3 + $0x78] sm:$0xf] %vm1140_vm2, %v1386_v26  ;;  %1172 = vst.msk [vmem:[%s1997_s3 + $0x7c] sm:$0xf] %vm1140_vm2, %v1387_v25 }
 0x169 PF: > { %s13_s16 = sadd.s32 1, %s1579_s16   ;;  %s1998_s12 = smov %s1567_s13 }
 0x16a   : > { %p10_p12 = scmp.ge.s32.totalorder %s13_s16, 7   ;;  %s1999_s13 = smov %s1637_s20 }
 0x16b   : > { %s2000_s14 = smov %s1575_s15  ;;  %s2001_s15 = smov %s2003_s17 }
 0x16c   :  { %12 = sbr.rel (!%p10_p12) target bundleno = 3 (0x3), region = 122 }

// kernel: siamese_forward.23
= control target key start
LH: loop header
LB: loop body
LE: loop exit
PB: predicated region body
PF: predicated region fallthrough
CT: control target
= control target key end

     0   :  { %s1570_s12 = smov 0   ;;  %s1572_s13 = smov 0   ;;  %s1962_s0 = inlined_call_operand.vmem [shape: bf16[256,640], index: 0, kind: input, shape index: {}]   ;;  %s1963_s1 = inlined_call_operand.vmem [shape: bf16[640,64], index: 1, kind: input, shape index: {}]   ;;  %s1964_s2 = inlined_call_operand.vmem [shape: f32[1,64], index: 2, kind: input, shape index: {}]   ;;  %s1965_s3 = inlined_call_operand.vmem [shape: bf16[256,64], index: 3, kind: output, shape index: {}]  }
   0x1   :  { %s1574_s14 = smov 0   ;;  %s1576_s15 = smov 0  }
   0x2   :  { %s1578_s16 = smov 0  }
   0x3 LB: > { %s25_s17 = sadd.s32 1, %s1543_s15  ;;  %p48_p1 = scmp.ne.s32.totalorder %s1535_s13, %s1531_s12  ;;  %s1547_s16 = sphi %s1578_s16, %s13_s16   ;;  %s1543_s15 = sphi %s1576_s15, %s1969_s15   ;;  %s1539_s14 = sphi %s1574_s14, %s1968_s14   ;;  %s1535_s13 = sphi %s1572_s13, %s1967_s13   ;;  %s1531_s12 = sphi %s1570_s12, %s1966_s12  }
   0x4   : > { %p26_p0 = scmp.ge.s32.totalorder %s25_s17, 5  ;;  %p49_p2 = scmp.eq.s32.totalorder %s1547_s16, 0 }
   0x5   : > { %s41_s19 = sadd.s32 1, %s1535_s13  ;;  %p1254_p5 = scmp.ge.s32.totalorder %s1547_s16, 5 }
   0x6   : > { %s1971_s17 = smov (%p26_p0, %s25_s17), 0  ;;  %p50_p3 = por %p49_p2, %p48_p1 }
   0x7   : > { %s37_s18 = ssub.s32 %s1543_s15, %s1971_s17  ;;  %162 = sbr.rel (%p1254_p5) target bundleno = 39 (0x27), region = 20 }
   0x8   : > { %p39_p4 = scmp.eq.s32.totalorder %s37_s18, 0 }
   0xa   : > { %s1605_s20 = scalar_select %p39_p4, %s1535_s13, %s41_s19  }
   0xe   : > { %165 = sbr.rel (!%p50_p3) target bundleno = 39 (0x27), region = 24  ;;  %s167_s21 = sand.u32 (%p50_p3), 1, %s1535_s13  }
   0xf   : > { %s1256_s22 = sshll.u32 (%p50_p3), %s1543_s15, 2  ;;  %s1255_s23 = sshll.u32 (%p50_p3), %s167_s21, 7 }
  0x10   : > { %s1613_s26 = scalar_lea.vmem (%p50_p3), %s1962_s0, %s1256_s22  ;;  %s1617_s27 = scalar_lea.vmem (%p50_p3), [#allocation3], %s1255_s23 }
  0x11   : > { %v190_v0 = vld [vmem:[%s1613_s26] sm:$0xf] (%p50_p3)  ;;  %v192_v1 = vld [vmem:[%s1613_s26 + $0x14] sm:$0xf] (%p50_p3)  ;;  %v194_v2 = vld [vmem:[%s1613_s26 + $0x28] sm:$0xf] (%p50_p3) }
  0x12   : > { %191 = vst [vmem:[%s1617_s27] sm:$0xf] (%p50_p3), %v190_v0  ;;  %193 = vst [vmem:[%s1617_s27 + $0x4] sm:$0xf] (%p50_p3), %v192_v1  ;;  %v196_v3 = vld [vmem:[%s1613_s26 + $0x3c] sm:$0xf] (%p50_p3) }
  0x13   : > { %v198_v4 = vld [vmem:[%s1613_s26 + $0x50] sm:$0xf] (%p50_p3)  ;;  %195 = vst [vmem:[%s1617_s27 + $0x8] sm:$0xf] (%p50_p3), %v194_v2  ;;  %197 = vst [vmem:[%s1617_s27 + $0xc] sm:$0xf] (%p50_p3), %v196_v3 }
  0x14   : > { %199 = vst [vmem:[%s1617_s27 + $0x10] sm:$0xf] (%p50_p3), %v198_v4  ;;  %v200_v5 = vld [vmem:[%s1613_s26 + $0x64] sm:$0xf] (%p50_p3)  ;;  %v202_v6 = vld [vmem:[%s1613_s26 + $0x78] sm:$0xf] (%p50_p3) }
  0x15   : > { %v204_v7 = vld [vmem:[%s1613_s26 + $0x8c] sm:$0xf]  ;;  %201 = vst [vmem:[%s1617_s27 + $0x14] sm:$0xf] %v200_v5  ;;  %203 = vst [vmem:[%s1617_s27 + $0x18] sm:$0xf] %v202_v6 }
  0x16   : > { %205 = vst [vmem:[%s1617_s27 + $0x1c] sm:$0xf] %v204_v7  ;;  %v206_v8 = vld [vmem:[%s1613_s26 + $0xa0] sm:$0xf]  ;;  %v208_v9 = vld [vmem:[%s1613_s26 + $0xb4] sm:$0xf] }
  0x17   : > { %v210_v10 = vld [vmem:[%s1613_s26 + $0xc8] sm:$0xf]  ;;  %207 = vst [vmem:[%s1617_s27 + $0x20] sm:$0xf] %v206_v8  ;;  %209 = vst [vmem:[%s1617_s27 + $0x24] sm:$0xf] %v208_v9 }
  0x18   : > { %211 = vst [vmem:[%s1617_s27 + $0x28] sm:$0xf] %v210_v10  ;;  %v212_v11 = vld [vmem:[%s1613_s26 + $0xdc] sm:$0xf]  ;;  %v214_v12 = vld [vmem:[%s1613_s26 + $0xf0] sm:$0xf] }
  0x19   : > { %v216_v13 = vld [vmem:[%s1613_s26 + $0x104] sm:$0xf]  ;;  %213 = vst [vmem:[%s1617_s27 + $0x2c] sm:$0xf] %v212_v11  ;;  %215 = vst [vmem:[%s1617_s27 + $0x30] sm:$0xf] %v214_v12 }
  0x1a   : > { %217 = vst [vmem:[%s1617_s27 + $0x34] sm:$0xf] %v216_v13  ;;  %v218_v14 = vld [vmem:[%s1613_s26 + $0x118] sm:$0xf]  ;;  %v220_v15 = vld [vmem:[%s1613_s26 + $0x12c] sm:$0xf] }
  0x1b   : > { %v222_v16 = vld [vmem:[%s1613_s26 + $0x140] sm:$0xf]  ;;  %219 = vst [vmem:[%s1617_s27 + $0x38] sm:$0xf] %v218_v14  ;;  %221 = vst [vmem:[%s1617_s27 + $0x3c] sm:$0xf] %v220_v15 }
  0x1c   : > { %223 = vst [vmem:[%s1617_s27 + $0x40] sm:$0xf] %v222_v16  ;;  %v224_v17 = vld [vmem:[%s1613_s26 + $0x154] sm:$0xf]  ;;  %v226_v18 = vld [vmem:[%s1613_s26 + $0x168] sm:$0xf] }
  0x1d   : > { %v228_v19 = vld [vmem:[%s1613_s26 + $0x17c] sm:$0xf]  ;;  %225 = vst [vmem:[%s1617_s27 + $0x44] sm:$0xf] %v224_v17  ;;  %227 = vst [vmem:[%s1617_s27 + $0x48] sm:$0xf] %v226_v18 }
  0x1e   : > { %229 = vst [vmem:[%s1617_s27 + $0x4c] sm:$0xf] %v228_v19  ;;  %v230_v20 = vld [vmem:[%s1613_s26 + $0x190] sm:$0xf]  ;;  %v232_v21 = vld [vmem:[%s1613_s26 + $0x1a4] sm:$0xf] }
  0x1f   : > { %v234_v22 = vld [vmem:[%s1613_s26 + $0x1b8] sm:$0xf]  ;;  %231 = vst [vmem:[%s1617_s27 + $0x50] sm:$0xf] %v230_v20  ;;  %233 = vst [vmem:[%s1617_s27 + $0x54] sm:$0xf] %v232_v21 }
  0x20   : > { %235 = vst [vmem:[%s1617_s27 + $0x58] sm:$0xf] %v234_v22  ;;  %v236_v23 = vld [vmem:[%s1613_s26 + $0x1cc] sm:$0xf]  ;;  %v238_v24 = vld [vmem:[%s1613_s26 + $0x1e0] sm:$0xf] }
  0x21   : > { %v240_v25 = vld [vmem:[%s1613_s26 + $0x1f4] sm:$0xf]  ;;  %237 = vst [vmem:[%s1617_s27 + $0x5c] sm:$0xf] %v236_v23  ;;  %239 = vst [vmem:[%s1617_s27 + $0x60] sm:$0xf] %v238_v24 }
  0x22   : > { %241 = vst [vmem:[%s1617_s27 + $0x64] sm:$0xf] %v240_v25  ;;  %v242_v26 = vld [vmem:[%s1613_s26 + $0x208] sm:$0xf]  ;;  %v244_v27 = vld [vmem:[%s1613_s26 + $0x21c] sm:$0xf] }
  0x23   : > { %v246_v28 = vld [vmem:[%s1613_s26 + $0x230] sm:$0xf]  ;;  %243 = vst [vmem:[%s1617_s27 + $0x68] sm:$0xf] %v242_v26  ;;  %245 = vst [vmem:[%s1617_s27 + $0x6c] sm:$0xf] %v244_v27 }
  0x24   : > { %247 = vst [vmem:[%s1617_s27 + $0x70] sm:$0xf] %v246_v28  ;;  %v248_v29 = vld [vmem:[%s1613_s26 + $0x244] sm:$0xf]  ;;  %v250_v30 = vld [vmem:[%s1613_s26 + $0x258] sm:$0xf] }
  0x25   : > { %v252_v31 = vld [vmem:[%s1613_s26 + $0x26c] sm:$0xf]  ;;  %249 = vst [vmem:[%s1617_s27 + $0x74] sm:$0xf] %v248_v29  ;;  %251 = vst [vmem:[%s1617_s27 + $0x78] sm:$0xf] %v250_v30 }
  0x26   : > { %253 = vst [vmem:[%s1617_s27 + $0x7c] sm:$0xf] %v252_v31 }
  0x27 PF: > { %p1257_p6 = scmp.ge.s32.totalorder %s1547_s16, 1  ;;  %p351_p7 = scmp.lt.s32.totalorder %s1547_s16, 6 }
  0x29   : > { %p352_p8 = pnand %p1257_p6, %p351_p7 }
  0x2a   : > { %s358_s28 = sand.u32 (!%p352_p8), 1, %s1531_s12   ;;  %s1259_s29 = sshll.u32 (!%p352_p8), %s1539_s14, 4 }
  0x2b   : > { %355 = sbr.rel (%p352_p8) target bundleno = 358 (0x166), region = 69  ;;  %s1258_s30 = sshll.u32 (!%p352_p8), %s358_s28, 7 }
  0x2c   : > { %p397_p9 = scmp.lt.s32.totalorder (!%p352_p8), %s1259_s29, 79  ;;  %s1690_s8 = scalar_lea.vmem (!%p352_p8), [#allocation3], %s1258_s30 }
  0x2d   : > { %p1261_p10 = scmp.ne.s32.totalorder (!%p352_p8), %s1539_s14, 0 }
  0x32   : > { %s1973_s29 = smov (!%p397_p9, %s1259_s29), 79  ;;  %421 = sbr.rel (%p1261_p10) target bundleno = 68 (0x44), region = 77 }
  0x33   : > { %s1260_s4 = sshll.u32 %s1973_s29, 2  ;;  %vm422_vm0 = vcmask (!%p1261_p10), 523264   ;;  %v1549_v32 = vmov (!%p1261_p10), 0.0  }
  0x34   : > { %s1688_s7 = scalar_lea.vmem %s1963_s1, %s1260_s4  ;;  %423 = vst.msk [vmem:[#allocation2] sm:$0xff] (!%p1261_p10), %vm422_vm0, %v1549_v32  ;;  %424 = vst.msk [vmem:[#allocation2 + $0x8] sm:$0xff] (!%p1261_p10), %vm422_vm0, %v1549_v32 }
  0x35   : > { %425 = vst.msk [vmem:[#allocation2 + $0x10] sm:$0xff] (!%p1261_p10), %vm422_vm0, %v1549_v32  ;;  %426 = vst.msk [vmem:[#allocation2 + $0x18] sm:$0xff] (!%p1261_p10), %vm422_vm0, %v1549_v32 }
  0x36   : > { %427 = vst.msk [vmem:[#allocation2 + $0x20] sm:$0xff] (!%p1261_p10), %vm422_vm0, %v1549_v32  ;;  %428 = vst.msk [vmem:[#allocation2 + $0x28] sm:$0xff] (!%p1261_p10), %vm422_vm0, %v1549_v32 }
  0x37   : > { %429 = vst.msk [vmem:[#allocation2 + $0x30] sm:$0xff] (!%p1261_p10), %vm422_vm0, %v1549_v32  ;;  %430 = vst.msk [vmem:[#allocation2 + $0x38] sm:$0xff] (!%p1261_p10), %vm422_vm0, %v1549_v32 }
  0x38   : > { %431 = vst.msk [vmem:[#allocation2 + $0x40] sm:$0xff] (!%p1261_p10), %vm422_vm0, %v1549_v32  ;;  %432 = vst.msk [vmem:[#allocation2 + $0x48] sm:$0xff] (!%p1261_p10), %vm422_vm0, %v1549_v32 }
  0x39   : > { %433 = vst.msk [vmem:[#allocation2 + $0x50] sm:$0xff] %vm422_vm0, %v1549_v32  ;;  %434 = vst.msk [vmem:[#allocation2 + $0x58] sm:$0xff] %vm422_vm0, %v1549_v32 }
  0x3a   : > { %435 = vst.msk [vmem:[#allocation2 + $0x60] sm:$0xff] %vm422_vm0, %v1549_v32  ;;  %436 = vst.msk [vmem:[#allocation2 + $0x68] sm:$0xff] %vm422_vm0, %v1549_v32 }
  0x3b   : > { %437 = vst.msk [vmem:[#allocation2 + $0x70] sm:$0xff] %vm422_vm0, %v1549_v32  ;;  %438 = vst.msk [vmem:[#allocation2 + $0x78] sm:$0xff] %vm422_vm0, %v1549_v32 }
  0x3c   : > { %439 = vst.msk [vmem:[#allocation2 + $0x80] sm:$0xff] %vm422_vm0, %v1549_v32  ;;  %440 = vst.msk [vmem:[#allocation2 + $0x88] sm:$0xff] %vm422_vm0, %v1549_v32 }
  0x3d   : > { %441 = vst.msk [vmem:[#allocation2 + $0x90] sm:$0xff] %vm422_vm0, %v1549_v32  ;;  %442 = vst.msk [vmem:[#allocation2 + $0x98] sm:$0xff] %vm422_vm0, %v1549_v32 }
  0x3e   : > { %443 = vst.msk [vmem:[#allocation2 + $0xa0] sm:$0xff] %vm422_vm0, %v1549_v32  ;;  %444 = vst.msk [vmem:[#allocation2 + $0xa8] sm:$0xff] %vm422_vm0, %v1549_v32 }
  0x3f   : > { %445 = vst.msk [vmem:[#allocation2 + $0xb0] sm:$0xff] %vm422_vm0, %v1549_v32  ;;  %446 = vst.msk [vmem:[#allocation2 + $0xb8] sm:$0xff] %vm422_vm0, %v1549_v32 }
  0x40   : > { %447 = vst.msk [vmem:[#allocation2 + $0xc0] sm:$0xff] %vm422_vm0, %v1549_v32  ;;  %448 = vst.msk [vmem:[#allocation2 + $0xc8] sm:$0xff] %vm422_vm0, %v1549_v32 }
  0x41   : > { %449 = vst.msk [vmem:[#allocation2 + $0xd0] sm:$0xff] %vm422_vm0, %v1549_v32  ;;  %450 = vst.msk [vmem:[#allocation2 + $0xd8] sm:$0xff] %vm422_vm0, %v1549_v32 }
  0x42   : > { %451 = vst.msk [vmem:[#allocation2 + $0xe0] sm:$0xff] %vm422_vm0, %v1549_v32  ;;  %452 = vst.msk [vmem:[#allocation2 + $0xe8] sm:$0xff] %vm422_vm0, %v1549_v32 }
  0x43   : > { %453 = vst.msk [vmem:[#allocation2 + $0xf0] sm:$0xff] %vm422_vm0, %v1549_v32  ;;  %454 = vst.msk [vmem:[#allocation2 + $0xf8] sm:$0xff] %vm422_vm0, %v1549_v32 }
  0x44 PF: > { %v1485_v33 = vld [vmem:[%s1688_s7] sm:$0xff]   ;;  %v1486_v34 = vld [vmem:[%s1688_s7 + $0x8] sm:$0xff]   ;;  %v1487_v35 = vld [vmem:[%s1688_s7 + $0x10] sm:$0xff]   ;;  %vm872_vm1 = vcmask 523264   ;;  %p1286_p11 = scmp.ne.s32.totalorder %s1539_s14, 4 }
  0x45   : > { %1380 = vmatprep.subr.bf16.mxu0 %v1485_v33  ;;  %1428 = vmatprep.subr.bf16.mxu1 %v1485_v33  ;;  %v1488_v36 = vld [vmem:[%s1688_s7 + $0x18] sm:$0xff]   ;;  %v1493_v37 = vld [vmem:[%s1690_s8] sm:$0xff]   ;;  %v1490_v40 = vld [vmem:[%s1688_s7 + $0x28] sm:$0xff]   ;;  %vm1108_vm2 = vcmask (!%p1286_p11), 519168  }
  0x46   : > { %1381 = vmatpush3.bf16.msra.mxu0 %v1485_v33  ;;  %1436 = vmatpush3.bf16.msra.mxu1 %v1485_v33  ;;  %v1494_v38 = vld [vmem:[%s1690_s8 + $0x40] sm:$0xff]   ;;  %v1491_v41 = vld [vmem:[%s1688_s7 + $0x30] sm:$0xff]   ;;  %v1492_v42 = vld [vmem:[%s1688_s7 + $0x38] sm:$0xff]  }
  0x47   : > { %1382 = vmatprep.subr.bf16.mxu0 %v1486_v34  ;;  %1429 = vmatprep.subr.bf16.mxu1 %v1486_v34  ;;  %v1489_v39 = vld [vmem:[%s1688_s7 + $0x20] sm:$0xff]   ;;  %v1495_v43 = vld [vmem:[%s1690_s8 + $0x8] sm:$0xff]   ;;  %v1497_v45 = vld [vmem:[%s1690_s8 + $0x10] sm:$0xff]  }
  0x48   : > { %1396 = vmatprep.mubr.bf16.mxu0 %v1493_v37  ;;  %1412 = vmatprep.mubr.bf16.mxu1 %v1494_v38  ;;  %v1496_v44 = vld [vmem:[%s1690_s8 + $0x48] sm:$0xff]   ;;  %v1498_v46 = vld [vmem:[%s1690_s8 + $0x50] sm:$0xff]   ;;  %v1499_v47 = vld [vmem:[%s1690_s8 + $0x18] sm:$0xff]  }
  0x49   : > { %v1500_v48 = vld [vmem:[%s1690_s8 + $0x58] sm:$0xff]   ;;  %v1501_v49 = vld [vmem:[%s1690_s8 + $0x20] sm:$0xff]   ;;  %v1503_v51 = vld [vmem:[%s1690_s8 + $0x28] sm:$0xff]  }
  0x4a   : > { %1383 = vmatpush3.bf16.msra.mxu0 %v1486_v34  ;;  %1437 = vmatpush3.bf16.msra.mxu1 %v1486_v34  ;;  %v1502_v50 = vld [vmem:[%s1690_s8 + $0x60] sm:$0xff]   ;;  %v1504_v52 = vld [vmem:[%s1690_s8 + $0x68] sm:$0xff]   ;;  %v1505_v53 = vld [vmem:[%s1690_s8 + $0x30] sm:$0xff]  }
  0x4b   : > { %1384 = vmatprep.subr.bf16.mxu0 %v1487_v35  ;;  %1430 = vmatprep.subr.bf16.mxu1 %v1487_v35  ;;  %v1506_v54 = vld [vmem:[%s1690_s8 + $0x70] sm:$0xff]   ;;  %v1507_v55 = vld [vmem:[%s1690_s8 + $0x38] sm:$0xff]   ;;  %v455_v59 = vld [vmem:[#allocation2] sm:$0xff] }
  0x4c   : > { %v1508_v56 = vld [vmem:[%s1690_s8 + $0x78] sm:$0xff]   ;;  %v457_v57 = vld [vmem:[#allocation2 + $0x10] sm:$0xff]  ;;  %v471_v60 = vld [vmem:[#allocation2 + $0x80] sm:$0xff] }
  0x4d   : > { %v473_v58 = vld [vmem:[#allocation2 + $0x90] sm:$0xff]  ;;  %v458_v63 = vld [vmem:[#allocation2 + $0x18] sm:$0xff]  ;;  %v456_v5 = vld [vmem:[#allocation2 + $0x8] sm:$0xff] }
  0x4e   : > { %1385 = vmatpush3.bf16.msra.mxu0 %v1487_v35  ;;  %1438 = vmatpush3.bf16.msra.mxu1 %v1487_v35  ;;  %v474_v0 = vld [vmem:[#allocation2 + $0x98] sm:$0xff]  ;;  %v472_v6 = vld [vmem:[#allocation2 + $0x88] sm:$0xff]  ;;  %v461_v17 = vld [vmem:[#allocation2 + $0x30] sm:$0xff] }
  0x4f   : > { %1386 = vmatprep.subr.bf16.mxu0 %v1488_v36  ;;  %1431 = vmatprep.subr.bf16.mxu1 %v1488_v36  ;;  %v477_v18 = vld [vmem:[#allocation2 + $0xb0] sm:$0xff]  ;;  %v459_v19 = vld [vmem:[#allocation2 + $0x20] sm:$0xff]  ;;  %v462_v23 = vld [vmem:[#allocation2 + $0x38] sm:$0xff] }
  0x50   : > { %v475_v20 = vld [vmem:[#allocation2 + $0xa0] sm:$0xff]  ;;  %v478_v24 = vld [vmem:[#allocation2 + $0xb8] sm:$0xff]  ;;  %v460_v29 = vld [vmem:[#allocation2 + $0x28] sm:$0xff] }
  0x51   : > { %v476_v30 = vld [vmem:[#allocation2 + $0xa8] sm:$0xff] }
  0x52   : > { %1387 = vmatpush3.bf16.msra.mxu0 %v1488_v36  ;;  %1439 = vmatpush3.bf16.msra.mxu1 %v1488_v36 }
  0x53   : > { %1388 = vmatprep.subr.bf16.mxu0 %v1489_v39  ;;  %1432 = vmatprep.subr.bf16.mxu1 %v1489_v39 }
  0x56   : > { %1389 = vmatpush3.bf16.msra.mxu0 %v1489_v39  ;;  %1440 = vmatpush3.bf16.msra.mxu1 %v1489_v39 }
  0x57   : > { %1390 = vmatprep.subr.bf16.mxu0 %v1490_v40  ;;  %1433 = vmatprep.subr.bf16.mxu1 %v1490_v40 }
  0x5a   : > { %1391 = vmatpush3.bf16.msra.mxu0 %v1490_v40  ;;  %1441 = vmatpush3.bf16.msra.mxu1 %v1490_v40 }
  0x5b   : > { %1392 = vmatprep.subr.bf16.mxu0 %v1491_v41  ;;  %1434 = vmatprep.subr.bf16.mxu1 %v1491_v41 }
  0x5e   : > { %1393 = vmatpush3.bf16.msra.mxu0 %v1491_v41  ;;  %1442 = vmatpush3.bf16.msra.mxu1 %v1491_v41  ;;  %v465_v41 = vld [vmem:[#allocation2 + $0x50] sm:$0xff] }
  0x5f   : > { %1394 = vmatprep.subr.bf16.mxu0 %v1492_v42  ;;  %1435 = vmatprep.subr.bf16.mxu1 %v1492_v42 }
  0x62   : > { %1395 = vmatpush3.bf16.msra.mxu0 %v1492_v42  ;;  %1443 = vmatpush3.bf16.msra.mxu1 %v1492_v42  ;;  %v481_v42 = vld [vmem:[#allocation2 + $0xd0] sm:$0xff] }
  0x65   : > { %1397 = vmatmul.mubr.bf16.vlgmr.msra.gmra.mrb[0].mxu0 %v1495_v43  ;;  %1413 = vmatmul.mubr.bf16.vlgmr.msra.gmra.mrb[0].mxu1 %v1496_v44  ;;  %v463_v43 = vld [vmem:[#allocation2 + $0x40] sm:$0xff] }
  0x66   : > { %1400 = vmatprep.mubr.bf16.mxu0 %v1497_v45  ;;  %1416 = vmatprep.mubr.bf16.mxu1 %v1498_v46  ;;  %v479_v44 = vld [vmem:[#allocation2 + $0xc0] sm:$0xff] }
  0x6d   : > { %1401 = vmatmul.mubr.bf16.gmra.mrb[4].mxu0 %v1499_v47  ;;  %1417 = vmatmul.mubr.bf16.gmra.mrb[4].mxu1 %v1500_v48  ;;  %v466_v47 = vld [vmem:[#allocation2 + $0x58] sm:$0xff] }
  0x6e   : > { %1404 = vmatprep.mubr.bf16.mxu0 %v1501_v49  ;;  %1420 = vmatprep.mubr.bf16.mxu1 %v1502_v50  ;;  %v482_v48 = vld [vmem:[#allocation2 + $0xd8] sm:$0xff] }
  0x75   : > { %1405 = vmatmul.mubr.bf16.gmra.mrb[8].mxu0 %v1503_v51  ;;  %1421 = vmatmul.mubr.bf16.gmra.mrb[8].mxu1 %v1504_v52 }
  0x76   : > { %1408 = vmatprep.mubr.bf16.mxu0 %v1505_v53  ;;  %1424 = vmatprep.mubr.bf16.mxu1 %v1506_v54  ;;  %v464_v53 = vld [vmem:[#allocation2 + $0x48] sm:$0xff] }
  0x77   : > { %v480_v54 = vld [vmem:[#allocation2 + $0xc8] sm:$0xff] }
  0x7d   : > { %1409 = vmatmul.mubr.bf16.gmra.mrb[12].mxu0 %v1507_v55  ;;  %1425 = vmatmul.mubr.bf16.gmra.mrb[12].mxu1 %v1508_v56 }
 0x138   : > { %v1398_v61 = vpop.f32.mrb[0].mxu0  ;;  %v1414_v62 = vpop.f32.mrb[0].mxu1 }
 0x139   : > { %v842_v1 = vadd.f32 %v1398_v61, %v457_v57  ;;  %v858_v2 = vadd.f32 %v1414_v62, %v473_v58  ;;  %v713_v3 = vpop.f32.mrb[1].mxu0  ;;  %v777_v4 = vpop.f32.mrb[1].mxu1 }
 0x13a   : > { %v840_v7 = vadd.f32 %v713_v3, %v455_v59  ;;  %v856_v8 = vadd.f32 %v777_v4, %v471_v60  ;;  %v1399_v9 = vpop.f32.mrb[2].mxu0  ;;  %v1415_v10 = vpop.f32.mrb[2].mxu1  ;;  %v467_v3 = vld [vmem:[#allocation2 + $0x60] sm:$0xff] }
 0x13b   : > { %875 = vst.msk [vmem:[#allocation2 + $0x10] sm:$0xff] %vm872_vm1, %v842_v1  ;;  %891 = vst.msk [vmem:[#allocation2 + $0x90] sm:$0xff] %vm872_vm1, %v858_v2  ;;  %v843_v11 = vadd.f32 %v1399_v9, %v458_v63  ;;  %v859_v12 = vadd.f32 %v1415_v10, %v474_v0  ;;  %v716_v13 = vpop.f32.mrb[3].mxu0  ;;  %v780_v14 = vpop.f32.mrb[3].mxu1  ;;  %v469_v1 = vld [vmem:[#allocation2 + $0x70] sm:$0xff]  ;;  %v483_v4 = vld [vmem:[#allocation2 + $0xe0] sm:$0xff] }
 0x13c   : > { %873 = vst.msk [vmem:[#allocation2] sm:$0xff] %vm872_vm1, %v840_v7  ;;  %889 = vst.msk [vmem:[#allocation2 + $0x80] sm:$0xff] %vm872_vm1, %v856_v8  ;;  %v841_v15 = vadd.f32 %v716_v13, %v456_v5  ;;  %v857_v16 = vadd.f32 %v780_v14, %v472_v6  ;;  %v485_v2 = vld [vmem:[#allocation2 + $0xf0] sm:$0xff]  ;;  %v470_v7 = vld [vmem:[#allocation2 + $0x78] sm:$0xff] }
 0x13d   : > { %876 = vst.msk [vmem:[#allocation2 + $0x18] sm:$0xff] %vm872_vm1, %v843_v11  ;;  %892 = vst.msk [vmem:[#allocation2 + $0x98] sm:$0xff] %vm872_vm1, %v859_v12  ;;  %v486_v8 = vld [vmem:[#allocation2 + $0xf8] sm:$0xff]  ;;  %v468_v13 = vld [vmem:[#allocation2 + $0x68] sm:$0xff] }
 0x13e   : > { %874 = vst.msk [vmem:[#allocation2 + $0x8] sm:$0xff] %vm872_vm1, %v841_v15  ;;  %890 = vst.msk [vmem:[#allocation2 + $0x88] sm:$0xff] %vm872_vm1, %v857_v16  ;;  %v484_v14 = vld [vmem:[#allocation2 + $0xe8] sm:$0xff] }
 0x140   : > { %v1402_v21 = vpop.f32.mrb[4].mxu0  ;;  %v1418_v22 = vpop.f32.mrb[4].mxu1 }
 0x141   : > { %v846_v25 = vadd.f32 %v1402_v21, %v461_v17  ;;  %v862_v26 = vadd.f32 %v1418_v22, %v477_v18  ;;  %v729_v27 = vpop.f32.mrb[5].mxu0  ;;  %v793_v28 = vpop.f32.mrb[5].mxu1 }
 0x142   : > { %v844_v31 = vadd.f32 %v729_v27, %v459_v19  ;;  %v860_v32 = vadd.f32 %v793_v28, %v475_v20  ;;  %v1403_v33 = vpop.f32.mrb[6].mxu0  ;;  %v1419_v34 = vpop.f32.mrb[6].mxu1 }
 0x143   : > { %879 = vst.msk [vmem:[#allocation2 + $0x30] sm:$0xff] %vm872_vm1, %v846_v25  ;;  %895 = vst.msk [vmem:[#allocation2 + $0xb0] sm:$0xff] %vm872_vm1, %v862_v26  ;;  %v847_v35 = vadd.f32 %v1403_v33, %v462_v23  ;;  %v863_v36 = vadd.f32 %v1419_v34, %v478_v24  ;;  %v732_v37 = vpop.f32.mrb[7].mxu0  ;;  %v796_v38 = vpop.f32.mrb[7].mxu1  ;;  %v909_v25 = vld [vmem:[#allocation2] sm:$0xff] (!%p1286_p11) }
 0x144   : > { %877 = vst.msk [vmem:[#allocation2 + $0x20] sm:$0xff] %vm872_vm1, %v844_v31  ;;  %893 = vst.msk [vmem:[#allocation2 + $0xa0] sm:$0xff] %vm872_vm1, %v860_v32  ;;  %v845_v39 = vadd.f32 %v732_v37, %v460_v29  ;;  %v861_v40 = vadd.f32 %v796_v38, %v476_v30  ;;  %v1785_v26 = vld [vmem:[%s1964_s2] ss:$0 sm:$0xff] (!%p1286_p11)  ;;  %v911_v30 = vld [vmem:[#allocation2 + $0x10] sm:$0xff] (!%p1286_p11) }
 0x145   : > { %880 = vst.msk [vmem:[#allocation2 + $0x38] sm:$0xff] %vm872_vm1, %v847_v35  ;;  %896 = vst.msk [vmem:[#allocation2 + $0xb8] sm:$0xff] %vm872_vm1, %v863_v36  ;;  %v910_v27 = vld [vmem:[#allocation2 + $0x8] sm:$0xff] (!%p1286_p11)  ;;  %v948_v28 = vadd.f32 (!%p1286_p11), %v1785_v26, %v909_v25  ;;  %v912_v31 = vld [vmem:[#allocation2 + $0x18] sm:$0xff] (!%p1286_p11)  ;;  %v950_v33 = vadd.f32 (!%p1286_p11), %v1785_v26, %v911_v30 }
 0x146   : > { %878 = vst.msk [vmem:[#allocation2 + $0x28] sm:$0xff] %vm872_vm1, %v845_v39  ;;  %894 = vst.msk [vmem:[#allocation2 + $0xa8] sm:$0xff] %vm872_vm1, %v861_v40  ;;  %v949_v29 = vadd.f32 (!%p1286_p11), %v1785_v26, %v910_v27  ;;  %v951_v34 = vadd.f32 (!%p1286_p11), %v1785_v26, %v912_v31 }
 0x147   : > { %v1324_v39 = vpack.c.bf16 (!%p1286_p11), %v948_v28, %v948_v28 }
 0x148   : > { %v1406_v45 = vpop.f32.mrb[8].mxu0  ;;  %v1422_v46 = vpop.f32.mrb[8].mxu1  ;;  %v1325_v40 = vpack.c.bf16 (!%p1286_p11), %v949_v29, %v949_v29 }
 0x149   : > { %v850_v49 = vadd.f32 %v1406_v45, %v465_v41  ;;  %v866_v50 = vadd.f32 %v1422_v46, %v481_v42  ;;  %v745_v51 = vpop.f32.mrb[9].mxu0  ;;  %v809_v52 = vpop.f32.mrb[9].mxu1  ;;  %v1326_v46 = vpack.c.bf16 (!%p1286_p11), %v950_v33, %v950_v33  ;;  %1109 = vst.msk [vmem:[%s1965_s3] sm:$0xf] (!%p1286_p11), %vm1108_vm2, %v1324_v39 }
 0x14a   : > { %v848_v55 = vadd.f32 %v745_v51, %v463_v43  ;;  %v864_v56 = vadd.f32 %v809_v52, %v479_v44  ;;  %v1407_v57 = vpop.f32.mrb[10].mxu0  ;;  %v1423_v58 = vpop.f32.mrb[10].mxu1  ;;  %v915_v37 = vld [vmem:[#allocation2 + $0x30] sm:$0xff] (!%p1286_p11)  ;;  %1110 = vst.msk [vmem:[%s1965_s3 + $0x4] sm:$0xf] (!%p1286_p11), %vm1108_vm2, %v1325_v40 }
 0x14b   : > { %883 = vst.msk [vmem:[#allocation2 + $0x50] sm:$0xff] %vm872_vm1, %v850_v49  ;;  %899 = vst.msk [vmem:[#allocation2 + $0xd0] sm:$0xff] %vm872_vm1, %v866_v50  ;;  %v851_v59 = vadd.f32 %v1407_v57, %v466_v47  ;;  %v867_v60 = vadd.f32 %v1423_v58, %v482_v48  ;;  %v748_v61 = vpop.f32.mrb[11].mxu0  ;;  %v812_v62 = vpop.f32.mrb[11].mxu1  ;;  %v913_v32 = vld [vmem:[#allocation2 + $0x20] sm:$0xff] (!%p1286_p11)  ;;  %v954_v42 = vadd.f32 (!%p1286_p11), %v1785_v26, %v915_v37 }
 0x14c   : > { %881 = vst.msk [vmem:[#allocation2 + $0x40] sm:$0xff] %vm872_vm1, %v848_v55  ;;  %897 = vst.msk [vmem:[#allocation2 + $0xc0] sm:$0xff] %vm872_vm1, %v864_v56  ;;  %v849_v63 = vadd.f32 %v748_v61, %v464_v53  ;;  %v865_v0 = vadd.f32 %v812_v62, %v480_v54  ;;  %v952_v35 = vadd.f32 (!%p1286_p11), %v1785_v26, %v913_v32  ;;  %v916_v38 = vld [vmem:[#allocation2 + $0x38] sm:$0xff] (!%p1286_p11) }
 0x14d   : > { %884 = vst.msk [vmem:[#allocation2 + $0x58] sm:$0xff] %vm872_vm1, %v851_v59  ;;  %900 = vst.msk [vmem:[#allocation2 + $0xd8] sm:$0xff] %vm872_vm1, %v867_v60  ;;  %v914_v36 = vld [vmem:[#allocation2 + $0x28] sm:$0xff] (!%p1286_p11)  ;;  %v1327_v47 = vpack.c.bf16 (!%p1286_p11), %v951_v34, %v951_v34  ;;  %v955_v49 = vadd.f32 (!%p1286_p11), %v1785_v26, %v916_v38  ;;  %v1330_v54 = vpack.c.bf16 (!%p1286_p11), %v954_v42, %v954_v42 }
 0x14e   : > { %882 = vst.msk [vmem:[#allocation2 + $0x48] sm:$0xff] %vm872_vm1, %v849_v63  ;;  %898 = vst.msk [vmem:[#allocation2 + $0xc8] sm:$0xff] %vm872_vm1, %v865_v0  ;;  %v953_v41 = vadd.f32 (!%p1286_p11), %v1785_v26, %v914_v36  ;;  %v1328_v48 = vpack.c.bf16 (!%p1286_p11), %v952_v35, %v952_v35  ;;  %v925_v63 = vld [vmem:[#allocation2 + $0x80] sm:$0xff] (!%p1286_p11)  ;;  %v926_v0 = vld [vmem:[#allocation2 + $0x88] sm:$0xff] (!%p1286_p11) }
 0x14f   : > { %1111 = vst.msk [vmem:[%s1965_s3 + $0x8] sm:$0xf] (!%p1286_p11), %vm1108_vm2, %v1326_v46  ;;  %1112 = vst.msk [vmem:[%s1965_s3 + $0xc] sm:$0xf] (!%p1286_p11), %vm1108_vm2, %v1327_v47  ;;  %v1331_v59 = vpack.c.bf16 (!%p1286_p11), %v955_v49, %v955_v49 }
 0x150   : > { %v1410_v5 = vpop.f32.mrb[12].mxu0  ;;  %v1426_v6 = vpop.f32.mrb[12].mxu1  ;;  %908 = sbr.rel (%p1286_p11) target bundleno = 358 (0x166), region = 81  ;;  %v1329_v53 = vpack.c.bf16 (!%p1286_p11), %v953_v41, %v953_v41  ;;  %1113 = vst.msk [vmem:[%s1965_s3 + $0x10] sm:$0xf] (!%p1286_p11), %vm1108_vm2, %v1328_v48 }
 0x151   : > { %v854_v9 = vadd.f32 %v1410_v5, %v469_v1  ;;  %v870_v10 = vadd.f32 %v1426_v6, %v485_v2  ;;  %v761_v11 = vpop.f32.mrb[13].mxu0  ;;  %v825_v12 = vpop.f32.mrb[13].mxu1  ;;  %1115 = vst.msk [vmem:[%s1965_s3 + $0x18] sm:$0xf] (!%p1286_p11), %vm1108_vm2, %v1330_v54  ;;  %v927_v5 = vld [vmem:[#allocation2 + $0x90] sm:$0xff] (!%p1286_p11)  ;;  %v928_v6 = vld [vmem:[#allocation2 + $0x98] sm:$0xff] (!%p1286_p11) }
 0x152   : > { %v852_v15 = vadd.f32 %v761_v11, %v467_v3  ;;  %v868_v16 = vadd.f32 %v825_v12, %v483_v4  ;;  %v1411_v17 = vpop.f32.mrb[14].mxu0  ;;  %v1427_v18 = vpop.f32.mrb[14].mxu1  ;;  %v919_v45 = vld [vmem:[#allocation2 + $0x50] sm:$0xff] (!%p1286_p11)  ;;  %1114 = vst.msk [vmem:[%s1965_s3 + $0x14] sm:$0xf] (!%p1286_p11), %vm1108_vm2, %v1329_v53  ;;  %v930_v12 = vld [vmem:[#allocation2 + $0xa8] sm:$0xff] (!%p1286_p11) }
 0x153   : > { %887 = vst.msk [vmem:[#allocation2 + $0x70] sm:$0xff] %vm872_vm1, %v854_v9  ;;  %903 = vst.msk [vmem:[#allocation2 + $0xf0] sm:$0xff] %vm872_vm1, %v870_v10  ;;  %v855_v19 = vadd.f32 %v1411_v17, %v470_v7  ;;  %v871_v20 = vadd.f32 %v1427_v18, %v486_v8  ;;  %v764_v21 = vpop.f32.mrb[15].mxu0  ;;  %v828_v22 = vpop.f32.mrb[15].mxu1  ;;  %v917_v43 = vld [vmem:[#allocation2 + $0x40] sm:$0xff] (!%p1286_p11)  ;;  %v958_v60 = vadd.f32 (!%p1286_p11), %v1785_v26, %v919_v45  ;;  %v932_v18 = vld [vmem:[#allocation2 + $0xb8] sm:$0xff] (!%p1286_p11) }
 0x154   : > { %885 = vst.msk [vmem:[#allocation2 + $0x60] sm:$0xff] %vm872_vm1, %v852_v15  ;;  %901 = vst.msk [vmem:[#allocation2 + $0xe0] sm:$0xff] %vm872_vm1, %v868_v16  ;;  %v853_v23 = vadd.f32 %v764_v21, %v468_v13  ;;  %v869_v24 = vadd.f32 %v828_v22, %v484_v14  ;;  %v920_v50 = vld [vmem:[#allocation2 + $0x58] sm:$0xff] (!%p1286_p11)  ;;  %v956_v55 = vadd.f32 (!%p1286_p11), %v1785_v26, %v917_v43  ;;  %v929_v7 = vld [vmem:[#allocation2 + $0xa0] sm:$0xff] (!%p1286_p11) }
 0x155   : > { %888 = vst.msk [vmem:[#allocation2 + $0x78] sm:$0xff] %vm872_vm1, %v855_v19  ;;  %904 = vst.msk [vmem:[#allocation2 + $0xf8] sm:$0xff] %vm872_vm1, %v871_v20  ;;  %v918_v44 = vld [vmem:[#allocation2 + $0x48] sm:$0xff] (!%p1286_p11)  ;;  %v959_v61 = vadd.f32 (!%p1286_p11), %v1785_v26, %v920_v50  ;;  %v1334_v8 = vpack.c.bf16 (!%p1286_p11), %v958_v60, %v958_v60  ;;  %v931_v13 = vld [vmem:[#allocation2 + $0xb0] sm:$0xff] (!%p1286_p11)  ;;  %v964_v16 = vadd.f32 (!%p1286_p11), %v1785_v26, %v925_v63 }
 0x156   : > { %886 = vst.msk [vmem:[#allocation2 + $0x68] sm:$0xff] %vm872_vm1, %v853_v23  ;;  %902 = vst.msk [vmem:[#allocation2 + $0xe8] sm:$0xff] %vm872_vm1, %v869_v24  ;;  %v957_v56 = vadd.f32 (!%p1286_p11), %v1785_v26, %v918_v44  ;;  %v1332_v1 = vpack.c.bf16 (!%p1286_p11), %v956_v55, %v956_v55  ;;  %v965_v17 = vadd.f32 (!%p1286_p11), %v1785_v26, %v926_v0  ;;  %v933_v23 = vld [vmem:[#allocation2 + $0xc0] sm:$0xff] (!%p1286_p11)  ;;  %v934_v24 = vld [vmem:[#allocation2 + $0xc8] sm:$0xff] (!%p1286_p11) }
 0x157   : > { %1116 = vst.msk [vmem:[%s1965_s3 + $0x1c] sm:$0xf] %vm1108_vm2, %v1331_v59  ;;  %v1335_v9 = vpack.c.bf16 %v959_v61, %v959_v61  ;;  %1119 = vst.msk [vmem:[%s1965_s3 + $0x28] sm:$0xf] %vm1108_vm2, %v1334_v8  ;;  %v966_v20 = vadd.f32 %v1785_v26, %v927_v5  ;;  %v967_v21 = vadd.f32 %v1785_v26, %v928_v6  ;;  %v935_v30 = vld [vmem:[#allocation2 + $0xd0] sm:$0xff]  ;;  %v936_v31 = vld [vmem:[#allocation2 + $0xd8] sm:$0xff] }
 0x158   : > { %v1333_v2 = vpack.c.bf16 %v957_v56, %v957_v56  ;;  %1117 = vst.msk [vmem:[%s1965_s3 + $0x20] sm:$0xf] %vm1108_vm2, %v1332_v1  ;;  %v968_v22 = vadd.f32 %v1785_v26, %v929_v7  ;;  %v1340_v25 = vpack.c.bf16 %v964_v16, %v964_v16  ;;  %v1341_v27 = vpack.c.bf16 %v965_v17, %v965_v17 }
 0x159   : > { %1120 = vst.msk [vmem:[%s1965_s3 + $0x2c] sm:$0xf] %vm1108_vm2, %v1335_v9  ;;  %v969_v28 = vadd.f32 %v1785_v26, %v930_v12  ;;  %v970_v29 = vadd.f32 %v1785_v26, %v931_v13  ;;  %v1342_v33 = vpack.c.bf16 %v966_v20, %v966_v20  ;;  %v1343_v34 = vpack.c.bf16 %v967_v21, %v967_v21 }
 0x15a   : > { %v923_v57 = vld [vmem:[#allocation2 + $0x70] sm:$0xff]  ;;  %1118 = vst.msk [vmem:[%s1965_s3 + $0x24] sm:$0xf] %vm1108_vm2, %v1333_v2  ;;  %v1344_v35 = vpack.c.bf16 %v968_v22, %v968_v22  ;;  %v971_v36 = vadd.f32 %v1785_v26, %v932_v18  ;;  %1125 = vst.msk [vmem:[%s1965_s3 + $0x40] sm:$0xf] %vm1108_vm2, %v1340_v25  ;;  %v972_v41 = vadd.f32 %v1785_v26, %v933_v23 }
 0x15b   : > { %v921_v51 = vld [vmem:[#allocation2 + $0x60] sm:$0xff]  ;;  %v962_v4 = vadd.f32 %v1785_v26, %v923_v57  ;;  %v939_v38 = vld [vmem:[#allocation2 + $0xf0] sm:$0xff]  ;;  %1126 = vst.msk [vmem:[%s1965_s3 + $0x44] sm:$0xf] %vm1108_vm2, %v1341_v27  ;;  %v1345_v39 = vpack.c.bf16 %v969_v28, %v969_v28  ;;  %v1346_v40 = vpack.c.bf16 %v970_v29, %v970_v29  ;;  %v973_v42 = vadd.f32 %v1785_v26, %v934_v24 }
 0x15c   : > { %v924_v58 = vld [vmem:[#allocation2 + $0x78] sm:$0xff]  ;;  %v960_v62 = vadd.f32 %v1785_v26, %v921_v51  ;;  %v937_v32 = vld [vmem:[#allocation2 + $0xe0] sm:$0xff]  ;;  %1127 = vst.msk [vmem:[%s1965_s3 + $0x48] sm:$0xf] %vm1108_vm2, %v1342_v33  ;;  %1128 = vst.msk [vmem:[%s1965_s3 + $0x4c] sm:$0xf] %vm1108_vm2, %v1343_v34  ;;  %v1347_v44 = vpack.c.bf16 %v971_v36, %v971_v36  ;;  %v974_v45 = vadd.f32 %v1785_v26, %v935_v30 }
 0x15d   : > { %v922_v52 = vld [vmem:[#allocation2 + $0x68] sm:$0xff]  ;;  %v963_v11 = vadd.f32 %v1785_v26, %v924_v58  ;;  %v1338_v15 = vpack.c.bf16 %v962_v4, %v962_v4  ;;  %v940_v43 = vld [vmem:[#allocation2 + $0xf8] sm:$0xff]  ;;  %1129 = vst.msk [vmem:[%s1965_s3 + $0x50] sm:$0xf] %vm1108_vm2, %v1344_v35  ;;  %v975_v46 = vadd.f32 %v1785_v26, %v936_v31  ;;  %v976_v47 = vadd.f32 %v1785_v26, %v937_v32 }
 0x15e   : > { %v961_v3 = vadd.f32 %v1785_v26, %v922_v52  ;;  %v1336_v10 = vpack.c.bf16 %v960_v62, %v960_v62  ;;  %v938_v37 = vld [vmem:[#allocation2 + $0xe8] sm:$0xff]  ;;  %1130 = vst.msk [vmem:[%s1965_s3 + $0x54] sm:$0xf] %vm1108_vm2, %v1345_v39  ;;  %1131 = vst.msk [vmem:[%s1965_s3 + $0x58] sm:$0xf] %vm1108_vm2, %v1346_v40  ;;  %v1348_v48 = vpack.c.bf16 %v972_v41, %v972_v41 }
 0x15f   : > { %v1339_v19 = vpack.c.bf16 %v963_v11, %v963_v11  ;;  %1123 = vst.msk [vmem:[%s1965_s3 + $0x38] sm:$0xf] %vm1108_vm2, %v1338_v15  ;;  %v1349_v49 = vpack.c.bf16 %v973_v42, %v973_v42  ;;  %v977_v50 = vadd.f32 %v1785_v26, %v938_v37  ;;  %v978_v51 = vadd.f32 %v1785_v26, %v939_v38 }
 0x160   : > { %v1337_v14 = vpack.c.bf16 %v961_v3, %v961_v3  ;;  %1121 = vst.msk [vmem:[%s1965_s3 + $0x30] sm:$0xf] %vm1108_vm2, %v1336_v10  ;;  %1132 = vst.msk [vmem:[%s1965_s3 + $0x5c] sm:$0xf] %vm1108_vm2, %v1347_v44  ;;  %v1350_v52 = vpack.c.bf16 %v974_v45, %v974_v45  ;;  %v1351_v53 = vpack.c.bf16 %v975_v46, %v975_v46 }
 0x161   : > { %1124 = vst.msk [vmem:[%s1965_s3 + $0x3c] sm:$0xf] %vm1108_vm2, %v1339_v19  ;;  %v1352_v54 = vpack.c.bf16 %v976_v47, %v976_v47  ;;  %v979_v55 = vadd.f32 %v1785_v26, %v940_v43  ;;  %1133 = vst.msk [vmem:[%s1965_s3 + $0x60] sm:$0xf] %vm1108_vm2, %v1348_v48  ;;  %v1353_v56 = vpack.c.bf16 %v977_v50, %v977_v50 }
 0x162   : > { %1122 = vst.msk [vmem:[%s1965_s3 + $0x34] sm:$0xf] %vm1108_vm2, %v1337_v14  ;;  %1134 = vst.msk [vmem:[%s1965_s3 + $0x64] sm:$0xf] %vm1108_vm2, %v1349_v49  ;;  %v1354_v57 = vpack.c.bf16 %v978_v51, %v978_v51 }
 0x163   : > { %1135 = vst.msk [vmem:[%s1965_s3 + $0x68] sm:$0xf] %vm1108_vm2, %v1350_v52  ;;  %1136 = vst.msk [vmem:[%s1965_s3 + $0x6c] sm:$0xf] %vm1108_vm2, %v1351_v53  ;;  %v1355_v26 = vpack.c.bf16 %v979_v55, %v979_v55 }
 0x164   : > { %1137 = vst.msk [vmem:[%s1965_s3 + $0x70] sm:$0xf] %vm1108_vm2, %v1352_v54  ;;  %1138 = vst.msk [vmem:[%s1965_s3 + $0x74] sm:$0xf] %vm1108_vm2, %v1353_v56 }
 0x165   : > { %1139 = vst.msk [vmem:[%s1965_s3 + $0x78] sm:$0xf] %vm1108_vm2, %v1354_v57  ;;  %1140 = vst.msk [vmem:[%s1965_s3 + $0x7c] sm:$0xf] %vm1108_vm2, %v1355_v26 }
 0x166 PF: > { %s13_s16 = sadd.s32 1, %s1547_s16   ;;  %s1966_s12 = smov %s1535_s13 }
 0x167   : > { %p10_p12 = scmp.ge.s32.totalorder %s13_s16, 7   ;;  %s1967_s13 = smov %s1605_s20 }
 0x168   : > { %s1968_s14 = smov %s1543_s15  ;;  %s1969_s15 = smov %s1971_s17 }
 0x169   :  { %12 = sbr.rel (!%p10_p12) target bundleno = 3 (0x3), region = 122 }

// kernel: siamese_forward.26
= control target key start
LH: loop header
LB: loop body
LE: loop exit
PB: predicated region body
PF: predicated region fallthrough
CT: control target
= control target key end

     0   :  { %s938_s12 = smov 0   ;;  %s940_s13 = smov 0   ;;  %s1036_s0 = inlined_call_operand.vmem [shape: bf16[64,640], index: 0, kind: input, shape index: {}]   ;;  %s1037_s1 = inlined_call_operand.vmem [shape: bf16[640,128], index: 1, kind: input, shape index: {}]   ;;  %s1038_s2 = inlined_call_operand.vmem [shape: f32[1,128], index: 2, kind: input, shape index: {}]   ;;  %s1039_s3 = inlined_call_operand.vmem [shape: bf16[64,128], index: 3, kind: output, shape index: {}]  }
   0x1   :  { %s942_s14 = smov 0   ;;  %s944_s15 = smov 0  }
   0x2   :  { %s946_s16 = smov 0  }
   0x3 LB: > { %s25_s17 = sadd.s32 1, %s911_s15  ;;  %p48_p1 = scmp.ne.s32.totalorder %s903_s13, %s899_s12  ;;  %s915_s16 = sphi %s946_s16, %s13_s16   ;;  %s911_s15 = sphi %s944_s15, %s1043_s15   ;;  %s907_s14 = sphi %s942_s14, %s1042_s14   ;;  %s903_s13 = sphi %s940_s13, %s1041_s13   ;;  %s899_s12 = sphi %s938_s12, %s1040_s12  }
   0x4   : > { %p26_p0 = scmp.ge.s32.totalorder %s25_s17, 5  ;;  %p49_p2 = scmp.eq.s32.totalorder %s915_s16, 0 }
   0x5   : > { %s41_s19 = sadd.s32 1, %s903_s13  ;;  %p707_p5 = scmp.ge.s32.totalorder %s915_s16, 5 }
   0x6   : > { %s1045_s17 = smov (%p26_p0, %s25_s17), 0  ;;  %p50_p3 = por %p49_p2, %p48_p1 }
   0x7   : > { %s37_s18 = ssub.s32 %s911_s15, %s1045_s17  ;;  %162 = sbr.rel (%p707_p5) target bundleno = 23 (0x17), region = 20 }
   0x8   : > { %p39_p4 = scmp.eq.s32.totalorder %s37_s18, 0 }
   0xa   : > { %s973_s20 = scalar_select %p39_p4, %s903_s13, %s41_s19  }
   0xe   : > { %165 = sbr.rel (!%p50_p3) target bundleno = 23 (0x17), region = 24  ;;  %s167_s21 = sand.u32 (%p50_p3), 1, %s903_s13  }
   0xf   : > { %s709_s22 = sshll.u32 (%p50_p3), %s911_s15, 2  ;;  %s708_s23 = sshll.u32 (%p50_p3), %s167_s21, 5 }
  0x10   : > { %s174_s26 = scalar_lea.vmem (%p50_p3), %s1036_s0, %s709_s22  ;;  %s169_s27 = scalar_lea.vmem (%p50_p3), [#allocation3], %s708_s23 }
  0x11   : > { %v190_v0 = vld [vmem:[%s174_s26] sm:$0xf] (%p50_p3)  ;;  %v192_v1 = vld [vmem:[%s174_s26 + $0x14] sm:$0xf] (%p50_p3)  ;;  %v194_v2 = vld [vmem:[%s174_s26 + $0x28] sm:$0xf] (%p50_p3) }
  0x12   : > { %191 = vst [vmem:[%s169_s27] sm:$0xf] (%p50_p3), %v190_v0  ;;  %193 = vst [vmem:[%s169_s27 + $0x4] sm:$0xf] (%p50_p3), %v192_v1  ;;  %v196_v3 = vld [vmem:[%s174_s26 + $0x3c] sm:$0xf] (%p50_p3) }
  0x13   : > { %v198_v4 = vld [vmem:[%s174_s26 + $0x50] sm:$0xf] (%p50_p3)  ;;  %195 = vst [vmem:[%s169_s27 + $0x8] sm:$0xf] (%p50_p3), %v194_v2  ;;  %197 = vst [vmem:[%s169_s27 + $0xc] sm:$0xf] (%p50_p3), %v196_v3 }
  0x14   : > { %199 = vst [vmem:[%s169_s27 + $0x10] sm:$0xf] (%p50_p3), %v198_v4  ;;  %v200_v5 = vld [vmem:[%s174_s26 + $0x64] sm:$0xf] (%p50_p3)  ;;  %v202_v6 = vld [vmem:[%s174_s26 + $0x78] sm:$0xf] (%p50_p3) }
  0x15   : > { %v204_v7 = vld [vmem:[%s174_s26 + $0x8c] sm:$0xf]  ;;  %201 = vst [vmem:[%s169_s27 + $0x14] sm:$0xf] %v200_v5  ;;  %203 = vst [vmem:[%s169_s27 + $0x18] sm:$0xf] %v202_v6 }
  0x16   : > { %205 = vst [vmem:[%s169_s27 + $0x1c] sm:$0xf] %v204_v7 }
  0x17 PF: > { %p710_p6 = scmp.ge.s32.totalorder %s915_s16, 1  ;;  %p255_p7 = scmp.lt.s32.totalorder %s915_s16, 6 }
  0x19   : > { %p256_p8 = pnand %p710_p6, %p255_p7 }
  0x1a   : > { %s262_s28 = sand.u32 (!%p256_p8), 1, %s899_s12   ;;  %s712_s29 = sshll.u32 (!%p256_p8), %s907_s14, 4 }
  0x1b   : > { %259 = sbr.rel (%p256_p8) target bundleno = 307 (0x133), region = 69  ;;  %s711_s30 = sshll.u32 (!%p256_p8), %s262_s28, 5 }
  0x1c   : > { %p301_p9 = scmp.lt.s32.totalorder (!%p256_p8), %s712_s29, 79  ;;  %s990_s8 = scalar_lea.vmem (!%p256_p8), [#allocation3], %s711_s30 }
  0x1d   : > { %p714_p10 = scmp.ne.s32.totalorder (!%p256_p8), %s907_s14, 0 }
  0x22   : > { %s1047_s29 = smov (!%p301_p9, %s712_s29), 79  ;;  %325 = sbr.rel (%p714_p10) target bundleno = 41 (0x29), region = 77 }
  0x23   : > { %s713_s4 = sshll.u32 %s1047_s29, 2  ;;  %v917_v8 = vmov (!%p714_p10), 0.0  }
  0x24   : > { %s988_s7 = scalar_lea.vmem %s1037_s1, %s713_s4  ;;  %326 = vst [vmem:[#allocation2] sm:$0xff] (!%p714_p10), %v917_v8  ;;  %327 = vst [vmem:[#allocation2 + $0x8] sm:$0xff] (!%p714_p10), %v917_v8 }
  0x25   : > { %328 = vst [vmem:[#allocation2 + $0x10] sm:$0xff] (!%p714_p10), %v917_v8  ;;  %329 = vst [vmem:[#allocation2 + $0x18] sm:$0xff] (!%p714_p10), %v917_v8 }
  0x26   : > { %330 = vst [vmem:[#allocation2 + $0x20] sm:$0xff] (!%p714_p10), %v917_v8  ;;  %331 = vst [vmem:[#allocation2 + $0x28] sm:$0xff] (!%p714_p10), %v917_v8 }
  0x27   : > { %332 = vst [vmem:[#allocation2 + $0x30] sm:$0xff] (!%p714_p10), %v917_v8  ;;  %333 = vst [vmem:[#allocation2 + $0x38] sm:$0xff] (!%p714_p10), %v917_v8 }
  0x29 PF: > { %v865_v9 = vld [vmem:[%s988_s7] sm:$0xff]   ;;  %v866_v10 = vld [vmem:[%s988_s7 + $0x8] sm:$0xff]   ;;  %v867_v11 = vld [vmem:[%s988_s7 + $0x10] sm:$0xff]   ;;  %p727_p11 = scmp.ne.s32.totalorder %s907_s14, 4 }
  0x2a   : > { %784 = vmatprep.subr.bf16.mxu0 %v865_v9  ;;  %808 = vmatprep.subr.bf16.mxu1 %v865_v9  ;;  %v868_v12 = vld [vmem:[%s988_s7 + $0x18] sm:$0xff]   ;;  %v873_v13 = vld [vmem:[%s990_s8] sm:$0xff]   ;;  %v874_v14 = vld [vmem:[%s990_s8 + $0x10] sm:$0xff]  }
  0x2b   : > { %785 = vmatpush3.bf16.msra.mxu0 %v865_v9  ;;  %816 = vmatpush3.bf16.msra.mxu1 %v865_v9  ;;  %v869_v15 = vld [vmem:[%s988_s7 + $0x20] sm:$0xff]   ;;  %v870_v16 = vld [vmem:[%s988_s7 + $0x28] sm:$0xff]   ;;  %v871_v17 = vld [vmem:[%s988_s7 + $0x30] sm:$0xff]  }
  0x2c   : > { %786 = vmatprep.subr.bf16.mxu0 %v866_v10  ;;  %809 = vmatprep.subr.bf16.mxu1 %v866_v10  ;;  %v872_v18 = vld [vmem:[%s988_s7 + $0x38] sm:$0xff]   ;;  %v875_v19 = vld [vmem:[%s990_s8 + $0x8] sm:$0xff]   ;;  %v336_v21 = vld [vmem:[#allocation2 + $0x10] sm:$0xff] }
  0x2d   : > { %800 = vmatprep.mubr.bf16.mxu0 %v873_v13  ;;  %804 = vmatprep.mubr.bf16.mxu1 %v874_v14  ;;  %v876_v20 = vld [vmem:[%s990_s8 + $0x18] sm:$0xff]   ;;  %v334_v23 = vld [vmem:[#allocation2] sm:$0xff]  ;;  %v335_v33 = vld [vmem:[#allocation2 + $0x8] sm:$0xff] }
  0x2e   : > { %v340_v22 = vld [vmem:[#allocation2 + $0x30] sm:$0xff]  ;;  %v338_v24 = vld [vmem:[#allocation2 + $0x20] sm:$0xff]  ;;  %v337_v27 = vld [vmem:[#allocation2 + $0x18] sm:$0xff] }
  0x2f   : > { %787 = vmatpush3.bf16.msra.mxu0 %v866_v10  ;;  %817 = vmatpush3.bf16.msra.mxu1 %v866_v10  ;;  %v341_v28 = vld [vmem:[#allocation2 + $0x38] sm:$0xff]  ;;  %v339_v34 = vld [vmem:[#allocation2 + $0x28] sm:$0xff]  ;;  %v728_v47 = vld [vmem:[%s1038_s2] ss:$0 sm:$0xff] (!%p727_p11) }
  0x30   : > { %788 = vmatprep.subr.bf16.mxu0 %v867_v11  ;;  %810 = vmatprep.subr.bf16.mxu1 %v867_v11 }
  0x33   : > { %789 = vmatpush3.bf16.msra.mxu0 %v867_v11  ;;  %818 = vmatpush3.bf16.msra.mxu1 %v867_v11 }
  0x34   : > { %790 = vmatprep.subr.bf16.mxu0 %v868_v12  ;;  %811 = vmatprep.subr.bf16.mxu1 %v868_v12 }
  0x37   : > { %791 = vmatpush3.bf16.msra.mxu0 %v868_v12  ;;  %819 = vmatpush3.bf16.msra.mxu1 %v868_v12 }
  0x38   : > { %792 = vmatprep.subr.bf16.mxu0 %v869_v15  ;;  %812 = vmatprep.subr.bf16.mxu1 %v869_v15 }
  0x3b   : > { %793 = vmatpush3.bf16.msra.mxu0 %v869_v15  ;;  %820 = vmatpush3.bf16.msra.mxu1 %v869_v15 }
  0x3c   : > { %794 = vmatprep.subr.bf16.mxu0 %v870_v16  ;;  %813 = vmatprep.subr.bf16.mxu1 %v870_v16 }
  0x3f   : > { %795 = vmatpush3.bf16.msra.mxu0 %v870_v16  ;;  %821 = vmatpush3.bf16.msra.mxu1 %v870_v16 }
  0x40   : > { %796 = vmatprep.subr.bf16.mxu0 %v871_v17  ;;  %814 = vmatprep.subr.bf16.mxu1 %v871_v17 }
  0x43   : > { %797 = vmatpush3.bf16.msra.mxu0 %v871_v17  ;;  %822 = vmatpush3.bf16.msra.mxu1 %v871_v17 }
  0x44   : > { %798 = vmatprep.subr.bf16.mxu0 %v872_v18  ;;  %815 = vmatprep.subr.bf16.mxu1 %v872_v18 }
  0x47   : > { %799 = vmatpush3.bf16.msra.mxu0 %v872_v18  ;;  %823 = vmatpush3.bf16.msra.mxu1 %v872_v18 }
  0x4a   : > { %801 = vmatmul.mubr.bf16.vlgmr.msra.gmra.mrb[0].mxu0 %v875_v19  ;;  %805 = vmatmul.mubr.bf16.vlgmr.msra.gmra.mrb[0].mxu1 %v876_v20 }
 0x11d   : > { %v802_v25 = vpop.f32.mrb[0].mxu0  ;;  %v806_v26 = vpop.f32.mrb[0].mxu1  ;;  %522 = sbr.rel (%p727_p11) target bundleno = 307 (0x133), region = 81 }
 0x11e   : > { %v505_v29 = vadd.f32 %v802_v25, %v336_v21  ;;  %v509_v30 = vadd.f32 %v806_v26, %v340_v22  ;;  %v472_v31 = vpop.f32.mrb[1].mxu0  ;;  %v488_v32 = vpop.f32.mrb[1].mxu1 }
 0x11f   : > { %v503_v35 = vadd.f32 %v472_v31, %v334_v23  ;;  %v507_v36 = vadd.f32 %v488_v32, %v338_v24  ;;  %v803_v37 = vpop.f32.mrb[2].mxu0  ;;  %v807_v38 = vpop.f32.mrb[2].mxu1 }
 0x120   : > { %513 = vst [vmem:[#allocation2 + $0x10] sm:$0xff] %v505_v29  ;;  %517 = vst [vmem:[#allocation2 + $0x30] sm:$0xff] %v509_v30  ;;  %v506_v39 = vadd.f32 %v803_v37, %v337_v27  ;;  %v510_v40 = vadd.f32 %v807_v38, %v341_v28  ;;  %v475_v41 = vpop.f32.mrb[3].mxu0  ;;  %v491_v42 = vpop.f32.mrb[3].mxu1 }
 0x121   : > { %511 = vst [vmem:[#allocation2] sm:$0xff] %v503_v35  ;;  %515 = vst [vmem:[#allocation2 + $0x20] sm:$0xff] %v507_v36  ;;  %v504_v43 = vadd.f32 %v475_v41, %v335_v33  ;;  %v508_v44 = vadd.f32 %v491_v42, %v339_v34 }
 0x122   : > { %514 = vst [vmem:[#allocation2 + $0x18] sm:$0xff] %v506_v39  ;;  %518 = vst [vmem:[#allocation2 + $0x38] sm:$0xff] %v510_v40 }
 0x123   : > { %512 = vst [vmem:[#allocation2 + $0x8] sm:$0xff] %v504_v43  ;;  %516 = vst [vmem:[#allocation2 + $0x28] sm:$0xff] %v508_v44 }
 0x127   : > { %v525_v50 = vld [vmem:[#allocation2 + $0x10] sm:$0xff] }
 0x128   : > { %v523_v45 = vld [vmem:[#allocation2] sm:$0xff]  ;;  %v540_v53 = vadd.f32 %v728_v47, %v525_v50  ;;  %v529_v57 = vld [vmem:[#allocation2 + $0x30] sm:$0xff] }
 0x129   : > { %v538_v48 = vadd.f32 %v728_v47, %v523_v45  ;;  %v526_v51 = vld [vmem:[#allocation2 + $0x18] sm:$0xff]  ;;  %v527_v52 = vld [vmem:[#allocation2 + $0x20] sm:$0xff]  ;;  %v544_v62 = vadd.f32 %v728_v47, %v529_v57 }
 0x12a   : > { %v524_v46 = vld [vmem:[#allocation2 + $0x8] sm:$0xff]  ;;  %v541_v54 = vadd.f32 %v728_v47, %v526_v51  ;;  %v542_v56 = vadd.f32 %v728_v47, %v527_v52  ;;  %v530_v58 = vld [vmem:[#allocation2 + $0x38] sm:$0xff]  ;;  %v548_v63 = vmax.f32 %v540_v53, 0.0 }
 0x12b   : > { %v539_v49 = vadd.f32 %v728_v47, %v524_v46  ;;  %v528_v55 = vld [vmem:[#allocation2 + $0x28] sm:$0xff]  ;;  %v546_v59 = vmax.f32 %v538_v48, 0.0  ;;  %v545_v2 = vadd.f32 %v728_v47, %v530_v58  ;;  %v552_v5 = vmax.f32 %v544_v62, 0.0 }
 0x12c   : > { %v543_v61 = vadd.f32 %v728_v47, %v528_v55  ;;  %v549_v0 = vmax.f32 %v541_v54, 0.0  ;;  %v550_v1 = vmax.f32 %v542_v56, 0.0 }
 0x12d   : > { %v547_v60 = vmax.f32 %v539_v49, 0.0  ;;  %v553_v7 = vmax.f32 %v545_v2, 0.0 }
 0x12e   : > { %v551_v4 = vmax.f32 %v543_v61, 0.0  ;;  %v757_v6 = vpack.c.bf16 %v549_v0, %v548_v63 }
 0x12f   : > { %v752_v3 = vpack.c.bf16 %v547_v60, %v546_v59  ;;  %v767_v9 = vpack.c.bf16 %v553_v7, %v552_v5 }
 0x130   : > { %v762_v8 = vpack.c.bf16 %v551_v4, %v550_v1  ;;  %769 = vst [vmem:[%s1039_s3 + $0x8] sm:$0xff] %v757_v6  }
 0x131   : > { %753 = vst [vmem:[%s1039_s3] sm:$0xff] %v752_v3   ;;  %771 = vst [vmem:[%s1039_s3 + $0x18] sm:$0xff] %v767_v9  }
 0x132   : > { %770 = vst [vmem:[%s1039_s3 + $0x10] sm:$0xff] %v762_v8  }
 0x133 PF: > { %s13_s16 = sadd.s32 1, %s915_s16   ;;  %s1040_s12 = smov %s903_s13 }
 0x134   : > { %p10_p12 = scmp.ge.s32.totalorder %s13_s16, 7   ;;  %s1041_s13 = smov %s973_s20 }
 0x135   : > { %s1042_s14 = smov %s911_s15  ;;  %s1043_s15 = smov %s1045_s17 }
 0x136   :  { %12 = sbr.rel (!%p10_p12) target bundleno = 3 (0x3), region = 122 }

// kernel: siamese_forward.27
= control target key start
LH: loop header
LB: loop body
LE: loop exit
PB: predicated region body
PF: predicated region fallthrough
CT: control target
= control target key end

     0   :  { %s930_s12 = smov 0   ;;  %s932_s13 = smov 0   ;;  %s1028_s0 = inlined_call_operand.vmem [shape: bf16[64,1152], index: 0, kind: input, shape index: {}]   ;;  %s1029_s1 = inlined_call_operand.vmem [shape: bf16[1152,128], index: 1, kind: input, shape index: {}]   ;;  %s1030_s2 = inlined_call_operand.vmem [shape: f32[1,128], index: 2, kind: input, shape index: {}]   ;;  %s1031_s3 = inlined_call_operand.vmem [shape: bf16[64,128], index: 3, kind: output, shape index: {}]  }
   0x1   :  { %s934_s14 = smov 0   ;;  %s936_s15 = smov 0  }
   0x2   :  { %s938_s16 = smov 0  }
   0x3 LB: > { %s25_s17 = sadd.s32 1, %s903_s15  ;;  %p48_p1 = scmp.ne.s32.totalorder %s895_s13, %s891_s12  ;;  %s907_s16 = sphi %s938_s16, %s13_s16   ;;  %s903_s15 = sphi %s936_s15, %s1035_s15   ;;  %s899_s14 = sphi %s934_s14, %s1034_s14   ;;  %s895_s13 = sphi %s932_s13, %s1033_s13   ;;  %s891_s12 = sphi %s930_s12, %s1032_s12  }
   0x4   : > { %p26_p0 = scmp.ge.s32.totalorder %s25_s17, 9  ;;  %p49_p2 = scmp.eq.s32.totalorder %s907_s16, 0 }
   0x5   : > { %s41_s19 = sadd.s32 1, %s895_s13  ;;  %p699_p5 = scmp.ge.s32.totalorder %s907_s16, 9 }
   0x6   : > { %s1037_s17 = smov (%p26_p0, %s25_s17), 0  ;;  %p50_p3 = por %p49_p2, %p48_p1 }
   0x7   : > { %s37_s18 = ssub.s32 %s903_s15, %s1037_s17  ;;  %162 = sbr.rel (%p699_p5) target bundleno = 23 (0x17), region = 20 }
   0x8   : > { %p39_p4 = scmp.eq.s32.totalorder %s37_s18, 0 }
   0xa   : > { %s965_s20 = scalar_select %p39_p4, %s895_s13, %s41_s19  }
   0xe   : > { %165 = sbr.rel (!%p50_p3) target bundleno = 23 (0x17), region = 24  ;;  %s167_s21 = sand.u32 (%p50_p3), 1, %s895_s13  }
   0xf   : > { %s701_s22 = sshll.u32 (%p50_p3), %s903_s15, 2  ;;  %s700_s23 = sshll.u32 (%p50_p3), %s167_s21, 5 }
  0x10   : > { %s174_s26 = scalar_lea.vmem (%p50_p3), %s1028_s0, %s701_s22  ;;  %s169_s27 = scalar_lea.vmem (%p50_p3), [#allocation3], %s700_s23 }
  0x11   : > { %v190_v0 = vld [vmem:[%s174_s26] sm:$0xf] (%p50_p3)  ;;  %v192_v1 = vld [vmem:[%s174_s26 + $0x24] sm:$0xf] (%p50_p3)  ;;  %v194_v2 = vld [vmem:[%s174_s26 + $0x48] sm:$0xf] (%p50_p3) }
  0x12   : > { %191 = vst [vmem:[%s169_s27] sm:$0xf] (%p50_p3), %v190_v0  ;;  %193 = vst [vmem:[%s169_s27 + $0x4] sm:$0xf] (%p50_p3), %v192_v1  ;;  %v196_v3 = vld [vmem:[%s174_s26 + $0x6c] sm:$0xf] (%p50_p3) }
  0x13   : > { %v198_v4 = vld [vmem:[%s174_s26 + $0x90] sm:$0xf] (%p50_p3)  ;;  %195 = vst [vmem:[%s169_s27 + $0x8] sm:$0xf] (%p50_p3), %v194_v2  ;;  %197 = vst [vmem:[%s169_s27 + $0xc] sm:$0xf] (%p50_p3), %v196_v3 }
  0x14   : > { %199 = vst [vmem:[%s169_s27 + $0x10] sm:$0xf] (%p50_p3), %v198_v4  ;;  %v200_v5 = vld [vmem:[%s174_s26 + $0xb4] sm:$0xf] (%p50_p3)  ;;  %v202_v6 = vld [vmem:[%s174_s26 + $0xd8] sm:$0xf] (%p50_p3) }
  0x15   : > { %v204_v7 = vld [vmem:[%s174_s26 + $0xfc] sm:$0xf]  ;;  %201 = vst [vmem:[%s169_s27 + $0x14] sm:$0xf] %v200_v5  ;;  %203 = vst [vmem:[%s169_s27 + $0x18] sm:$0xf] %v202_v6 }
  0x16   : > { %205 = vst [vmem:[%s169_s27 + $0x1c] sm:$0xf] %v204_v7 }
  0x17 PF: > { %p702_p6 = scmp.ge.s32.totalorder %s907_s16, 1  ;;  %p255_p7 = scmp.lt.s32.totalorder %s907_s16, 10 }
  0x19   : > { %p256_p8 = pnand %p702_p6, %p255_p7 }
  0x1a   : > { %s262_s28 = sand.u32 (!%p256_p8), 1, %s891_s12   ;;  %s704_s29 = sshll.u32 (!%p256_p8), %s899_s14, 4 }
  0x1b   : > { %259 = sbr.rel (%p256_p8) target bundleno = 305 (0x131), region = 69  ;;  %s703_s30 = sshll.u32 (!%p256_p8), %s262_s28, 5 }
  0x1c   : > { %p301_p9 = scmp.lt.s32.totalorder (!%p256_p8), %s704_s29, 143  ;;  %s982_s8 = scalar_lea.vmem (!%p256_p8), [#allocation3], %s703_s30 }
  0x1d   : > { %p706_p10 = scmp.ne.s32.totalorder (!%p256_p8), %s899_s14, 0 }
  0x22   : > { %s1039_s29 = smov (!%p301_p9, %s704_s29), 143  ;;  %325 = sbr.rel (%p706_p10) target bundleno = 41 (0x29), region = 77 }
  0x23   : > { %s705_s4 = sshll.u32 %s1039_s29, 2  ;;  %v909_v8 = vmov (!%p706_p10), 0.0  }
  0x24   : > { %s980_s7 = scalar_lea.vmem %s1029_s1, %s705_s4  ;;  %326 = vst [vmem:[#allocation2] sm:$0xff] (!%p706_p10), %v909_v8  ;;  %327 = vst [vmem:[#allocation2 + $0x8] sm:$0xff] (!%p706_p10), %v909_v8 }
  0x25   : > { %328 = vst [vmem:[#allocation2 + $0x10] sm:$0xff] (!%p706_p10), %v909_v8  ;;  %329 = vst [vmem:[#allocation2 + $0x18] sm:$0xff] (!%p706_p10), %v909_v8 }
  0x26   : > { %330 = vst [vmem:[#allocation2 + $0x20] sm:$0xff] (!%p706_p10), %v909_v8  ;;  %331 = vst [vmem:[#allocation2 + $0x28] sm:$0xff] (!%p706_p10), %v909_v8 }
  0x27   : > { %332 = vst [vmem:[#allocation2 + $0x30] sm:$0xff] (!%p706_p10), %v909_v8  ;;  %333 = vst [vmem:[#allocation2 + $0x38] sm:$0xff] (!%p706_p10), %v909_v8 }
  0x29 PF: > { %v857_v9 = vld [vmem:[%s980_s7] sm:$0xff]   ;;  %v858_v10 = vld [vmem:[%s980_s7 + $0x8] sm:$0xff]   ;;  %v859_v11 = vld [vmem:[%s980_s7 + $0x10] sm:$0xff]   ;;  %p719_p11 = scmp.ne.s32.totalorder %s899_s14, 8 }
  0x2a   : > { %776 = vmatprep.subr.bf16.mxu0 %v857_v9  ;;  %800 = vmatprep.subr.bf16.mxu1 %v857_v9  ;;  %v860_v12 = vld [vmem:[%s980_s7 + $0x18] sm:$0xff]   ;;  %v865_v13 = vld [vmem:[%s982_s8] sm:$0xff]   ;;  %v866_v14 = vld [vmem:[%s982_s8 + $0x10] sm:$0xff]  }
  0x2b   : > { %777 = vmatpush3.bf16.msra.mxu0 %v857_v9  ;;  %808 = vmatpush3.bf16.msra.mxu1 %v857_v9  ;;  %v861_v15 = vld [vmem:[%s980_s7 + $0x20] sm:$0xff]   ;;  %v862_v16 = vld [vmem:[%s980_s7 + $0x28] sm:$0xff]   ;;  %v863_v17 = vld [vmem:[%s980_s7 + $0x30] sm:$0xff]  }
  0x2c   : > { %778 = vmatprep.subr.bf16.mxu0 %v858_v10  ;;  %801 = vmatprep.subr.bf16.mxu1 %v858_v10  ;;  %v864_v18 = vld [vmem:[%s980_s7 + $0x38] sm:$0xff]   ;;  %v867_v19 = vld [vmem:[%s982_s8 + $0x8] sm:$0xff]   ;;  %v336_v21 = vld [vmem:[#allocation2 + $0x10] sm:$0xff] }
  0x2d   : > { %792 = vmatprep.mubr.bf16.mxu0 %v865_v13  ;;  %796 = vmatprep.mubr.bf16.mxu1 %v866_v14  ;;  %v868_v20 = vld [vmem:[%s982_s8 + $0x18] sm:$0xff]   ;;  %v334_v23 = vld [vmem:[#allocation2] sm:$0xff]  ;;  %v335_v33 = vld [vmem:[#allocation2 + $0x8] sm:$0xff] }
  0x2e   : > { %v340_v22 = vld [vmem:[#allocation2 + $0x30] sm:$0xff]  ;;  %v338_v24 = vld [vmem:[#allocation2 + $0x20] sm:$0xff]  ;;  %v337_v27 = vld [vmem:[#allocation2 + $0x18] sm:$0xff] }
  0x2f   : > { %779 = vmatpush3.bf16.msra.mxu0 %v858_v10  ;;  %809 = vmatpush3.bf16.msra.mxu1 %v858_v10  ;;  %v341_v28 = vld [vmem:[#allocation2 + $0x38] sm:$0xff]  ;;  %v339_v34 = vld [vmem:[#allocation2 + $0x28] sm:$0xff]  ;;  %v720_v47 = vld [vmem:[%s1030_s2] ss:$0 sm:$0xff] (!%p719_p11) }
  0x30   : > { %780 = vmatprep.subr.bf16.mxu0 %v859_v11  ;;  %802 = vmatprep.subr.bf16.mxu1 %v859_v11 }
  0x33   : > { %781 = vmatpush3.bf16.msra.mxu0 %v859_v11  ;;  %810 = vmatpush3.bf16.msra.mxu1 %v859_v11 }
  0x34   : > { %782 = vmatprep.subr.bf16.mxu0 %v860_v12  ;;  %803 = vmatprep.subr.bf16.mxu1 %v860_v12 }
  0x37   : > { %783 = vmatpush3.bf16.msra.mxu0 %v860_v12  ;;  %811 = vmatpush3.bf16.msra.mxu1 %v860_v12 }
  0x38   : > { %784 = vmatprep.subr.bf16.mxu0 %v861_v15  ;;  %804 = vmatprep.subr.bf16.mxu1 %v861_v15 }
  0x3b   : > { %785 = vmatpush3.bf16.msra.mxu0 %v861_v15  ;;  %812 = vmatpush3.bf16.msra.mxu1 %v861_v15 }
  0x3c   : > { %786 = vmatprep.subr.bf16.mxu0 %v862_v16  ;;  %805 = vmatprep.subr.bf16.mxu1 %v862_v16 }
  0x3f   : > { %787 = vmatpush3.bf16.msra.mxu0 %v862_v16  ;;  %813 = vmatpush3.bf16.msra.mxu1 %v862_v16 }
  0x40   : > { %788 = vmatprep.subr.bf16.mxu0 %v863_v17  ;;  %806 = vmatprep.subr.bf16.mxu1 %v863_v17 }
  0x43   : > { %789 = vmatpush3.bf16.msra.mxu0 %v863_v17  ;;  %814 = vmatpush3.bf16.msra.mxu1 %v863_v17 }
  0x44   : > { %790 = vmatprep.subr.bf16.mxu0 %v864_v18  ;;  %807 = vmatprep.subr.bf16.mxu1 %v864_v18 }
  0x47   : > { %791 = vmatpush3.bf16.msra.mxu0 %v864_v18  ;;  %815 = vmatpush3.bf16.msra.mxu1 %v864_v18 }
  0x4a   : > { %793 = vmatmul.mubr.bf16.vlgmr.msra.gmra.mrb[0].mxu0 %v867_v19  ;;  %797 = vmatmul.mubr.bf16.vlgmr.msra.gmra.mrb[0].mxu1 %v868_v20 }
 0x11d   : > { %v794_v25 = vpop.f32.mrb[0].mxu0  ;;  %v798_v26 = vpop.f32.mrb[0].mxu1  ;;  %522 = sbr.rel (%p719_p11) target bundleno = 305 (0x131), region = 81 }
 0x11e   : > { %v505_v29 = vadd.f32 %v794_v25, %v336_v21  ;;  %v509_v30 = vadd.f32 %v798_v26, %v340_v22  ;;  %v472_v31 = vpop.f32.mrb[1].mxu0  ;;  %v488_v32 = vpop.f32.mrb[1].mxu1 }
 0x11f   : > { %v503_v35 = vadd.f32 %v472_v31, %v334_v23  ;;  %v507_v36 = vadd.f32 %v488_v32, %v338_v24  ;;  %v795_v37 = vpop.f32.mrb[2].mxu0  ;;  %v799_v38 = vpop.f32.mrb[2].mxu1 }
 0x120   : > { %513 = vst [vmem:[#allocation2 + $0x10] sm:$0xff] %v505_v29  ;;  %517 = vst [vmem:[#allocation2 + $0x30] sm:$0xff] %v509_v30  ;;  %v506_v39 = vadd.f32 %v795_v37, %v337_v27  ;;  %v510_v40 = vadd.f32 %v799_v38, %v341_v28  ;;  %v475_v41 = vpop.f32.mrb[3].mxu0  ;;  %v491_v42 = vpop.f32.mrb[3].mxu1 }
 0x121   : > { %511 = vst [vmem:[#allocation2] sm:$0xff] %v503_v35  ;;  %515 = vst [vmem:[#allocation2 + $0x20] sm:$0xff] %v507_v36  ;;  %v504_v43 = vadd.f32 %v475_v41, %v335_v33  ;;  %v508_v44 = vadd.f32 %v491_v42, %v339_v34 }
 0x122   : > { %514 = vst [vmem:[#allocation2 + $0x18] sm:$0xff] %v506_v39  ;;  %518 = vst [vmem:[#allocation2 + $0x38] sm:$0xff] %v510_v40 }
 0x123   : > { %512 = vst [vmem:[#allocation2 + $0x8] sm:$0xff] %v504_v43  ;;  %516 = vst [vmem:[#allocation2 + $0x28] sm:$0xff] %v508_v44 }
 0x127   : > { %v525_v50 = vld [vmem:[#allocation2 + $0x10] sm:$0xff] }
 0x128   : > { %v523_v45 = vld [vmem:[#allocation2] sm:$0xff]  ;;  %v540_v53 = vadd.f32 %v720_v47, %v525_v50  ;;  %v529_v57 = vld [vmem:[#allocation2 + $0x30] sm:$0xff] }
 0x129   : > { %v538_v48 = vadd.f32 %v720_v47, %v523_v45  ;;  %v526_v51 = vld [vmem:[#allocation2 + $0x18] sm:$0xff]  ;;  %v527_v52 = vld [vmem:[#allocation2 + $0x20] sm:$0xff]  ;;  %v544_v61 = vadd.f32 %v720_v47, %v529_v57 }
 0x12a   : > { %v524_v46 = vld [vmem:[#allocation2 + $0x8] sm:$0xff]  ;;  %v541_v54 = vadd.f32 %v720_v47, %v526_v51  ;;  %v542_v56 = vadd.f32 %v720_v47, %v527_v52  ;;  %v530_v58 = vld [vmem:[#allocation2 + $0x38] sm:$0xff] }
 0x12b   : > { %v539_v49 = vadd.f32 %v720_v47, %v524_v46  ;;  %v528_v55 = vld [vmem:[#allocation2 + $0x28] sm:$0xff]  ;;  %v545_v62 = vadd.f32 %v720_v47, %v530_v58 }
 0x12c   : > { %v543_v60 = vadd.f32 %v720_v47, %v528_v55  ;;  %v749_v63 = vpack.c.bf16 %v541_v54, %v540_v53 }
 0x12d   : > { %v744_v59 = vpack.c.bf16 %v539_v49, %v538_v48  ;;  %v759_v1 = vpack.c.bf16 %v545_v62, %v544_v61 }
 0x12e   : > { %v754_v0 = vpack.c.bf16 %v543_v60, %v542_v56  ;;  %761 = vst [vmem:[%s1031_s3 + $0x8] sm:$0xff] %v749_v63  }
 0x12f   : > { %745 = vst [vmem:[%s1031_s3] sm:$0xff] %v744_v59   ;;  %763 = vst [vmem:[%s1031_s3 + $0x18] sm:$0xff] %v759_v1  }
 0x130   : > { %762 = vst [vmem:[%s1031_s3 + $0x10] sm:$0xff] %v754_v0  }
 0x131 PF: > { %s13_s16 = sadd.s32 1, %s907_s16   ;;  %s1032_s12 = smov %s895_s13 }
 0x132   : > { %p10_p12 = scmp.ge.s32.totalorder %s13_s16, 11   ;;  %s1033_s13 = smov %s965_s20 }
 0x133   : > { %s1034_s14 = smov %s903_s15  ;;  %s1035_s15 = smov %s1037_s17 }
 0x134   :  { %12 = sbr.rel (!%p10_p12) target bundleno = 3 (0x3), region = 122 }

// kernel: siamese_forward.28
= control target key start
LH: loop header
LB: loop body
LE: loop exit
PB: predicated region body
PF: predicated region fallthrough
CT: control target
= control target key end

     0   :  { %s469_s1 = inlined_call_operand.vmem [shape: bf16[128,128], index: 1, kind: input, shape index: {}]   ;;  %s470_s0 = inlined_call_operand.vmem [shape: bf16[64,128], index: 0, kind: input, shape index: {}]   ;;  %s471_s2 = inlined_call_operand.vmem [shape: f32[1,128], index: 2, kind: input, shape index: {}]   ;;  %s472_s3 = inlined_call_operand.vmem [shape: bf16[64,128], index: 3, kind: output, shape index: {}]  }
   0x1   :  { %v386_v0 = vld [vmem:[%s469_s1] sm:$0xff]   ;;  %v387_v1 = vld [vmem:[%s469_s1 + $0x8] sm:$0xff]   ;;  %v388_v2 = vld [vmem:[%s469_s1 + $0x10] sm:$0xff]  }
   0x2   :  { %346 = vmatprep.subr.bf16.mxu0 %v386_v0  ;;  %370 = vmatprep.subr.bf16.mxu1 %v386_v0  ;;  %v389_v3 = vld [vmem:[%s469_s1 + $0x18] sm:$0xff]   ;;  %v394_v4 = vld [vmem:[%s470_s0] sm:$0xff]   ;;  %v395_v5 = vld [vmem:[%s470_s0 + $0x10] sm:$0xff]  }
   0x3   :  { %347 = vmatpush3.bf16.msra.mxu0 %v386_v0  ;;  %378 = vmatpush3.bf16.msra.mxu1 %v386_v0  ;;  %v390_v6 = vld [vmem:[%s469_s1 + $0x20] sm:$0xff]   ;;  %v391_v7 = vld [vmem:[%s469_s1 + $0x28] sm:$0xff]   ;;  %v392_v8 = vld [vmem:[%s469_s1 + $0x30] sm:$0xff]  }
   0x4   :  { %348 = vmatprep.subr.bf16.mxu0 %v387_v1  ;;  %371 = vmatprep.subr.bf16.mxu1 %v387_v1  ;;  %v393_v9 = vld [vmem:[%s469_s1 + $0x38] sm:$0xff]   ;;  %v396_v10 = vld [vmem:[%s470_s0 + $0x8] sm:$0xff]   ;;  %v294_v13 = vld [vmem:[%s471_s2] ss:$0 sm:$0xff] }
   0x5   :  { %362 = vmatprep.mubr.bf16.mxu0 %v394_v4  ;;  %366 = vmatprep.mubr.bf16.mxu1 %v395_v5  ;;  %v397_v11 = vld [vmem:[%s470_s0 + $0x18] sm:$0xff]  }
   0x7   :  { %349 = vmatpush3.bf16.msra.mxu0 %v387_v1  ;;  %379 = vmatpush3.bf16.msra.mxu1 %v387_v1 }
   0x8   :  { %350 = vmatprep.subr.bf16.mxu0 %v388_v2  ;;  %372 = vmatprep.subr.bf16.mxu1 %v388_v2 }
   0xb   :  { %351 = vmatpush3.bf16.msra.mxu0 %v388_v2  ;;  %380 = vmatpush3.bf16.msra.mxu1 %v388_v2 }
   0xc   :  { %352 = vmatprep.subr.bf16.mxu0 %v389_v3  ;;  %373 = vmatprep.subr.bf16.mxu1 %v389_v3 }
   0xf   :  { %353 = vmatpush3.bf16.msra.mxu0 %v389_v3  ;;  %381 = vmatpush3.bf16.msra.mxu1 %v389_v3 }
  0x10   :  { %354 = vmatprep.subr.bf16.mxu0 %v390_v6  ;;  %374 = vmatprep.subr.bf16.mxu1 %v390_v6 }
  0x13   :  { %355 = vmatpush3.bf16.msra.mxu0 %v390_v6  ;;  %382 = vmatpush3.bf16.msra.mxu1 %v390_v6 }
  0x14   :  { %356 = vmatprep.subr.bf16.mxu0 %v391_v7  ;;  %375 = vmatprep.subr.bf16.mxu1 %v391_v7 }
  0x17   :  { %357 = vmatpush3.bf16.msra.mxu0 %v391_v7  ;;  %383 = vmatpush3.bf16.msra.mxu1 %v391_v7 }
  0x18   :  { %358 = vmatprep.subr.bf16.mxu0 %v392_v8  ;;  %376 = vmatprep.subr.bf16.mxu1 %v392_v8 }
  0x1b   :  { %359 = vmatpush3.bf16.msra.mxu0 %v392_v8  ;;  %384 = vmatpush3.bf16.msra.mxu1 %v392_v8 }
  0x1c   :  { %360 = vmatprep.subr.bf16.mxu0 %v393_v9  ;;  %377 = vmatprep.subr.bf16.mxu1 %v393_v9 }
  0x1f   :  { %361 = vmatpush3.bf16.msra.mxu0 %v393_v9  ;;  %385 = vmatpush3.bf16.msra.mxu1 %v393_v9 }
  0x22   :  { %363 = vmatmul.mubr.bf16.vlgmr.msra.gmra.mrb[0].mxu0 %v396_v10  ;;  %367 = vmatmul.mubr.bf16.vlgmr.msra.gmra.mrb[0].mxu1 %v397_v11 }
  0xf5   :  { %v364_v12 = vpop.f32.mrb[0].mxu0  ;;  %v368_v14 = vpop.f32.mrb[0].mxu1 }
  0xf6   :  { %v165_v15 = vpop.f32.mrb[1].mxu0  ;;  %v181_v16 = vpop.f32.mrb[1].mxu1  ;;  %v232_v19 = vadd.f32 %v364_v12, %v294_v13  ;;  %v236_v20 = vadd.f32 %v368_v14, %v294_v13 }
  0xf7   :  { %v365_v17 = vpop.f32.mrb[2].mxu0  ;;  %v369_v18 = vpop.f32.mrb[2].mxu1  ;;  %v230_v25 = vadd.f32 %v294_v13, %v165_v15  ;;  %v234_v26 = vadd.f32 %v294_v13, %v181_v16 }
  0xf8   :  { %v233_v21 = vadd.f32 %v365_v17, %v294_v13  ;;  %v237_v22 = vadd.f32 %v369_v18, %v294_v13  ;;  %v168_v23 = vpop.f32.mrb[3].mxu0  ;;  %v184_v24 = vpop.f32.mrb[3].mxu1 }
  0xf9   :  { %v231_v27 = vadd.f32 %v294_v13, %v168_v23  ;;  %v235_v28 = vadd.f32 %v294_v13, %v184_v24 }
  0xfa   :  { %v319_v29 = vpack.c.bf16 %v233_v21, %v232_v19  ;;  %v329_v30 = vpack.c.bf16 %v237_v22, %v236_v20 }
  0xfb   :  { %v314_v31 = vpack.c.bf16 %v231_v27, %v230_v25  ;;  %v324_v32 = vpack.c.bf16 %v235_v28, %v234_v26 }
  0xfc   :  { %331 = vst [vmem:[%s472_s3 + $0x8] sm:$0xff] %v319_v29   ;;  %333 = vst [vmem:[%s472_s3 + $0x18] sm:$0xff] %v329_v30  }
  0xfd   :  { %315 = vst [vmem:[%s472_s3] sm:$0xff] %v314_v31   ;;  %332 = vst [vmem:[%s472_s3 + $0x10] sm:$0xff] %v324_v32  }

// kernel: siamese_forward.29
= control target key start
LH: loop header
LB: loop body
LE: loop exit
PB: predicated region body
PF: predicated region fallthrough
CT: control target
= control target key end

     0   :  { %s938_s12 = smov 0   ;;  %s940_s13 = smov 0   ;;  %s1036_s0 = inlined_call_operand.vmem [shape: bf16[64,1152], index: 0, kind: input, shape index: {}]   ;;  %s1037_s1 = inlined_call_operand.vmem [shape: bf16[1152,128], index: 1, kind: input, shape index: {}]   ;;  %s1038_s2 = inlined_call_operand.vmem [shape: f32[1,128], index: 2, kind: input, shape index: {}]   ;;  %s1039_s3 = inlined_call_operand.vmem [shape: bf16[64,128], index: 3, kind: output, shape index: {}]  }
   0x1   :  { %s942_s14 = smov 0   ;;  %s944_s15 = smov 0  }
   0x2   :  { %s946_s16 = smov 0  }
   0x3 LB: > { %s25_s17 = sadd.s32 1, %s911_s15  ;;  %p48_p1 = scmp.ne.s32.totalorder %s903_s13, %s899_s12  ;;  %s915_s16 = sphi %s946_s16, %s13_s16   ;;  %s911_s15 = sphi %s944_s15, %s1043_s15   ;;  %s907_s14 = sphi %s942_s14, %s1042_s14   ;;  %s903_s13 = sphi %s940_s13, %s1041_s13   ;;  %s899_s12 = sphi %s938_s12, %s1040_s12  }
   0x4   : > { %p26_p0 = scmp.ge.s32.totalorder %s25_s17, 9  ;;  %p49_p2 = scmp.eq.s32.totalorder %s915_s16, 0 }
   0x5   : > { %s41_s19 = sadd.s32 1, %s903_s13  ;;  %p707_p5 = scmp.ge.s32.totalorder %s915_s16, 9 }
   0x6   : > { %s1045_s17 = smov (%p26_p0, %s25_s17), 0  ;;  %p50_p3 = por %p49_p2, %p48_p1 }
   0x7   : > { %s37_s18 = ssub.s32 %s911_s15, %s1045_s17  ;;  %162 = sbr.rel (%p707_p5) target bundleno = 23 (0x17), region = 20 }
   0x8   : > { %p39_p4 = scmp.eq.s32.totalorder %s37_s18, 0 }
   0xa   : > { %s973_s20 = scalar_select %p39_p4, %s903_s13, %s41_s19  }
   0xe   : > { %165 = sbr.rel (!%p50_p3) target bundleno = 23 (0x17), region = 24  ;;  %s167_s21 = sand.u32 (%p50_p3), 1, %s903_s13  }
   0xf   : > { %s709_s22 = sshll.u32 (%p50_p3), %s911_s15, 2  ;;  %s708_s23 = sshll.u32 (%p50_p3), %s167_s21, 5 }
  0x10   : > { %s174_s26 = scalar_lea.vmem (%p50_p3), %s1036_s0, %s709_s22  ;;  %s169_s27 = scalar_lea.vmem (%p50_p3), [#allocation3], %s708_s23 }
  0x11   : > { %v190_v0 = vld [vmem:[%s174_s26] sm:$0xf] (%p50_p3)  ;;  %v192_v1 = vld [vmem:[%s174_s26 + $0x24] sm:$0xf] (%p50_p3)  ;;  %v194_v2 = vld [vmem:[%s174_s26 + $0x48] sm:$0xf] (%p50_p3) }
  0x12   : > { %191 = vst [vmem:[%s169_s27] sm:$0xf] (%p50_p3), %v190_v0  ;;  %193 = vst [vmem:[%s169_s27 + $0x4] sm:$0xf] (%p50_p3), %v192_v1  ;;  %v196_v3 = vld [vmem:[%s174_s26 + $0x6c] sm:$0xf] (%p50_p3) }
  0x13   : > { %v198_v4 = vld [vmem:[%s174_s26 + $0x90] sm:$0xf] (%p50_p3)  ;;  %195 = vst [vmem:[%s169_s27 + $0x8] sm:$0xf] (%p50_p3), %v194_v2  ;;  %197 = vst [vmem:[%s169_s27 + $0xc] sm:$0xf] (%p50_p3), %v196_v3 }
  0x14   : > { %199 = vst [vmem:[%s169_s27 + $0x10] sm:$0xf] (%p50_p3), %v198_v4  ;;  %v200_v5 = vld [vmem:[%s174_s26 + $0xb4] sm:$0xf] (%p50_p3)  ;;  %v202_v6 = vld [vmem:[%s174_s26 + $0xd8] sm:$0xf] (%p50_p3) }
  0x15   : > { %v204_v7 = vld [vmem:[%s174_s26 + $0xfc] sm:$0xf]  ;;  %201 = vst [vmem:[%s169_s27 + $0x14] sm:$0xf] %v200_v5  ;;  %203 = vst [vmem:[%s169_s27 + $0x18] sm:$0xf] %v202_v6 }
  0x16   : > { %205 = vst [vmem:[%s169_s27 + $0x1c] sm:$0xf] %v204_v7 }
  0x17 PF: > { %p710_p6 = scmp.ge.s32.totalorder %s915_s16, 1  ;;  %p255_p7 = scmp.lt.s32.totalorder %s915_s16, 10 }
  0x19   : > { %p256_p8 = pnand %p710_p6, %p255_p7 }
  0x1a   : > { %s262_s28 = sand.u32 (!%p256_p8), 1, %s899_s12   ;;  %s712_s29 = sshll.u32 (!%p256_p8), %s907_s14, 4 }
  0x1b   : > { %259 = sbr.rel (%p256_p8) target bundleno = 307 (0x133), region = 69  ;;  %s711_s30 = sshll.u32 (!%p256_p8), %s262_s28, 5 }
  0x1c   : > { %p301_p9 = scmp.lt.s32.totalorder (!%p256_p8), %s712_s29, 143  ;;  %s990_s8 = scalar_lea.vmem (!%p256_p8), [#allocation3], %s711_s30 }
  0x1d   : > { %p714_p10 = scmp.ne.s32.totalorder (!%p256_p8), %s907_s14, 0 }
  0x22   : > { %s1047_s29 = smov (!%p301_p9, %s712_s29), 143  ;;  %325 = sbr.rel (%p714_p10) target bundleno = 41 (0x29), region = 77 }
  0x23   : > { %s713_s4 = sshll.u32 %s1047_s29, 2  ;;  %v917_v8 = vmov (!%p714_p10), 0.0  }
  0x24   : > { %s988_s7 = scalar_lea.vmem %s1037_s1, %s713_s4  ;;  %326 = vst [vmem:[#allocation2] sm:$0xff] (!%p714_p10), %v917_v8  ;;  %327 = vst [vmem:[#allocation2 + $0x8] sm:$0xff] (!%p714_p10), %v917_v8 }
  0x25   : > { %328 = vst [vmem:[#allocation2 + $0x10] sm:$0xff] (!%p714_p10), %v917_v8  ;;  %329 = vst [vmem:[#allocation2 + $0x18] sm:$0xff] (!%p714_p10), %v917_v8 }
  0x26   : > { %330 = vst [vmem:[#allocation2 + $0x20] sm:$0xff] (!%p714_p10), %v917_v8  ;;  %331 = vst [vmem:[#allocation2 + $0x28] sm:$0xff] (!%p714_p10), %v917_v8 }
  0x27   : > { %332 = vst [vmem:[#allocation2 + $0x30] sm:$0xff] (!%p714_p10), %v917_v8  ;;  %333 = vst [vmem:[#allocation2 + $0x38] sm:$0xff] (!%p714_p10), %v917_v8 }
  0x29 PF: > { %v865_v9 = vld [vmem:[%s988_s7] sm:$0xff]   ;;  %v866_v10 = vld [vmem:[%s988_s7 + $0x8] sm:$0xff]   ;;  %v867_v11 = vld [vmem:[%s988_s7 + $0x10] sm:$0xff]   ;;  %p727_p11 = scmp.ne.s32.totalorder %s907_s14, 8 }
  0x2a   : > { %784 = vmatprep.subr.bf16.mxu0 %v865_v9  ;;  %808 = vmatprep.subr.bf16.mxu1 %v865_v9  ;;  %v868_v12 = vld [vmem:[%s988_s7 + $0x18] sm:$0xff]   ;;  %v873_v13 = vld [vmem:[%s990_s8] sm:$0xff]   ;;  %v874_v14 = vld [vmem:[%s990_s8 + $0x10] sm:$0xff]  }
  0x2b   : > { %785 = vmatpush3.bf16.msra.mxu0 %v865_v9  ;;  %816 = vmatpush3.bf16.msra.mxu1 %v865_v9  ;;  %v869_v15 = vld [vmem:[%s988_s7 + $0x20] sm:$0xff]   ;;  %v870_v16 = vld [vmem:[%s988_s7 + $0x28] sm:$0xff]   ;;  %v871_v17 = vld [vmem:[%s988_s7 + $0x30] sm:$0xff]  }
  0x2c   : > { %786 = vmatprep.subr.bf16.mxu0 %v866_v10  ;;  %809 = vmatprep.subr.bf16.mxu1 %v866_v10  ;;  %v872_v18 = vld [vmem:[%s988_s7 + $0x38] sm:$0xff]   ;;  %v875_v19 = vld [vmem:[%s990_s8 + $0x8] sm:$0xff]   ;;  %v336_v21 = vld [vmem:[#allocation2 + $0x10] sm:$0xff] }
  0x2d   : > { %800 = vmatprep.mubr.bf16.mxu0 %v873_v13  ;;  %804 = vmatprep.mubr.bf16.mxu1 %v874_v14  ;;  %v876_v20 = vld [vmem:[%s990_s8 + $0x18] sm:$0xff]   ;;  %v334_v23 = vld [vmem:[#allocation2] sm:$0xff]  ;;  %v335_v33 = vld [vmem:[#allocation2 + $0x8] sm:$0xff] }
  0x2e   : > { %v340_v22 = vld [vmem:[#allocation2 + $0x30] sm:$0xff]  ;;  %v338_v24 = vld [vmem:[#allocation2 + $0x20] sm:$0xff]  ;;  %v337_v27 = vld [vmem:[#allocation2 + $0x18] sm:$0xff] }
  0x2f   : > { %787 = vmatpush3.bf16.msra.mxu0 %v866_v10  ;;  %817 = vmatpush3.bf16.msra.mxu1 %v866_v10  ;;  %v341_v28 = vld [vmem:[#allocation2 + $0x38] sm:$0xff]  ;;  %v339_v34 = vld [vmem:[#allocation2 + $0x28] sm:$0xff]  ;;  %v728_v47 = vld [vmem:[%s1038_s2] ss:$0 sm:$0xff] (!%p727_p11) }
  0x30   : > { %788 = vmatprep.subr.bf16.mxu0 %v867_v11  ;;  %810 = vmatprep.subr.bf16.mxu1 %v867_v11 }
  0x33   : > { %789 = vmatpush3.bf16.msra.mxu0 %v867_v11  ;;  %818 = vmatpush3.bf16.msra.mxu1 %v867_v11 }
  0x34   : > { %790 = vmatprep.subr.bf16.mxu0 %v868_v12  ;;  %811 = vmatprep.subr.bf16.mxu1 %v868_v12 }
  0x37   : > { %791 = vmatpush3.bf16.msra.mxu0 %v868_v12  ;;  %819 = vmatpush3.bf16.msra.mxu1 %v868_v12 }
  0x38   : > { %792 = vmatprep.subr.bf16.mxu0 %v869_v15  ;;  %812 = vmatprep.subr.bf16.mxu1 %v869_v15 }
  0x3b   : > { %793 = vmatpush3.bf16.msra.mxu0 %v869_v15  ;;  %820 = vmatpush3.bf16.msra.mxu1 %v869_v15 }
  0x3c   : > { %794 = vmatprep.subr.bf16.mxu0 %v870_v16  ;;  %813 = vmatprep.subr.bf16.mxu1 %v870_v16 }
  0x3f   : > { %795 = vmatpush3.bf16.msra.mxu0 %v870_v16  ;;  %821 = vmatpush3.bf16.msra.mxu1 %v870_v16 }
  0x40   : > { %796 = vmatprep.subr.bf16.mxu0 %v871_v17  ;;  %814 = vmatprep.subr.bf16.mxu1 %v871_v17 }
  0x43   : > { %797 = vmatpush3.bf16.msra.mxu0 %v871_v17  ;;  %822 = vmatpush3.bf16.msra.mxu1 %v871_v17 }
  0x44   : > { %798 = vmatprep.subr.bf16.mxu0 %v872_v18  ;;  %815 = vmatprep.subr.bf16.mxu1 %v872_v18 }
  0x47   : > { %799 = vmatpush3.bf16.msra.mxu0 %v872_v18  ;;  %823 = vmatpush3.bf16.msra.mxu1 %v872_v18 }
  0x4a   : > { %801 = vmatmul.mubr.bf16.vlgmr.msra.gmra.mrb[0].mxu0 %v875_v19  ;;  %805 = vmatmul.mubr.bf16.vlgmr.msra.gmra.mrb[0].mxu1 %v876_v20 }
 0x11d   : > { %v802_v25 = vpop.f32.mrb[0].mxu0  ;;  %v806_v26 = vpop.f32.mrb[0].mxu1  ;;  %522 = sbr.rel (%p727_p11) target bundleno = 307 (0x133), region = 81 }
 0x11e   : > { %v505_v29 = vadd.f32 %v802_v25, %v336_v21  ;;  %v509_v30 = vadd.f32 %v806_v26, %v340_v22  ;;  %v472_v31 = vpop.f32.mrb[1].mxu0  ;;  %v488_v32 = vpop.f32.mrb[1].mxu1 }
 0x11f   : > { %v503_v35 = vadd.f32 %v472_v31, %v334_v23  ;;  %v507_v36 = vadd.f32 %v488_v32, %v338_v24  ;;  %v803_v37 = vpop.f32.mrb[2].mxu0  ;;  %v807_v38 = vpop.f32.mrb[2].mxu1 }
 0x120   : > { %513 = vst [vmem:[#allocation2 + $0x10] sm:$0xff] %v505_v29  ;;  %517 = vst [vmem:[#allocation2 + $0x30] sm:$0xff] %v509_v30  ;;  %v506_v39 = vadd.f32 %v803_v37, %v337_v27  ;;  %v510_v40 = vadd.f32 %v807_v38, %v341_v28  ;;  %v475_v41 = vpop.f32.mrb[3].mxu0  ;;  %v491_v42 = vpop.f32.mrb[3].mxu1 }
 0x121   : > { %511 = vst [vmem:[#allocation2] sm:$0xff] %v503_v35  ;;  %515 = vst [vmem:[#allocation2 + $0x20] sm:$0xff] %v507_v36  ;;  %v504_v43 = vadd.f32 %v475_v41, %v335_v33  ;;  %v508_v44 = vadd.f32 %v491_v42, %v339_v34 }
 0x122   : > { %514 = vst [vmem:[#allocation2 + $0x18] sm:$0xff] %v506_v39  ;;  %518 = vst [vmem:[#allocation2 + $0x38] sm:$0xff] %v510_v40 }
 0x123   : > { %512 = vst [vmem:[#allocation2 + $0x8] sm:$0xff] %v504_v43  ;;  %516 = vst [vmem:[#allocation2 + $0x28] sm:$0xff] %v508_v44 }
 0x127   : > { %v525_v50 = vld [vmem:[#allocation2 + $0x10] sm:$0xff] }
 0x128   : > { %v523_v45 = vld [vmem:[#allocation2] sm:$0xff]  ;;  %v540_v53 = vadd.f32 %v728_v47, %v525_v50  ;;  %v529_v57 = vld [vmem:[#allocation2 + $0x30] sm:$0xff] }
 0x129   : > { %v538_v48 = vadd.f32 %v728_v47, %v523_v45  ;;  %v526_v51 = vld [vmem:[#allocation2 + $0x18] sm:$0xff]  ;;  %v527_v52 = vld [vmem:[#allocation2 + $0x20] sm:$0xff]  ;;  %v544_v62 = vadd.f32 %v728_v47, %v529_v57 }
 0x12a   : > { %v524_v46 = vld [vmem:[#allocation2 + $0x8] sm:$0xff]  ;;  %v541_v54 = vadd.f32 %v728_v47, %v526_v51  ;;  %v542_v56 = vadd.f32 %v728_v47, %v527_v52  ;;  %v530_v58 = vld [vmem:[#allocation2 + $0x38] sm:$0xff]  ;;  %v548_v63 = vmax.f32 %v540_v53, 0.0 }
 0x12b   : > { %v539_v49 = vadd.f32 %v728_v47, %v524_v46  ;;  %v528_v55 = vld [vmem:[#allocation2 + $0x28] sm:$0xff]  ;;  %v546_v59 = vmax.f32 %v538_v48, 0.0  ;;  %v545_v2 = vadd.f32 %v728_v47, %v530_v58  ;;  %v552_v5 = vmax.f32 %v544_v62, 0.0 }
 0x12c   : > { %v543_v61 = vadd.f32 %v728_v47, %v528_v55  ;;  %v549_v0 = vmax.f32 %v541_v54, 0.0  ;;  %v550_v1 = vmax.f32 %v542_v56, 0.0 }
 0x12d   : > { %v547_v60 = vmax.f32 %v539_v49, 0.0  ;;  %v553_v7 = vmax.f32 %v545_v2, 0.0 }
 0x12e   : > { %v551_v4 = vmax.f32 %v543_v61, 0.0  ;;  %v757_v6 = vpack.c.bf16 %v549_v0, %v548_v63 }
 0x12f   : > { %v752_v3 = vpack.c.bf16 %v547_v60, %v546_v59  ;;  %v767_v9 = vpack.c.bf16 %v553_v7, %v552_v5 }
 0x130   : > { %v762_v8 = vpack.c.bf16 %v551_v4, %v550_v1  ;;  %769 = vst [vmem:[%s1039_s3 + $0x8] sm:$0xff] %v757_v6  }
 0x131   : > { %753 = vst [vmem:[%s1039_s3] sm:$0xff] %v752_v3   ;;  %771 = vst [vmem:[%s1039_s3 + $0x18] sm:$0xff] %v767_v9  }
 0x132   : > { %770 = vst [vmem:[%s1039_s3 + $0x10] sm:$0xff] %v762_v8  }
 0x133 PF: > { %s13_s16 = sadd.s32 1, %s915_s16   ;;  %s1040_s12 = smov %s903_s13 }
 0x134   : > { %p10_p12 = scmp.ge.s32.totalorder %s13_s16, 11   ;;  %s1041_s13 = smov %s973_s20 }
 0x135   : > { %s1042_s14 = smov %s911_s15  ;;  %s1043_s15 = smov %s1045_s17 }
 0x136   :  { %12 = sbr.rel (!%p10_p12) target bundleno = 3 (0x3), region = 122 }

// kernel: siamese_forward.31
= control target key start
LH: loop header
LB: loop body
LE: loop exit
PB: predicated region body
PF: predicated region fallthrough
CT: control target
= control target key end

     0   :  { %s815_s12 = smov 0   ;;  %s817_s13 = smov 0   ;;  %s914_s0 = inlined_call_operand.vmem [shape: bf16[16,1152], index: 0, kind: input, shape index: {}]   ;;  %s915_s1 = inlined_call_operand.vmem [shape: bf16[1152,256], index: 1, kind: input, shape index: {}]   ;;  %s916_s2 = inlined_call_operand.vmem [shape: f32[1,256], index: 2, kind: input, shape index: {}]   ;;  %s917_s3 = inlined_call_operand.vmem [shape: bf16[16,256], index: 3, kind: output, shape index: {}]  }
   0x1   :  { %s819_s14 = smov 0   ;;  %s821_s15 = smov 0  }
   0x2   :  { %s823_s16 = smov 0  }
   0x3 LB: > { %s25_s17 = sadd.s32 1, %s787_s15  ;;  %p48_p1 = scmp.ne.s32.totalorder %s779_s13, %s775_s12  ;;  %s791_s16 = sphi %s823_s16, %s13_s16   ;;  %s787_s15 = sphi %s821_s15, %s921_s15   ;;  %s783_s14 = sphi %s819_s14, %s920_s14   ;;  %s779_s13 = sphi %s817_s13, %s919_s13   ;;  %s775_s12 = sphi %s815_s12, %s918_s12  }
   0x4   : > { %p26_p0 = scmp.ge.s32.totalorder %s25_s17, 9  ;;  %p49_p2 = scmp.eq.s32.totalorder %s791_s16, 0 }
   0x5   : > { %s41_s19 = sadd.s32 1, %s779_s13  ;;  %p650_p5 = scmp.ge.s32.totalorder %s791_s16, 9 }
   0x6   : > { %s923_s17 = smov (%p26_p0, %s25_s17), 0  ;;  %p50_p3 = por %p49_p2, %p48_p1 }
   0x7   : > { %s37_s18 = ssub.s32 %s787_s15, %s923_s17  ;;  %164 = sbr.rel (%p650_p5) target bundleno = 21 (0x15), region = 20 }
   0x8   : > { %p39_p4 = scmp.eq.s32.totalorder %s37_s18, 0 }
   0xa   : > { %s850_s20 = scalar_select %p39_p4, %s779_s13, %s41_s19  }
   0xe   : > { %167 = sbr.rel (!%p50_p3) target bundleno = 21 (0x15), region = 24  ;;  %s169_s21 = sand.u32 (%p50_p3), 1, %s779_s13  }
   0xf   : > { %s652_s22 = sshll.u32 (%p50_p3), %s787_s15, 2  ;;  %s651_s23 = sshll.u32 (%p50_p3), %s169_s21, 3 }
  0x10   : > { %s176_s26 = scalar_lea.vmem (%p50_p3), %s914_s0, %s652_s22  ;;  %s171_s27 = scalar_lea.vmem (%p50_p3), [#allocation3], %s651_s23 }
  0x11   : > { %v192_v0 = vld [vmem:[%s176_s26] sm:$0xf] (%p50_p3)  ;;  %v194_v1 = vld [vmem:[%s176_s26 + $0x24] sm:$0xf] (%p50_p3) }
  0x12   : > { %193 = vst [vmem:[%s171_s27] sm:$0xf] (%p50_p3), %v192_v0  ;;  %195 = vst [vmem:[%s171_s27 + $0x4] sm:$0xf] (%p50_p3), %v194_v1 }
  0x15 PF: > { %p653_p6 = scmp.ge.s32.totalorder %s791_s16, 1  ;;  %p236_p7 = scmp.lt.s32.totalorder %s791_s16, 10 }
  0x17   : > { %p237_p8 = pnand %p653_p6, %p236_p7 }
  0x18   : > { %s243_s28 = sand.u32 (!%p237_p8), 1, %s775_s12   ;;  %s655_s29 = sshll.u32 (!%p237_p8), %s783_s14, 4 }
  0x19   : > { %240 = sbr.rel (%p237_p8) target bundleno = 304 (0x130), region = 69  ;;  %s862_s30 = sshll.u32 (!%p237_p8), %s243_s28, 3 }
  0x1a   : > { %p288_p9 = scmp.lt.s32.totalorder (!%p237_p8), %s655_s29, 143  ;;  %s245_s8 = scalar_lea.vmem (!%p237_p8), [#allocation3], %s862_s30 }
  0x1b   : > { %p658_p10 = scmp.ne.s32.totalorder (!%p237_p8), %s783_s14, 0 }
  0x20   : > { %s925_s29 = smov (!%p288_p9, %s655_s29), 143  ;;  %319 = sbr.rel (%p658_p10) target bundleno = 39 (0x27), region = 77 }
  0x21   : > { %s683_s4 = sshll.u32 %s925_s29, 3  ;;  %v793_v2 = vmov (!%p658_p10), 0.0  }
  0x22   : > { %s867_s7 = scalar_lea.vmem %s915_s1, %s683_s4  ;;  %320 = vst [vmem:[#allocation2] sm:$0xff] (!%p658_p10), %v793_v2  ;;  %321 = vst [vmem:[#allocation2 + $0x8] sm:$0xff] (!%p658_p10), %v793_v2 }
  0x23   : > { %322 = vst [vmem:[#allocation2 + $0x10] sm:$0xff] (!%p658_p10), %v793_v2  ;;  %323 = vst [vmem:[#allocation2 + $0x18] sm:$0xff] (!%p658_p10), %v793_v2 }
  0x27 PF: > { %v728_v3 = vld [vmem:[%s867_s7 + $0x4] ss:$8 sps:$4 sm:$0xff]   ;;  %v730_v4 = vld [vmem:[%s867_s7] ss:$8 sps:$4 sm:$0xff]   ;;  %v794_v5 = vmov 0   ;;  %p676_p11 = scmp.ne.s32.totalorder %s783_s14, 8 }
  0x28   : > { %464 = vmatprep.mubr.bf16.mxu0 %v794_v5  ;;  %432 = vmatprep.subr.bf16.mxu0 %v728_v3  ;;  %v731_v6 = vld [vmem:[%s867_s7 + $0x14] ss:$8 sps:$4 sm:$0xff]   ;;  %v733_v7 = vld [vmem:[%s867_s7 + $0x10] ss:$8 sps:$4 sm:$0xff]   ;;  %v734_v8 = vld [vmem:[%s867_s7 + $0x24] ss:$8 sps:$4 sm:$0xff]   ;;  %v493_v33 = vlaneseq (!%p676_p11) }
  0x29   : > { %433 = vmatpush1.bf16.msra.mxu0 %v730_v4  ;;  %v736_v9 = vld [vmem:[%s867_s7 + $0x20] ss:$8 sps:$4 sm:$0xff]   ;;  %v737_v10 = vld [vmem:[%s867_s7 + $0x34] ss:$8 sps:$4 sm:$0xff]   ;;  %v739_v11 = vld [vmem:[%s867_s7 + $0x30] ss:$8 sps:$4 sm:$0xff]  }
  0x2a   : > { %434 = vmatprep.subr.bf16.mxu0 %v731_v6  ;;  %v740_v12 = vld [vmem:[%s867_s7 + $0x44] ss:$8 sps:$4 sm:$0xff]   ;;  %v742_v13 = vld [vmem:[%s867_s7 + $0x40] ss:$8 sps:$4 sm:$0xff]   ;;  %v743_v14 = vld [vmem:[%s867_s7 + $0x54] ss:$8 sps:$4 sm:$0xff]  }
  0x2b   : > { %v745_v15 = vld [vmem:[%s867_s7 + $0x50] ss:$8 sps:$4 sm:$0xff]   ;;  %v746_v16 = vld [vmem:[%s867_s7 + $0x64] ss:$8 sps:$4 sm:$0xff]   ;;  %v748_v17 = vld [vmem:[%s867_s7 + $0x60] ss:$8 sps:$4 sm:$0xff]  }
  0x2c   : > { %v749_v18 = vld [vmem:[%s867_s7 + $0x74] ss:$8 sps:$4 sm:$0xff]   ;;  %v751_v19 = vld [vmem:[%s867_s7 + $0x70] ss:$8 sps:$4 sm:$0xff]   ;;  %v752_v20 = vld [vmem:[%s245_s8] sm:$0xff]   ;;  %v494_v34 = vshrl.u32 (!%p676_p11), %v493_v33, 7 }
  0x2d   : > { %435 = vmatpush1.bf16.msra.mxu0 %v733_v7  ;;  %v324_v21 = vld [vmem:[#allocation2] sm:$0xff]  ;;  %v325_v22 = vld [vmem:[#allocation2 + $0x8] sm:$0xff]  ;;  %v326_v24 = vld [vmem:[#allocation2 + $0x10] sm:$0xff] }
  0x2e   : > { %436 = vmatprep.subr.bf16.mxu0 %v734_v8  ;;  %v327_v27 = vld [vmem:[#allocation2 + $0x18] sm:$0xff]  ;;  %v491_v35 = vld [vmem:[%s916_s2] sm:$0x3] (!%p676_p11)  ;;  %v495_v37 = vsub.s32 (!%p676_p11), 0, %v494_v34  ;;  %v499_v38 = vsub.s32 (!%p676_p11), 1, %v494_v34 }
  0x30   : > { %v496_v42 = vrot.slane (!%p676_p11), %v491_v35, %v495_v37  ;;  %v500_v43 = vrot.slane (!%p676_p11), %v491_v35, %v499_v38 }
  0x31   : > { %437 = vmatpush1.bf16.msra.mxu0 %v736_v9 }
  0x32   : > { %438 = vmatprep.subr.bf16.mxu0 %v737_v10 }
  0x35   : > { %439 = vmatpush1.bf16.msra.mxu0 %v739_v11 }
  0x36   : > { %440 = vmatprep.subr.bf16.mxu0 %v740_v12 }
  0x39   : > { %441 = vmatpush1.bf16.msra.mxu0 %v742_v13 }
  0x3a   : > { %442 = vmatprep.subr.bf16.mxu0 %v743_v14 }
  0x3d   : > { %443 = vmatpush1.bf16.msra.mxu0 %v745_v15 }
  0x3e   : > { %444 = vmatprep.subr.bf16.mxu0 %v746_v16 }
  0x41   : > { %445 = vmatpush1.bf16.msra.mxu0 %v748_v17 }
  0x42   : > { %446 = vmatprep.subr.bf16.mxu0 %v749_v18 }
  0x45   : > { %447 = vmatpush1.bf16.msra.mxu0 %v751_v19 }
  0x48   : > { %465 = vmatmul.mubr.bf16.vlgmr.msra.gmra.mrb[0].mxu0 %v752_v20 }
 0x11b   : > { %v466_v23 = vpop.f32.mrb[0].mxu0  ;;  %486 = sbr.rel (%p676_p11) target bundleno = 304 (0x130), region = 81 }
 0x11c   : > { %v475_v25 = vadd.f32 %v466_v23, %v324_v21  ;;  %v468_v26 = vpop.f32.mrb[1].mxu0 }
 0x11d   : > { %v476_v28 = vadd.f32 %v468_v26, %v325_v22  ;;  %v470_v29 = vpop.f32.mrb[2].mxu0 }
 0x11e   : > { %479 = vst [vmem:[#allocation2] sm:$0xff] %v475_v25  ;;  %v477_v30 = vadd.f32 %v470_v29, %v326_v24  ;;  %v472_v31 = vpop.f32.mrb[3].mxu0 }
 0x11f   : > { %480 = vst [vmem:[#allocation2 + $0x8] sm:$0xff] %v476_v28  ;;  %v478_v32 = vadd.f32 %v472_v31, %v327_v27 }
 0x120   : > { %481 = vst [vmem:[#allocation2 + $0x10] sm:$0xff] %v477_v30 }
 0x121   : > { %482 = vst [vmem:[#allocation2 + $0x18] sm:$0xff] %v478_v32 }
 0x125   : > { %v487_v36 = vld [vmem:[#allocation2] sm:$0xff] }
 0x126   : > { %v488_v39 = vld [vmem:[#allocation2 + $0x8] sm:$0xff]  ;;  %v503_v44 = vadd.f32 %v496_v42, %v487_v36 }
 0x127   : > { %v489_v40 = vld [vmem:[#allocation2 + $0x10] sm:$0xff]  ;;  %v504_v45 = vadd.f32 %v500_v43, %v488_v39 }
 0x128   : > { %v490_v41 = vld [vmem:[#allocation2 + $0x18] sm:$0xff]  ;;  %v505_v46 = vadd.f32 %v496_v42, %v489_v40  ;;  %v507_v48 = vmax.f32 %v503_v44, 0.0 }
 0x129   : > { %v506_v47 = vadd.f32 %v500_v43, %v490_v41  ;;  %v508_v49 = vmax.f32 %v504_v45, 0.0 }
 0x12a   : > { %v509_v50 = vmax.f32 %v505_v46, 0.0 }
 0x12b   : > { %v510_v51 = vmax.f32 %v506_v47, 0.0  ;;  %v684_v52 = vpack.c.bf16 %v508_v49, %v507_v48 }
 0x12d   : > { %v685_v53 = vpack.c.bf16 %v510_v51, %v509_v50  ;;  %523 = vst [vmem:[%s917_s3] sm:$0xff] %v684_v52 }
 0x12f   : > { %524 = vst [vmem:[%s917_s3 + $0x8] sm:$0xff] %v685_v53 }
 0x130 PF: > { %s13_s16 = sadd.s32 1, %s791_s16   ;;  %s918_s12 = smov %s779_s13 }
 0x131   : > { %p10_p12 = scmp.ge.s32.totalorder %s13_s16, 11   ;;  %s919_s13 = smov %s850_s20 }
 0x132   : > { %s920_s14 = smov %s787_s15  ;;  %s921_s15 = smov %s923_s17 }
 0x133   :  { %12 = sbr.rel (!%p10_p12) target bundleno = 3 (0x3), region = 122 }

// kernel: siamese_forward.32
= control target key start
LH: loop header
LB: loop body
LE: loop exit
PB: predicated region body
PF: predicated region fallthrough
CT: control target
= control target key end

     0   :  { %s949_s12 = smov 0   ;;  %s951_s13 = smov 0   ;;  %s1066_s0 = inlined_call_operand.vmem [shape: bf16[16,2304], index: 0, kind: input, shape index: {}]   ;;  %s1067_s1 = inlined_call_operand.vmem [shape: bf16[2304,256], index: 1, kind: input, shape index: {}]   ;;  %s1068_s2 = inlined_call_operand.vmem [shape: f32[1,256], index: 2, kind: input, shape index: {}]   ;;  %s1069_s3 = inlined_call_operand.vmem [shape: bf16[16,256], index: 3, kind: output, shape index: {}]  }
   0x1   :  { %s953_s14 = smov 0   ;;  %s955_s15 = smov 0  }
   0x2   :  { %s957_s16 = smov 0  }
   0x3 LB: > { %s25_s17 = sadd.s32 1, %s922_s15  ;;  %p48_p1 = scmp.ne.s32.totalorder %s914_s13, %s910_s12  ;;  %s926_s16 = sphi %s957_s16, %s13_s16   ;;  %s922_s15 = sphi %s955_s15, %s1073_s15   ;;  %s918_s14 = sphi %s953_s14, %s1072_s14   ;;  %s914_s13 = sphi %s951_s13, %s1071_s13   ;;  %s910_s12 = sphi %s949_s12, %s1070_s12  }
   0x4   : > { %p26_p0 = scmp.ge.s32.totalorder %s25_s17, 9  ;;  %p49_p2 = scmp.eq.s32.totalorder %s926_s16, 0 }
   0x5   : > { %s41_s19 = sadd.s32 1, %s914_s13  ;;  %p741_p5 = scmp.ge.s32.totalorder %s926_s16, 9 }
   0x6   : > { %s1075_s17 = smov (%p26_p0, %s25_s17), 0  ;;  %p50_p3 = por %p49_p2, %p48_p1 }
   0x7   : > { %s37_s18 = ssub.s32 %s922_s15, %s1075_s17  ;;  %164 = sbr.rel (%p741_p5) target bundleno = 21 (0x15), region = 20 }
   0x8   : > { %p39_p4 = scmp.eq.s32.totalorder %s37_s18, 0 }
   0xa   : > { %s984_s20 = scalar_select %p39_p4, %s914_s13, %s41_s19  }
   0xe   : > { %167 = sbr.rel (!%p50_p3) target bundleno = 21 (0x15), region = 24  ;;  %s169_s21 = sand.u32 (%p50_p3), 1, %s914_s13  }
   0xf   : > { %s792_s22 = sshll.u32 (%p50_p3), %s922_s15, 3  ;;  %s742_s23 = sshll.u32 (%p50_p3), %s169_s21, 4 }
  0x10   : > { %s177_s26 = scalar_lea.vmem (%p50_p3), %s1066_s0, %s792_s22  ;;  %s171_s27 = scalar_lea.vmem (%p50_p3), [#allocation3], %s742_s23 }
  0x11   : > { %v207_v0 = vld [vmem:[%s177_s26] sm:$0xff] (%p50_p3)  ;;  %v209_v1 = vld [vmem:[%s177_s26 + $0x48] sm:$0xff] (%p50_p3) }
  0x12   : > { %208 = vst [vmem:[%s171_s27] sm:$0xff] (%p50_p3), %v207_v0  ;;  %210 = vst [vmem:[%s171_s27 + $0x8] sm:$0xff] (%p50_p3), %v209_v1 }
  0x15 PF: > { %p745_p6 = scmp.ge.s32.totalorder %s926_s16, 1  ;;  %p230_p7 = scmp.lt.s32.totalorder %s926_s16, 10 }
  0x17   : > { %p231_p8 = pnand %p745_p6, %p230_p7 }
  0x18   : > { %s237_s28 = sand.u32 (!%p231_p8), 1, %s910_s12   ;;  %s747_s29 = sshll.u32 (!%p231_p8), %s918_s14, 5 }
  0x19   : > { %234 = sbr.rel (%p231_p8) target bundleno = 334 (0x14e), region = 66  ;;  %s996_s30 = sshll.u32 (!%p231_p8), %s237_s28, 4 }
  0x1a   : > { %p283_p9 = scmp.lt.s32.totalorder (!%p231_p8), %s747_s29, 287  ;;  %s239_s8 = scalar_lea.vmem (!%p231_p8), [#allocation3], %s996_s30 }
  0x1b   : > { %p750_p10 = scmp.ne.s32.totalorder (!%p231_p8), %s918_s14, 0 }
  0x20   : > { %s1077_s29 = smov (!%p283_p9, %s747_s29), 287  ;;  %313 = sbr.rel (%p750_p10) target bundleno = 39 (0x27), region = 74 }
  0x21   : > { %s793_s4 = sshll.u32 %s1077_s29, 3  ;;  %v928_v2 = vmov (!%p750_p10), 0.0  }
  0x22   : > { %s1001_s7 = scalar_lea.vmem %s1067_s1, %s793_s4  ;;  %314 = vst [vmem:[#allocation2] sm:$0xff] (!%p750_p10), %v928_v2  ;;  %315 = vst [vmem:[#allocation2 + $0x8] sm:$0xff] (!%p750_p10), %v928_v2 }
  0x23   : > { %316 = vst [vmem:[#allocation2 + $0x10] sm:$0xff] (!%p750_p10), %v928_v2  ;;  %317 = vst [vmem:[#allocation2 + $0x18] sm:$0xff] (!%p750_p10), %v928_v2 }
  0x27 PF: > { %v837_v3 = vld [vmem:[%s1001_s7 + $0x4] ss:$8 sps:$4 sm:$0xff]   ;;  %v839_v4 = vld [vmem:[%s1001_s7] ss:$8 sps:$4 sm:$0xff]   ;;  %v840_v5 = vld [vmem:[%s1001_s7 + $0x14] ss:$8 sps:$4 sm:$0xff]  }
  0x28   : > { %526 = vmatprep.subr.bf16.mxu0 %v837_v3  ;;  %v842_v6 = vld [vmem:[%s1001_s7 + $0x10] ss:$8 sps:$4 sm:$0xff]   ;;  %v843_v7 = vld [vmem:[%s1001_s7 + $0x24] ss:$8 sps:$4 sm:$0xff]   ;;  %v845_v8 = vld [vmem:[%s1001_s7 + $0x20] ss:$8 sps:$4 sm:$0xff]  }
  0x29   : > { %527 = vmatpush1.bf16.msra.mxu0 %v839_v4  ;;  %v846_v9 = vld [vmem:[%s1001_s7 + $0x34] ss:$8 sps:$4 sm:$0xff]   ;;  %v848_v10 = vld [vmem:[%s1001_s7 + $0x30] ss:$8 sps:$4 sm:$0xff]   ;;  %v849_v11 = vld [vmem:[%s1001_s7 + $0x44] ss:$8 sps:$4 sm:$0xff]  }
  0x2a   : > { %528 = vmatprep.subr.bf16.mxu0 %v840_v5  ;;  %v851_v12 = vld [vmem:[%s1001_s7 + $0x40] ss:$8 sps:$4 sm:$0xff]   ;;  %v852_v13 = vld [vmem:[%s1001_s7 + $0x54] ss:$8 sps:$4 sm:$0xff]   ;;  %v854_v14 = vld [vmem:[%s1001_s7 + $0x50] ss:$8 sps:$4 sm:$0xff]  }
  0x2b   : > { %v855_v15 = vld [vmem:[%s1001_s7 + $0x64] ss:$8 sps:$4 sm:$0xff]   ;;  %v857_v17 = vld [vmem:[%s1001_s7 + $0x60] ss:$8 sps:$4 sm:$0xff]   ;;  %v858_v18 = vld [vmem:[%s1001_s7 + $0x74] ss:$8 sps:$4 sm:$0xff]  }
  0x2c   : > { %v887_v16 = vld [vmem:[%s239_s8 + $0x4] ss:$8 sps:$4 sm:$0xff]   ;;  %v860_v19 = vld [vmem:[%s1001_s7 + $0x70] ss:$8 sps:$4 sm:$0xff]   ;;  %v863_v21 = vld [vmem:[%s1001_s7 + $0x80] ss:$8 sps:$4 sm:$0xff]  }
  0x2d   : > { %529 = vmatpush1.bf16.msra.mxu0 %v842_v6  ;;  %558 = vmatprep.mubr.bf16.mxu0 %v887_v16  ;;  %v861_v20 = vld [vmem:[%s1001_s7 + $0x84] ss:$8 sps:$4 sm:$0xff]   ;;  %v864_v22 = vld [vmem:[%s1001_s7 + $0x94] ss:$8 sps:$4 sm:$0xff]   ;;  %v866_v23 = vld [vmem:[%s1001_s7 + $0x90] ss:$8 sps:$4 sm:$0xff]  }
  0x2e   : > { %530 = vmatprep.subr.bf16.mxu0 %v843_v7  ;;  %v867_v24 = vld [vmem:[%s1001_s7 + $0xa4] ss:$8 sps:$4 sm:$0xff]   ;;  %v869_v25 = vld [vmem:[%s1001_s7 + $0xa0] ss:$8 sps:$4 sm:$0xff]   ;;  %v870_v26 = vld [vmem:[%s1001_s7 + $0xb4] ss:$8 sps:$4 sm:$0xff]  }
  0x2f   : > { %v872_v27 = vld [vmem:[%s1001_s7 + $0xb0] ss:$8 sps:$4 sm:$0xff]   ;;  %v873_v28 = vld [vmem:[%s1001_s7 + $0xc4] ss:$8 sps:$4 sm:$0xff]   ;;  %v875_v29 = vld [vmem:[%s1001_s7 + $0xc0] ss:$8 sps:$4 sm:$0xff]  }
  0x30   : > { %v876_v30 = vld [vmem:[%s1001_s7 + $0xd4] ss:$8 sps:$4 sm:$0xff]   ;;  %v878_v31 = vld [vmem:[%s1001_s7 + $0xd0] ss:$8 sps:$4 sm:$0xff]   ;;  %v879_v32 = vld [vmem:[%s1001_s7 + $0xe4] ss:$8 sps:$4 sm:$0xff]  }
  0x31   : > { %531 = vmatpush1.bf16.msra.mxu0 %v845_v8  ;;  %v881_v33 = vld [vmem:[%s1001_s7 + $0xe0] ss:$8 sps:$4 sm:$0xff]   ;;  %v882_v34 = vld [vmem:[%s1001_s7 + $0xf4] ss:$8 sps:$4 sm:$0xff]   ;;  %v884_v35 = vld [vmem:[%s1001_s7 + $0xf0] ss:$8 sps:$4 sm:$0xff]  }
  0x32   : > { %532 = vmatprep.subr.bf16.mxu0 %v846_v9  ;;  %v885_v36 = vld [vmem:[%s239_s8] ss:$8 sps:$4 sm:$0xff]   ;;  %p785_p11 = scmp.ne.s32.totalorder %s918_s14, 8 }
  0x33   : > { %v318_v37 = vld [vmem:[#allocation2] sm:$0xff]  ;;  %v319_v38 = vld [vmem:[#allocation2 + $0x8] sm:$0xff]  ;;  %v320_v40 = vld [vmem:[#allocation2 + $0x10] sm:$0xff]  ;;  %v587_v49 = vlaneseq (!%p785_p11) }
  0x34   : > { %v321_v43 = vld [vmem:[#allocation2 + $0x18] sm:$0xff]  ;;  %v585_v51 = vld [vmem:[%s1068_s2] sm:$0x3] (!%p785_p11) }
  0x35   : > { %533 = vmatpush1.bf16.msra.mxu0 %v848_v10  ;;  %v588_v50 = vshrl.u32 (!%p785_p11), %v587_v49, 7 }
  0x36   : > { %534 = vmatprep.subr.bf16.mxu0 %v849_v11 }
  0x37   : > { %v589_v53 = vsub.s32 (!%p785_p11), 0, %v588_v50  ;;  %v593_v54 = vsub.s32 (!%p785_p11), 1, %v588_v50 }
  0x39   : > { %535 = vmatpush1.bf16.msra.mxu0 %v851_v12  ;;  %v590_v58 = vrot.slane (!%p785_p11), %v585_v51, %v589_v53  ;;  %v594_v59 = vrot.slane (!%p785_p11), %v585_v51, %v593_v54 }
  0x3a   : > { %536 = vmatprep.subr.bf16.mxu0 %v852_v13 }
  0x3d   : > { %537 = vmatpush1.bf16.msra.mxu0 %v854_v14 }
  0x3e   : > { %538 = vmatprep.subr.bf16.mxu0 %v855_v15 }
  0x41   : > { %539 = vmatpush1.bf16.msra.mxu0 %v857_v17 }
  0x42   : > { %540 = vmatprep.subr.bf16.mxu0 %v858_v18 }
  0x45   : > { %541 = vmatpush1.bf16.msra.mxu0 %v860_v19 }
  0x46   : > { %542 = vmatprep.subr.bf16.mxu0 %v861_v20 }
  0x49   : > { %543 = vmatpush1.bf16.msra.mxu0 %v863_v21 }
  0x4a   : > { %544 = vmatprep.subr.bf16.mxu0 %v864_v22 }
  0x4d   : > { %545 = vmatpush1.bf16.msra.mxu0 %v866_v23 }
  0x4e   : > { %546 = vmatprep.subr.bf16.mxu0 %v867_v24 }
  0x51   : > { %547 = vmatpush1.bf16.msra.mxu0 %v869_v25 }
  0x52   : > { %548 = vmatprep.subr.bf16.mxu0 %v870_v26 }
  0x55   : > { %549 = vmatpush1.bf16.msra.mxu0 %v872_v27 }
  0x56   : > { %550 = vmatprep.subr.bf16.mxu0 %v873_v28 }
  0x59   : > { %551 = vmatpush1.bf16.msra.mxu0 %v875_v29 }
  0x5a   : > { %552 = vmatprep.subr.bf16.mxu0 %v876_v30 }
  0x5d   : > { %553 = vmatpush1.bf16.msra.mxu0 %v878_v31 }
  0x5e   : > { %554 = vmatprep.subr.bf16.mxu0 %v879_v32 }
  0x61   : > { %555 = vmatpush1.bf16.msra.mxu0 %v881_v33 }
  0x62   : > { %556 = vmatprep.subr.bf16.mxu0 %v882_v34 }
  0x65   : > { %557 = vmatpush1.bf16.msra.mxu0 %v884_v35 }
  0x68   : > { %559 = vmatmul.mubr.bf16.vlgmr.msra.gmra.mrb[0].mxu0 %v885_v36 }
 0x13b   : > { %v560_v39 = vpop.f32.mrb[0].mxu0  ;;  %580 = sbr.rel (%p785_p11) target bundleno = 334 (0x14e), region = 78 }
 0x13c   : > { %v569_v41 = vadd.f32 %v560_v39, %v318_v37  ;;  %v562_v42 = vpop.f32.mrb[1].mxu0 }
 0x13d   : > { %v570_v44 = vadd.f32 %v562_v42, %v319_v38  ;;  %v564_v45 = vpop.f32.mrb[2].mxu0 }
 0x13e   : > { %573 = vst [vmem:[#allocation2] sm:$0xff] %v569_v41  ;;  %v571_v46 = vadd.f32 %v564_v45, %v320_v40  ;;  %v566_v47 = vpop.f32.mrb[3].mxu0 }
 0x13f   : > { %574 = vst [vmem:[#allocation2 + $0x8] sm:$0xff] %v570_v44  ;;  %v572_v48 = vadd.f32 %v566_v47, %v321_v43 }
 0x140   : > { %575 = vst [vmem:[#allocation2 + $0x10] sm:$0xff] %v571_v46 }
 0x141   : > { %576 = vst [vmem:[#allocation2 + $0x18] sm:$0xff] %v572_v48 }
 0x145   : > { %v581_v52 = vld [vmem:[#allocation2] sm:$0xff] }
 0x146   : > { %v582_v55 = vld [vmem:[#allocation2 + $0x8] sm:$0xff]  ;;  %v597_v60 = vadd.f32 %v590_v58, %v581_v52 }
 0x147   : > { %v583_v56 = vld [vmem:[#allocation2 + $0x10] sm:$0xff]  ;;  %v598_v61 = vadd.f32 %v594_v59, %v582_v55 }
 0x148   : > { %v584_v57 = vld [vmem:[#allocation2 + $0x18] sm:$0xff]  ;;  %v599_v62 = vadd.f32 %v590_v58, %v583_v56 }
 0x149   : > { %v600_v63 = vadd.f32 %v594_v59, %v584_v57  ;;  %v794_v0 = vpack.c.bf16 %v598_v61, %v597_v60 }
 0x14b   : > { %v795_v1 = vpack.c.bf16 %v600_v63, %v599_v62  ;;  %613 = vst [vmem:[%s1069_s3] sm:$0xff] %v794_v0 }
 0x14d   : > { %614 = vst [vmem:[%s1069_s3 + $0x8] sm:$0xff] %v795_v1 }
 0x14e PF: > { %s13_s16 = sadd.s32 1, %s926_s16   ;;  %s1070_s12 = smov %s914_s13 }
 0x14f   : > { %p10_p12 = scmp.ge.s32.totalorder %s13_s16, 11   ;;  %s1071_s13 = smov %s984_s20 }
 0x150   : > { %s1072_s14 = smov %s922_s15  ;;  %s1073_s15 = smov %s1075_s17 }
 0x151   :  { %12 = sbr.rel (!%p10_p12) target bundleno = 3 (0x3), region = 119 }

// kernel: siamese_forward.34
= control target key start
LH: loop header
LB: loop body
LE: loop exit
PB: predicated region body
PF: predicated region fallthrough
CT: control target
= control target key end

     0   :  { %s953_s12 = smov 0   ;;  %s955_s13 = smov 0   ;;  %s1070_s0 = inlined_call_operand.vmem [shape: bf16[16,2304], index: 0, kind: input, shape index: {}]   ;;  %s1071_s1 = inlined_call_operand.vmem [shape: bf16[2304,256], index: 1, kind: input, shape index: {}]   ;;  %s1072_s2 = inlined_call_operand.vmem [shape: f32[1,256], index: 2, kind: input, shape index: {}]   ;;  %s1073_s3 = inlined_call_operand.vmem [shape: bf16[16,256], index: 3, kind: output, shape index: {}]  }
   0x1   :  { %s957_s14 = smov 0   ;;  %s959_s15 = smov 0  }
   0x2   :  { %s961_s16 = smov 0  }
   0x3 LB: > { %s25_s17 = sadd.s32 1, %s926_s15  ;;  %p48_p1 = scmp.ne.s32.totalorder %s918_s13, %s914_s12  ;;  %s930_s16 = sphi %s961_s16, %s13_s16   ;;  %s926_s15 = sphi %s959_s15, %s1077_s15   ;;  %s922_s14 = sphi %s957_s14, %s1076_s14   ;;  %s918_s13 = sphi %s955_s13, %s1075_s13   ;;  %s914_s12 = sphi %s953_s12, %s1074_s12  }
   0x4   : > { %p26_p0 = scmp.ge.s32.totalorder %s25_s17, 9  ;;  %p49_p2 = scmp.eq.s32.totalorder %s930_s16, 0 }
   0x5   : > { %s41_s19 = sadd.s32 1, %s918_s13  ;;  %p745_p5 = scmp.ge.s32.totalorder %s930_s16, 9 }
   0x6   : > { %s1079_s17 = smov (%p26_p0, %s25_s17), 0  ;;  %p50_p3 = por %p49_p2, %p48_p1 }
   0x7   : > { %s37_s18 = ssub.s32 %s926_s15, %s1079_s17  ;;  %164 = sbr.rel (%p745_p5) target bundleno = 21 (0x15), region = 20 }
   0x8   : > { %p39_p4 = scmp.eq.s32.totalorder %s37_s18, 0 }
   0xa   : > { %s988_s20 = scalar_select %p39_p4, %s918_s13, %s41_s19  }
   0xe   : > { %167 = sbr.rel (!%p50_p3) target bundleno = 21 (0x15), region = 24  ;;  %s169_s21 = sand.u32 (%p50_p3), 1, %s918_s13  }
   0xf   : > { %s796_s22 = sshll.u32 (%p50_p3), %s926_s15, 3  ;;  %s746_s23 = sshll.u32 (%p50_p3), %s169_s21, 4 }
  0x10   : > { %s177_s26 = scalar_lea.vmem (%p50_p3), %s1070_s0, %s796_s22  ;;  %s171_s27 = scalar_lea.vmem (%p50_p3), [#allocation3], %s746_s23 }
  0x11   : > { %v207_v0 = vld [vmem:[%s177_s26] sm:$0xff] (%p50_p3)  ;;  %v209_v1 = vld [vmem:[%s177_s26 + $0x48] sm:$0xff] (%p50_p3) }
  0x12   : > { %208 = vst [vmem:[%s171_s27] sm:$0xff] (%p50_p3), %v207_v0  ;;  %210 = vst [vmem:[%s171_s27 + $0x8] sm:$0xff] (%p50_p3), %v209_v1 }
  0x15 PF: > { %p749_p6 = scmp.ge.s32.totalorder %s930_s16, 1  ;;  %p230_p7 = scmp.lt.s32.totalorder %s930_s16, 10 }
  0x17   : > { %p231_p8 = pnand %p749_p6, %p230_p7 }
  0x18   : > { %s237_s28 = sand.u32 (!%p231_p8), 1, %s914_s12   ;;  %s751_s29 = sshll.u32 (!%p231_p8), %s922_s14, 5 }
  0x19   : > { %234 = sbr.rel (%p231_p8) target bundleno = 336 (0x150), region = 66  ;;  %s1000_s30 = sshll.u32 (!%p231_p8), %s237_s28, 4 }
  0x1a   : > { %p283_p9 = scmp.lt.s32.totalorder (!%p231_p8), %s751_s29, 287  ;;  %s239_s8 = scalar_lea.vmem (!%p231_p8), [#allocation3], %s1000_s30 }
  0x1b   : > { %p754_p10 = scmp.ne.s32.totalorder (!%p231_p8), %s922_s14, 0 }
  0x20   : > { %s1081_s29 = smov (!%p283_p9, %s751_s29), 287  ;;  %313 = sbr.rel (%p754_p10) target bundleno = 39 (0x27), region = 74 }
  0x21   : > { %s797_s4 = sshll.u32 %s1081_s29, 3  ;;  %v932_v2 = vmov (!%p754_p10), 0.0  }
  0x22   : > { %s1005_s7 = scalar_lea.vmem %s1071_s1, %s797_s4  ;;  %314 = vst [vmem:[#allocation2] sm:$0xff] (!%p754_p10), %v932_v2  ;;  %315 = vst [vmem:[#allocation2 + $0x8] sm:$0xff] (!%p754_p10), %v932_v2 }
  0x23   : > { %316 = vst [vmem:[#allocation2 + $0x10] sm:$0xff] (!%p754_p10), %v932_v2  ;;  %317 = vst [vmem:[#allocation2 + $0x18] sm:$0xff] (!%p754_p10), %v932_v2 }
  0x27 PF: > { %v841_v3 = vld [vmem:[%s1005_s7 + $0x4] ss:$8 sps:$4 sm:$0xff]   ;;  %v843_v4 = vld [vmem:[%s1005_s7] ss:$8 sps:$4 sm:$0xff]   ;;  %v844_v5 = vld [vmem:[%s1005_s7 + $0x14] ss:$8 sps:$4 sm:$0xff]  }
  0x28   : > { %526 = vmatprep.subr.bf16.mxu0 %v841_v3  ;;  %v846_v6 = vld [vmem:[%s1005_s7 + $0x10] ss:$8 sps:$4 sm:$0xff]   ;;  %v847_v7 = vld [vmem:[%s1005_s7 + $0x24] ss:$8 sps:$4 sm:$0xff]   ;;  %v849_v8 = vld [vmem:[%s1005_s7 + $0x20] ss:$8 sps:$4 sm:$0xff]  }
  0x29   : > { %527 = vmatpush1.bf16.msra.mxu0 %v843_v4  ;;  %v850_v9 = vld [vmem:[%s1005_s7 + $0x34] ss:$8 sps:$4 sm:$0xff]   ;;  %v852_v10 = vld [vmem:[%s1005_s7 + $0x30] ss:$8 sps:$4 sm:$0xff]   ;;  %v853_v11 = vld [vmem:[%s1005_s7 + $0x44] ss:$8 sps:$4 sm:$0xff]  }
  0x2a   : > { %528 = vmatprep.subr.bf16.mxu0 %v844_v5  ;;  %v855_v12 = vld [vmem:[%s1005_s7 + $0x40] ss:$8 sps:$4 sm:$0xff]   ;;  %v856_v13 = vld [vmem:[%s1005_s7 + $0x54] ss:$8 sps:$4 sm:$0xff]   ;;  %v858_v14 = vld [vmem:[%s1005_s7 + $0x50] ss:$8 sps:$4 sm:$0xff]  }
  0x2b   : > { %v859_v15 = vld [vmem:[%s1005_s7 + $0x64] ss:$8 sps:$4 sm:$0xff]   ;;  %v861_v17 = vld [vmem:[%s1005_s7 + $0x60] ss:$8 sps:$4 sm:$0xff]   ;;  %v862_v18 = vld [vmem:[%s1005_s7 + $0x74] ss:$8 sps:$4 sm:$0xff]  }
  0x2c   : > { %v891_v16 = vld [vmem:[%s239_s8 + $0x4] ss:$8 sps:$4 sm:$0xff]   ;;  %v864_v19 = vld [vmem:[%s1005_s7 + $0x70] ss:$8 sps:$4 sm:$0xff]   ;;  %v867_v21 = vld [vmem:[%s1005_s7 + $0x80] ss:$8 sps:$4 sm:$0xff]  }
  0x2d   : > { %529 = vmatpush1.bf16.msra.mxu0 %v846_v6  ;;  %558 = vmatprep.mubr.bf16.mxu0 %v891_v16  ;;  %v865_v20 = vld [vmem:[%s1005_s7 + $0x84] ss:$8 sps:$4 sm:$0xff]   ;;  %v868_v22 = vld [vmem:[%s1005_s7 + $0x94] ss:$8 sps:$4 sm:$0xff]   ;;  %v870_v23 = vld [vmem:[%s1005_s7 + $0x90] ss:$8 sps:$4 sm:$0xff]  }
  0x2e   : > { %530 = vmatprep.subr.bf16.mxu0 %v847_v7  ;;  %v871_v24 = vld [vmem:[%s1005_s7 + $0xa4] ss:$8 sps:$4 sm:$0xff]   ;;  %v873_v25 = vld [vmem:[%s1005_s7 + $0xa0] ss:$8 sps:$4 sm:$0xff]   ;;  %v874_v26 = vld [vmem:[%s1005_s7 + $0xb4] ss:$8 sps:$4 sm:$0xff]  }
  0x2f   : > { %v876_v27 = vld [vmem:[%s1005_s7 + $0xb0] ss:$8 sps:$4 sm:$0xff]   ;;  %v877_v28 = vld [vmem:[%s1005_s7 + $0xc4] ss:$8 sps:$4 sm:$0xff]   ;;  %v879_v29 = vld [vmem:[%s1005_s7 + $0xc0] ss:$8 sps:$4 sm:$0xff]  }
  0x30   : > { %v880_v30 = vld [vmem:[%s1005_s7 + $0xd4] ss:$8 sps:$4 sm:$0xff]   ;;  %v882_v31 = vld [vmem:[%s1005_s7 + $0xd0] ss:$8 sps:$4 sm:$0xff]   ;;  %v883_v32 = vld [vmem:[%s1005_s7 + $0xe4] ss:$8 sps:$4 sm:$0xff]  }
  0x31   : > { %531 = vmatpush1.bf16.msra.mxu0 %v849_v8  ;;  %v885_v33 = vld [vmem:[%s1005_s7 + $0xe0] ss:$8 sps:$4 sm:$0xff]   ;;  %v886_v34 = vld [vmem:[%s1005_s7 + $0xf4] ss:$8 sps:$4 sm:$0xff]   ;;  %v888_v35 = vld [vmem:[%s1005_s7 + $0xf0] ss:$8 sps:$4 sm:$0xff]  }
  0x32   : > { %532 = vmatprep.subr.bf16.mxu0 %v850_v9  ;;  %v889_v36 = vld [vmem:[%s239_s8] ss:$8 sps:$4 sm:$0xff]   ;;  %p789_p11 = scmp.ne.s32.totalorder %s922_s14, 8 }
  0x33   : > { %v318_v37 = vld [vmem:[#allocation2] sm:$0xff]  ;;  %v319_v38 = vld [vmem:[#allocation2 + $0x8] sm:$0xff]  ;;  %v320_v40 = vld [vmem:[#allocation2 + $0x10] sm:$0xff]  ;;  %v587_v49 = vlaneseq (!%p789_p11) }
  0x34   : > { %v321_v43 = vld [vmem:[#allocation2 + $0x18] sm:$0xff]  ;;  %v585_v51 = vld [vmem:[%s1072_s2] sm:$0x3] (!%p789_p11) }
  0x35   : > { %533 = vmatpush1.bf16.msra.mxu0 %v852_v10  ;;  %v588_v50 = vshrl.u32 (!%p789_p11), %v587_v49, 7 }
  0x36   : > { %534 = vmatprep.subr.bf16.mxu0 %v853_v11 }
  0x37   : > { %v589_v53 = vsub.s32 (!%p789_p11), 0, %v588_v50  ;;  %v593_v54 = vsub.s32 (!%p789_p11), 1, %v588_v50 }
  0x39   : > { %535 = vmatpush1.bf16.msra.mxu0 %v855_v12  ;;  %v590_v58 = vrot.slane (!%p789_p11), %v585_v51, %v589_v53  ;;  %v594_v59 = vrot.slane (!%p789_p11), %v585_v51, %v593_v54 }
  0x3a   : > { %536 = vmatprep.subr.bf16.mxu0 %v856_v13 }
  0x3d   : > { %537 = vmatpush1.bf16.msra.mxu0 %v858_v14 }
  0x3e   : > { %538 = vmatprep.subr.bf16.mxu0 %v859_v15 }
  0x41   : > { %539 = vmatpush1.bf16.msra.mxu0 %v861_v17 }
  0x42   : > { %540 = vmatprep.subr.bf16.mxu0 %v862_v18 }
  0x45   : > { %541 = vmatpush1.bf16.msra.mxu0 %v864_v19 }
  0x46   : > { %542 = vmatprep.subr.bf16.mxu0 %v865_v20 }
  0x49   : > { %543 = vmatpush1.bf16.msra.mxu0 %v867_v21 }
  0x4a   : > { %544 = vmatprep.subr.bf16.mxu0 %v868_v22 }
  0x4d   : > { %545 = vmatpush1.bf16.msra.mxu0 %v870_v23 }
  0x4e   : > { %546 = vmatprep.subr.bf16.mxu0 %v871_v24 }
  0x51   : > { %547 = vmatpush1.bf16.msra.mxu0 %v873_v25 }
  0x52   : > { %548 = vmatprep.subr.bf16.mxu0 %v874_v26 }
  0x55   : > { %549 = vmatpush1.bf16.msra.mxu0 %v876_v27 }
  0x56   : > { %550 = vmatprep.subr.bf16.mxu0 %v877_v28 }
  0x59   : > { %551 = vmatpush1.bf16.msra.mxu0 %v879_v29 }
  0x5a   : > { %552 = vmatprep.subr.bf16.mxu0 %v880_v30 }
  0x5d   : > { %553 = vmatpush1.bf16.msra.mxu0 %v882_v31 }
  0x5e   : > { %554 = vmatprep.subr.bf16.mxu0 %v883_v32 }
  0x61   : > { %555 = vmatpush1.bf16.msra.mxu0 %v885_v33 }
  0x62   : > { %556 = vmatprep.subr.bf16.mxu0 %v886_v34 }
  0x65   : > { %557 = vmatpush1.bf16.msra.mxu0 %v888_v35 }
  0x68   : > { %559 = vmatmul.mubr.bf16.vlgmr.msra.gmra.mrb[0].mxu0 %v889_v36 }
 0x13b   : > { %v560_v39 = vpop.f32.mrb[0].mxu0  ;;  %580 = sbr.rel (%p789_p11) target bundleno = 336 (0x150), region = 78 }
 0x13c   : > { %v569_v41 = vadd.f32 %v560_v39, %v318_v37  ;;  %v562_v42 = vpop.f32.mrb[1].mxu0 }
 0x13d   : > { %v570_v44 = vadd.f32 %v562_v42, %v319_v38  ;;  %v564_v45 = vpop.f32.mrb[2].mxu0 }
 0x13e   : > { %573 = vst [vmem:[#allocation2] sm:$0xff] %v569_v41  ;;  %v571_v46 = vadd.f32 %v564_v45, %v320_v40  ;;  %v566_v47 = vpop.f32.mrb[3].mxu0 }
 0x13f   : > { %574 = vst [vmem:[#allocation2 + $0x8] sm:$0xff] %v570_v44  ;;  %v572_v48 = vadd.f32 %v566_v47, %v321_v43 }
 0x140   : > { %575 = vst [vmem:[#allocation2 + $0x10] sm:$0xff] %v571_v46 }
 0x141   : > { %576 = vst [vmem:[#allocation2 + $0x18] sm:$0xff] %v572_v48 }
 0x145   : > { %v581_v52 = vld [vmem:[#allocation2] sm:$0xff] }
 0x146   : > { %v582_v55 = vld [vmem:[#allocation2 + $0x8] sm:$0xff]  ;;  %v597_v60 = vadd.f32 %v590_v58, %v581_v52 }
 0x147   : > { %v583_v56 = vld [vmem:[#allocation2 + $0x10] sm:$0xff]  ;;  %v598_v61 = vadd.f32 %v594_v59, %v582_v55 }
 0x148   : > { %v584_v57 = vld [vmem:[#allocation2 + $0x18] sm:$0xff]  ;;  %v599_v62 = vadd.f32 %v590_v58, %v583_v56  ;;  %v601_v0 = vmax.f32 %v597_v60, 0.0 }
 0x149   : > { %v600_v63 = vadd.f32 %v594_v59, %v584_v57  ;;  %v602_v1 = vmax.f32 %v598_v61, 0.0 }
 0x14a   : > { %v603_v2 = vmax.f32 %v599_v62, 0.0 }
 0x14b   : > { %v604_v3 = vmax.f32 %v600_v63, 0.0  ;;  %v798_v4 = vpack.c.bf16 %v602_v1, %v601_v0 }
 0x14d   : > { %v799_v5 = vpack.c.bf16 %v604_v3, %v603_v2  ;;  %617 = vst [vmem:[%s1073_s3] sm:$0xff] %v798_v4 }
 0x14f   : > { %618 = vst [vmem:[%s1073_s3 + $0x8] sm:$0xff] %v799_v5 }
 0x150 PF: > { %s13_s16 = sadd.s32 1, %s930_s16   ;;  %s1074_s12 = smov %s918_s13 }
 0x151   : > { %p10_p12 = scmp.ge.s32.totalorder %s13_s16, 11   ;;  %s1075_s13 = smov %s988_s20 }
 0x152   : > { %s1076_s14 = smov %s926_s15  ;;  %s1077_s15 = smov %s1079_s17 }
 0x153   :  { %12 = sbr.rel (!%p10_p12) target bundleno = 3 (0x3), region = 119 }

// kernel: siamese_forward.33
= control target key start
LH: loop header
LB: loop body
LE: loop exit
PB: predicated region body
PF: predicated region fallthrough
CT: control target
= control target key end

     0   :  { %v270_v1 = vmov 0   ;;  %v191_v18 = vlaneseq  ;;  %s351_s1 = inlined_call_operand.vmem [shape: bf16[128,256], index: 1, kind: input, shape index: {}]   ;;  %s352_s0 = inlined_call_operand.vmem [shape: bf16[16,128], index: 0, kind: input, shape index: {}]   ;;  %s353_s2 = inlined_call_operand.vmem [shape: f32[1,256], index: 2, kind: input, shape index: {}]   ;;  %s354_s3 = inlined_call_operand.vmem [shape: bf16[16,256], index: 3, kind: output, shape index: {}]  }
   0x1   :  { %v245_v0 = vld [vmem:[%s351_s1 + $0x4] ss:$8 sps:$4 sm:$0xff]   ;;  %163 = vmatprep.mubr.bf16.mxu0 %v270_v1  ;;  %v247_v2 = vld [vmem:[%s351_s1] ss:$8 sps:$4 sm:$0xff]   ;;  %v248_v3 = vld [vmem:[%s351_s1 + $0x14] ss:$8 sps:$4 sm:$0xff]  }
   0x2   :  { %131 = vmatprep.subr.bf16.mxu0 %v245_v0  ;;  %v250_v4 = vld [vmem:[%s351_s1 + $0x10] ss:$8 sps:$4 sm:$0xff]   ;;  %v251_v5 = vld [vmem:[%s351_s1 + $0x24] ss:$8 sps:$4 sm:$0xff]   ;;  %v253_v6 = vld [vmem:[%s351_s1 + $0x20] ss:$8 sps:$4 sm:$0xff]  }
   0x3   :  { %132 = vmatpush1.bf16.msra.mxu0 %v247_v2  ;;  %v254_v7 = vld [vmem:[%s351_s1 + $0x34] ss:$8 sps:$4 sm:$0xff]   ;;  %v256_v8 = vld [vmem:[%s351_s1 + $0x30] ss:$8 sps:$4 sm:$0xff]   ;;  %v257_v9 = vld [vmem:[%s351_s1 + $0x44] ss:$8 sps:$4 sm:$0xff]  }
   0x4   :  { %133 = vmatprep.subr.bf16.mxu0 %v248_v3  ;;  %v259_v10 = vld [vmem:[%s351_s1 + $0x40] ss:$8 sps:$4 sm:$0xff]   ;;  %v260_v11 = vld [vmem:[%s351_s1 + $0x54] ss:$8 sps:$4 sm:$0xff]   ;;  %v262_v12 = vld [vmem:[%s351_s1 + $0x50] ss:$8 sps:$4 sm:$0xff]  }
   0x5   :  { %v263_v13 = vld [vmem:[%s351_s1 + $0x64] ss:$8 sps:$4 sm:$0xff]   ;;  %v265_v14 = vld [vmem:[%s351_s1 + $0x60] ss:$8 sps:$4 sm:$0xff]   ;;  %v266_v15 = vld [vmem:[%s351_s1 + $0x74] ss:$8 sps:$4 sm:$0xff]  }
   0x6   :  { %v268_v16 = vld [vmem:[%s351_s1 + $0x70] ss:$8 sps:$4 sm:$0xff]   ;;  %v269_v17 = vld [vmem:[%s352_s0] sm:$0xff]   ;;  %v192_v19 = vshrl.u32 %v191_v18, 7 }
   0x7   :  { %134 = vmatpush1.bf16.msra.mxu0 %v250_v4  ;;  %v189_v21 = vld [vmem:[%s353_s2] sm:$0x3] }
   0x8   :  { %135 = vmatprep.subr.bf16.mxu0 %v251_v5  ;;  %v193_v20 = vsub.s32 0, %v192_v19  ;;  %v197_v22 = vsub.s32 1, %v192_v19 }
   0xa   :  { %v194_v23 = vrot.slane %v189_v21, %v193_v20  ;;  %v198_v24 = vrot.slane %v189_v21, %v197_v22 }
   0xb   :  { %136 = vmatpush1.bf16.msra.mxu0 %v253_v6 }
   0xc   :  { %137 = vmatprep.subr.bf16.mxu0 %v254_v7 }
   0xf   :  { %138 = vmatpush1.bf16.msra.mxu0 %v256_v8 }
  0x10   :  { %139 = vmatprep.subr.bf16.mxu0 %v257_v9 }
  0x13   :  { %140 = vmatpush1.bf16.msra.mxu0 %v259_v10 }
  0x14   :  { %141 = vmatprep.subr.bf16.mxu0 %v260_v11 }
  0x17   :  { %142 = vmatpush1.bf16.msra.mxu0 %v262_v12 }
  0x18   :  { %143 = vmatprep.subr.bf16.mxu0 %v263_v13 }
  0x1b   :  { %144 = vmatpush1.bf16.msra.mxu0 %v265_v14 }
  0x1c   :  { %145 = vmatprep.subr.bf16.mxu0 %v266_v15 }
  0x1f   :  { %146 = vmatpush1.bf16.msra.mxu0 %v268_v16 }
  0x22   :  { %164 = vmatmul.mubr.bf16.vlgmr.msra.gmra.mrb[0].mxu0 %v269_v17 }
  0xf5   :  { %v165_v25 = vpop.f32.mrb[0].mxu0 }
  0xf6   :  { %v201_v26 = vadd.f32 %v194_v23, %v165_v25  ;;  %v167_v27 = vpop.f32.mrb[1].mxu0 }
  0xf7   :  { %v202_v28 = vadd.f32 %v198_v24, %v167_v27  ;;  %v169_v29 = vpop.f32.mrb[2].mxu0 }
  0xf8   :  { %v203_v30 = vadd.f32 %v194_v23, %v169_v29  ;;  %v171_v31 = vpop.f32.mrb[3].mxu0 }
  0xf9   :  { %v242_v32 = vpack.c.bf16 %v202_v28, %v201_v26  ;;  %v204_v33 = vadd.f32 %v198_v24, %v171_v31 }
  0xfb   :  { %217 = vst [vmem:[%s354_s3] sm:$0xff] %v242_v32  ;;  %v243_v34 = vpack.c.bf16 %v204_v33, %v203_v30 }
  0xfd   :  { %218 = vst [vmem:[%s354_s3 + $0x8] sm:$0xff] %v243_v34 }

// kernel: siamese_forward.36
= control target key start
LH: loop header
LB: loop body
LE: loop exit
PB: predicated region body
PF: predicated region fallthrough
CT: control target
= control target key end

     0   :  { %s1070_s12 = smov 0   ;;  %s1072_s13 = smov 0   ;;  %s1284_s0 = inlined_call_operand.vmem [shape: bf16[8,2304], index: 0, kind: input, shape index: {}]   ;;  %s1285_s1 = inlined_call_operand.vmem [shape: bf16[2304,512], index: 1, kind: input, shape index: {}]   ;;  %s1286_s2 = inlined_call_operand.vmem [shape: f32[1,512], index: 2, kind: input, shape index: {}]   ;;  %s1287_s3 = inlined_call_operand.vmem [shape: bf16[8,512], index: 3, kind: output, shape index: {}]  }
   0x1   :  { %s1074_s14 = smov 0   ;;  %s1076_s15 = smov 0  }
   0x2   :  { %s1078_s16 = smov 0   ;;  %s1080_s17 = smov 0  }
   0x3   :  { %s1082_s18 = smov 0  }
   0x4 LB: > { %s25_s19 = sadd.s32 1, %s1039_s16  ;;  %s28_s20 = sadd.s32 1, %s1043_s17  ;;  %s1047_s18 = sphi %s1082_s18, %s13_s18   ;;  %s1043_s17 = sphi %s1080_s17, %s1293_s17   ;;  %s1039_s16 = sphi %s1078_s16, %s1292_s16   ;;  %s1035_s15 = sphi %s1076_s15, %s1291_s15   ;;  %s1031_s14 = sphi %s1074_s14, %s1290_s14   ;;  %s1027_s13 = sphi %s1072_s13, %s1289_s13   ;;  %s1023_s12 = sphi %s1070_s12, %s1288_s12  }
   0x5   : > { %p26_p0 = scmp.ge.s32.totalorder %s25_s19, 9  ;;  %p76_p1 = scmp.ne.s32.totalorder %s1027_s13, %s1023_s12 }
   0x6   : > { %p77_p2 = scmp.eq.s32.totalorder %s1047_s18, 0  ;;  %s69_s24 = sadd.s32 1, %s1027_s13 }
   0x7   : > { %s1295_s19 = smov (%p26_p0, %s25_s19), 0  ;;  %s1297_s20 = smov (!%p26_p0, %s28_s20), %s1043_s17 }
   0x8   : > { %p78_p3 = por %p77_p2, %p76_p1  ;;  %p30_p4 = scmp.ge.s32.totalorder %s1297_s20, 2 }
   0x9   : > { %s64_s21 = ssub.s32 %s1039_s16, %s1295_s19  ;;  %p832_p6 = scmp.ge.s32.totalorder %s1047_s18, 18 }
   0xa   : > { %s1299_s20 = smov (%p30_p4, %s1297_s20), 0 }
   0xb   : > { %s65_s22 = ssub.s32 %s1043_s17, %s1299_s20  ;;  %156 = sbr.rel (%p832_p6) target bundleno = 41 (0x29), region = 16 }
   0xc   : > { %s66_s23 = sor.u32 %s65_s22, %s64_s21 }
   0xd   : > { %p67_p5 = scmp.eq.s32.totalorder %s66_s23, 0 }
   0xf   : > { %s1121_s25 = scalar_select %p67_p5, %s1027_s13, %s69_s24  }
  0x12   : > { %172 = sbr.rel (!%p78_p3) target bundleno = 41 (0x29), region = 24  ;;  %s174_s26 = sand.u32 (%p78_p3), 1, %s1027_s13  }
  0x13   : > { %s835_s27 = sshll.u32 (%p78_p3), %s1043_s17, 1  ;;  %s833_s28 = sshll.u32 (%p78_p3), %s174_s26, 8 }
  0x14   : > { %s884_s29 = sshll.u32 (%p78_p3), %s1039_s16, 7  ;;  %s1135_s8 = scalar_lea.vmem (%p78_p3), [#allocation3], %s833_s28 }
  0x15   : > { %s180_s30 = sadd.s32 (%p78_p3), %s884_s29, %s835_s27 }
  0x16   : > { %s837_s4 = sshll.u32 (%p78_p3), %s180_s30, 2 }
  0x17   : > { %s1130_s7 = scalar_lea.vmem (%p78_p3), %s1285_s1, %s837_s4 }
  0x18   : > { %v272_v0 = vld [vmem:[%s1130_s7] sm:$0xff] (%p78_p3)  ;;  %v274_v1 = vld [vmem:[%s1130_s7 + $0x10] sm:$0xff] (%p78_p3) }
  0x19   : > { %v276_v2 = vld [vmem:[%s1130_s7 + $0x20] sm:$0xff]  ;;  %273 = vst [vmem:[%s1135_s8] sm:$0xff] %v272_v0  ;;  %275 = vst [vmem:[%s1135_s8 + $0x8] sm:$0xff] %v274_v1  ;;  %v278_v3 = vld [vmem:[%s1130_s7 + $0x30] sm:$0xff] }
  0x1a   : > { %277 = vst [vmem:[%s1135_s8 + $0x10] sm:$0xff] %v276_v2  ;;  %v280_v4 = vld [vmem:[%s1130_s7 + $0x40] sm:$0xff]  ;;  %v282_v5 = vld [vmem:[%s1130_s7 + $0x50] sm:$0xff]  ;;  %279 = vst [vmem:[%s1135_s8 + $0x18] sm:$0xff] %v278_v3 }
  0x1b   : > { %281 = vst [vmem:[%s1135_s8 + $0x20] sm:$0xff] %v280_v4  ;;  %283 = vst [vmem:[%s1135_s8 + $0x28] sm:$0xff] %v282_v5  ;;  %v284_v6 = vld [vmem:[%s1130_s7 + $0x60] sm:$0xff]  ;;  %v286_v7 = vld [vmem:[%s1130_s7 + $0x70] sm:$0xff] }
  0x1c   : > { %v288_v8 = vld [vmem:[%s1130_s7 + $0x80] sm:$0xff]  ;;  %285 = vst [vmem:[%s1135_s8 + $0x30] sm:$0xff] %v284_v6  ;;  %287 = vst [vmem:[%s1135_s8 + $0x38] sm:$0xff] %v286_v7  ;;  %v290_v9 = vld [vmem:[%s1130_s7 + $0x90] sm:$0xff] }
  0x1d   : > { %289 = vst [vmem:[%s1135_s8 + $0x40] sm:$0xff] %v288_v8  ;;  %v292_v10 = vld [vmem:[%s1130_s7 + $0xa0] sm:$0xff]  ;;  %v294_v11 = vld [vmem:[%s1130_s7 + $0xb0] sm:$0xff]  ;;  %291 = vst [vmem:[%s1135_s8 + $0x48] sm:$0xff] %v290_v9 }
  0x1e   : > { %293 = vst [vmem:[%s1135_s8 + $0x50] sm:$0xff] %v292_v10  ;;  %295 = vst [vmem:[%s1135_s8 + $0x58] sm:$0xff] %v294_v11  ;;  %v296_v12 = vld [vmem:[%s1130_s7 + $0xc0] sm:$0xff]  ;;  %v298_v13 = vld [vmem:[%s1130_s7 + $0xd0] sm:$0xff] }
  0x1f   : > { %v300_v14 = vld [vmem:[%s1130_s7 + $0xe0] sm:$0xff]  ;;  %297 = vst [vmem:[%s1135_s8 + $0x60] sm:$0xff] %v296_v12  ;;  %299 = vst [vmem:[%s1135_s8 + $0x68] sm:$0xff] %v298_v13  ;;  %v302_v15 = vld [vmem:[%s1130_s7 + $0xf0] sm:$0xff] }
  0x20   : > { %301 = vst [vmem:[%s1135_s8 + $0x70] sm:$0xff] %v300_v14  ;;  %v304_v16 = vld [vmem:[%s1130_s7 + $0x100] sm:$0xff]  ;;  %v306_v17 = vld [vmem:[%s1130_s7 + $0x110] sm:$0xff]  ;;  %303 = vst [vmem:[%s1135_s8 + $0x78] sm:$0xff] %v302_v15 }
  0x21   : > { %305 = vst [vmem:[%s1135_s8 + $0x80] sm:$0xff] %v304_v16  ;;  %307 = vst [vmem:[%s1135_s8 + $0x88] sm:$0xff] %v306_v17  ;;  %v308_v18 = vld [vmem:[%s1130_s7 + $0x120] sm:$0xff]  ;;  %v310_v19 = vld [vmem:[%s1130_s7 + $0x130] sm:$0xff] }
  0x22   : > { %v312_v20 = vld [vmem:[%s1130_s7 + $0x140] sm:$0xff]  ;;  %309 = vst [vmem:[%s1135_s8 + $0x90] sm:$0xff] %v308_v18  ;;  %311 = vst [vmem:[%s1135_s8 + $0x98] sm:$0xff] %v310_v19  ;;  %v314_v21 = vld [vmem:[%s1130_s7 + $0x150] sm:$0xff] }
  0x23   : > { %313 = vst [vmem:[%s1135_s8 + $0xa0] sm:$0xff] %v312_v20  ;;  %v316_v22 = vld [vmem:[%s1130_s7 + $0x160] sm:$0xff]  ;;  %v318_v23 = vld [vmem:[%s1130_s7 + $0x170] sm:$0xff]  ;;  %315 = vst [vmem:[%s1135_s8 + $0xa8] sm:$0xff] %v314_v21 }
  0x24   : > { %317 = vst [vmem:[%s1135_s8 + $0xb0] sm:$0xff] %v316_v22  ;;  %319 = vst [vmem:[%s1135_s8 + $0xb8] sm:$0xff] %v318_v23  ;;  %v320_v24 = vld [vmem:[%s1130_s7 + $0x180] sm:$0xff]  ;;  %v322_v25 = vld [vmem:[%s1130_s7 + $0x190] sm:$0xff] }
  0x25   : > { %v324_v26 = vld [vmem:[%s1130_s7 + $0x1a0] sm:$0xff]  ;;  %321 = vst [vmem:[%s1135_s8 + $0xc0] sm:$0xff] %v320_v24  ;;  %323 = vst [vmem:[%s1135_s8 + $0xc8] sm:$0xff] %v322_v25  ;;  %v326_v27 = vld [vmem:[%s1130_s7 + $0x1b0] sm:$0xff] }
  0x26   : > { %325 = vst [vmem:[%s1135_s8 + $0xd0] sm:$0xff] %v324_v26  ;;  %v328_v28 = vld [vmem:[%s1130_s7 + $0x1c0] sm:$0xff]  ;;  %v330_v29 = vld [vmem:[%s1130_s7 + $0x1d0] sm:$0xff]  ;;  %327 = vst [vmem:[%s1135_s8 + $0xd8] sm:$0xff] %v326_v27 }
  0x27   : > { %329 = vst [vmem:[%s1135_s8 + $0xe0] sm:$0xff] %v328_v28  ;;  %331 = vst [vmem:[%s1135_s8 + $0xe8] sm:$0xff] %v330_v29  ;;  %v332_v30 = vld [vmem:[%s1130_s7 + $0x1e0] sm:$0xff]  ;;  %v334_v31 = vld [vmem:[%s1130_s7 + $0x1f0] sm:$0xff] }
  0x28   : > { %333 = vst [vmem:[%s1135_s8 + $0xf0] sm:$0xff] %v332_v30  ;;  %335 = vst [vmem:[%s1135_s8 + $0xf8] sm:$0xff] %v334_v31 }
  0x29 PF: > { %p838_p7 = scmp.ge.s32.totalorder %s1047_s18, 1  ;;  %p348_p8 = scmp.lt.s32.totalorder %s1047_s18, 19 }
  0x2b   : > { %p349_p9 = pnand %p838_p7, %p348_p8 }
  0x2c   : > { %s355_s9 = sand.u32 (!%p349_p9), 1, %s1023_s12   ;;  %s840_s10 = sshll.u32 (!%p349_p9), %s1031_s14, 1 }
  0x2d   : > { %352 = sbr.rel (%p349_p9) target bundleno = 357 (0x165), region = 66  ;;  %s839_s11 = sshll.u32 (!%p349_p9), %s355_s9, 8 }
  0x2e   : > { %p398_p10 = scmp.lt.s32.totalorder (!%p349_p9), %s840_s10, 17  ;;  %s842_s21 = sshll.u32 (!%p349_p9), %s1035_s15, 1 }
  0x2f   : > { %p408_p11 = scmp.lt.s32.totalorder (!%p349_p9), %s842_s21, 3  ;;  %s1220_s5 = scalar_lea.vmem (!%p349_p9), [#allocation3], %s839_s11 }
  0x30   : > { %p845_p12 = scmp.ne.s32.totalorder (!%p349_p9), %s1031_s14, 0 }
  0x34   : > { %s1301_s10 = smov (!%p398_p10, %s840_s10), 17  ;;  %s1303_s21 = smov (!%p408_p11, %s842_s21), 3 }
  0x35   : > { %s841_s22 = sshll.u32 %s1301_s10, 2  ;;  %s410_s12 = scalar_lea.vmem %s1286_s2, %s1303_s21  ;;  %v1049_v32 = vmov (!%p845_p12), 0.0  }
  0x36   : > { %s1206_s26 = scalar_lea.vmem %s1284_s0, %s841_s22  ;;  %s844_s29 = sshll.u32 %s1303_s21, 2  ;;  %426 = vst [vmem:[#allocation2] sm:$0xff] (!%p845_p12), %v1049_v32  ;;  %427 = vst [vmem:[#allocation2 + $0x8] sm:$0xff] (!%p845_p12), %v1049_v32 }
  0x37   : > { %s1218_s15 = scalar_lea.vmem %s1287_s3, %s844_s29  ;;  %425 = sbr.rel (%p845_p12) target bundleno = 62 (0x3e), region = 74 }
  0x3e PF: > { %v943_v33 = vld [vmem:[%s1220_s5 + $0x4] ss:$8 sps:$4 sm:$0xff]   ;;  %v945_v34 = vld [vmem:[%s1220_s5] ss:$8 sps:$4 sm:$0xff]   ;;  %v946_v35 = vld [vmem:[%s1220_s5 + $0x14] ss:$8 sps:$4 sm:$0xff]  }
  0x3f   : > { %630 = vmatprep.subr.bf16.mxu0 %v943_v33  ;;  %v948_v36 = vld [vmem:[%s1220_s5 + $0x10] ss:$8 sps:$4 sm:$0xff]   ;;  %v949_v37 = vld [vmem:[%s1220_s5 + $0x24] ss:$8 sps:$4 sm:$0xff]   ;;  %v951_v38 = vld [vmem:[%s1220_s5 + $0x20] ss:$8 sps:$4 sm:$0xff]  }
  0x40   : > { %631 = vmatpush1.bf16.msra.mxu0 %v945_v34  ;;  %v952_v39 = vld [vmem:[%s1220_s5 + $0x34] ss:$8 sps:$4 sm:$0xff]   ;;  %v954_v40 = vld [vmem:[%s1220_s5 + $0x30] ss:$8 sps:$4 sm:$0xff]   ;;  %v955_v41 = vld [vmem:[%s1220_s5 + $0x44] ss:$8 sps:$4 sm:$0xff]  }
  0x41   : > { %632 = vmatprep.subr.bf16.mxu0 %v946_v35  ;;  %v957_v42 = vld [vmem:[%s1220_s5 + $0x40] ss:$8 sps:$4 sm:$0xff]   ;;  %v958_v43 = vld [vmem:[%s1220_s5 + $0x54] ss:$8 sps:$4 sm:$0xff]   ;;  %v960_v44 = vld [vmem:[%s1220_s5 + $0x50] ss:$8 sps:$4 sm:$0xff]  }
  0x42   : > { %v961_v45 = vld [vmem:[%s1220_s5 + $0x64] ss:$8 sps:$4 sm:$0xff]   ;;  %v430_v46 = vld [vmem:[%s1206_s26] sm:$0xff]  ;;  %v963_v48 = vld [vmem:[%s1220_s5 + $0x60] ss:$8 sps:$4 sm:$0xff]   ;;  %p880_p13 = scmp.ne.s32.totalorder %s1031_s14, 8 }
  0x43   : > { %v847_v47 = vcombine.high %v430_v46, %v430_v46  ;;  %v964_v49 = vld [vmem:[%s1220_s5 + $0x74] ss:$8 sps:$4 sm:$0xff]   ;;  %v966_v50 = vld [vmem:[%s1220_s5 + $0x70] ss:$8 sps:$4 sm:$0xff]   ;;  %v967_v51 = vld [vmem:[%s1220_s5 + $0x84] ss:$8 sps:$4 sm:$0xff]   ;;  %v846_v3 = vcombine.low %v430_v46, %v430_v46  ;;  %v683_v12 = vlaneseq (!%p880_p13) }
  0x44   : > { %633 = vmatpush1.bf16.msra.mxu0 %v948_v36  ;;  %v969_v52 = vld [vmem:[%s1220_s5 + $0x80] ss:$8 sps:$4 sm:$0xff]   ;;  %v970_v53 = vld [vmem:[%s1220_s5 + $0x94] ss:$8 sps:$4 sm:$0xff]   ;;  %v972_v54 = vld [vmem:[%s1220_s5 + $0x90] ss:$8 sps:$4 sm:$0xff]  }
  0x45   : > { %634 = vmatprep.subr.bf16.mxu0 %v949_v37  ;;  %662 = vmatprep.mubr.bf16.mxu0 %v847_v47  ;;  %v973_v55 = vld [vmem:[%s1220_s5 + $0xa4] ss:$8 sps:$4 sm:$0xff]   ;;  %v975_v56 = vld [vmem:[%s1220_s5 + $0xa0] ss:$8 sps:$4 sm:$0xff]   ;;  %v976_v57 = vld [vmem:[%s1220_s5 + $0xb4] ss:$8 sps:$4 sm:$0xff]  }
  0x46   : > { %v978_v58 = vld [vmem:[%s1220_s5 + $0xb0] ss:$8 sps:$4 sm:$0xff]   ;;  %v979_v59 = vld [vmem:[%s1220_s5 + $0xc4] ss:$8 sps:$4 sm:$0xff]   ;;  %v981_v60 = vld [vmem:[%s1220_s5 + $0xc0] ss:$8 sps:$4 sm:$0xff]  }
  0x47   : > { %v982_v61 = vld [vmem:[%s1220_s5 + $0xd4] ss:$8 sps:$4 sm:$0xff]   ;;  %v984_v62 = vld [vmem:[%s1220_s5 + $0xd0] ss:$8 sps:$4 sm:$0xff]   ;;  %v985_v63 = vld [vmem:[%s1220_s5 + $0xe4] ss:$8 sps:$4 sm:$0xff]  }
  0x48   : > { %635 = vmatpush1.bf16.msra.mxu0 %v951_v38  ;;  %v987_v0 = vld [vmem:[%s1220_s5 + $0xe0] ss:$8 sps:$4 sm:$0xff]   ;;  %v988_v1 = vld [vmem:[%s1220_s5 + $0xf4] ss:$8 sps:$4 sm:$0xff]   ;;  %v990_v2 = vld [vmem:[%s1220_s5 + $0xf0] ss:$8 sps:$4 sm:$0xff]  }
  0x49   : > { %636 = vmatprep.subr.bf16.mxu0 %v952_v39  ;;  %v428_v4 = vld [vmem:[#allocation2] sm:$0xff]  ;;  %v429_v5 = vld [vmem:[#allocation2 + $0x8] sm:$0xff]  ;;  %v684_v13 = vshrl.u32 (!%p880_p13), %v683_v12, 7 }
  0x4a   : > { %v681_v14 = vld [vmem:[%s410_s12] sm:$0x3] (!%p880_p13) }
  0x4b   : > { %v685_v15 = vsub.s32 (!%p880_p13), 0, %v684_v13  ;;  %v689_v16 = vsub.s32 (!%p880_p13), 1, %v684_v13 }
  0x4c   : > { %637 = vmatpush1.bf16.msra.mxu0 %v954_v40 }
  0x4d   : > { %638 = vmatprep.subr.bf16.mxu0 %v955_v41  ;;  %v686_v19 = vrot.slane (!%p880_p13), %v681_v14, %v685_v15  ;;  %v690_v20 = vrot.slane (!%p880_p13), %v681_v14, %v689_v16 }
  0x50   : > { %639 = vmatpush1.bf16.msra.mxu0 %v957_v42 }
  0x51   : > { %640 = vmatprep.subr.bf16.mxu0 %v958_v43 }
  0x54   : > { %641 = vmatpush1.bf16.msra.mxu0 %v960_v44 }
  0x55   : > { %642 = vmatprep.subr.bf16.mxu0 %v961_v45 }
  0x58   : > { %643 = vmatpush1.bf16.msra.mxu0 %v963_v48 }
  0x59   : > { %644 = vmatprep.subr.bf16.mxu0 %v964_v49 }
  0x5c   : > { %645 = vmatpush1.bf16.msra.mxu0 %v966_v50 }
  0x5d   : > { %646 = vmatprep.subr.bf16.mxu0 %v967_v51 }
  0x60   : > { %647 = vmatpush1.bf16.msra.mxu0 %v969_v52 }
  0x61   : > { %648 = vmatprep.subr.bf16.mxu0 %v970_v53 }
  0x64   : > { %649 = vmatpush1.bf16.msra.mxu0 %v972_v54 }
  0x65   : > { %650 = vmatprep.subr.bf16.mxu0 %v973_v55 }
  0x68   : > { %651 = vmatpush1.bf16.msra.mxu0 %v975_v56 }
  0x69   : > { %652 = vmatprep.subr.bf16.mxu0 %v976_v57 }
  0x6c   : > { %653 = vmatpush1.bf16.msra.mxu0 %v978_v58 }
  0x6d   : > { %654 = vmatprep.subr.bf16.mxu0 %v979_v59 }
  0x70   : > { %655 = vmatpush1.bf16.msra.mxu0 %v981_v60 }
  0x71   : > { %656 = vmatprep.subr.bf16.mxu0 %v982_v61 }
  0x74   : > { %657 = vmatpush1.bf16.msra.mxu0 %v984_v62 }
  0x75   : > { %658 = vmatprep.subr.bf16.mxu0 %v985_v63 }
  0x78   : > { %659 = vmatpush1.bf16.msra.mxu0 %v987_v0 }
  0x79   : > { %660 = vmatprep.subr.bf16.mxu0 %v988_v1 }
  0x7c   : > { %661 = vmatpush1.bf16.msra.mxu0 %v990_v2 }
  0x7f   : > { %663 = vmatmul.mubr.bf16.vlgmr.msra.gmra.mrb[0].mxu0 %v846_v3 }
 0x150   : > { %678 = sbr.rel (%p880_p13) target bundleno = 357 (0x165), region = 78 }
 0x152   : > { %v664_v6 = vpop.f32.mrb[0].mxu0 }
 0x153   : > { %v671_v7 = vadd.f32 %v664_v6, %v428_v4  ;;  %v666_v8 = vpop.f32.mrb[1].mxu0 }
 0x154   : > { %v672_v9 = vadd.f32 %v666_v8, %v429_v5  ;;  %v668_v10 = vpop.f32.mrb[2].mxu0 }
 0x155   : > { %673 = vst [vmem:[#allocation2] sm:$0xff] %v671_v7  ;;  %v669_v11 = vpop.f32.mrb[3].mxu0 }
 0x156   : > { %674 = vst [vmem:[#allocation2 + $0x8] sm:$0xff] %v672_v9 }
 0x15c   : > { %v679_v17 = vld [vmem:[#allocation2] sm:$0xff] }
 0x15d   : > { %v680_v18 = vld [vmem:[#allocation2 + $0x8] sm:$0xff]  ;;  %v693_v21 = vadd.f32 %v686_v19, %v679_v17 }
 0x15e   : > { %v694_v22 = vadd.f32 %v690_v20, %v680_v18 }
 0x15f   : > { %v695_v23 = vmax.f32 %v693_v21, 0.0 }
 0x160   : > { %v696_v24 = vmax.f32 %v694_v22, 0.0 }
 0x162   : > { %v885_v25 = vpack.c.bf16 %v696_v24, %v695_v23 }
 0x164   : > { %705 = vst [vmem:[%s1218_s15] sm:$0xff] %v885_v25 }
 0x165 PF: > { %s13_s18 = sadd.s32 1, %s1047_s18   ;;  %s1288_s12 = smov %s1027_s13 }
 0x166   : > { %p10_p0 = scmp.ge.s32.totalorder %s13_s18, 20   ;;  %s1289_s13 = smov %s1121_s25 }
 0x167   : > { %s1290_s14 = smov %s1039_s16  ;;  %s1291_s15 = smov %s1043_s17 }
 0x168   : > { %s1292_s16 = smov %s1295_s19  ;;  %s1293_s17 = smov %s1299_s20 }
 0x169   :  { %12 = sbr.rel (!%p10_p0) target bundleno = 4 (0x4), region = 119 }

// kernel: siamese_forward.37
= control target key start
LH: loop header
LB: loop body
LE: loop exit
PB: predicated region body
PF: predicated region fallthrough
CT: control target
= control target key end

     0   :  { %s1521_s12 = smov 0   ;;  %s1523_s13 = smov 0   ;;  %s1832_s0 = inlined_call_operand.vmem [shape: bf16[8,4608], index: 0, kind: input, shape index: {}]   ;;  %s1833_s1 = inlined_call_operand.vmem [shape: bf16[4608,512], index: 1, kind: input, shape index: {}]   ;;  %s1834_s2 = inlined_call_operand.vmem [shape: f32[1,512], index: 2, kind: input, shape index: {}]   ;;  %s1835_s3 = inlined_call_operand.vmem [shape: bf16[8,512], index: 3, kind: output, shape index: {}]  }
   0x1   :  { %s1525_s14 = smov 0   ;;  %s1527_s15 = smov 0  }
   0x2   :  { %s1529_s16 = smov 0   ;;  %s1531_s17 = smov 0  }
   0x3   :  { %s1533_s18 = smov 0  }
   0x4 LB: > { %s25_s19 = sadd.s32 1, %s1490_s16  ;;  %s28_s20 = sadd.s32 1, %s1494_s17  ;;  %s1498_s18 = sphi %s1533_s18, %s13_s18   ;;  %s1494_s17 = sphi %s1531_s17, %s1841_s17   ;;  %s1490_s16 = sphi %s1529_s16, %s1840_s16   ;;  %s1486_s15 = sphi %s1527_s15, %s1839_s15   ;;  %s1482_s14 = sphi %s1525_s14, %s1838_s14   ;;  %s1478_s13 = sphi %s1523_s13, %s1837_s13   ;;  %s1474_s12 = sphi %s1521_s12, %s1836_s12  }
   0x5   : > { %p26_p0 = scmp.ge.s32.totalorder %s25_s19, 9  ;;  %p76_p1 = scmp.ne.s32.totalorder %s1478_s13, %s1474_s12 }
   0x6   : > { %p77_p2 = scmp.eq.s32.totalorder %s1498_s18, 0  ;;  %s69_s24 = sadd.s32 1, %s1478_s13 }
   0x7   : > { %s1843_s19 = smov (%p26_p0, %s25_s19), 0  ;;  %s1845_s20 = smov (!%p26_p0, %s28_s20), %s1494_s17 }
   0x8   : > { %p78_p3 = por %p77_p2, %p76_p1  ;;  %p30_p4 = scmp.ge.s32.totalorder %s1845_s20, 2 }
   0x9   : > { %s64_s21 = ssub.s32 %s1490_s16, %s1843_s19  ;;  %p1199_p6 = scmp.ge.s32.totalorder %s1498_s18, 18 }
   0xa   : > { %s1847_s20 = smov (%p30_p4, %s1845_s20), 0 }
   0xb   : > { %s65_s22 = ssub.s32 %s1494_s17, %s1847_s20  ;;  %156 = sbr.rel (%p1199_p6) target bundleno = 57 (0x39), region = 16 }
   0xc   : > { %s66_s23 = sor.u32 %s65_s22, %s64_s21 }
   0xd   : > { %p67_p5 = scmp.eq.s32.totalorder %s66_s23, 0 }
   0xf   : > { %s1572_s25 = scalar_select %p67_p5, %s1478_s13, %s69_s24  }
  0x12   : > { %172 = sbr.rel (!%p78_p3) target bundleno = 57 (0x39), region = 24  ;;  %s174_s26 = sand.u32 (%p78_p3), 1, %s1478_s13  }
  0x13   : > { %s1202_s27 = sshll.u32 (%p78_p3), %s1494_s17, 1  ;;  %s1200_s28 = sshll.u32 (%p78_p3), %s174_s26, 9 }
  0x14   : > { %s1285_s29 = sshll.u32 (%p78_p3), %s1490_s16, 8  ;;  %s1586_s8 = scalar_lea.vmem (%p78_p3), [#allocation3], %s1200_s28 }
  0x15   : > { %s180_s30 = sadd.s32 (%p78_p3), %s1285_s29, %s1202_s27 }
  0x16   : > { %s1204_s4 = sshll.u32 (%p78_p3), %s180_s30, 2 }
  0x17   : > { %s1581_s7 = scalar_lea.vmem (%p78_p3), %s1833_s1, %s1204_s4 }
  0x18   : > { %v336_v0 = vld [vmem:[%s1581_s7] sm:$0xff] (%p78_p3)  ;;  %v338_v1 = vld [vmem:[%s1581_s7 + $0x10] sm:$0xff] (%p78_p3) }
  0x19   : > { %v340_v2 = vld [vmem:[%s1581_s7 + $0x20] sm:$0xff]  ;;  %337 = vst [vmem:[%s1586_s8] sm:$0xff] %v336_v0  ;;  %339 = vst [vmem:[%s1586_s8 + $0x8] sm:$0xff] %v338_v1  ;;  %v342_v3 = vld [vmem:[%s1581_s7 + $0x30] sm:$0xff] }
  0x1a   : > { %341 = vst [vmem:[%s1586_s8 + $0x10] sm:$0xff] %v340_v2  ;;  %v344_v4 = vld [vmem:[%s1581_s7 + $0x40] sm:$0xff]  ;;  %v346_v5 = vld [vmem:[%s1581_s7 + $0x50] sm:$0xff]  ;;  %343 = vst [vmem:[%s1586_s8 + $0x18] sm:$0xff] %v342_v3 }
  0x1b   : > { %345 = vst [vmem:[%s1586_s8 + $0x20] sm:$0xff] %v344_v4  ;;  %347 = vst [vmem:[%s1586_s8 + $0x28] sm:$0xff] %v346_v5  ;;  %v348_v6 = vld [vmem:[%s1581_s7 + $0x60] sm:$0xff]  ;;  %v350_v7 = vld [vmem:[%s1581_s7 + $0x70] sm:$0xff] }
  0x1c   : > { %v352_v8 = vld [vmem:[%s1581_s7 + $0x80] sm:$0xff]  ;;  %349 = vst [vmem:[%s1586_s8 + $0x30] sm:$0xff] %v348_v6  ;;  %351 = vst [vmem:[%s1586_s8 + $0x38] sm:$0xff] %v350_v7  ;;  %v354_v9 = vld [vmem:[%s1581_s7 + $0x90] sm:$0xff] }
  0x1d   : > { %353 = vst [vmem:[%s1586_s8 + $0x40] sm:$0xff] %v352_v8  ;;  %v356_v10 = vld [vmem:[%s1581_s7 + $0xa0] sm:$0xff]  ;;  %v358_v11 = vld [vmem:[%s1581_s7 + $0xb0] sm:$0xff]  ;;  %355 = vst [vmem:[%s1586_s8 + $0x48] sm:$0xff] %v354_v9 }
  0x1e   : > { %357 = vst [vmem:[%s1586_s8 + $0x50] sm:$0xff] %v356_v10  ;;  %359 = vst [vmem:[%s1586_s8 + $0x58] sm:$0xff] %v358_v11  ;;  %v360_v12 = vld [vmem:[%s1581_s7 + $0xc0] sm:$0xff]  ;;  %v362_v13 = vld [vmem:[%s1581_s7 + $0xd0] sm:$0xff] }
  0x1f   : > { %v364_v14 = vld [vmem:[%s1581_s7 + $0xe0] sm:$0xff]  ;;  %361 = vst [vmem:[%s1586_s8 + $0x60] sm:$0xff] %v360_v12  ;;  %363 = vst [vmem:[%s1586_s8 + $0x68] sm:$0xff] %v362_v13  ;;  %v366_v15 = vld [vmem:[%s1581_s7 + $0xf0] sm:$0xff] }
  0x20   : > { %365 = vst [vmem:[%s1586_s8 + $0x70] sm:$0xff] %v364_v14  ;;  %v368_v16 = vld [vmem:[%s1581_s7 + $0x100] sm:$0xff]  ;;  %v370_v17 = vld [vmem:[%s1581_s7 + $0x110] sm:$0xff]  ;;  %367 = vst [vmem:[%s1586_s8 + $0x78] sm:$0xff] %v366_v15 }
  0x21   : > { %369 = vst [vmem:[%s1586_s8 + $0x80] sm:$0xff] %v368_v16  ;;  %371 = vst [vmem:[%s1586_s8 + $0x88] sm:$0xff] %v370_v17  ;;  %v372_v18 = vld [vmem:[%s1581_s7 + $0x120] sm:$0xff]  ;;  %v374_v19 = vld [vmem:[%s1581_s7 + $0x130] sm:$0xff] }
  0x22   : > { %v376_v20 = vld [vmem:[%s1581_s7 + $0x140] sm:$0xff]  ;;  %373 = vst [vmem:[%s1586_s8 + $0x90] sm:$0xff] %v372_v18  ;;  %375 = vst [vmem:[%s1586_s8 + $0x98] sm:$0xff] %v374_v19  ;;  %v378_v21 = vld [vmem:[%s1581_s7 + $0x150] sm:$0xff] }
  0x23   : > { %377 = vst [vmem:[%s1586_s8 + $0xa0] sm:$0xff] %v376_v20  ;;  %v380_v22 = vld [vmem:[%s1581_s7 + $0x160] sm:$0xff]  ;;  %v382_v23 = vld [vmem:[%s1581_s7 + $0x170] sm:$0xff]  ;;  %379 = vst [vmem:[%s1586_s8 + $0xa8] sm:$0xff] %v378_v21 }
  0x24   : > { %381 = vst [vmem:[%s1586_s8 + $0xb0] sm:$0xff] %v380_v22  ;;  %383 = vst [vmem:[%s1586_s8 + $0xb8] sm:$0xff] %v382_v23  ;;  %v384_v24 = vld [vmem:[%s1581_s7 + $0x180] sm:$0xff]  ;;  %v386_v25 = vld [vmem:[%s1581_s7 + $0x190] sm:$0xff] }
  0x25   : > { %v388_v26 = vld [vmem:[%s1581_s7 + $0x1a0] sm:$0xff]  ;;  %385 = vst [vmem:[%s1586_s8 + $0xc0] sm:$0xff] %v384_v24  ;;  %387 = vst [vmem:[%s1586_s8 + $0xc8] sm:$0xff] %v386_v25  ;;  %v390_v27 = vld [vmem:[%s1581_s7 + $0x1b0] sm:$0xff] }
  0x26   : > { %389 = vst [vmem:[%s1586_s8 + $0xd0] sm:$0xff] %v388_v26  ;;  %v392_v28 = vld [vmem:[%s1581_s7 + $0x1c0] sm:$0xff]  ;;  %v394_v29 = vld [vmem:[%s1581_s7 + $0x1d0] sm:$0xff]  ;;  %391 = vst [vmem:[%s1586_s8 + $0xd8] sm:$0xff] %v390_v27 }
  0x27   : > { %393 = vst [vmem:[%s1586_s8 + $0xe0] sm:$0xff] %v392_v28  ;;  %395 = vst [vmem:[%s1586_s8 + $0xe8] sm:$0xff] %v394_v29  ;;  %v396_v30 = vld [vmem:[%s1581_s7 + $0x1e0] sm:$0xff]  ;;  %v398_v31 = vld [vmem:[%s1581_s7 + $0x1f0] sm:$0xff] }
  0x28   : > { %v400_v32 = vld [vmem:[%s1581_s7 + $0x200] sm:$0xff]  ;;  %397 = vst [vmem:[%s1586_s8 + $0xf0] sm:$0xff] %v396_v30  ;;  %399 = vst [vmem:[%s1586_s8 + $0xf8] sm:$0xff] %v398_v31  ;;  %v402_v33 = vld [vmem:[%s1581_s7 + $0x210] sm:$0xff] }
  0x29   : > { %401 = vst [vmem:[%s1586_s8 + $0x100] sm:$0xff] %v400_v32  ;;  %v404_v34 = vld [vmem:[%s1581_s7 + $0x220] sm:$0xff]  ;;  %v406_v35 = vld [vmem:[%s1581_s7 + $0x230] sm:$0xff]  ;;  %403 = vst [vmem:[%s1586_s8 + $0x108] sm:$0xff] %v402_v33 }
  0x2a   : > { %405 = vst [vmem:[%s1586_s8 + $0x110] sm:$0xff] %v404_v34  ;;  %407 = vst [vmem:[%s1586_s8 + $0x118] sm:$0xff] %v406_v35  ;;  %v408_v36 = vld [vmem:[%s1581_s7 + $0x240] sm:$0xff]  ;;  %v410_v37 = vld [vmem:[%s1581_s7 + $0x250] sm:$0xff] }
  0x2b   : > { %v412_v38 = vld [vmem:[%s1581_s7 + $0x260] sm:$0xff]  ;;  %409 = vst [vmem:[%s1586_s8 + $0x120] sm:$0xff] %v408_v36  ;;  %411 = vst [vmem:[%s1586_s8 + $0x128] sm:$0xff] %v410_v37  ;;  %v414_v39 = vld [vmem:[%s1581_s7 + $0x270] sm:$0xff] }
  0x2c   : > { %413 = vst [vmem:[%s1586_s8 + $0x130] sm:$0xff] %v412_v38  ;;  %v416_v40 = vld [vmem:[%s1581_s7 + $0x280] sm:$0xff]  ;;  %v418_v41 = vld [vmem:[%s1581_s7 + $0x290] sm:$0xff]  ;;  %415 = vst [vmem:[%s1586_s8 + $0x138] sm:$0xff] %v414_v39 }
  0x2d   : > { %417 = vst [vmem:[%s1586_s8 + $0x140] sm:$0xff] %v416_v40  ;;  %419 = vst [vmem:[%s1586_s8 + $0x148] sm:$0xff] %v418_v41  ;;  %v420_v42 = vld [vmem:[%s1581_s7 + $0x2a0] sm:$0xff]  ;;  %v422_v43 = vld [vmem:[%s1581_s7 + $0x2b0] sm:$0xff] }
  0x2e   : > { %v424_v44 = vld [vmem:[%s1581_s7 + $0x2c0] sm:$0xff]  ;;  %421 = vst [vmem:[%s1586_s8 + $0x150] sm:$0xff] %v420_v42  ;;  %423 = vst [vmem:[%s1586_s8 + $0x158] sm:$0xff] %v422_v43  ;;  %v426_v45 = vld [vmem:[%s1581_s7 + $0x2d0] sm:$0xff] }
  0x2f   : > { %425 = vst [vmem:[%s1586_s8 + $0x160] sm:$0xff] %v424_v44  ;;  %v428_v46 = vld [vmem:[%s1581_s7 + $0x2e0] sm:$0xff]  ;;  %v430_v47 = vld [vmem:[%s1581_s7 + $0x2f0] sm:$0xff]  ;;  %427 = vst [vmem:[%s1586_s8 + $0x168] sm:$0xff] %v426_v45 }
  0x30   : > { %429 = vst [vmem:[%s1586_s8 + $0x170] sm:$0xff] %v428_v46  ;;  %431 = vst [vmem:[%s1586_s8 + $0x178] sm:$0xff] %v430_v47  ;;  %v432_v48 = vld [vmem:[%s1581_s7 + $0x300] sm:$0xff]  ;;  %v434_v49 = vld [vmem:[%s1581_s7 + $0x310] sm:$0xff] }
  0x31   : > { %v436_v50 = vld [vmem:[%s1581_s7 + $0x320] sm:$0xff]  ;;  %433 = vst [vmem:[%s1586_s8 + $0x180] sm:$0xff] %v432_v48  ;;  %435 = vst [vmem:[%s1586_s8 + $0x188] sm:$0xff] %v434_v49  ;;  %v438_v51 = vld [vmem:[%s1581_s7 + $0x330] sm:$0xff] }
  0x32   : > { %437 = vst [vmem:[%s1586_s8 + $0x190] sm:$0xff] %v436_v50  ;;  %v440_v52 = vld [vmem:[%s1581_s7 + $0x340] sm:$0xff]  ;;  %v442_v53 = vld [vmem:[%s1581_s7 + $0x350] sm:$0xff]  ;;  %439 = vst [vmem:[%s1586_s8 + $0x198] sm:$0xff] %v438_v51 }
  0x33   : > { %441 = vst [vmem:[%s1586_s8 + $0x1a0] sm:$0xff] %v440_v52  ;;  %443 = vst [vmem:[%s1586_s8 + $0x1a8] sm:$0xff] %v442_v53  ;;  %v444_v54 = vld [vmem:[%s1581_s7 + $0x360] sm:$0xff]  ;;  %v446_v55 = vld [vmem:[%s1581_s7 + $0x370] sm:$0xff] }
  0x34   : > { %v448_v56 = vld [vmem:[%s1581_s7 + $0x380] sm:$0xff]  ;;  %445 = vst [vmem:[%s1586_s8 + $0x1b0] sm:$0xff] %v444_v54  ;;  %447 = vst [vmem:[%s1586_s8 + $0x1b8] sm:$0xff] %v446_v55  ;;  %v450_v57 = vld [vmem:[%s1581_s7 + $0x390] sm:$0xff] }
  0x35   : > { %449 = vst [vmem:[%s1586_s8 + $0x1c0] sm:$0xff] %v448_v56  ;;  %v452_v58 = vld [vmem:[%s1581_s7 + $0x3a0] sm:$0xff]  ;;  %v454_v59 = vld [vmem:[%s1581_s7 + $0x3b0] sm:$0xff]  ;;  %451 = vst [vmem:[%s1586_s8 + $0x1c8] sm:$0xff] %v450_v57 }
  0x36   : > { %453 = vst [vmem:[%s1586_s8 + $0x1d0] sm:$0xff] %v452_v58  ;;  %455 = vst [vmem:[%s1586_s8 + $0x1d8] sm:$0xff] %v454_v59  ;;  %v456_v60 = vld [vmem:[%s1581_s7 + $0x3c0] sm:$0xff]  ;;  %v458_v61 = vld [vmem:[%s1581_s7 + $0x3d0] sm:$0xff] }
  0x37   : > { %v460_v62 = vld [vmem:[%s1581_s7 + $0x3e0] sm:$0xff]  ;;  %457 = vst [vmem:[%s1586_s8 + $0x1e0] sm:$0xff] %v456_v60  ;;  %459 = vst [vmem:[%s1586_s8 + $0x1e8] sm:$0xff] %v458_v61  ;;  %v462_v63 = vld [vmem:[%s1581_s7 + $0x3f0] sm:$0xff] }
  0x38   : > { %461 = vst [vmem:[%s1586_s8 + $0x1f0] sm:$0xff] %v460_v62  ;;  %463 = vst [vmem:[%s1586_s8 + $0x1f8] sm:$0xff] %v462_v63 }
  0x39 PF: > { %p1205_p7 = scmp.ge.s32.totalorder %s1498_s18, 1  ;;  %p476_p8 = scmp.lt.s32.totalorder %s1498_s18, 19 }
  0x3b   : > { %p477_p9 = pnand %p1205_p7, %p476_p8 }
  0x3c   : > { %s483_s9 = sand.u32 (!%p477_p9), 1, %s1474_s12   ;;  %s1207_s10 = sshll.u32 (!%p477_p9), %s1482_s14, 2 }
  0x3d   : > { %480 = sbr.rel (%p477_p9) target bundleno = 374 (0x176), region = 66  ;;  %s1206_s11 = sshll.u32 (!%p477_p9), %s483_s9, 9 }
  0x3e   : > { %p526_p10 = scmp.lt.s32.totalorder (!%p477_p9), %s1207_s10, 35  ;;  %s1209_s21 = sshll.u32 (!%p477_p9), %s1486_s15, 1 }
  0x3f   : > { %p536_p11 = scmp.lt.s32.totalorder (!%p477_p9), %s1209_s21, 3  ;;  %s1735_s5 = scalar_lea.vmem (!%p477_p9), [#allocation3], %s1206_s11 }
  0x40   : > { %p1212_p12 = scmp.ne.s32.totalorder (!%p477_p9), %s1482_s14, 0 }
  0x44   : > { %s1849_s10 = smov (!%p526_p10, %s1207_s10), 35  ;;  %s1851_s21 = smov (!%p536_p11, %s1209_s21), 3 }
  0x45   : > { %s1208_s22 = sshll.u32 %s1849_s10, 2  ;;  %s538_s12 = scalar_lea.vmem %s1834_s2, %s1851_s21  ;;  %v1500_v0 = vmov (!%p1212_p12), 0.0  }
  0x46   : > { %s1721_s26 = scalar_lea.vmem %s1832_s0, %s1208_s22  ;;  %s1211_s29 = sshll.u32 %s1851_s21, 2  ;;  %554 = vst [vmem:[#allocation2] sm:$0xff] (!%p1212_p12), %v1500_v0  ;;  %555 = vst [vmem:[#allocation2 + $0x8] sm:$0xff] (!%p1212_p12), %v1500_v0 }
  0x47   : > { %s1733_s15 = scalar_lea.vmem %s1835_s3, %s1211_s29  ;;  %553 = sbr.rel (%p1212_p12) target bundleno = 78 (0x4e), region = 74 }
  0x4e PF: > { %v1344_v1 = vld [vmem:[%s1735_s5 + $0x4] ss:$8 sps:$4 sm:$0xff]   ;;  %v1348_v3 = vld [vmem:[%s1735_s5] ss:$8 sps:$4 sm:$0xff]   ;;  %v1350_v5 = vld [vmem:[%s1735_s5 + $0x14] ss:$8 sps:$4 sm:$0xff]  }
  0x4f   : > { %v1346_v2 = vld [vmem:[%s1735_s5 + $0x104] ss:$8 sps:$4 sm:$0xff]   ;;  %958 = vmatprep.subr.bf16.mxu0 %v1344_v1  ;;  %v1349_v4 = vld [vmem:[%s1735_s5 + $0x100] ss:$8 sps:$4 sm:$0xff]   ;;  %v1352_v6 = vld [vmem:[%s1735_s5 + $0x114] ss:$8 sps:$4 sm:$0xff]  }
  0x50   : > { %999 = vmatprep.subr.bf16.mxu1 %v1346_v2  ;;  %959 = vmatpush1.bf16.msra.mxu0 %v1348_v3  ;;  %v1354_v7 = vld [vmem:[%s1735_s5 + $0x10] ss:$8 sps:$4 sm:$0xff]   ;;  %v1356_v9 = vld [vmem:[%s1735_s5 + $0x24] ss:$8 sps:$4 sm:$0xff]   ;;  %v1360_v11 = vld [vmem:[%s1735_s5 + $0x20] ss:$8 sps:$4 sm:$0xff]  }
  0x51   : > { %1000 = vmatpush1.bf16.msra.mxu1 %v1349_v4  ;;  %960 = vmatprep.subr.bf16.mxu0 %v1350_v5  ;;  %v1355_v8 = vld [vmem:[%s1735_s5 + $0x110] ss:$8 sps:$4 sm:$0xff]   ;;  %v1358_v10 = vld [vmem:[%s1735_s5 + $0x124] ss:$8 sps:$4 sm:$0xff]   ;;  %v1361_v12 = vld [vmem:[%s1735_s5 + $0x120] ss:$8 sps:$4 sm:$0xff]  }
  0x52   : > { %1001 = vmatprep.subr.bf16.mxu1 %v1352_v6  ;;  %v1362_v13 = vld [vmem:[%s1735_s5 + $0x34] ss:$8 sps:$4 sm:$0xff]   ;;  %v1366_v15 = vld [vmem:[%s1735_s5 + $0x30] ss:$8 sps:$4 sm:$0xff]   ;;  %v1368_v17 = vld [vmem:[%s1735_s5 + $0x44] ss:$8 sps:$4 sm:$0xff]  }
  0x53   : > { %v1364_v14 = vld [vmem:[%s1735_s5 + $0x134] ss:$8 sps:$4 sm:$0xff]   ;;  %v1367_v16 = vld [vmem:[%s1735_s5 + $0x130] ss:$8 sps:$4 sm:$0xff]   ;;  %v1370_v18 = vld [vmem:[%s1735_s5 + $0x144] ss:$8 sps:$4 sm:$0xff]  }
  0x54   : > { %961 = vmatpush1.bf16.msra.mxu0 %v1354_v7  ;;  %v1372_v19 = vld [vmem:[%s1735_s5 + $0x40] ss:$8 sps:$4 sm:$0xff]   ;;  %v1374_v21 = vld [vmem:[%s1735_s5 + $0x54] ss:$8 sps:$4 sm:$0xff]   ;;  %v1378_v23 = vld [vmem:[%s1735_s5 + $0x50] ss:$8 sps:$4 sm:$0xff]  }
  0x55   : > { %1002 = vmatpush1.bf16.msra.mxu1 %v1355_v8  ;;  %962 = vmatprep.subr.bf16.mxu0 %v1356_v9  ;;  %v1373_v20 = vld [vmem:[%s1735_s5 + $0x140] ss:$8 sps:$4 sm:$0xff]   ;;  %v1376_v22 = vld [vmem:[%s1735_s5 + $0x154] ss:$8 sps:$4 sm:$0xff]   ;;  %v1379_v24 = vld [vmem:[%s1735_s5 + $0x150] ss:$8 sps:$4 sm:$0xff]  }
  0x56   : > { %1003 = vmatprep.subr.bf16.mxu1 %v1358_v10  ;;  %v1380_v25 = vld [vmem:[%s1735_s5 + $0x64] ss:$8 sps:$4 sm:$0xff]   ;;  %v1384_v27 = vld [vmem:[%s1735_s5 + $0x60] ss:$8 sps:$4 sm:$0xff]   ;;  %v1386_v29 = vld [vmem:[%s1735_s5 + $0x74] ss:$8 sps:$4 sm:$0xff]  }
  0x57   : > { %v1382_v26 = vld [vmem:[%s1735_s5 + $0x164] ss:$8 sps:$4 sm:$0xff]   ;;  %v1385_v28 = vld [vmem:[%s1735_s5 + $0x160] ss:$8 sps:$4 sm:$0xff]   ;;  %v1388_v30 = vld [vmem:[%s1735_s5 + $0x174] ss:$8 sps:$4 sm:$0xff]  }
  0x58   : > { %963 = vmatpush1.bf16.msra.mxu0 %v1360_v11  ;;  %v1390_v31 = vld [vmem:[%s1735_s5 + $0x70] ss:$8 sps:$4 sm:$0xff]   ;;  %v1392_v33 = vld [vmem:[%s1735_s5 + $0x84] ss:$8 sps:$4 sm:$0xff]   ;;  %v1396_v35 = vld [vmem:[%s1735_s5 + $0x80] ss:$8 sps:$4 sm:$0xff]  }
  0x59   : > { %1004 = vmatpush1.bf16.msra.mxu1 %v1361_v12  ;;  %964 = vmatprep.subr.bf16.mxu0 %v1362_v13  ;;  %v1391_v32 = vld [vmem:[%s1735_s5 + $0x170] ss:$8 sps:$4 sm:$0xff]   ;;  %v1394_v34 = vld [vmem:[%s1735_s5 + $0x184] ss:$8 sps:$4 sm:$0xff]   ;;  %v1397_v36 = vld [vmem:[%s1735_s5 + $0x180] ss:$8 sps:$4 sm:$0xff]  }
  0x5a   : > { %1005 = vmatprep.subr.bf16.mxu1 %v1364_v14  ;;  %v1398_v37 = vld [vmem:[%s1735_s5 + $0x94] ss:$8 sps:$4 sm:$0xff]   ;;  %v1402_v39 = vld [vmem:[%s1735_s5 + $0x90] ss:$8 sps:$4 sm:$0xff]   ;;  %v1404_v41 = vld [vmem:[%s1735_s5 + $0xa4] ss:$8 sps:$4 sm:$0xff]  }
  0x5b   : > { %v1400_v38 = vld [vmem:[%s1735_s5 + $0x194] ss:$8 sps:$4 sm:$0xff]   ;;  %v1403_v40 = vld [vmem:[%s1735_s5 + $0x190] ss:$8 sps:$4 sm:$0xff]   ;;  %v1406_v42 = vld [vmem:[%s1735_s5 + $0x1a4] ss:$8 sps:$4 sm:$0xff]  }
  0x5c   : > { %965 = vmatpush1.bf16.msra.mxu0 %v1366_v15  ;;  %v1408_v43 = vld [vmem:[%s1735_s5 + $0xa0] ss:$8 sps:$4 sm:$0xff]   ;;  %v1410_v45 = vld [vmem:[%s1735_s5 + $0xb4] ss:$8 sps:$4 sm:$0xff]   ;;  %v1414_v50 = vld [vmem:[%s1735_s5 + $0xb0] ss:$8 sps:$4 sm:$0xff]  }
  0x5d   : > { %1006 = vmatpush1.bf16.msra.mxu1 %v1367_v16  ;;  %966 = vmatprep.subr.bf16.mxu0 %v1368_v17  ;;  %v1409_v44 = vld [vmem:[%s1735_s5 + $0x1a0] ss:$8 sps:$4 sm:$0xff]   ;;  %v1412_v46 = vld [vmem:[%s1735_s5 + $0x1b4] ss:$8 sps:$4 sm:$0xff]   ;;  %v1415_v51 = vld [vmem:[%s1735_s5 + $0x1b0] ss:$8 sps:$4 sm:$0xff]  }
  0x5e   : > { %1007 = vmatprep.subr.bf16.mxu1 %v1370_v18  ;;  %v558_v47 = vld [vmem:[%s1721_s26] sm:$0xff]  ;;  %v559_v49 = vld [vmem:[%s1721_s26 + $0x8] sm:$0xff]  ;;  %v1416_v53 = vld [vmem:[%s1735_s5 + $0xc4] ss:$8 sps:$4 sm:$0xff]   ;;  %p1281_p13 = scmp.ne.s32.totalorder %s1482_s14, 8 }
  0x5f   : > { %v1214_v48 = vcombine.high %v558_v47, %v558_v47  ;;  %v1216_v52 = vcombine.high %v559_v49, %v559_v49  ;;  %v1418_v54 = vld [vmem:[%s1735_s5 + $0x1c4] ss:$8 sps:$4 sm:$0xff]   ;;  %v1420_v55 = vld [vmem:[%s1735_s5 + $0xc0] ss:$8 sps:$4 sm:$0xff]   ;;  %v1422_v57 = vld [vmem:[%s1735_s5 + $0xd4] ss:$8 sps:$4 sm:$0xff]   ;;  %v1213_v5 = vcombine.low %v558_v47, %v558_v47  ;;  %v1215_v6 = vcombine.low %v559_v49, %v559_v49 }
  0x60   : > { %967 = vmatpush1.bf16.msra.mxu0 %v1372_v19  ;;  %v1421_v56 = vld [vmem:[%s1735_s5 + $0x1c0] ss:$8 sps:$4 sm:$0xff]   ;;  %v1424_v58 = vld [vmem:[%s1735_s5 + $0x1d4] ss:$8 sps:$4 sm:$0xff]   ;;  %v1426_v59 = vld [vmem:[%s1735_s5 + $0xd0] ss:$8 sps:$4 sm:$0xff]  }
  0x61   : > { %1008 = vmatpush1.bf16.msra.mxu1 %v1373_v20  ;;  %968 = vmatprep.subr.bf16.mxu0 %v1374_v21  ;;  %v1427_v60 = vld [vmem:[%s1735_s5 + $0x1d0] ss:$8 sps:$4 sm:$0xff]   ;;  %v1428_v61 = vld [vmem:[%s1735_s5 + $0xe4] ss:$8 sps:$4 sm:$0xff]   ;;  %v1432_v63 = vld [vmem:[%s1735_s5 + $0xe0] ss:$8 sps:$4 sm:$0xff]   ;;  %v1052_v21 = vlaneseq (!%p1281_p13) }
  0x62   : > { %1009 = vmatprep.subr.bf16.mxu1 %v1376_v22  ;;  %990 = vmatprep.mubr.bf16.mxu0 %v1214_v48  ;;  %v1430_v62 = vld [vmem:[%s1735_s5 + $0x1e4] ss:$8 sps:$4 sm:$0xff]   ;;  %v1433_v0 = vld [vmem:[%s1735_s5 + $0x1e0] ss:$8 sps:$4 sm:$0xff]   ;;  %v1434_v1 = vld [vmem:[%s1735_s5 + $0xf4] ss:$8 sps:$4 sm:$0xff]  }
  0x63   : > { %1031 = vmatprep.mubr.bf16.mxu1 %v1216_v52  ;;  %v1436_v2 = vld [vmem:[%s1735_s5 + $0x1f4] ss:$8 sps:$4 sm:$0xff]   ;;  %v1438_v3 = vld [vmem:[%s1735_s5 + $0xf0] ss:$8 sps:$4 sm:$0xff]   ;;  %v1053_v22 = vshrl.u32 (!%p1281_p13), %v1052_v21, 7 }
  0x64   : > { %969 = vmatpush1.bf16.msra.mxu0 %v1378_v23  ;;  %v1439_v4 = vld [vmem:[%s1735_s5 + $0x1f0] ss:$8 sps:$4 sm:$0xff]  }
  0x65   : > { %1010 = vmatpush1.bf16.msra.mxu1 %v1379_v24  ;;  %970 = vmatprep.subr.bf16.mxu0 %v1380_v25  ;;  %v556_v8 = vld [vmem:[#allocation2] sm:$0xff]  ;;  %v557_v12 = vld [vmem:[#allocation2 + $0x8] sm:$0xff]  ;;  %v1054_v24 = vsub.s32 (!%p1281_p13), 0, %v1053_v22  ;;  %v1058_v25 = vsub.s32 (!%p1281_p13), 1, %v1053_v22 }
  0x66   : > { %1011 = vmatprep.subr.bf16.mxu1 %v1382_v26  ;;  %v1050_v23 = vld [vmem:[%s538_s12] sm:$0x3] (!%p1281_p13) }
  0x68   : > { %971 = vmatpush1.bf16.msra.mxu0 %v1384_v27 }
  0x69   : > { %1012 = vmatpush1.bf16.msra.mxu1 %v1385_v28  ;;  %972 = vmatprep.subr.bf16.mxu0 %v1386_v29  ;;  %v1055_v28 = vrot.slane (!%p1281_p13), %v1050_v23, %v1054_v24  ;;  %v1059_v29 = vrot.slane (!%p1281_p13), %v1050_v23, %v1058_v25 }
  0x6a   : > { %1013 = vmatprep.subr.bf16.mxu1 %v1388_v30 }
  0x6c   : > { %973 = vmatpush1.bf16.msra.mxu0 %v1390_v31 }
  0x6d   : > { %1014 = vmatpush1.bf16.msra.mxu1 %v1391_v32  ;;  %974 = vmatprep.subr.bf16.mxu0 %v1392_v33 }
  0x6e   : > { %1015 = vmatprep.subr.bf16.mxu1 %v1394_v34 }
  0x70   : > { %975 = vmatpush1.bf16.msra.mxu0 %v1396_v35 }
  0x71   : > { %1016 = vmatpush1.bf16.msra.mxu1 %v1397_v36  ;;  %976 = vmatprep.subr.bf16.mxu0 %v1398_v37 }
  0x72   : > { %1017 = vmatprep.subr.bf16.mxu1 %v1400_v38 }
  0x74   : > { %977 = vmatpush1.bf16.msra.mxu0 %v1402_v39 }
  0x75   : > { %1018 = vmatpush1.bf16.msra.mxu1 %v1403_v40  ;;  %978 = vmatprep.subr.bf16.mxu0 %v1404_v41 }
  0x76   : > { %1019 = vmatprep.subr.bf16.mxu1 %v1406_v42 }
  0x78   : > { %979 = vmatpush1.bf16.msra.mxu0 %v1408_v43 }
  0x79   : > { %1020 = vmatpush1.bf16.msra.mxu1 %v1409_v44  ;;  %980 = vmatprep.subr.bf16.mxu0 %v1410_v45 }
  0x7a   : > { %1021 = vmatprep.subr.bf16.mxu1 %v1412_v46 }
  0x7c   : > { %981 = vmatpush1.bf16.msra.mxu0 %v1414_v50 }
  0x7d   : > { %1022 = vmatpush1.bf16.msra.mxu1 %v1415_v51  ;;  %982 = vmatprep.subr.bf16.mxu0 %v1416_v53 }
  0x7e   : > { %1023 = vmatprep.subr.bf16.mxu1 %v1418_v54 }
  0x80   : > { %983 = vmatpush1.bf16.msra.mxu0 %v1420_v55 }
  0x81   : > { %1024 = vmatpush1.bf16.msra.mxu1 %v1421_v56  ;;  %984 = vmatprep.subr.bf16.mxu0 %v1422_v57 }
  0x82   : > { %1025 = vmatprep.subr.bf16.mxu1 %v1424_v58 }
  0x84   : > { %985 = vmatpush1.bf16.msra.mxu0 %v1426_v59 }
  0x85   : > { %1026 = vmatpush1.bf16.msra.mxu1 %v1427_v60  ;;  %986 = vmatprep.subr.bf16.mxu0 %v1428_v61 }
  0x86   : > { %1027 = vmatprep.subr.bf16.mxu1 %v1430_v62 }
  0x88   : > { %987 = vmatpush1.bf16.msra.mxu0 %v1432_v63 }
  0x89   : > { %1028 = vmatpush1.bf16.msra.mxu1 %v1433_v0  ;;  %988 = vmatprep.subr.bf16.mxu0 %v1434_v1 }
  0x8a   : > { %1029 = vmatprep.subr.bf16.mxu1 %v1436_v2 }
  0x8c   : > { %989 = vmatpush1.bf16.msra.mxu0 %v1438_v3 }
  0x8d   : > { %1030 = vmatpush1.bf16.msra.mxu1 %v1439_v4 }
  0x8f   : > { %991 = vmatmul.mubr.bf16.vlgmr.msra.gmra.mrb[0].mxu0 %v1213_v5 }
  0x90   : > { %1032 = vmatmul.mubr.bf16.vlgmr.msra.gmra.mrb[0].mxu1 %v1215_v6 }
 0x162   : > { %v992_v7 = vpop.f32.mrb[0].mxu0 }
 0x163   : > { %v1033_v9 = vpop.f32.mrb[0].mxu1  ;;  %v994_v11 = vpop.f32.mrb[1].mxu0  ;;  %1047 = sbr.rel (%p1281_p13) target bundleno = 374 (0x176), region = 78 }
 0x164   : > { %v1034_v10 = vadd.f32 %v1033_v9, %v992_v7  ;;  %v1035_v13 = vpop.f32.mrb[1].mxu1  ;;  %v996_v15 = vpop.f32.mrb[2].mxu0 }
 0x165   : > { %v1036_v14 = vadd.f32 %v1035_v13, %v994_v11  ;;  %v1037_v16 = vpop.f32.mrb[2].mxu1  ;;  %v997_v18 = vpop.f32.mrb[3].mxu0 }
 0x166   : > { %v1040_v17 = vadd.f32 %v1034_v10, %v556_v8  ;;  %v1038_v19 = vpop.f32.mrb[3].mxu1 }
 0x167   : > { %v1041_v20 = vadd.f32 %v1036_v14, %v557_v12 }
 0x168   : > { %1042 = vst [vmem:[#allocation2] sm:$0xff] %v1040_v17 }
 0x169   : > { %1043 = vst [vmem:[#allocation2 + $0x8] sm:$0xff] %v1041_v20 }
 0x16f   : > { %v1048_v26 = vld [vmem:[#allocation2] sm:$0xff] }
 0x170   : > { %v1049_v27 = vld [vmem:[#allocation2 + $0x8] sm:$0xff]  ;;  %v1062_v30 = vadd.f32 %v1055_v28, %v1048_v26 }
 0x171   : > { %v1063_v31 = vadd.f32 %v1059_v29, %v1049_v27 }
 0x173   : > { %v1286_v32 = vpack.c.bf16 %v1063_v31, %v1062_v30 }
 0x175   : > { %1072 = vst [vmem:[%s1733_s15] sm:$0xff] %v1286_v32 }
 0x176 PF: > { %s13_s18 = sadd.s32 1, %s1498_s18   ;;  %s1836_s12 = smov %s1478_s13 }
 0x177   : > { %p10_p0 = scmp.ge.s32.totalorder %s13_s18, 20   ;;  %s1837_s13 = smov %s1572_s25 }
 0x178   : > { %s1838_s14 = smov %s1490_s16  ;;  %s1839_s15 = smov %s1494_s17 }
 0x179   : > { %s1840_s16 = smov %s1843_s19  ;;  %s1841_s17 = smov %s1847_s20 }
 0x17a   :  { %12 = sbr.rel (!%p10_p0) target bundleno = 4 (0x4), region = 119 }

// kernel: siamese_forward.38
= control target key start
LH: loop header
LB: loop body
LE: loop exit
PB: predicated region body
PF: predicated region fallthrough
CT: control target
= control target key end

     0   :  { %s1028_s12 = smov 0   ;;  %s1030_s13 = smov 0   ;;  %s1207_s0 = inlined_call_operand.vmem [shape: bf16[8,256], index: 0, kind: input, shape index: {}]   ;;  %s1208_s1 = inlined_call_operand.vmem [shape: bf16[256,512], index: 1, kind: input, shape index: {}]   ;;  %s1209_s2 = inlined_call_operand.vmem [shape: f32[1,512], index: 2, kind: input, shape index: {}]   ;;  %s1210_s3 = inlined_call_operand.vmem [shape: bf16[8,512], index: 3, kind: output, shape index: {}]  }
   0x1   :  { %s1032_s14 = smov 0   ;;  %s1034_s15 = smov 0  }
   0x2   :  { %s1036_s16 = smov 0  }
   0x3 LB: > { %s28_s17 = sadd.s32 1, %s1002_s15  ;;  %p76_p1 = scmp.ne.s32.totalorder %s994_s13, %s990_s12  ;;  %s1006_s16 = sphi %s1036_s16, %s13_s16   ;;  %s1002_s15 = sphi %s1034_s15, %s1214_s15   ;;  %s998_s14 = sphi %s1032_s14, %s1213_s14   ;;  %s994_s13 = sphi %s1030_s13, %s1212_s13   ;;  %s990_s12 = sphi %s1028_s12, %s1211_s12  }
   0x4   : > { %p30_p0 = scmp.ge.s32.totalorder %s28_s17, 2  ;;  %p77_p2 = scmp.eq.s32.totalorder %s1006_s16, 0 }
   0x5   : > { %s69_s19 = sadd.s32 1, %s994_s13  ;;  %p830_p5 = scmp.ge.s32.totalorder %s1006_s16, 2 }
   0x6   : > { %s1216_s17 = smov (%p30_p0, %s28_s17), 0  ;;  %p78_p3 = por %p77_p2, %p76_p1 }
   0x7   : > { %s65_s18 = ssub.s32 %s1002_s15, %s1216_s17  ;;  %169 = sbr.rel (%p830_p5) target bundleno = 34 (0x22), region = 20 }
   0x8   : > { %p67_p4 = scmp.eq.s32.totalorder %s65_s18, 0 }
   0xa   : > { %s1063_s20 = scalar_select %p67_p4, %s994_s13, %s69_s19  }
   0xe   : > { %172 = sbr.rel (!%p78_p3) target bundleno = 34 (0x22), region = 24  ;;  %s174_s21 = sand.u32 (%p78_p3), 1, %s994_s13  }
   0xf   : > { %s876_s22 = sshll.u32 (%p78_p3), %s1002_s15, 3  ;;  %s831_s23 = sshll.u32 (%p78_p3), %s174_s21, 8 }
  0x10   : > { %s1071_s26 = scalar_lea.vmem (%p78_p3), %s1208_s1, %s876_s22  ;;  %s1076_s27 = scalar_lea.vmem (%p78_p3), [#allocation3], %s831_s23 }
  0x11   : > { %v272_v0 = vld [vmem:[%s1071_s26] sm:$0xff] (%p78_p3)  ;;  %v274_v1 = vld [vmem:[%s1071_s26 + $0x10] sm:$0xff] (%p78_p3) }
  0x12   : > { %v276_v2 = vld [vmem:[%s1071_s26 + $0x20] sm:$0xff] (%p78_p3)  ;;  %273 = vst [vmem:[%s1076_s27] sm:$0xff] (%p78_p3), %v272_v0  ;;  %275 = vst [vmem:[%s1076_s27 + $0x8] sm:$0xff] (%p78_p3), %v274_v1  ;;  %v278_v3 = vld [vmem:[%s1071_s26 + $0x30] sm:$0xff] (%p78_p3) }
  0x13   : > { %277 = vst [vmem:[%s1076_s27 + $0x10] sm:$0xff] (%p78_p3), %v276_v2  ;;  %v280_v4 = vld [vmem:[%s1071_s26 + $0x40] sm:$0xff] (%p78_p3)  ;;  %v282_v5 = vld [vmem:[%s1071_s26 + $0x50] sm:$0xff] (%p78_p3)  ;;  %279 = vst [vmem:[%s1076_s27 + $0x18] sm:$0xff] (%p78_p3), %v278_v3 }
  0x14   : > { %281 = vst [vmem:[%s1076_s27 + $0x20] sm:$0xff] (%p78_p3), %v280_v4  ;;  %283 = vst [vmem:[%s1076_s27 + $0x28] sm:$0xff] (%p78_p3), %v282_v5  ;;  %v284_v6 = vld [vmem:[%s1071_s26 + $0x60] sm:$0xff] (%p78_p3)  ;;  %v286_v7 = vld [vmem:[%s1071_s26 + $0x70] sm:$0xff] (%p78_p3) }
  0x15   : > { %v288_v8 = vld [vmem:[%s1071_s26 + $0x80] sm:$0xff]  ;;  %285 = vst [vmem:[%s1076_s27 + $0x30] sm:$0xff] %v284_v6  ;;  %287 = vst [vmem:[%s1076_s27 + $0x38] sm:$0xff] %v286_v7  ;;  %v290_v9 = vld [vmem:[%s1071_s26 + $0x90] sm:$0xff] }
  0x16   : > { %289 = vst [vmem:[%s1076_s27 + $0x40] sm:$0xff] %v288_v8  ;;  %v292_v10 = vld [vmem:[%s1071_s26 + $0xa0] sm:$0xff]  ;;  %v294_v11 = vld [vmem:[%s1071_s26 + $0xb0] sm:$0xff]  ;;  %291 = vst [vmem:[%s1076_s27 + $0x48] sm:$0xff] %v290_v9 }
  0x17   : > { %293 = vst [vmem:[%s1076_s27 + $0x50] sm:$0xff] %v292_v10  ;;  %295 = vst [vmem:[%s1076_s27 + $0x58] sm:$0xff] %v294_v11  ;;  %v296_v12 = vld [vmem:[%s1071_s26 + $0xc0] sm:$0xff]  ;;  %v298_v13 = vld [vmem:[%s1071_s26 + $0xd0] sm:$0xff] }
  0x18   : > { %v300_v14 = vld [vmem:[%s1071_s26 + $0xe0] sm:$0xff]  ;;  %297 = vst [vmem:[%s1076_s27 + $0x60] sm:$0xff] %v296_v12  ;;  %299 = vst [vmem:[%s1076_s27 + $0x68] sm:$0xff] %v298_v13  ;;  %v302_v15 = vld [vmem:[%s1071_s26 + $0xf0] sm:$0xff] }
  0x19   : > { %301 = vst [vmem:[%s1076_s27 + $0x70] sm:$0xff] %v300_v14  ;;  %v304_v16 = vld [vmem:[%s1071_s26 + $0x100] sm:$0xff]  ;;  %v306_v17 = vld [vmem:[%s1071_s26 + $0x110] sm:$0xff]  ;;  %303 = vst [vmem:[%s1076_s27 + $0x78] sm:$0xff] %v302_v15 }
  0x1a   : > { %305 = vst [vmem:[%s1076_s27 + $0x80] sm:$0xff] %v304_v16  ;;  %307 = vst [vmem:[%s1076_s27 + $0x88] sm:$0xff] %v306_v17  ;;  %v308_v18 = vld [vmem:[%s1071_s26 + $0x120] sm:$0xff]  ;;  %v310_v19 = vld [vmem:[%s1071_s26 + $0x130] sm:$0xff] }
  0x1b   : > { %v312_v20 = vld [vmem:[%s1071_s26 + $0x140] sm:$0xff]  ;;  %309 = vst [vmem:[%s1076_s27 + $0x90] sm:$0xff] %v308_v18  ;;  %311 = vst [vmem:[%s1076_s27 + $0x98] sm:$0xff] %v310_v19  ;;  %v314_v21 = vld [vmem:[%s1071_s26 + $0x150] sm:$0xff] }
  0x1c   : > { %313 = vst [vmem:[%s1076_s27 + $0xa0] sm:$0xff] %v312_v20  ;;  %v316_v22 = vld [vmem:[%s1071_s26 + $0x160] sm:$0xff]  ;;  %v318_v23 = vld [vmem:[%s1071_s26 + $0x170] sm:$0xff]  ;;  %315 = vst [vmem:[%s1076_s27 + $0xa8] sm:$0xff] %v314_v21 }
  0x1d   : > { %317 = vst [vmem:[%s1076_s27 + $0xb0] sm:$0xff] %v316_v22  ;;  %319 = vst [vmem:[%s1076_s27 + $0xb8] sm:$0xff] %v318_v23  ;;  %v320_v24 = vld [vmem:[%s1071_s26 + $0x180] sm:$0xff]  ;;  %v322_v25 = vld [vmem:[%s1071_s26 + $0x190] sm:$0xff] }
  0x1e   : > { %v324_v26 = vld [vmem:[%s1071_s26 + $0x1a0] sm:$0xff]  ;;  %321 = vst [vmem:[%s1076_s27 + $0xc0] sm:$0xff] %v320_v24  ;;  %323 = vst [vmem:[%s1076_s27 + $0xc8] sm:$0xff] %v322_v25  ;;  %v326_v27 = vld [vmem:[%s1071_s26 + $0x1b0] sm:$0xff] }
  0x1f   : > { %325 = vst [vmem:[%s1076_s27 + $0xd0] sm:$0xff] %v324_v26  ;;  %v328_v28 = vld [vmem:[%s1071_s26 + $0x1c0] sm:$0xff]  ;;  %v330_v29 = vld [vmem:[%s1071_s26 + $0x1d0] sm:$0xff]  ;;  %327 = vst [vmem:[%s1076_s27 + $0xd8] sm:$0xff] %v326_v27 }
  0x20   : > { %329 = vst [vmem:[%s1076_s27 + $0xe0] sm:$0xff] %v328_v28  ;;  %331 = vst [vmem:[%s1076_s27 + $0xe8] sm:$0xff] %v330_v29  ;;  %v332_v30 = vld [vmem:[%s1071_s26 + $0x1e0] sm:$0xff]  ;;  %v334_v31 = vld [vmem:[%s1071_s26 + $0x1f0] sm:$0xff] }
  0x21   : > { %333 = vst [vmem:[%s1076_s27 + $0xf0] sm:$0xff] %v332_v30  ;;  %335 = vst [vmem:[%s1076_s27 + $0xf8] sm:$0xff] %v334_v31 }
  0x22 PF: > { %p834_p6 = scmp.ge.s32.totalorder %s1006_s16, 1  ;;  %p348_p7 = scmp.lt.s32.totalorder %s1006_s16, 3 }
  0x24   : > { %p349_p8 = pnand %p834_p6, %p348_p7 }
  0x25   : > { %s355_s28 = sand.u32 (!%p349_p8), 1, %s990_s12   ;;  %v1145_v32 = vld [vmem:[%s1207_s0] sm:$0xff] (!%p349_p8)  ;;  %s836_s6 = sshll.u32 (!%p349_p8), %s998_s14, 1  ;;  %v682_v3 = vlaneseq (!%p349_p8) }
  0x26   : > { %352 = sbr.rel (%p349_p8) target bundleno = 323 (0x143), region = 66  ;;  %s835_s4 = sshll.u32 (!%p349_p8), %s355_s28, 8  ;;  %v840_v33 = vcombine.high (!%p349_p8), %v1145_v32, %v1145_v32  ;;  %v839_v2 = vcombine.low (!%p349_p8), %v1145_v32, %v1145_v32 }
  0x27   : > { %s1149_s5 = scalar_lea.vmem (!%p349_p8), [#allocation3], %s835_s4  ;;  %p408_p9 = scmp.lt.s32.totalorder (!%p349_p8), %s836_s6, 3  ;;  %v683_v4 = vshrl.u32 (!%p349_p8), %v682_v3, 7 }
  0x28   : > { %v918_v34 = vld [vmem:[%s1149_s5 + $0x4] ss:$8 sps:$4 sm:$0xff] (!%p349_p8)   ;;  %662 = vmatprep.mubr.bf16.mxu0 (!%p349_p8), %v840_v33  ;;  %v920_v35 = vld [vmem:[%s1149_s5] ss:$8 sps:$4 sm:$0xff] (!%p349_p8)   ;;  %v921_v36 = vld [vmem:[%s1149_s5 + $0x14] ss:$8 sps:$4 sm:$0xff] (!%p349_p8)  }
  0x29   : > { %630 = vmatprep.subr.bf16.mxu0 (!%p349_p8), %v918_v34  ;;  %v923_v37 = vld [vmem:[%s1149_s5 + $0x10] ss:$8 sps:$4 sm:$0xff] (!%p349_p8)   ;;  %v924_v38 = vld [vmem:[%s1149_s5 + $0x24] ss:$8 sps:$4 sm:$0xff] (!%p349_p8)   ;;  %v926_v39 = vld [vmem:[%s1149_s5 + $0x20] ss:$8 sps:$4 sm:$0xff] (!%p349_p8)  }
  0x2a   : > { %631 = vmatpush1.bf16.msra.mxu0 (!%p349_p8), %v920_v35  ;;  %v927_v40 = vld [vmem:[%s1149_s5 + $0x34] ss:$8 sps:$4 sm:$0xff] (!%p349_p8)   ;;  %v929_v41 = vld [vmem:[%s1149_s5 + $0x30] ss:$8 sps:$4 sm:$0xff] (!%p349_p8)   ;;  %v930_v42 = vld [vmem:[%s1149_s5 + $0x44] ss:$8 sps:$4 sm:$0xff] (!%p349_p8)  }
  0x2b   : > { %632 = vmatprep.subr.bf16.mxu0 (!%p349_p8), %v921_v36  ;;  %v932_v43 = vld [vmem:[%s1149_s5 + $0x40] ss:$8 sps:$4 sm:$0xff] (!%p349_p8)   ;;  %v933_v44 = vld [vmem:[%s1149_s5 + $0x54] ss:$8 sps:$4 sm:$0xff] (!%p349_p8)   ;;  %v935_v45 = vld [vmem:[%s1149_s5 + $0x50] ss:$8 sps:$4 sm:$0xff] (!%p349_p8)  }
  0x2c   : > { %v936_v46 = vld [vmem:[%s1149_s5 + $0x64] ss:$8 sps:$4 sm:$0xff] (!%p349_p8)   ;;  %v938_v47 = vld [vmem:[%s1149_s5 + $0x60] ss:$8 sps:$4 sm:$0xff] (!%p349_p8)   ;;  %v939_v48 = vld [vmem:[%s1149_s5 + $0x74] ss:$8 sps:$4 sm:$0xff] (!%p349_p8)  }
  0x2d   : > { %v941_v49 = vld [vmem:[%s1149_s5 + $0x70] ss:$8 sps:$4 sm:$0xff]   ;;  %v942_v50 = vld [vmem:[%s1149_s5 + $0x84] ss:$8 sps:$4 sm:$0xff]   ;;  %v944_v51 = vld [vmem:[%s1149_s5 + $0x80] ss:$8 sps:$4 sm:$0xff]  }
  0x2e   : > { %633 = vmatpush1.bf16.msra.mxu0 %v923_v37  ;;  %v945_v52 = vld [vmem:[%s1149_s5 + $0x94] ss:$8 sps:$4 sm:$0xff]   ;;  %v947_v53 = vld [vmem:[%s1149_s5 + $0x90] ss:$8 sps:$4 sm:$0xff]   ;;  %v948_v54 = vld [vmem:[%s1149_s5 + $0xa4] ss:$8 sps:$4 sm:$0xff]  }
  0x2f   : > { %634 = vmatprep.subr.bf16.mxu0 %v924_v38  ;;  %v950_v55 = vld [vmem:[%s1149_s5 + $0xa0] ss:$8 sps:$4 sm:$0xff]   ;;  %v951_v56 = vld [vmem:[%s1149_s5 + $0xb4] ss:$8 sps:$4 sm:$0xff]   ;;  %v953_v57 = vld [vmem:[%s1149_s5 + $0xb0] ss:$8 sps:$4 sm:$0xff]  }
  0x30   : > { %v954_v58 = vld [vmem:[%s1149_s5 + $0xc4] ss:$8 sps:$4 sm:$0xff]   ;;  %v956_v59 = vld [vmem:[%s1149_s5 + $0xc0] ss:$8 sps:$4 sm:$0xff]   ;;  %v957_v60 = vld [vmem:[%s1149_s5 + $0xd4] ss:$8 sps:$4 sm:$0xff]  }
  0x31   : > { %v959_v61 = vld [vmem:[%s1149_s5 + $0xd0] ss:$8 sps:$4 sm:$0xff]   ;;  %v960_v62 = vld [vmem:[%s1149_s5 + $0xe4] ss:$8 sps:$4 sm:$0xff]   ;;  %v962_v63 = vld [vmem:[%s1149_s5 + $0xe0] ss:$8 sps:$4 sm:$0xff]  }
  0x32   : > { %635 = vmatpush1.bf16.msra.mxu0 %v926_v39  ;;  %v963_v0 = vld [vmem:[%s1149_s5 + $0xf4] ss:$8 sps:$4 sm:$0xff]   ;;  %v965_v1 = vld [vmem:[%s1149_s5 + $0xf0] ss:$8 sps:$4 sm:$0xff]   ;;  %s1218_s6 = smov (!%p408_p9, %s836_s6), 3  ;;  %v684_v5 = vsub.s32 0, %v683_v4 }
  0x33   : > { %636 = vmatprep.subr.bf16.mxu0 %v927_v40  ;;  %s410_s9 = scalar_lea.vmem %s1209_s2, %s1218_s6  ;;  %v688_v7 = vsub.s32 1, %v683_v4  ;;  %s838_s10 = sshll.u32 %s1218_s6, 2 }
  0x34   : > { %v680_v6 = vld [vmem:[%s410_s9] sm:$0x3]  ;;  %s420_s14 = scalar_lea.vmem %s1210_s3, %s838_s10 }
  0x35   : > { %v685_v8 = vrot.slane %v680_v6, %v684_v5  ;;  %v689_v9 = vrot.slane %v680_v6, %v688_v7 }
  0x36   : > { %637 = vmatpush1.bf16.msra.mxu0 %v929_v41 }
  0x37   : > { %638 = vmatprep.subr.bf16.mxu0 %v930_v42 }
  0x3a   : > { %639 = vmatpush1.bf16.msra.mxu0 %v932_v43 }
  0x3b   : > { %640 = vmatprep.subr.bf16.mxu0 %v933_v44 }
  0x3e   : > { %641 = vmatpush1.bf16.msra.mxu0 %v935_v45 }
  0x3f   : > { %642 = vmatprep.subr.bf16.mxu0 %v936_v46 }
  0x42   : > { %643 = vmatpush1.bf16.msra.mxu0 %v938_v47 }
  0x43   : > { %644 = vmatprep.subr.bf16.mxu0 %v939_v48 }
  0x46   : > { %645 = vmatpush1.bf16.msra.mxu0 %v941_v49 }
  0x47   : > { %646 = vmatprep.subr.bf16.mxu0 %v942_v50 }
  0x4a   : > { %647 = vmatpush1.bf16.msra.mxu0 %v944_v51 }
  0x4b   : > { %648 = vmatprep.subr.bf16.mxu0 %v945_v52 }
  0x4e   : > { %649 = vmatpush1.bf16.msra.mxu0 %v947_v53 }
  0x4f   : > { %650 = vmatprep.subr.bf16.mxu0 %v948_v54 }
  0x52   : > { %651 = vmatpush1.bf16.msra.mxu0 %v950_v55 }
  0x53   : > { %652 = vmatprep.subr.bf16.mxu0 %v951_v56 }
  0x56   : > { %653 = vmatpush1.bf16.msra.mxu0 %v953_v57 }
  0x57   : > { %654 = vmatprep.subr.bf16.mxu0 %v954_v58 }
  0x5a   : > { %655 = vmatpush1.bf16.msra.mxu0 %v956_v59 }
  0x5b   : > { %656 = vmatprep.subr.bf16.mxu0 %v957_v60 }
  0x5e   : > { %657 = vmatpush1.bf16.msra.mxu0 %v959_v61 }
  0x5f   : > { %658 = vmatprep.subr.bf16.mxu0 %v960_v62 }
  0x62   : > { %659 = vmatpush1.bf16.msra.mxu0 %v962_v63 }
  0x63   : > { %660 = vmatprep.subr.bf16.mxu0 %v963_v0 }
  0x66   : > { %661 = vmatpush1.bf16.msra.mxu0 %v965_v1 }
  0x69   : > { %663 = vmatmul.mubr.bf16.vlgmr.msra.gmra.mrb[0].mxu0 %v839_v2 }
 0x13c   : > { %v664_v10 = vpop.f32.mrb[0].mxu0 }
 0x13d   : > { %v692_v11 = vadd.f32 %v685_v8, %v664_v10  ;;  %v666_v12 = vpop.f32.mrb[1].mxu0 }
 0x13e   : > { %v693_v13 = vadd.f32 %v689_v9, %v666_v12  ;;  %v668_v14 = vpop.f32.mrb[2].mxu0 }
 0x13f   : > { %v669_v15 = vpop.f32.mrb[3].mxu0 }
 0x140   : > { %v877_v16 = vpack.c.bf16 %v693_v13, %v692_v11 }
 0x142   : > { %702 = vst [vmem:[%s420_s14] sm:$0xff] %v877_v16 }
 0x143 PF: > { %s13_s16 = sadd.s32 1, %s1006_s16   ;;  %s1211_s12 = smov %s994_s13 }
 0x144   : > { %p10_p10 = scmp.ge.s32.totalorder %s13_s16, 4   ;;  %s1212_s13 = smov %s1063_s20 }
 0x145   : > { %s1213_s14 = smov %s1002_s15  ;;  %s1214_s15 = smov %s1216_s17 }
 0x146   :  { %12 = sbr.rel (!%p10_p10) target bundleno = 3 (0x3), region = 119 }

// kernel: siamese_forward.39
= control target key start
LH: loop header
LB: loop body
LE: loop exit
PB: predicated region body
PF: predicated region fallthrough
CT: control target
= control target key end

     0   :  { %s1523_s12 = smov 0   ;;  %s1525_s13 = smov 0   ;;  %s1834_s0 = inlined_call_operand.vmem [shape: bf16[8,4608], index: 0, kind: input, shape index: {}]   ;;  %s1835_s1 = inlined_call_operand.vmem [shape: bf16[4608,512], index: 1, kind: input, shape index: {}]   ;;  %s1836_s2 = inlined_call_operand.vmem [shape: f32[1,512], index: 2, kind: input, shape index: {}]   ;;  %s1837_s3 = inlined_call_operand.vmem [shape: bf16[8,512], index: 3, kind: output, shape index: {}]  }
   0x1   :  { %s1527_s14 = smov 0   ;;  %s1529_s15 = smov 0  }
   0x2   :  { %s1531_s16 = smov 0   ;;  %s1533_s17 = smov 0  }
   0x3   :  { %s1535_s18 = smov 0  }
   0x4 LB: > { %s25_s19 = sadd.s32 1, %s1492_s16  ;;  %s28_s20 = sadd.s32 1, %s1496_s17  ;;  %s1500_s18 = sphi %s1535_s18, %s13_s18   ;;  %s1496_s17 = sphi %s1533_s17, %s1843_s17   ;;  %s1492_s16 = sphi %s1531_s16, %s1842_s16   ;;  %s1488_s15 = sphi %s1529_s15, %s1841_s15   ;;  %s1484_s14 = sphi %s1527_s14, %s1840_s14   ;;  %s1480_s13 = sphi %s1525_s13, %s1839_s13   ;;  %s1476_s12 = sphi %s1523_s12, %s1838_s12  }
   0x5   : > { %p26_p0 = scmp.ge.s32.totalorder %s25_s19, 9  ;;  %p76_p1 = scmp.ne.s32.totalorder %s1480_s13, %s1476_s12 }
   0x6   : > { %p77_p2 = scmp.eq.s32.totalorder %s1500_s18, 0  ;;  %s69_s24 = sadd.s32 1, %s1480_s13 }
   0x7   : > { %s1845_s19 = smov (%p26_p0, %s25_s19), 0  ;;  %s1847_s20 = smov (!%p26_p0, %s28_s20), %s1496_s17 }
   0x8   : > { %p78_p3 = por %p77_p2, %p76_p1  ;;  %p30_p4 = scmp.ge.s32.totalorder %s1847_s20, 2 }
   0x9   : > { %s64_s21 = ssub.s32 %s1492_s16, %s1845_s19  ;;  %p1201_p6 = scmp.ge.s32.totalorder %s1500_s18, 18 }
   0xa   : > { %s1849_s20 = smov (%p30_p4, %s1847_s20), 0 }
   0xb   : > { %s65_s22 = ssub.s32 %s1496_s17, %s1849_s20  ;;  %156 = sbr.rel (%p1201_p6) target bundleno = 57 (0x39), region = 16 }
   0xc   : > { %s66_s23 = sor.u32 %s65_s22, %s64_s21 }
   0xd   : > { %p67_p5 = scmp.eq.s32.totalorder %s66_s23, 0 }
   0xf   : > { %s1574_s25 = scalar_select %p67_p5, %s1480_s13, %s69_s24  }
  0x12   : > { %172 = sbr.rel (!%p78_p3) target bundleno = 57 (0x39), region = 24  ;;  %s174_s26 = sand.u32 (%p78_p3), 1, %s1480_s13  }
  0x13   : > { %s1204_s27 = sshll.u32 (%p78_p3), %s1496_s17, 1  ;;  %s1202_s28 = sshll.u32 (%p78_p3), %s174_s26, 9 }
  0x14   : > { %s1287_s29 = sshll.u32 (%p78_p3), %s1492_s16, 8  ;;  %s1588_s8 = scalar_lea.vmem (%p78_p3), [#allocation3], %s1202_s28 }
  0x15   : > { %s180_s30 = sadd.s32 (%p78_p3), %s1287_s29, %s1204_s27 }
  0x16   : > { %s1206_s4 = sshll.u32 (%p78_p3), %s180_s30, 2 }
  0x17   : > { %s1583_s7 = scalar_lea.vmem (%p78_p3), %s1835_s1, %s1206_s4 }
  0x18   : > { %v336_v0 = vld [vmem:[%s1583_s7] sm:$0xff] (%p78_p3)  ;;  %v338_v1 = vld [vmem:[%s1583_s7 + $0x10] sm:$0xff] (%p78_p3) }
  0x19   : > { %v340_v2 = vld [vmem:[%s1583_s7 + $0x20] sm:$0xff]  ;;  %337 = vst [vmem:[%s1588_s8] sm:$0xff] %v336_v0  ;;  %339 = vst [vmem:[%s1588_s8 + $0x8] sm:$0xff] %v338_v1  ;;  %v342_v3 = vld [vmem:[%s1583_s7 + $0x30] sm:$0xff] }
  0x1a   : > { %341 = vst [vmem:[%s1588_s8 + $0x10] sm:$0xff] %v340_v2  ;;  %v344_v4 = vld [vmem:[%s1583_s7 + $0x40] sm:$0xff]  ;;  %v346_v5 = vld [vmem:[%s1583_s7 + $0x50] sm:$0xff]  ;;  %343 = vst [vmem:[%s1588_s8 + $0x18] sm:$0xff] %v342_v3 }
  0x1b   : > { %345 = vst [vmem:[%s1588_s8 + $0x20] sm:$0xff] %v344_v4  ;;  %347 = vst [vmem:[%s1588_s8 + $0x28] sm:$0xff] %v346_v5  ;;  %v348_v6 = vld [vmem:[%s1583_s7 + $0x60] sm:$0xff]  ;;  %v350_v7 = vld [vmem:[%s1583_s7 + $0x70] sm:$0xff] }
  0x1c   : > { %v352_v8 = vld [vmem:[%s1583_s7 + $0x80] sm:$0xff]  ;;  %349 = vst [vmem:[%s1588_s8 + $0x30] sm:$0xff] %v348_v6  ;;  %351 = vst [vmem:[%s1588_s8 + $0x38] sm:$0xff] %v350_v7  ;;  %v354_v9 = vld [vmem:[%s1583_s7 + $0x90] sm:$0xff] }
  0x1d   : > { %353 = vst [vmem:[%s1588_s8 + $0x40] sm:$0xff] %v352_v8  ;;  %v356_v10 = vld [vmem:[%s1583_s7 + $0xa0] sm:$0xff]  ;;  %v358_v11 = vld [vmem:[%s1583_s7 + $0xb0] sm:$0xff]  ;;  %355 = vst [vmem:[%s1588_s8 + $0x48] sm:$0xff] %v354_v9 }
  0x1e   : > { %357 = vst [vmem:[%s1588_s8 + $0x50] sm:$0xff] %v356_v10  ;;  %359 = vst [vmem:[%s1588_s8 + $0x58] sm:$0xff] %v358_v11  ;;  %v360_v12 = vld [vmem:[%s1583_s7 + $0xc0] sm:$0xff]  ;;  %v362_v13 = vld [vmem:[%s1583_s7 + $0xd0] sm:$0xff] }
  0x1f   : > { %v364_v14 = vld [vmem:[%s1583_s7 + $0xe0] sm:$0xff]  ;;  %361 = vst [vmem:[%s1588_s8 + $0x60] sm:$0xff] %v360_v12  ;;  %363 = vst [vmem:[%s1588_s8 + $0x68] sm:$0xff] %v362_v13  ;;  %v366_v15 = vld [vmem:[%s1583_s7 + $0xf0] sm:$0xff] }
  0x20   : > { %365 = vst [vmem:[%s1588_s8 + $0x70] sm:$0xff] %v364_v14  ;;  %v368_v16 = vld [vmem:[%s1583_s7 + $0x100] sm:$0xff]  ;;  %v370_v17 = vld [vmem:[%s1583_s7 + $0x110] sm:$0xff]  ;;  %367 = vst [vmem:[%s1588_s8 + $0x78] sm:$0xff] %v366_v15 }
  0x21   : > { %369 = vst [vmem:[%s1588_s8 + $0x80] sm:$0xff] %v368_v16  ;;  %371 = vst [vmem:[%s1588_s8 + $0x88] sm:$0xff] %v370_v17  ;;  %v372_v18 = vld [vmem:[%s1583_s7 + $0x120] sm:$0xff]  ;;  %v374_v19 = vld [vmem:[%s1583_s7 + $0x130] sm:$0xff] }
  0x22   : > { %v376_v20 = vld [vmem:[%s1583_s7 + $0x140] sm:$0xff]  ;;  %373 = vst [vmem:[%s1588_s8 + $0x90] sm:$0xff] %v372_v18  ;;  %375 = vst [vmem:[%s1588_s8 + $0x98] sm:$0xff] %v374_v19  ;;  %v378_v21 = vld [vmem:[%s1583_s7 + $0x150] sm:$0xff] }
  0x23   : > { %377 = vst [vmem:[%s1588_s8 + $0xa0] sm:$0xff] %v376_v20  ;;  %v380_v22 = vld [vmem:[%s1583_s7 + $0x160] sm:$0xff]  ;;  %v382_v23 = vld [vmem:[%s1583_s7 + $0x170] sm:$0xff]  ;;  %379 = vst [vmem:[%s1588_s8 + $0xa8] sm:$0xff] %v378_v21 }
  0x24   : > { %381 = vst [vmem:[%s1588_s8 + $0xb0] sm:$0xff] %v380_v22  ;;  %383 = vst [vmem:[%s1588_s8 + $0xb8] sm:$0xff] %v382_v23  ;;  %v384_v24 = vld [vmem:[%s1583_s7 + $0x180] sm:$0xff]  ;;  %v386_v25 = vld [vmem:[%s1583_s7 + $0x190] sm:$0xff] }
  0x25   : > { %v388_v26 = vld [vmem:[%s1583_s7 + $0x1a0] sm:$0xff]  ;;  %385 = vst [vmem:[%s1588_s8 + $0xc0] sm:$0xff] %v384_v24  ;;  %387 = vst [vmem:[%s1588_s8 + $0xc8] sm:$0xff] %v386_v25  ;;  %v390_v27 = vld [vmem:[%s1583_s7 + $0x1b0] sm:$0xff] }
  0x26   : > { %389 = vst [vmem:[%s1588_s8 + $0xd0] sm:$0xff] %v388_v26  ;;  %v392_v28 = vld [vmem:[%s1583_s7 + $0x1c0] sm:$0xff]  ;;  %v394_v29 = vld [vmem:[%s1583_s7 + $0x1d0] sm:$0xff]  ;;  %391 = vst [vmem:[%s1588_s8 + $0xd8] sm:$0xff] %v390_v27 }
  0x27   : > { %393 = vst [vmem:[%s1588_s8 + $0xe0] sm:$0xff] %v392_v28  ;;  %395 = vst [vmem:[%s1588_s8 + $0xe8] sm:$0xff] %v394_v29  ;;  %v396_v30 = vld [vmem:[%s1583_s7 + $0x1e0] sm:$0xff]  ;;  %v398_v31 = vld [vmem:[%s1583_s7 + $0x1f0] sm:$0xff] }
  0x28   : > { %v400_v32 = vld [vmem:[%s1583_s7 + $0x200] sm:$0xff]  ;;  %397 = vst [vmem:[%s1588_s8 + $0xf0] sm:$0xff] %v396_v30  ;;  %399 = vst [vmem:[%s1588_s8 + $0xf8] sm:$0xff] %v398_v31  ;;  %v402_v33 = vld [vmem:[%s1583_s7 + $0x210] sm:$0xff] }
  0x29   : > { %401 = vst [vmem:[%s1588_s8 + $0x100] sm:$0xff] %v400_v32  ;;  %v404_v34 = vld [vmem:[%s1583_s7 + $0x220] sm:$0xff]  ;;  %v406_v35 = vld [vmem:[%s1583_s7 + $0x230] sm:$0xff]  ;;  %403 = vst [vmem:[%s1588_s8 + $0x108] sm:$0xff] %v402_v33 }
  0x2a   : > { %405 = vst [vmem:[%s1588_s8 + $0x110] sm:$0xff] %v404_v34  ;;  %407 = vst [vmem:[%s1588_s8 + $0x118] sm:$0xff] %v406_v35  ;;  %v408_v36 = vld [vmem:[%s1583_s7 + $0x240] sm:$0xff]  ;;  %v410_v37 = vld [vmem:[%s1583_s7 + $0x250] sm:$0xff] }
  0x2b   : > { %v412_v38 = vld [vmem:[%s1583_s7 + $0x260] sm:$0xff]  ;;  %409 = vst [vmem:[%s1588_s8 + $0x120] sm:$0xff] %v408_v36  ;;  %411 = vst [vmem:[%s1588_s8 + $0x128] sm:$0xff] %v410_v37  ;;  %v414_v39 = vld [vmem:[%s1583_s7 + $0x270] sm:$0xff] }
  0x2c   : > { %413 = vst [vmem:[%s1588_s8 + $0x130] sm:$0xff] %v412_v38  ;;  %v416_v40 = vld [vmem:[%s1583_s7 + $0x280] sm:$0xff]  ;;  %v418_v41 = vld [vmem:[%s1583_s7 + $0x290] sm:$0xff]  ;;  %415 = vst [vmem:[%s1588_s8 + $0x138] sm:$0xff] %v414_v39 }
  0x2d   : > { %417 = vst [vmem:[%s1588_s8 + $0x140] sm:$0xff] %v416_v40  ;;  %419 = vst [vmem:[%s1588_s8 + $0x148] sm:$0xff] %v418_v41  ;;  %v420_v42 = vld [vmem:[%s1583_s7 + $0x2a0] sm:$0xff]  ;;  %v422_v43 = vld [vmem:[%s1583_s7 + $0x2b0] sm:$0xff] }
  0x2e   : > { %v424_v44 = vld [vmem:[%s1583_s7 + $0x2c0] sm:$0xff]  ;;  %421 = vst [vmem:[%s1588_s8 + $0x150] sm:$0xff] %v420_v42  ;;  %423 = vst [vmem:[%s1588_s8 + $0x158] sm:$0xff] %v422_v43  ;;  %v426_v45 = vld [vmem:[%s1583_s7 + $0x2d0] sm:$0xff] }
  0x2f   : > { %425 = vst [vmem:[%s1588_s8 + $0x160] sm:$0xff] %v424_v44  ;;  %v428_v46 = vld [vmem:[%s1583_s7 + $0x2e0] sm:$0xff]  ;;  %v430_v47 = vld [vmem:[%s1583_s7 + $0x2f0] sm:$0xff]  ;;  %427 = vst [vmem:[%s1588_s8 + $0x168] sm:$0xff] %v426_v45 }
  0x30   : > { %429 = vst [vmem:[%s1588_s8 + $0x170] sm:$0xff] %v428_v46  ;;  %431 = vst [vmem:[%s1588_s8 + $0x178] sm:$0xff] %v430_v47  ;;  %v432_v48 = vld [vmem:[%s1583_s7 + $0x300] sm:$0xff]  ;;  %v434_v49 = vld [vmem:[%s1583_s7 + $0x310] sm:$0xff] }
  0x31   : > { %v436_v50 = vld [vmem:[%s1583_s7 + $0x320] sm:$0xff]  ;;  %433 = vst [vmem:[%s1588_s8 + $0x180] sm:$0xff] %v432_v48  ;;  %435 = vst [vmem:[%s1588_s8 + $0x188] sm:$0xff] %v434_v49  ;;  %v438_v51 = vld [vmem:[%s1583_s7 + $0x330] sm:$0xff] }
  0x32   : > { %437 = vst [vmem:[%s1588_s8 + $0x190] sm:$0xff] %v436_v50  ;;  %v440_v52 = vld [vmem:[%s1583_s7 + $0x340] sm:$0xff]  ;;  %v442_v53 = vld [vmem:[%s1583_s7 + $0x350] sm:$0xff]  ;;  %439 = vst [vmem:[%s1588_s8 + $0x198] sm:$0xff] %v438_v51 }
  0x33   : > { %441 = vst [vmem:[%s1588_s8 + $0x1a0] sm:$0xff] %v440_v52  ;;  %443 = vst [vmem:[%s1588_s8 + $0x1a8] sm:$0xff] %v442_v53  ;;  %v444_v54 = vld [vmem:[%s1583_s7 + $0x360] sm:$0xff]  ;;  %v446_v55 = vld [vmem:[%s1583_s7 + $0x370] sm:$0xff] }
  0x34   : > { %v448_v56 = vld [vmem:[%s1583_s7 + $0x380] sm:$0xff]  ;;  %445 = vst [vmem:[%s1588_s8 + $0x1b0] sm:$0xff] %v444_v54  ;;  %447 = vst [vmem:[%s1588_s8 + $0x1b8] sm:$0xff] %v446_v55  ;;  %v450_v57 = vld [vmem:[%s1583_s7 + $0x390] sm:$0xff] }
  0x35   : > { %449 = vst [vmem:[%s1588_s8 + $0x1c0] sm:$0xff] %v448_v56  ;;  %v452_v58 = vld [vmem:[%s1583_s7 + $0x3a0] sm:$0xff]  ;;  %v454_v59 = vld [vmem:[%s1583_s7 + $0x3b0] sm:$0xff]  ;;  %451 = vst [vmem:[%s1588_s8 + $0x1c8] sm:$0xff] %v450_v57 }
  0x36   : > { %453 = vst [vmem:[%s1588_s8 + $0x1d0] sm:$0xff] %v452_v58  ;;  %455 = vst [vmem:[%s1588_s8 + $0x1d8] sm:$0xff] %v454_v59  ;;  %v456_v60 = vld [vmem:[%s1583_s7 + $0x3c0] sm:$0xff]  ;;  %v458_v61 = vld [vmem:[%s1583_s7 + $0x3d0] sm:$0xff] }
  0x37   : > { %v460_v62 = vld [vmem:[%s1583_s7 + $0x3e0] sm:$0xff]  ;;  %457 = vst [vmem:[%s1588_s8 + $0x1e0] sm:$0xff] %v456_v60  ;;  %459 = vst [vmem:[%s1588_s8 + $0x1e8] sm:$0xff] %v458_v61  ;;  %v462_v63 = vld [vmem:[%s1583_s7 + $0x3f0] sm:$0xff] }
  0x38   : > { %461 = vst [vmem:[%s1588_s8 + $0x1f0] sm:$0xff] %v460_v62  ;;  %463 = vst [vmem:[%s1588_s8 + $0x1f8] sm:$0xff] %v462_v63 }
  0x39 PF: > { %p1207_p7 = scmp.ge.s32.totalorder %s1500_s18, 1  ;;  %p476_p8 = scmp.lt.s32.totalorder %s1500_s18, 19 }
  0x3b   : > { %p477_p9 = pnand %p1207_p7, %p476_p8 }
  0x3c   : > { %s483_s9 = sand.u32 (!%p477_p9), 1, %s1476_s12   ;;  %s1209_s10 = sshll.u32 (!%p477_p9), %s1484_s14, 2 }
  0x3d   : > { %480 = sbr.rel (%p477_p9) target bundleno = 376 (0x178), region = 66  ;;  %s1208_s11 = sshll.u32 (!%p477_p9), %s483_s9, 9 }
  0x3e   : > { %p526_p10 = scmp.lt.s32.totalorder (!%p477_p9), %s1209_s10, 35  ;;  %s1211_s21 = sshll.u32 (!%p477_p9), %s1488_s15, 1 }
  0x3f   : > { %p536_p11 = scmp.lt.s32.totalorder (!%p477_p9), %s1211_s21, 3  ;;  %s1737_s5 = scalar_lea.vmem (!%p477_p9), [#allocation3], %s1208_s11 }
  0x40   : > { %p1214_p12 = scmp.ne.s32.totalorder (!%p477_p9), %s1484_s14, 0 }
  0x44   : > { %s1851_s10 = smov (!%p526_p10, %s1209_s10), 35  ;;  %s1853_s21 = smov (!%p536_p11, %s1211_s21), 3 }
  0x45   : > { %s1210_s22 = sshll.u32 %s1851_s10, 2  ;;  %s538_s12 = scalar_lea.vmem %s1836_s2, %s1853_s21  ;;  %v1502_v0 = vmov (!%p1214_p12), 0.0  }
  0x46   : > { %s1723_s26 = scalar_lea.vmem %s1834_s0, %s1210_s22  ;;  %s1213_s29 = sshll.u32 %s1853_s21, 2  ;;  %554 = vst [vmem:[#allocation2] sm:$0xff] (!%p1214_p12), %v1502_v0  ;;  %555 = vst [vmem:[#allocation2 + $0x8] sm:$0xff] (!%p1214_p12), %v1502_v0 }
  0x47   : > { %s1735_s15 = scalar_lea.vmem %s1837_s3, %s1213_s29  ;;  %553 = sbr.rel (%p1214_p12) target bundleno = 78 (0x4e), region = 74 }
  0x4e PF: > { %v1346_v1 = vld [vmem:[%s1737_s5 + $0x4] ss:$8 sps:$4 sm:$0xff]   ;;  %v1350_v3 = vld [vmem:[%s1737_s5] ss:$8 sps:$4 sm:$0xff]   ;;  %v1352_v5 = vld [vmem:[%s1737_s5 + $0x14] ss:$8 sps:$4 sm:$0xff]  }
  0x4f   : > { %v1348_v2 = vld [vmem:[%s1737_s5 + $0x104] ss:$8 sps:$4 sm:$0xff]   ;;  %958 = vmatprep.subr.bf16.mxu0 %v1346_v1  ;;  %v1351_v4 = vld [vmem:[%s1737_s5 + $0x100] ss:$8 sps:$4 sm:$0xff]   ;;  %v1354_v6 = vld [vmem:[%s1737_s5 + $0x114] ss:$8 sps:$4 sm:$0xff]  }
  0x50   : > { %999 = vmatprep.subr.bf16.mxu1 %v1348_v2  ;;  %959 = vmatpush1.bf16.msra.mxu0 %v1350_v3  ;;  %v1356_v7 = vld [vmem:[%s1737_s5 + $0x10] ss:$8 sps:$4 sm:$0xff]   ;;  %v1358_v9 = vld [vmem:[%s1737_s5 + $0x24] ss:$8 sps:$4 sm:$0xff]   ;;  %v1362_v11 = vld [vmem:[%s1737_s5 + $0x20] ss:$8 sps:$4 sm:$0xff]  }
  0x51   : > { %1000 = vmatpush1.bf16.msra.mxu1 %v1351_v4  ;;  %960 = vmatprep.subr.bf16.mxu0 %v1352_v5  ;;  %v1357_v8 = vld [vmem:[%s1737_s5 + $0x110] ss:$8 sps:$4 sm:$0xff]   ;;  %v1360_v10 = vld [vmem:[%s1737_s5 + $0x124] ss:$8 sps:$4 sm:$0xff]   ;;  %v1363_v12 = vld [vmem:[%s1737_s5 + $0x120] ss:$8 sps:$4 sm:$0xff]  }
  0x52   : > { %1001 = vmatprep.subr.bf16.mxu1 %v1354_v6  ;;  %v1364_v13 = vld [vmem:[%s1737_s5 + $0x34] ss:$8 sps:$4 sm:$0xff]   ;;  %v1368_v15 = vld [vmem:[%s1737_s5 + $0x30] ss:$8 sps:$4 sm:$0xff]   ;;  %v1370_v17 = vld [vmem:[%s1737_s5 + $0x44] ss:$8 sps:$4 sm:$0xff]  }
  0x53   : > { %v1366_v14 = vld [vmem:[%s1737_s5 + $0x134] ss:$8 sps:$4 sm:$0xff]   ;;  %v1369_v16 = vld [vmem:[%s1737_s5 + $0x130] ss:$8 sps:$4 sm:$0xff]   ;;  %v1372_v18 = vld [vmem:[%s1737_s5 + $0x144] ss:$8 sps:$4 sm:$0xff]  }
  0x54   : > { %961 = vmatpush1.bf16.msra.mxu0 %v1356_v7  ;;  %v1374_v19 = vld [vmem:[%s1737_s5 + $0x40] ss:$8 sps:$4 sm:$0xff]   ;;  %v1376_v21 = vld [vmem:[%s1737_s5 + $0x54] ss:$8 sps:$4 sm:$0xff]   ;;  %v1380_v23 = vld [vmem:[%s1737_s5 + $0x50] ss:$8 sps:$4 sm:$0xff]  }
  0x55   : > { %1002 = vmatpush1.bf16.msra.mxu1 %v1357_v8  ;;  %962 = vmatprep.subr.bf16.mxu0 %v1358_v9  ;;  %v1375_v20 = vld [vmem:[%s1737_s5 + $0x140] ss:$8 sps:$4 sm:$0xff]   ;;  %v1378_v22 = vld [vmem:[%s1737_s5 + $0x154] ss:$8 sps:$4 sm:$0xff]   ;;  %v1381_v24 = vld [vmem:[%s1737_s5 + $0x150] ss:$8 sps:$4 sm:$0xff]  }
  0x56   : > { %1003 = vmatprep.subr.bf16.mxu1 %v1360_v10  ;;  %v1382_v25 = vld [vmem:[%s1737_s5 + $0x64] ss:$8 sps:$4 sm:$0xff]   ;;  %v1386_v27 = vld [vmem:[%s1737_s5 + $0x60] ss:$8 sps:$4 sm:$0xff]   ;;  %v1388_v29 = vld [vmem:[%s1737_s5 + $0x74] ss:$8 sps:$4 sm:$0xff]  }
  0x57   : > { %v1384_v26 = vld [vmem:[%s1737_s5 + $0x164] ss:$8 sps:$4 sm:$0xff]   ;;  %v1387_v28 = vld [vmem:[%s1737_s5 + $0x160] ss:$8 sps:$4 sm:$0xff]   ;;  %v1390_v30 = vld [vmem:[%s1737_s5 + $0x174] ss:$8 sps:$4 sm:$0xff]  }
  0x58   : > { %963 = vmatpush1.bf16.msra.mxu0 %v1362_v11  ;;  %v1392_v31 = vld [vmem:[%s1737_s5 + $0x70] ss:$8 sps:$4 sm:$0xff]   ;;  %v1394_v33 = vld [vmem:[%s1737_s5 + $0x84] ss:$8 sps:$4 sm:$0xff]   ;;  %v1398_v35 = vld [vmem:[%s1737_s5 + $0x80] ss:$8 sps:$4 sm:$0xff]  }
  0x59   : > { %1004 = vmatpush1.bf16.msra.mxu1 %v1363_v12  ;;  %964 = vmatprep.subr.bf16.mxu0 %v1364_v13  ;;  %v1393_v32 = vld [vmem:[%s1737_s5 + $0x170] ss:$8 sps:$4 sm:$0xff]   ;;  %v1396_v34 = vld [vmem:[%s1737_s5 + $0x184] ss:$8 sps:$4 sm:$0xff]   ;;  %v1399_v36 = vld [vmem:[%s1737_s5 + $0x180] ss:$8 sps:$4 sm:$0xff]  }
  0x5a   : > { %1005 = vmatprep.subr.bf16.mxu1 %v1366_v14  ;;  %v1400_v37 = vld [vmem:[%s1737_s5 + $0x94] ss:$8 sps:$4 sm:$0xff]   ;;  %v1404_v39 = vld [vmem:[%s1737_s5 + $0x90] ss:$8 sps:$4 sm:$0xff]   ;;  %v1406_v41 = vld [vmem:[%s1737_s5 + $0xa4] ss:$8 sps:$4 sm:$0xff]  }
  0x5b   : > { %v1402_v38 = vld [vmem:[%s1737_s5 + $0x194] ss:$8 sps:$4 sm:$0xff]   ;;  %v1405_v40 = vld [vmem:[%s1737_s5 + $0x190] ss:$8 sps:$4 sm:$0xff]   ;;  %v1408_v42 = vld [vmem:[%s1737_s5 + $0x1a4] ss:$8 sps:$4 sm:$0xff]  }
  0x5c   : > { %965 = vmatpush1.bf16.msra.mxu0 %v1368_v15  ;;  %v1410_v43 = vld [vmem:[%s1737_s5 + $0xa0] ss:$8 sps:$4 sm:$0xff]   ;;  %v1412_v45 = vld [vmem:[%s1737_s5 + $0xb4] ss:$8 sps:$4 sm:$0xff]   ;;  %v1416_v50 = vld [vmem:[%s1737_s5 + $0xb0] ss:$8 sps:$4 sm:$0xff]  }
  0x5d   : > { %1006 = vmatpush1.bf16.msra.mxu1 %v1369_v16  ;;  %966 = vmatprep.subr.bf16.mxu0 %v1370_v17  ;;  %v1411_v44 = vld [vmem:[%s1737_s5 + $0x1a0] ss:$8 sps:$4 sm:$0xff]   ;;  %v1414_v46 = vld [vmem:[%s1737_s5 + $0x1b4] ss:$8 sps:$4 sm:$0xff]   ;;  %v1417_v51 = vld [vmem:[%s1737_s5 + $0x1b0] ss:$8 sps:$4 sm:$0xff]  }
  0x5e   : > { %1007 = vmatprep.subr.bf16.mxu1 %v1372_v18  ;;  %v558_v47 = vld [vmem:[%s1723_s26] sm:$0xff]  ;;  %v559_v49 = vld [vmem:[%s1723_s26 + $0x8] sm:$0xff]  ;;  %v1418_v53 = vld [vmem:[%s1737_s5 + $0xc4] ss:$8 sps:$4 sm:$0xff]   ;;  %p1283_p13 = scmp.ne.s32.totalorder %s1484_s14, 8 }
  0x5f   : > { %v1216_v48 = vcombine.high %v558_v47, %v558_v47  ;;  %v1218_v52 = vcombine.high %v559_v49, %v559_v49  ;;  %v1420_v54 = vld [vmem:[%s1737_s5 + $0x1c4] ss:$8 sps:$4 sm:$0xff]   ;;  %v1422_v55 = vld [vmem:[%s1737_s5 + $0xc0] ss:$8 sps:$4 sm:$0xff]   ;;  %v1424_v57 = vld [vmem:[%s1737_s5 + $0xd4] ss:$8 sps:$4 sm:$0xff]   ;;  %v1215_v5 = vcombine.low %v558_v47, %v558_v47  ;;  %v1217_v6 = vcombine.low %v559_v49, %v559_v49 }
  0x60   : > { %967 = vmatpush1.bf16.msra.mxu0 %v1374_v19  ;;  %v1423_v56 = vld [vmem:[%s1737_s5 + $0x1c0] ss:$8 sps:$4 sm:$0xff]   ;;  %v1426_v58 = vld [vmem:[%s1737_s5 + $0x1d4] ss:$8 sps:$4 sm:$0xff]   ;;  %v1428_v59 = vld [vmem:[%s1737_s5 + $0xd0] ss:$8 sps:$4 sm:$0xff]  }
  0x61   : > { %1008 = vmatpush1.bf16.msra.mxu1 %v1375_v20  ;;  %968 = vmatprep.subr.bf16.mxu0 %v1376_v21  ;;  %v1429_v60 = vld [vmem:[%s1737_s5 + $0x1d0] ss:$8 sps:$4 sm:$0xff]   ;;  %v1430_v61 = vld [vmem:[%s1737_s5 + $0xe4] ss:$8 sps:$4 sm:$0xff]   ;;  %v1434_v63 = vld [vmem:[%s1737_s5 + $0xe0] ss:$8 sps:$4 sm:$0xff]   ;;  %v1052_v21 = vlaneseq (!%p1283_p13) }
  0x62   : > { %1009 = vmatprep.subr.bf16.mxu1 %v1378_v22  ;;  %990 = vmatprep.mubr.bf16.mxu0 %v1216_v48  ;;  %v1432_v62 = vld [vmem:[%s1737_s5 + $0x1e4] ss:$8 sps:$4 sm:$0xff]   ;;  %v1435_v0 = vld [vmem:[%s1737_s5 + $0x1e0] ss:$8 sps:$4 sm:$0xff]   ;;  %v1436_v1 = vld [vmem:[%s1737_s5 + $0xf4] ss:$8 sps:$4 sm:$0xff]  }
  0x63   : > { %1031 = vmatprep.mubr.bf16.mxu1 %v1218_v52  ;;  %v1438_v2 = vld [vmem:[%s1737_s5 + $0x1f4] ss:$8 sps:$4 sm:$0xff]   ;;  %v1440_v3 = vld [vmem:[%s1737_s5 + $0xf0] ss:$8 sps:$4 sm:$0xff]   ;;  %v1053_v22 = vshrl.u32 (!%p1283_p13), %v1052_v21, 7 }
  0x64   : > { %969 = vmatpush1.bf16.msra.mxu0 %v1380_v23  ;;  %v1441_v4 = vld [vmem:[%s1737_s5 + $0x1f0] ss:$8 sps:$4 sm:$0xff]  }
  0x65   : > { %1010 = vmatpush1.bf16.msra.mxu1 %v1381_v24  ;;  %970 = vmatprep.subr.bf16.mxu0 %v1382_v25  ;;  %v556_v8 = vld [vmem:[#allocation2] sm:$0xff]  ;;  %v557_v12 = vld [vmem:[#allocation2 + $0x8] sm:$0xff]  ;;  %v1054_v24 = vsub.s32 (!%p1283_p13), 0, %v1053_v22  ;;  %v1058_v25 = vsub.s32 (!%p1283_p13), 1, %v1053_v22 }
  0x66   : > { %1011 = vmatprep.subr.bf16.mxu1 %v1384_v26  ;;  %v1050_v23 = vld [vmem:[%s538_s12] sm:$0x3] (!%p1283_p13) }
  0x68   : > { %971 = vmatpush1.bf16.msra.mxu0 %v1386_v27 }
  0x69   : > { %1012 = vmatpush1.bf16.msra.mxu1 %v1387_v28  ;;  %972 = vmatprep.subr.bf16.mxu0 %v1388_v29  ;;  %v1055_v28 = vrot.slane (!%p1283_p13), %v1050_v23, %v1054_v24  ;;  %v1059_v29 = vrot.slane (!%p1283_p13), %v1050_v23, %v1058_v25 }
  0x6a   : > { %1013 = vmatprep.subr.bf16.mxu1 %v1390_v30 }
  0x6c   : > { %973 = vmatpush1.bf16.msra.mxu0 %v1392_v31 }
  0x6d   : > { %1014 = vmatpush1.bf16.msra.mxu1 %v1393_v32  ;;  %974 = vmatprep.subr.bf16.mxu0 %v1394_v33 }
  0x6e   : > { %1015 = vmatprep.subr.bf16.mxu1 %v1396_v34 }
  0x70   : > { %975 = vmatpush1.bf16.msra.mxu0 %v1398_v35 }
  0x71   : > { %1016 = vmatpush1.bf16.msra.mxu1 %v1399_v36  ;;  %976 = vmatprep.subr.bf16.mxu0 %v1400_v37 }
  0x72   : > { %1017 = vmatprep.subr.bf16.mxu1 %v1402_v38 }
  0x74   : > { %977 = vmatpush1.bf16.msra.mxu0 %v1404_v39 }
  0x75   : > { %1018 = vmatpush1.bf16.msra.mxu1 %v1405_v40  ;;  %978 = vmatprep.subr.bf16.mxu0 %v1406_v41 }
  0x76   : > { %1019 = vmatprep.subr.bf16.mxu1 %v1408_v42 }
  0x78   : > { %979 = vmatpush1.bf16.msra.mxu0 %v1410_v43 }
  0x79   : > { %1020 = vmatpush1.bf16.msra.mxu1 %v1411_v44  ;;  %980 = vmatprep.subr.bf16.mxu0 %v1412_v45 }
  0x7a   : > { %1021 = vmatprep.subr.bf16.mxu1 %v1414_v46 }
  0x7c   : > { %981 = vmatpush1.bf16.msra.mxu0 %v1416_v50 }
  0x7d   : > { %1022 = vmatpush1.bf16.msra.mxu1 %v1417_v51  ;;  %982 = vmatprep.subr.bf16.mxu0 %v1418_v53 }
  0x7e   : > { %1023 = vmatprep.subr.bf16.mxu1 %v1420_v54 }
  0x80   : > { %983 = vmatpush1.bf16.msra.mxu0 %v1422_v55 }
  0x81   : > { %1024 = vmatpush1.bf16.msra.mxu1 %v1423_v56  ;;  %984 = vmatprep.subr.bf16.mxu0 %v1424_v57 }
  0x82   : > { %1025 = vmatprep.subr.bf16.mxu1 %v1426_v58 }
  0x84   : > { %985 = vmatpush1.bf16.msra.mxu0 %v1428_v59 }
  0x85   : > { %1026 = vmatpush1.bf16.msra.mxu1 %v1429_v60  ;;  %986 = vmatprep.subr.bf16.mxu0 %v1430_v61 }
  0x86   : > { %1027 = vmatprep.subr.bf16.mxu1 %v1432_v62 }
  0x88   : > { %987 = vmatpush1.bf16.msra.mxu0 %v1434_v63 }
  0x89   : > { %1028 = vmatpush1.bf16.msra.mxu1 %v1435_v0  ;;  %988 = vmatprep.subr.bf16.mxu0 %v1436_v1 }
  0x8a   : > { %1029 = vmatprep.subr.bf16.mxu1 %v1438_v2 }
  0x8c   : > { %989 = vmatpush1.bf16.msra.mxu0 %v1440_v3 }
  0x8d   : > { %1030 = vmatpush1.bf16.msra.mxu1 %v1441_v4 }
  0x8f   : > { %991 = vmatmul.mubr.bf16.vlgmr.msra.gmra.mrb[0].mxu0 %v1215_v5 }
  0x90   : > { %1032 = vmatmul.mubr.bf16.vlgmr.msra.gmra.mrb[0].mxu1 %v1217_v6 }
 0x162   : > { %v992_v7 = vpop.f32.mrb[0].mxu0 }
 0x163   : > { %v1033_v9 = vpop.f32.mrb[0].mxu1  ;;  %v994_v11 = vpop.f32.mrb[1].mxu0  ;;  %1047 = sbr.rel (%p1283_p13) target bundleno = 376 (0x178), region = 78 }
 0x164   : > { %v1034_v10 = vadd.f32 %v1033_v9, %v992_v7  ;;  %v1035_v13 = vpop.f32.mrb[1].mxu1  ;;  %v996_v15 = vpop.f32.mrb[2].mxu0 }
 0x165   : > { %v1036_v14 = vadd.f32 %v1035_v13, %v994_v11  ;;  %v1037_v16 = vpop.f32.mrb[2].mxu1  ;;  %v997_v18 = vpop.f32.mrb[3].mxu0 }
 0x166   : > { %v1040_v17 = vadd.f32 %v1034_v10, %v556_v8  ;;  %v1038_v19 = vpop.f32.mrb[3].mxu1 }
 0x167   : > { %v1041_v20 = vadd.f32 %v1036_v14, %v557_v12 }
 0x168   : > { %1042 = vst [vmem:[#allocation2] sm:$0xff] %v1040_v17 }
 0x169   : > { %1043 = vst [vmem:[#allocation2 + $0x8] sm:$0xff] %v1041_v20 }
 0x16f   : > { %v1048_v26 = vld [vmem:[#allocation2] sm:$0xff] }
 0x170   : > { %v1049_v27 = vld [vmem:[#allocation2 + $0x8] sm:$0xff]  ;;  %v1062_v30 = vadd.f32 %v1055_v28, %v1048_v26 }
 0x171   : > { %v1063_v31 = vadd.f32 %v1059_v29, %v1049_v27 }
 0x172   : > { %v1064_v32 = vmax.f32 %v1062_v30, 0.0 }
 0x173   : > { %v1065_v33 = vmax.f32 %v1063_v31, 0.0 }
 0x175   : > { %v1288_v34 = vpack.c.bf16 %v1065_v33, %v1064_v32 }
 0x177   : > { %1074 = vst [vmem:[%s1735_s15] sm:$0xff] %v1288_v34 }
 0x178 PF: > { %s13_s18 = sadd.s32 1, %s1500_s18   ;;  %s1838_s12 = smov %s1480_s13 }
 0x179   : > { %p10_p0 = scmp.ge.s32.totalorder %s13_s18, 20   ;;  %s1839_s13 = smov %s1574_s25 }
 0x17a   : > { %s1840_s14 = smov %s1492_s16  ;;  %s1841_s15 = smov %s1496_s17 }
 0x17b   : > { %s1842_s16 = smov %s1845_s19  ;;  %s1843_s17 = smov %s1849_s20 }
 0x17c   :  { %12 = sbr.rel (!%p10_p0) target bundleno = 4 (0x4), region = 119 }

// kernel: siamese_forward.41
= control target key start
LH: loop header
LB: loop body
LE: loop exit
PB: predicated region body
PF: predicated region fallthrough
CT: control target
= control target key end

     0   :  { %vm540_vm0 = vcmask 1041408   ;;  %vm560_vm1 = vcmask 1024   ;;  %s983_s1 = inlined_call_operand.vmem [shape: bf16[512,256], index: 1, kind: input, shape index: {}]   ;;  %s984_s0 = inlined_call_operand.vmem [shape: bf16[8,512], index: 0, kind: input, shape index: {}]   ;;  %s985_s4 = inlined_call_operand.<no memory space> [shape: f32[1,1], index: 4, kind: input, shape index: {}]   ;;  %s986_s2 = inlined_call_operand.vmem [shape: f32[1,256], index: 2, kind: input, shape index: {}]   ;;  %s987_s3 = inlined_call_operand.vmem [shape: f32[1,256], index: 3, kind: input, shape index: {}]   ;;  %s988_s5 = inlined_call_operand.vmem [shape: f32[2,1], index: 5, kind: output, shape index: {}]  }
   0x1   :  { %v639_v0 = vld [vmem:[%s983_s1 + $0x4] ss:$8 sps:$4 sm:$0xff]   ;;  %v643_v2 = vld [vmem:[%s983_s1] ss:$8 sps:$4 sm:$0xff]   ;;  %v645_v4 = vld [vmem:[%s983_s1 + $0x14] ss:$8 sps:$4 sm:$0xff]  }
   0x2   :  { %v641_v1 = vld [vmem:[%s983_s1 + $0x104] ss:$8 sps:$4 sm:$0xff]   ;;  %434 = vmatprep.subr.bf16.mxu1 %v639_v0  ;;  %v644_v3 = vld [vmem:[%s983_s1 + $0x100] ss:$8 sps:$4 sm:$0xff]   ;;  %v647_v5 = vld [vmem:[%s983_s1 + $0x114] ss:$8 sps:$4 sm:$0xff]  }
   0x3   :  { %475 = vmatprep.subr.bf16.mxu0 %v641_v1  ;;  %435 = vmatpush1.bf16.msra.mxu1 %v643_v2  ;;  %v649_v6 = vld [vmem:[%s983_s1 + $0x10] ss:$8 sps:$4 sm:$0xff]   ;;  %v651_v8 = vld [vmem:[%s983_s1 + $0x24] ss:$8 sps:$4 sm:$0xff]   ;;  %v655_v10 = vld [vmem:[%s983_s1 + $0x20] ss:$8 sps:$4 sm:$0xff]  }
   0x4   :  { %476 = vmatpush1.bf16.msra.mxu0 %v644_v3  ;;  %436 = vmatprep.subr.bf16.mxu1 %v645_v4  ;;  %v650_v7 = vld [vmem:[%s983_s1 + $0x110] ss:$8 sps:$4 sm:$0xff]   ;;  %v653_v9 = vld [vmem:[%s983_s1 + $0x124] ss:$8 sps:$4 sm:$0xff]   ;;  %v656_v11 = vld [vmem:[%s983_s1 + $0x120] ss:$8 sps:$4 sm:$0xff]  }
   0x5   :  { %477 = vmatprep.subr.bf16.mxu0 %v647_v5  ;;  %v657_v12 = vld [vmem:[%s983_s1 + $0x34] ss:$8 sps:$4 sm:$0xff]   ;;  %v661_v14 = vld [vmem:[%s983_s1 + $0x30] ss:$8 sps:$4 sm:$0xff]   ;;  %v663_v16 = vld [vmem:[%s983_s1 + $0x44] ss:$8 sps:$4 sm:$0xff]  }
   0x6   :  { %v659_v13 = vld [vmem:[%s983_s1 + $0x134] ss:$8 sps:$4 sm:$0xff]   ;;  %v662_v15 = vld [vmem:[%s983_s1 + $0x130] ss:$8 sps:$4 sm:$0xff]   ;;  %v665_v17 = vld [vmem:[%s983_s1 + $0x144] ss:$8 sps:$4 sm:$0xff]  }
   0x7   :  { %437 = vmatpush1.bf16.msra.mxu1 %v649_v6  ;;  %v667_v18 = vld [vmem:[%s983_s1 + $0x40] ss:$8 sps:$4 sm:$0xff]   ;;  %v669_v20 = vld [vmem:[%s983_s1 + $0x54] ss:$8 sps:$4 sm:$0xff]   ;;  %v673_v22 = vld [vmem:[%s983_s1 + $0x50] ss:$8 sps:$4 sm:$0xff]   ;;  %v10_v6 = vstv %s985_s4 }
   0x8   :  { %478 = vmatpush1.bf16.msra.mxu0 %v650_v7  ;;  %438 = vmatprep.subr.bf16.mxu1 %v651_v8  ;;  %v668_v19 = vld [vmem:[%s983_s1 + $0x140] ss:$8 sps:$4 sm:$0xff]   ;;  %v671_v21 = vld [vmem:[%s983_s1 + $0x154] ss:$8 sps:$4 sm:$0xff]   ;;  %v674_v23 = vld [vmem:[%s983_s1 + $0x150] ss:$8 sps:$4 sm:$0xff]   ;;  %v90_v7 = vlaneseq }
   0x9   :  { %479 = vmatprep.subr.bf16.mxu0 %v653_v9  ;;  %v675_v24 = vld [vmem:[%s983_s1 + $0x64] ss:$8 sps:$4 sm:$0xff]   ;;  %v679_v26 = vld [vmem:[%s983_s1 + $0x60] ss:$8 sps:$4 sm:$0xff]   ;;  %v681_v28 = vld [vmem:[%s983_s1 + $0x74] ss:$8 sps:$4 sm:$0xff]  }
   0xa   :  { %v677_v25 = vld [vmem:[%s983_s1 + $0x164] ss:$8 sps:$4 sm:$0xff]   ;;  %v680_v27 = vld [vmem:[%s983_s1 + $0x160] ss:$8 sps:$4 sm:$0xff]   ;;  %v683_v29 = vld [vmem:[%s983_s1 + $0x174] ss:$8 sps:$4 sm:$0xff]  }
   0xb   :  { %439 = vmatpush1.bf16.msra.mxu1 %v655_v10  ;;  %v685_v30 = vld [vmem:[%s983_s1 + $0x70] ss:$8 sps:$4 sm:$0xff]   ;;  %v687_v32 = vld [vmem:[%s983_s1 + $0x84] ss:$8 sps:$4 sm:$0xff]   ;;  %v691_v34 = vld [vmem:[%s983_s1 + $0x80] ss:$8 sps:$4 sm:$0xff]  }
   0xc   :  { %480 = vmatpush1.bf16.msra.mxu0 %v656_v11  ;;  %440 = vmatprep.subr.bf16.mxu1 %v657_v12  ;;  %v686_v31 = vld [vmem:[%s983_s1 + $0x170] ss:$8 sps:$4 sm:$0xff]   ;;  %v689_v33 = vld [vmem:[%s983_s1 + $0x184] ss:$8 sps:$4 sm:$0xff]   ;;  %v692_v35 = vld [vmem:[%s983_s1 + $0x180] ss:$8 sps:$4 sm:$0xff]  }
   0xd   :  { %481 = vmatprep.subr.bf16.mxu0 %v659_v13  ;;  %v693_v36 = vld [vmem:[%s983_s1 + $0x94] ss:$8 sps:$4 sm:$0xff]   ;;  %v697_v38 = vld [vmem:[%s983_s1 + $0x90] ss:$8 sps:$4 sm:$0xff]   ;;  %v699_v40 = vld [vmem:[%s983_s1 + $0xa4] ss:$8 sps:$4 sm:$0xff]  }
   0xe   :  { %v695_v37 = vld [vmem:[%s983_s1 + $0x194] ss:$8 sps:$4 sm:$0xff]   ;;  %v698_v39 = vld [vmem:[%s983_s1 + $0x190] ss:$8 sps:$4 sm:$0xff]   ;;  %v701_v41 = vld [vmem:[%s983_s1 + $0x1a4] ss:$8 sps:$4 sm:$0xff]  }
   0xf   :  { %441 = vmatpush1.bf16.msra.mxu1 %v661_v14  ;;  %v703_v42 = vld [vmem:[%s983_s1 + $0xa0] ss:$8 sps:$4 sm:$0xff]   ;;  %v705_v44 = vld [vmem:[%s983_s1 + $0xb4] ss:$8 sps:$4 sm:$0xff]   ;;  %v709_v49 = vld [vmem:[%s983_s1 + $0xb0] ss:$8 sps:$4 sm:$0xff]  }
  0x10   :  { %482 = vmatpush1.bf16.msra.mxu0 %v662_v15  ;;  %442 = vmatprep.subr.bf16.mxu1 %v663_v16  ;;  %v704_v43 = vld [vmem:[%s983_s1 + $0x1a0] ss:$8 sps:$4 sm:$0xff]   ;;  %v707_v45 = vld [vmem:[%s983_s1 + $0x1b4] ss:$8 sps:$4 sm:$0xff]   ;;  %v710_v50 = vld [vmem:[%s983_s1 + $0x1b0] ss:$8 sps:$4 sm:$0xff]  }
  0x11   :  { %483 = vmatprep.subr.bf16.mxu0 %v665_v17  ;;  %v22_v46 = vld [vmem:[%s984_s0] sm:$0xff]  ;;  %v23_v48 = vld [vmem:[%s984_s0 + $0x8] sm:$0xff]  ;;  %v717_v56 = vld [vmem:[%s983_s1 + $0xd4] ss:$8 sps:$4 sm:$0xff]   ;;  %11 = vst [vmem:[#allocation2] sm:$0x1] %v10_v6 }
  0x12   :  { %v567_v47 = vcombine.high %v22_v46, %v22_v46  ;;  %v569_v51 = vcombine.high %v23_v48, %v23_v48  ;;  %v711_v52 = vld [vmem:[%s983_s1 + $0xc4] ss:$8 sps:$4 sm:$0xff]   ;;  %v715_v54 = vld [vmem:[%s983_s1 + $0xc0] ss:$8 sps:$4 sm:$0xff]   ;;  %v719_v57 = vld [vmem:[%s983_s1 + $0x1d4] ss:$8 sps:$4 sm:$0xff]   ;;  %v566_v4 = vcombine.low %v22_v46, %v22_v46  ;;  %v568_v5 = vcombine.low %v23_v48, %v23_v48 }
  0x13   :  { %443 = vmatpush1.bf16.msra.mxu1 %v667_v18  ;;  %v713_v53 = vld [vmem:[%s983_s1 + $0x1c4] ss:$8 sps:$4 sm:$0xff]   ;;  %v716_v55 = vld [vmem:[%s983_s1 + $0x1c0] ss:$8 sps:$4 sm:$0xff]   ;;  %v721_v58 = vld [vmem:[%s983_s1 + $0xd0] ss:$8 sps:$4 sm:$0xff]  }
  0x14   :  { %484 = vmatpush1.bf16.msra.mxu0 %v668_v19  ;;  %444 = vmatprep.subr.bf16.mxu1 %v669_v20  ;;  %v722_v59 = vld [vmem:[%s983_s1 + $0x1d0] ss:$8 sps:$4 sm:$0xff]   ;;  %v723_v60 = vld [vmem:[%s983_s1 + $0xe4] ss:$8 sps:$4 sm:$0xff]   ;;  %v727_v62 = vld [vmem:[%s983_s1 + $0xe0] ss:$8 sps:$4 sm:$0xff]  }
  0x15   :  { %485 = vmatprep.subr.bf16.mxu0 %v671_v21  ;;  %466 = vmatprep.mubr.bf16.mxu1 %v567_v47  ;;  %v725_v61 = vld [vmem:[%s983_s1 + $0x1e4] ss:$8 sps:$4 sm:$0xff]   ;;  %v728_v63 = vld [vmem:[%s983_s1 + $0x1e0] ss:$8 sps:$4 sm:$0xff]   ;;  %v729_v0 = vld [vmem:[%s983_s1 + $0xf4] ss:$8 sps:$4 sm:$0xff]  }
  0x16   :  { %507 = vmatprep.mubr.bf16.mxu0 %v569_v51  ;;  %v731_v1 = vld [vmem:[%s983_s1 + $0x1f4] ss:$8 sps:$4 sm:$0xff]   ;;  %v733_v2 = vld [vmem:[%s983_s1 + $0xf0] ss:$8 sps:$4 sm:$0xff]   ;;  %v91_v8 = vshrl.u32 %v90_v7, 7 }
  0x17   :  { %445 = vmatpush1.bf16.msra.mxu1 %v673_v22  ;;  %v734_v3 = vld [vmem:[%s983_s1 + $0x1f0] ss:$8 sps:$4 sm:$0xff]   ;;  %v88_v10 = vld [vmem:[%s986_s2] sm:$0x3] }
  0x18   :  { %486 = vmatpush1.bf16.msra.mxu0 %v674_v23  ;;  %446 = vmatprep.subr.bf16.mxu1 %v675_v24  ;;  %v92_v9 = vsub.s32 0, %v91_v8  ;;  %v96_v11 = vsub.s32 1, %v91_v8 }
  0x19   :  { %487 = vmatprep.subr.bf16.mxu0 %v677_v25 }
  0x1a   :  { %v93_v12 = vrot.slane %v88_v10, %v92_v9  ;;  %v97_v13 = vrot.slane %v88_v10, %v96_v11 }
  0x1b   :  { %447 = vmatpush1.bf16.msra.mxu1 %v679_v26  ;;  %v526_v26 = vld [vmem:[%s987_s3] sm:$0x3] }
  0x1c   :  { %488 = vmatpush1.bf16.msra.mxu0 %v680_v27  ;;  %448 = vmatprep.subr.bf16.mxu1 %v681_v28 }
  0x1d   :  { %489 = vmatprep.subr.bf16.mxu0 %v683_v29 }
  0x1f   :  { %449 = vmatpush1.bf16.msra.mxu1 %v685_v30  ;;  %v531_v30 = vrot.slane %v526_v26, %v92_v9 }
  0x20   :  { %490 = vmatpush1.bf16.msra.mxu0 %v686_v31  ;;  %450 = vmatprep.subr.bf16.mxu1 %v687_v32  ;;  %v535_v32 = vrot.slane %v526_v26, %v96_v11 }
  0x21   :  { %491 = vmatprep.subr.bf16.mxu0 %v689_v33 }
  0x23   :  { %451 = vmatpush1.bf16.msra.mxu1 %v691_v34 }
  0x24   :  { %492 = vmatpush1.bf16.msra.mxu0 %v692_v35  ;;  %452 = vmatprep.subr.bf16.mxu1 %v693_v36 }
  0x25   :  { %493 = vmatprep.subr.bf16.mxu0 %v695_v37 }
  0x27   :  { %453 = vmatpush1.bf16.msra.mxu1 %v697_v38 }
  0x28   :  { %494 = vmatpush1.bf16.msra.mxu0 %v698_v39  ;;  %454 = vmatprep.subr.bf16.mxu1 %v699_v40  ;;  %v634_v40 = vld [vmem:[#allocation2] ss:$0 sm:$0xff] }
  0x29   :  { %495 = vmatprep.subr.bf16.mxu0 %v701_v41 }
  0x2b   :  { %455 = vmatpush1.bf16.msra.mxu1 %v703_v42 }
  0x2c   :  { %496 = vmatpush1.bf16.msra.mxu0 %v704_v43  ;;  %456 = vmatprep.subr.bf16.mxu1 %v705_v44 }
  0x2d   :  { %497 = vmatprep.subr.bf16.mxu0 %v707_v45 }
  0x2f   :  { %457 = vmatpush1.bf16.msra.mxu1 %v709_v49 }
  0x30   :  { %498 = vmatpush1.bf16.msra.mxu0 %v710_v50  ;;  %458 = vmatprep.subr.bf16.mxu1 %v711_v52 }
  0x31   :  { %499 = vmatprep.subr.bf16.mxu0 %v713_v53 }
  0x33   :  { %459 = vmatpush1.bf16.msra.mxu1 %v715_v54 }
  0x34   :  { %500 = vmatpush1.bf16.msra.mxu0 %v716_v55  ;;  %460 = vmatprep.subr.bf16.mxu1 %v717_v56 }
  0x35   :  { %501 = vmatprep.subr.bf16.mxu0 %v719_v57 }
  0x37   :  { %461 = vmatpush1.bf16.msra.mxu1 %v721_v58 }
  0x38   :  { %502 = vmatpush1.bf16.msra.mxu0 %v722_v59  ;;  %462 = vmatprep.subr.bf16.mxu1 %v723_v60 }
  0x39   :  { %503 = vmatprep.subr.bf16.mxu0 %v725_v61 }
  0x3b   :  { %463 = vmatpush1.bf16.msra.mxu1 %v727_v62 }
  0x3c   :  { %504 = vmatpush1.bf16.msra.mxu0 %v728_v63  ;;  %464 = vmatprep.subr.bf16.mxu1 %v729_v0 }
  0x3d   :  { %505 = vmatprep.subr.bf16.mxu0 %v731_v1 }
  0x3f   :  { %465 = vmatpush1.bf16.msra.mxu1 %v733_v2 }
  0x40   :  { %506 = vmatpush1.bf16.msra.mxu0 %v734_v3 }
  0x42   :  { %467 = vmatmul.mubr.bf16.vlgmr.msra.gmra.mrb[0].mxu1 %v566_v4 }
  0x43   :  { %508 = vmatmul.mubr.bf16.vlgmr.msra.gmra.mrb[0].mxu0 %v568_v5 }
 0x115   :  { %v468_v14 = vpop.f32.mrb[0].mxu1 }
 0x116   :  { %v509_v15 = vpop.f32.mrb[0].mxu0  ;;  %v469_v16 = vadd.f32 %v468_v14, %v93_v12  ;;  %v470_v17 = vpop.f32.mrb[1].mxu1 }
 0x117   :  { %v511_v18 = vpop.f32.mrb[1].mxu0  ;;  %v471_v19 = vadd.f32 %v470_v17, %v97_v13  ;;  %v472_v20 = vpop.f32.mrb[2].mxu1 }
 0x118   :  { %v513_v21 = vpop.f32.mrb[2].mxu0  ;;  %v510_v22 = vadd.f32 %v509_v15, %v469_v16  ;;  %v473_v23 = vpop.f32.mrb[3].mxu1 }
 0x119   :  { %v514_v24 = vpop.f32.mrb[3].mxu0  ;;  %v512_v25 = vadd.f32 %v511_v18, %v471_v19 }
 0x11a   :  { %v518_v27 = vrot.slane %v510_v22, 2 }
 0x11b   :  { %v519_v28 = vrot.slane %v512_v25, 2 }
 0x11c   :  { %v522_v29 = vsub.f32 %v510_v22, %v518_v27 }
 0x11d   :  { %v523_v31 = vsub.f32 %v512_v25, %v519_v28 }
 0x11e   :  { %v524_v33 = vand.u32 2147483647, %v522_v29 }
 0x11f   :  { %v525_v34 = vand.u32 2147483647, %v523_v31 }
 0x120   :  { %v538_v35 = vmul.f32 %v531_v30, %v524_v33 }
 0x121   :  { %v539_v36 = vmul.f32 %v535_v32, %v525_v34 }
 0x122   :  { %v541_v37 = vsel %vm540_vm0, %v538_v35, 0.0 }
 0x123   :  { %v542_v38 = vsel %vm540_vm0, %v539_v36, 0.0 }
 0x124   :  { %v543_v39 = vadd.f32 %v542_v38, %v541_v37 }
 0x126   :  { %544 = vadd.xlane.f32.xlu0 %v543_v39 }
 0x1b3   :  { %v545_v41 = vpop.xlane.xlu0 %544 }
 0x1b4   :  { %v553_v42 = vadd.f32 %v634_v40, %v545_v41 }
 0x1b6   :  { %v554_v43 = vsub.f32 0.0, %v553_v42 }
 0x1b8   :  { %v555_v44 = vmul.f32 1.442695, %v554_v43 }
 0x1ba   :  { %739 = vpow2.f32 %v555_v44 }
 0x1c4   :  { %v740_v45 = vpop.eup %739 }
 0x1c5   :  { %v557_v46 = vadd.f32 1.0, %v740_v45 }
 0x1c7   :  { %741 = vrcp.f32 %v557_v46 }
 0x1d1   :  { %v742_v47 = vpop.eup %741 }
 0x1d2   :  { %561 = vst.msk [vmem:[%s988_s5] sm:$0x3] %vm560_vm1, %v742_v47 }

</bundles_post_ra>
